<compile_context>
chip_gen: v6e
topology: v6e:2x2x1
jax: 0.10.0
libtpu: 0.0.40
codegen_flags: <defaults>
</compile_context>

<pallas_src>
import numpy as np
import jax
import jax.numpy as jnp
from jax import lax
from jax.experimental import pallas as pl
from jax.experimental.pallas import tpu as pltpu

# ----------------------- model configuration (small synthetic shapes) ----------
B = 2              # batch_size
N = 16             # n_nodes
CIN, COUT = 6, 2   # coords_dim
CIN_PAD = 8        # input features padded to sublane granularity
HID = 32           # hid_dim
HEADS = 8
HDIM = HID // HEADS
NLAYERS = 4
NEG_SLOPE = 0.2    # GATv2Conv default negative_slope
LN_EPS = 1e-5      # PyTorch LayerNorm default eps
OUT_PAD = 128      # lane-dense padded width of the kernel output slab

BN = B * N         # 32  node rows
NTH = N * HID      # 512 lane-dense (tgt, channel) width
NTHD = N * HEADS   # 128 lane-dense (tgt, head) width


# ----------------------- fused Pallas kernel -----------------------------------
def _fused_gatv2_kernel(x_ref, win_ref, wlr_ref, ebc_ref, attbd_ref,
                        agg_ref, sel_ref, wproj_ref, outw_ref, o_ref):
    f32 = jnp.float32

    def layer_norm(v, g, b):
        # E[x^2] - mu^2 form: the two 32-lane reductions are independent.
        mu = jnp.mean(v, axis=-1, keepdims=True)
        var = jnp.mean(v * v, axis=-1, keepdims=True) - mu * mu
        return (v - mu) * lax.rsqrt(var + LN_EPS) * g + b

    # ---- unpack consolidated weight slabs (all static, tile-aligned slices) ----
    win = win_ref[...]                              # (48, HID)
    w1 = win[0:CIN_PAD, :]                          # input linear 1 (8, HID)
    w2 = win[CIN_PAD:CIN_PAD + HID, :]              # input linear 2 (32, HID)
    vec = win[CIN_PAD + HID:CIN_PAD + HID + 6, :]   # 6 packed (1, HID) vectors

    bmask = agg_ref[0:BN, :]                        # (32, 32)   per-batch row-sum/broadcast
    sumblk = agg_ref[BN:BN + NTH, :]                # (512, 32)  stacked identities
    rowsel = sel_ref[0:BN, :]                       # (32, 512)  row t -> lane block t mask
    expand = sel_ref[BN:BN + NTHD, :]               # (128, 512) block-diag head->channel

    # ---------------- input MLP on all B*N nodes -------------------------------
    h = jnp.dot(x_ref[...], w1, preferred_element_type=f32) + vec[0:1, :]
    h = layer_norm(h, vec[1:2, :], vec[2:3, :])
    h = jnp.maximum(h, 0.0)
    h = jnp.dot(h, w2, preferred_element_type=f32) + vec[3:4, :]
    h = layer_norm(h, vec[4:5, :], vec[5:6, :])                       # (B*N, HID)

    # ---------------- GATv2 layers (static unroll, batch-vectorized) -----------
    for l in range(NLAYERS):
        h_prev = h
        wlr = wlr_ref[l]                                              # (HID+1, 2*N*HID)
        wp = wproj_ref[l]                                             # (HID+4, HID)

        # fused lin_l | lin_r, already replicated over target blocks (one MXU op).
        hlr_bc = jnp.dot(h, wlr[0:HID, :], preferred_element_type=f32) + wlr[HID:HID + 1, :]
        hl_bc = hlr_bc[:, 0:NTH]         # [(b,s), t*HID+d] = lin_l(h)[(b,s), d]
        hr_pre = hlr_bc[:, NTH:2 * NTH]  # [(b,r), t*HID+d] = lin_r(h)[(b,r), d]
        # place each target row's lin_r into its own lane block, then per-batch sum
        # -> hr_bc[(b,s), t*HID+d] = lin_r(h)[(b,t), d]   (pure matmul, no relayout)
        hr_bc = jnp.dot(bmask, hr_pre * rowsel, preferred_element_type=f32)

        # GATv2 scores: s = leaky_relu(x_j + x_i + e_ij), fully lane-dense (32, 512)
        s = hl_bc + hr_bc + ebc_ref[l]
        s = jnp.where(s > 0, s, NEG_SLOPE * s)

        # per-(target, head) logits via block-diagonal attention matrix (MXU)
        logits = jnp.dot(s, attbd_ref[l], preferred_element_type=f32)  # (32, 128)

        # softmax over source nodes (sublanes, segmented per batch)
        lg3 = logits.reshape(B, N, NTHD)
        m = jnp.max(lg3, axis=1, keepdims=True)
        p = jnp.exp(lg3 - m)
        dsum = jnp.sum(p, axis=1, keepdims=True)
        alpha = (p * pl.reciprocal(dsum, approx=True)).reshape(BN, NTHD)

        # head -> channel expansion (block-diag MXU), weight messages, aggregate
        alpha_full = jnp.dot(alpha, expand, preferred_element_type=f32)   # (32, 512)
        weighted = alpha_full * hl_bc
        agg = jnp.dot(bmask, weighted, preferred_element_type=f32)        # per-batch src sum
        conv = jnp.dot(agg * rowsel, sumblk, preferred_element_type=f32)  # (B*N, HID)
        conv = conv + wp[HID:HID + 1, :]                                  # GATv2Conv bias

        # projection -> LayerNorm -> ReLU -> residual
        h = jnp.dot(conv, wp[0:HID, :], preferred_element_type=f32) + wp[HID + 1:HID + 2, :]
        h = layer_norm(h, wp[HID + 2:HID + 3, :], wp[HID + 3:HID + 4, :])
        h = jnp.maximum(h, 0.0)
        h = h + h_prev

    # output head: single lane-dense (32, 128) store (sliced to COUT in wrapper)
    outw = outw_ref[...]
    o_ref[...] = jnp.dot(h, outw[0:HID, :], preferred_element_type=f32) + outw[HID:HID + 1, :]


# ----------------------- shared preprocessing ----------------------------------
def edge_features_with_self_loop_mean(edge_emb, edge_cats, n):
    """edge_attr[src, tgt, :]; GATv2Conv add_self_loops(fill_value='mean')."""
    e3 = edge_emb[edge_cats]                                     # (N, N, HID)
    col_sum = jnp.sum(e3, axis=0)                                # per-target sum over src
    diag = e3[jnp.arange(n), jnp.arange(n)]
    loop_attr = (col_sum - diag) / (n - 1)
    eye = jnp.eye(n, dtype=jnp.float32)[:, :, None]
    return e3 * (1.0 - eye) + loop_attr[None, :, :] * eye


def _head_selector():
    d_ids = jnp.arange(HID) // HDIM
    hsel = (d_ids[:, None] == jnp.arange(HEADS)[None, :]).astype(jnp.float32)  # (HID, HEADS)
    return hsel, hsel.T                                                        # and (HEADS, HID)


# ----------------------- one-time weight fusion (hoisted off the call path) ----
def build_fused_params(params, edge_cats):
    f32 = jnp.float32
    e_used = edge_features_with_self_loop_mean(params["edge_emb"], edge_cats, N)
    e2d = e_used.reshape(N * N, HID)

    hsel, hsel_t = _head_selector()
    eyeN = jnp.eye(N, dtype=f32)

    # layer-independent structural constants (all consumed by MXU matmuls)
    bmask = jnp.kron(jnp.eye(B, dtype=f32), jnp.ones((N, N), f32))   # (BN, BN)
    sumblk = jnp.tile(jnp.eye(HID, dtype=f32), (N, 1))               # (N*HID, HID)
    rowsel = jnp.tile(jnp.repeat(eyeN, HID, axis=1), (B, 1))         # (BN, N*HID)
    expand = jnp.kron(eyeN, hsel_t)                                  # (N*HEADS, N*HID)
    aggmat = jnp.concatenate([bmask, sumblk], axis=0)                # (544, 32)
    selmat = jnp.concatenate([rowsel, expand], axis=0)               # (160, 512)

    # input MLP pack: [w_in1 (padded K), w_in2, b1, g1, be1, b2, g2, be2, pad]
    w_in1_pad = jnp.zeros((CIN_PAD, HID), f32).at[:CIN, :].set(params["in_w1"])
    mlp_vecs = jnp.stack([params["in_b1"], params["in_g1"], params["in_be1"],
                          params["in_b2"], params["in_g2"], params["in_be2"]], axis=0)
    win_pack = jnp.concatenate(
        [w_in1_pad, params["in_w2"], mlp_vecs, jnp.zeros((2, HID), f32)], axis=0)  # (48, HID)

    wlr_list, ebc_list, attbd_list, wproj_list = [], [], [], []
    for lp in params["layers"]:
        # lin_l / lin_r fused and pre-replicated over the N target lane blocks
        wl_tile = jnp.tile(lp["lin_l_w"], (1, N))                    # (HID, N*HID)
        wr_tile = jnp.tile(lp["lin_r_w"], (1, N))
        bl_tile = jnp.tile(lp["lin_l_b"], (N,))
        br_tile = jnp.tile(lp["lin_r_b"], (N,))
        wlr = jnp.concatenate([wl_tile, wr_tile], axis=1)            # (HID, 2*N*HID)
        blr = jnp.concatenate([bl_tile, br_tile])[None, :]           # (1, 2*N*HID)
        wlr_list.append(jnp.concatenate([wlr, blr], axis=0))         # (HID+1, 2*N*HID)

        # lin_edge applied once at init; flattened [src, tgt*HID+d] and tiled over batch
        e_lin = jnp.dot(e2d, lp["lin_e_w"]).reshape(N, N * HID)
        ebc_list.append(jnp.tile(e_lin, (B, 1)))                     # (B*N, N*HID)

        # block-diagonal per-(target, head) attention matrix
        att_mat = hsel * lp["att"].reshape(HID)[:, None]             # (HID, HEADS)
        attbd_list.append(jnp.kron(eyeN, att_mat))                   # (N*HID, N*HEADS)

        lvec = jnp.stack([lp["conv_bias"], lp["proj_b"], lp["ln_g"], lp["ln_b"]], axis=0)
        wproj_list.append(jnp.concatenate([lp["proj_w"], lvec], axis=0))  # (HID+4, HID)

    out_w_pad = jnp.zeros((HID, OUT_PAD), f32).at[:, :COUT].set(params["out_w"])
    out_b_pad = jnp.zeros((1, OUT_PAD), f32).at[:, :COUT].set(params["out_b"])
    out_pack = jnp.concatenate([out_w_pad, out_b_pad], axis=0)       # (HID+1, OUT_PAD)

    return dict(
        win=win_pack,
        wlr=jnp.stack(wlr_list),        # (L, HID+1, 2*N*HID)
        ebc=jnp.stack(ebc_list),        # (L, B*N, N*HID)
        attbd=jnp.stack(attbd_list),    # (L, N*HID, N*HEADS)
        aggmat=aggmat, selmat=selmat,
        wproj=jnp.stack(wproj_list),    # (L, HID+4, HID)
        outw=out_pack,
    )


# ----------------------- jitted Pallas wrapper ----------------------------------
@jax.jit
def gatv2_forward_pallas(fused, x):
    Bc, Nc, _ = x.shape
    x2 = x.reshape(Bc * Nc, CIN)
    x_pad = jnp.concatenate([x2, jnp.zeros((Bc * Nc, CIN_PAD - CIN), x2.dtype)], axis=1)

    args = (x_pad, fused["win"], fused["wlr"], fused["ebc"], fused["attbd"],
            fused["aggmat"], fused["selmat"], fused["wproj"], fused["outw"])

    out_pad = pl.pallas_call(
        _fused_gatv2_kernel,
        out_shape=jax.ShapeDtypeStruct((Bc * Nc, OUT_PAD), jnp.float32),
        in_specs=[pl.BlockSpec(memory_space=pltpu.MemorySpace.VMEM)] * len(args),
        out_specs=pl.BlockSpec(memory_space=pltpu.MemorySpace.VMEM),
    )(*args)

    # dropout (p_dropout=None) is inactive -> identity
    return out_pad[:, :COUT].reshape(Bc, Nc, COUT)


# ----------------------- pure-JAX numerical reference ---------------------------
def gatv2_forward_ref(params, x, edge_cats):
    Bc, Nc, _ = x.shape
    e_used = edge_features_with_self_loop_mean(params["edge_emb"], edge_cats, Nc)
    hsel, hsel_t = _head_selector()

    def linear(v, w, b):
        return jnp.dot(v, w) + b

    def layer_norm(v, g, b):
        mu = jnp.mean(v, axis=-1, keepdims=True)
        var = jnp.mean((v - mu) ** 2, axis=-1, keepdims=True)
        return (v - mu) / jnp.sqrt(var + LN_EPS) * g + b

    h = x.reshape(Bc * Nc, CIN)
    h = linear(h, params["in_w1"], params["in_b1"])
    h = layer_norm(h, params["in_g1"], params["in_be1"])
    h = jax.nn.relu(h)
    h = linear(h, params["in_w2"], params["in_b2"])
    h = layer_norm(h, params["in_g2"], params["in_be2"])

    for lp in params["layers"]:
        h_prev = h
        hl = linear(h, lp["lin_l_w"], lp["lin_l_b"]).reshape(Bc, Nc, HID)
        hr = linear(h, lp["lin_r_w"], lp["lin_r_b"]).reshape(Bc, Nc, HID)
        e_lin = jnp.dot(e_used.reshape(Nc * Nc, HID), lp["lin_e_w"]).reshape(Nc, Nc, HID)
        att_mat = hsel * lp["att"].reshape(HID)[:, None]
        s = hl[:, :, None, :] + hr[:, None, :, :] + e_lin[None, :, :, :]
        s = jnp.where(s > 0, s, NEG_SLOPE * s)
        logits = jnp.einsum("bstd,dh->bsth", s, att_mat)
        logits = logits - jnp.max(logits, axis=1, keepdims=True)
        p = jnp.exp(logits)
        alpha = p / jnp.sum(p, axis=1, keepdims=True)
        alpha_full = jnp.einsum("bsth,hd->bstd", alpha, hsel_t)
        out = jnp.sum(alpha_full * hl[:, :, None, :], axis=1)      # (B, N, HID)
        h = out.reshape(Bc * Nc, HID) + lp["conv_bias"]
        h = linear(h, lp["proj_w"], lp["proj_b"])
        h = layer_norm(h, lp["ln_g"], lp["ln_b"])
        h = jax.nn.relu(h)
        h = h + h_prev

    return linear(h, params["out_w"], params["out_b"]).reshape(Bc, Nc, COUT)


# ----------------------- graph / parameter construction -------------------------
def build_edge_categories(n_nodes, orbits):
    """Dense (sparse=False) edge categories: find_categories() / index() semantics."""
    pos = np.zeros(n_nodes, dtype=np.int32)
    for a, orb in enumerate(orbits):
        for b in orb:
            pos[b] = a
    k = len(orbits)
    cats = np.zeros((n_nodes, n_nodes), dtype=np.int32)
    for i in range(n_nodes):
        for j in range(n_nodes):
            if i == j:
                cats[i, j] = k * k + pos[i]
            else:
                cats[i, j] = pos[i] * k + pos[j]
    return cats, k * k + k


def init_params(key, num_cats):
    keys = jax.random.split(key, 64)
    it = iter(keys)

    def nrm(shape, scale=0.1):
        return scale * jax.random.normal(next(it), shape, dtype=jnp.float32)

    params = {
        "edge_emb": nrm((num_cats, HID)),                       # nn.Embedding weight
        "in_w1": nrm((CIN, HID)), "in_b1": nrm((HID,)),
        "in_g1": jnp.ones((HID,), jnp.float32), "in_be1": jnp.zeros((HID,), jnp.float32),
        "in_w2": nrm((HID, HID)), "in_b2": nrm((HID,)),
        "in_g2": jnp.ones((HID,), jnp.float32), "in_be2": jnp.zeros((HID,), jnp.float32),
        "out_w": nrm((HID, COUT)), "out_b": nrm((COUT,)),
        "layers": [],
    }
    for _ in range(NLAYERS):
        params["layers"].append(dict(
            lin_l_w=nrm((HID, HID)), lin_l_b=nrm((HID,)),       # GATv2Conv.lin_l
            lin_r_w=nrm((HID, HID)), lin_r_b=nrm((HID,)),       # GATv2Conv.lin_r
            lin_e_w=nrm((HID, HID)),                            # GATv2Conv.lin_edge (no bias)
            att=nrm((HEADS, HDIM)),                             # GATv2Conv.att
            conv_bias=nrm((HID,)),                              # GATv2Conv.bias
            proj_w=nrm((HID, HID)), proj_b=nrm((HID,)),         # projection_layers[l]
            ln_g=jnp.ones((HID,), jnp.float32), ln_b=jnp.zeros((HID,), jnp.float32),
        ))
    return params


# ----------------------- main ----------------------------------------------------
if __name__ == "__main__":
    key = jax.random.PRNGKey(0)
    kx, kp = jax.random.split(key)

    orbits = [list(range(N // 2)), list(range(N // 2, N))]
    edge_cats_np, num_cats = build_edge_categories(N, orbits)
    edge_cats = jnp.asarray(edge_cats_np, dtype=jnp.int32)

    params = init_params(kp, num_cats)
    x = jax.random.normal(kx, (B, N, CIN), dtype=jnp.float32)

    # one-time (init) weight fusion -- off the per-call path
    fused = jax.tree_util.tree_map(jax.block_until_ready, build_fused_params(params, edge_cats))

    out = gatv2_forward_pallas(fused, x)
    out = jax.block_until_ready(out)
    assert out.shape == (B, N, COUT)

    ref = gatv2_forward_ref(params, x, edge_cats)
    ref = jax.block_until_ready(ref)
    if not bool(jnp.allclose(out, ref, atol=5e-3, rtol=5e-3)):
        raise AssertionError("Pallas output does not match JAX reference")

    print("KERNEL_OK")
</pallas_src>

<mosaic_0001>
module attributes {stable_mosaic.version = 11 : i64} {
  func.func @_fused_gatv2_kernel(%arg0: memref<32x8xf32, #tpu.memory_space<vmem>>, %arg1: memref<48x32xf32, #tpu.memory_space<vmem>>, %arg2: memref<4x33x1024xf32, #tpu.memory_space<vmem>>, %arg3: memref<4x32x512xf32, #tpu.memory_space<vmem>>, %arg4: memref<4x512x128xf32, #tpu.memory_space<vmem>>, %arg5: memref<544x32xf32, #tpu.memory_space<vmem>>, %arg6: memref<160x512xf32, #tpu.memory_space<vmem>>, %arg7: memref<4x36x32xf32, #tpu.memory_space<vmem>>, %arg8: memref<33x128xf32, #tpu.memory_space<vmem>>, %arg9: memref<32x128xf32, #tpu.memory_space<vmem>>) attributes {dimension_semantics = [], scalar_prefetch = 0 : i64, scratch_operands = 0 : i64, tpu.core_type = #tpu.core_type<tc>} {
    %c0 = arith.constant 0 : index
    %c0_0 = arith.constant 0 : index
    %0 = vector.load %arg1[%c0, %c0_0] : memref<48x32xf32, #tpu.memory_space<vmem>>, vector<48x32xf32>
    %1 = vector.extract_strided_slice %0 {offsets = [0, 0], sizes = [8, 32], strides = [1, 1]} : vector<48x32xf32> to vector<8x32xf32>
    %2 = vector.extract_strided_slice %0 {offsets = [8, 0], sizes = [32, 32], strides = [1, 1]} : vector<48x32xf32> to vector<32x32xf32>
    %3 = vector.extract_strided_slice %0 {offsets = [40, 0], sizes = [6, 32], strides = [1, 1]} : vector<48x32xf32> to vector<6x32xf32>
    %c0_1 = arith.constant 0 : index
    %c0_2 = arith.constant 0 : index
    %4 = vector.load %arg5[%c0_1, %c0_2] : memref<544x32xf32, #tpu.memory_space<vmem>>, vector<32x32xf32>
    %c32 = arith.constant 32 : index
    %c0_3 = arith.constant 0 : index
    %5 = vector.load %arg5[%c32, %c0_3] : memref<544x32xf32, #tpu.memory_space<vmem>>, vector<512x32xf32>
    %c0_4 = arith.constant 0 : index
    %c0_5 = arith.constant 0 : index
    %6 = vector.load %arg6[%c0_4, %c0_5] : memref<160x512xf32, #tpu.memory_space<vmem>>, vector<32x512xf32>
    %c32_6 = arith.constant 32 : index
    %c0_7 = arith.constant 0 : index
    %7 = vector.load %arg6[%c32_6, %c0_7] : memref<160x512xf32, #tpu.memory_space<vmem>>, vector<128x512xf32>
    %c0_8 = arith.constant 0 : index
    %c0_9 = arith.constant 0 : index
    %8 = vector.load %arg0[%c0_8, %c0_9] : memref<32x8xf32, #tpu.memory_space<vmem>>, vector<32x8xf32>
    %cst = arith.constant dense<0.000000e+00> : vector<32x32xf32>
    %9 = tpu.matmul %8, %1, %cst {dimension_numbers = #tpu.dot_dimension_numbers<[1], [0], [0], [1], [0, 0, 1, 1], [], []>} : vector<32x8xf32>, vector<8x32xf32>, vector<32x32xf32> -> vector<32x32xf32>
    %10 = vector.extract_strided_slice %3 {offsets = [0, 0], sizes = [1, 32], strides = [1, 1]} : vector<6x32xf32> to vector<1x32xf32>
    %11 = vector.broadcast %10 : vector<1x32xf32> to vector<32x32xf32>
    %12 = arith.addf %9, %11 : vector<32x32xf32>
    %13 = vector.extract_strided_slice %3 {offsets = [1, 0], sizes = [1, 32], strides = [1, 1]} : vector<6x32xf32> to vector<1x32xf32>
    %14 = vector.extract_strided_slice %3 {offsets = [2, 0], sizes = [1, 32], strides = [1, 1]} : vector<6x32xf32> to vector<1x32xf32>
    %cst_10 = arith.constant dense<0.000000e+00> : vector<32xf32>
    %15 = vector.multi_reduction <add>, %12, %cst_10 [1] : vector<32x32xf32> to vector<32xf32>
    %16 = vector.shape_cast %15 : vector<32xf32> to vector<32x1xf32>
    %cst_11 = arith.constant 3.200000e+01 : f32
    %17 = vector.broadcast %cst_11 : f32 to vector<32x1xf32>
    %18 = arith.divf %16, %17 : vector<32x1xf32>
    %19 = arith.mulf %12, %12 : vector<32x32xf32>
    %cst_12 = arith.constant dense<0.000000e+00> : vector<32xf32>
    %20 = vector.multi_reduction <add>, %19, %cst_12 [1] : vector<32x32xf32> to vector<32xf32>
    %21 = vector.shape_cast %20 : vector<32xf32> to vector<32x1xf32>
    %cst_13 = arith.constant 3.200000e+01 : f32
    %22 = vector.broadcast %cst_13 : f32 to vector<32x1xf32>
    %23 = arith.divf %21, %22 : vector<32x1xf32>
    %24 = arith.mulf %18, %18 : vector<32x1xf32>
    %25 = arith.subf %23, %24 : vector<32x1xf32>
    %26 = vector.broadcast %18 : vector<32x1xf32> to vector<32x32xf32>
    %27 = arith.subf %12, %26 : vector<32x32xf32>
    %cst_14 = arith.constant 9.99999974E-6 : f32
    %28 = vector.broadcast %cst_14 : f32 to vector<32x1xf32>
    %29 = arith.addf %25, %28 : vector<32x1xf32>
    %30 = math.rsqrt %29 : vector<32x1xf32>
    %31 = vector.broadcast %30 : vector<32x1xf32> to vector<32x32xf32>
    %32 = arith.mulf %27, %31 : vector<32x32xf32>
    %33 = vector.broadcast %13 : vector<1x32xf32> to vector<32x32xf32>
    %34 = arith.mulf %32, %33 : vector<32x32xf32>
    %35 = vector.broadcast %14 : vector<1x32xf32> to vector<32x32xf32>
    %36 = arith.addf %34, %35 : vector<32x32xf32>
    %cst_15 = arith.constant 0.000000e+00 : f32
    %37 = vector.broadcast %cst_15 : f32 to vector<32x32xf32>
    %38 = arith.maximumf %36, %37 : vector<32x32xf32>
    %cst_16 = arith.constant dense<0.000000e+00> : vector<32x32xf32>
    %39 = tpu.matmul %38, %2, %cst_16 {dimension_numbers = #tpu.dot_dimension_numbers<[1], [0], [0], [1], [0, 0, 1, 1], [], []>} : vector<32x32xf32>, vector<32x32xf32>, vector<32x32xf32> -> vector<32x32xf32>
    %40 = vector.extract_strided_slice %3 {offsets = [3, 0], sizes = [1, 32], strides = [1, 1]} : vector<6x32xf32> to vector<1x32xf32>
    %41 = vector.broadcast %40 : vector<1x32xf32> to vector<32x32xf32>
    %42 = arith.addf %39, %41 : vector<32x32xf32>
    %43 = vector.extract_strided_slice %3 {offsets = [4, 0], sizes = [1, 32], strides = [1, 1]} : vector<6x32xf32> to vector<1x32xf32>
    %44 = vector.extract_strided_slice %3 {offsets = [5, 0], sizes = [1, 32], strides = [1, 1]} : vector<6x32xf32> to vector<1x32xf32>
    %cst_17 = arith.constant dense<0.000000e+00> : vector<32xf32>
    %45 = vector.multi_reduction <add>, %42, %cst_17 [1] : vector<32x32xf32> to vector<32xf32>
    %46 = vector.shape_cast %45 : vector<32xf32> to vector<32x1xf32>
    %cst_18 = arith.constant 3.200000e+01 : f32
    %47 = vector.broadcast %cst_18 : f32 to vector<32x1xf32>
    %48 = arith.divf %46, %47 : vector<32x1xf32>
    %49 = arith.mulf %42, %42 : vector<32x32xf32>
    %cst_19 = arith.constant dense<0.000000e+00> : vector<32xf32>
    %50 = vector.multi_reduction <add>, %49, %cst_19 [1] : vector<32x32xf32> to vector<32xf32>
    %51 = vector.shape_cast %50 : vector<32xf32> to vector<32x1xf32>
    %cst_20 = arith.constant 3.200000e+01 : f32
    %52 = vector.broadcast %cst_20 : f32 to vector<32x1xf32>
    %53 = arith.divf %51, %52 : vector<32x1xf32>
    %54 = arith.mulf %48, %48 : vector<32x1xf32>
    %55 = arith.subf %53, %54 : vector<32x1xf32>
    %56 = vector.broadcast %48 : vector<32x1xf32> to vector<32x32xf32>
    %57 = arith.subf %42, %56 : vector<32x32xf32>
    %cst_21 = arith.constant 9.99999974E-6 : f32
    %58 = vector.broadcast %cst_21 : f32 to vector<32x1xf32>
    %59 = arith.addf %55, %58 : vector<32x1xf32>
    %60 = math.rsqrt %59 : vector<32x1xf32>
    %61 = vector.broadcast %60 : vector<32x1xf32> to vector<32x32xf32>
    %62 = arith.mulf %57, %61 : vector<32x32xf32>
    %63 = vector.broadcast %43 : vector<1x32xf32> to vector<32x32xf32>
    %64 = arith.mulf %62, %63 : vector<32x32xf32>
    %65 = vector.broadcast %44 : vector<1x32xf32> to vector<32x32xf32>
    %66 = arith.addf %64, %65 : vector<32x32xf32>
    %c0_22 = arith.constant 0 : index
    %c0_23 = arith.constant 0 : index
    %c0_24 = arith.constant 0 : index
    %67 = vector.load %arg2[%c0_22, %c0_23, %c0_24] : memref<4x33x1024xf32, #tpu.memory_space<vmem>>, vector<1x33x1024xf32>
    %68 = vector.shape_cast %67 : vector<1x33x1024xf32> to vector<33x1024xf32>
    %c0_25 = arith.constant 0 : index
    %c0_26 = arith.constant 0 : index
    %c0_27 = arith.constant 0 : index
    %69 = vector.load %arg7[%c0_25, %c0_26, %c0_27] : memref<4x36x32xf32, #tpu.memory_space<vmem>>, vector<1x36x32xf32>
    %70 = vector.shape_cast %69 : vector<1x36x32xf32> to vector<36x32xf32>
    %71 = vector.extract_strided_slice %68 {offsets = [0, 0], sizes = [32, 1024], strides = [1, 1]} : vector<33x1024xf32> to vector<32x1024xf32>
    %cst_28 = arith.constant dense<0.000000e+00> : vector<32x1024xf32>
    %72 = tpu.matmul %66, %71, %cst_28 {dimension_numbers = #tpu.dot_dimension_numbers<[1], [0], [0], [1], [0, 0, 1, 1], [], []>} : vector<32x32xf32>, vector<32x1024xf32>, vector<32x1024xf32> -> vector<32x1024xf32>
    %73 = vector.extract_strided_slice %68 {offsets = [32, 0], sizes = [1, 1024], strides = [1, 1]} : vector<33x1024xf32> to vector<1x1024xf32>
    %74 = vector.broadcast %73 : vector<1x1024xf32> to vector<32x1024xf32>
    %75 = arith.addf %72, %74 : vector<32x1024xf32>
    %76 = vector.extract_strided_slice %75 {offsets = [0, 0], sizes = [32, 512], strides = [1, 1]} : vector<32x1024xf32> to vector<32x512xf32>
    %77 = vector.extract_strided_slice %75 {offsets = [0, 512], sizes = [32, 512], strides = [1, 1]} : vector<32x1024xf32> to vector<32x512xf32>
    %78 = arith.mulf %77, %6 : vector<32x512xf32>
    %cst_29 = arith.constant dense<0.000000e+00> : vector<32x512xf32>
    %79 = tpu.matmul %4, %78, %cst_29 {dimension_numbers = #tpu.dot_dimension_numbers<[1], [0], [0], [1], [0, 0, 1, 1], [], []>} : vector<32x32xf32>, vector<32x512xf32>, vector<32x512xf32> -> vector<32x512xf32>
    %80 = arith.addf %76, %79 : vector<32x512xf32>
    %c0_30 = arith.constant 0 : index
    %c0_31 = arith.constant 0 : index
    %c0_32 = arith.constant 0 : index
    %81 = vector.load %arg3[%c0_30, %c0_31, %c0_32] : memref<4x32x512xf32, #tpu.memory_space<vmem>>, vector<1x32x512xf32>
    %82 = vector.shape_cast %81 : vector<1x32x512xf32> to vector<32x512xf32>
    %83 = arith.addf %80, %82 : vector<32x512xf32>
    %cst_33 = arith.constant 0.000000e+00 : f32
    %84 = vector.broadcast %cst_33 : f32 to vector<32x512xf32>
    %85 = arith.cmpf ogt, %83, %84 : vector<32x512xf32>
    %cst_34 = arith.constant 2.000000e-01 : f32
    %86 = vector.broadcast %cst_34 : f32 to vector<32x512xf32>
    %87 = arith.mulf %86, %83 : vector<32x512xf32>
    %88 = arith.select %85, %83, %87 : vector<32x512xi1>, vector<32x512xf32>
    %c0_35 = arith.constant 0 : index
    %c0_36 = arith.constant 0 : index
    %c0_37 = arith.constant 0 : index
    %89 = vector.load %arg4[%c0_35, %c0_36, %c0_37] : memref<4x512x128xf32, #tpu.memory_space<vmem>>, vector<1x512x128xf32>
    %90 = vector.shape_cast %89 : vector<1x512x128xf32> to vector<512x128xf32>
    %cst_38 = arith.constant dense<0.000000e+00> : vector<32x128xf32>
    %91 = tpu.matmul %88, %90, %cst_38 {dimension_numbers = #tpu.dot_dimension_numbers<[1], [0], [0], [1], [0, 0, 1, 1], [], []>} : vector<32x512xf32>, vector<512x128xf32>, vector<32x128xf32> -> vector<32x128xf32>
    %92 = vector.shape_cast %91 : vector<32x128xf32> to vector<2x16x128xf32>
    %cst_39 = arith.constant dense<0xFF800000> : vector<2x128xf32>
    %93 = vector.multi_reduction <maximumf>, %92, %cst_39 [1] : vector<2x16x128xf32> to vector<2x128xf32>
    %94 = vector.shape_cast %93 : vector<2x128xf32> to vector<2x1x128xf32>
    %95 = vector.broadcast %94 : vector<2x1x128xf32> to vector<2x16x128xf32>
    %96 = arith.subf %92, %95 : vector<2x16x128xf32>
    %97 = math.exp %96 : vector<2x16x128xf32>
    %cst_40 = arith.constant dense<0.000000e+00> : vector<2x128xf32>
    %98 = vector.multi_reduction <add>, %97, %cst_40 [1] : vector<2x16x128xf32> to vector<2x128xf32>
    %99 = vector.shape_cast %98 : vector<2x128xf32> to vector<2x1x128xf32>
    %100 = tpu.reciprocal %99 {approx = true} : vector<2x1x128xf32> -> vector<2x1x128xf32>
    %101 = vector.broadcast %100 : vector<2x1x128xf32> to vector<2x16x128xf32>
    %102 = arith.mulf %97, %101 : vector<2x16x128xf32>
    %103 = vector.shape_cast %102 : vector<2x16x128xf32> to vector<32x128xf32>
    %cst_41 = arith.constant dense<0.000000e+00> : vector<32x512xf32>
    %104 = tpu.matmul %103, %7, %cst_41 {dimension_numbers = #tpu.dot_dimension_numbers<[1], [0], [0], [1], [0, 0, 1, 1], [], []>} : vector<32x128xf32>, vector<128x512xf32>, vector<32x512xf32> -> vector<32x512xf32>
    %105 = arith.mulf %104, %76 : vector<32x512xf32>
    %cst_42 = arith.constant dense<0.000000e+00> : vector<32x512xf32>
    %106 = tpu.matmul %4, %105, %cst_42 {dimension_numbers = #tpu.dot_dimension_numbers<[1], [0], [0], [1], [0, 0, 1, 1], [], []>} : vector<32x32xf32>, vector<32x512xf32>, vector<32x512xf32> -> vector<32x512xf32>
    %107 = arith.mulf %106, %6 : vector<32x512xf32>
    %cst_43 = arith.constant dense<0.000000e+00> : vector<32x32xf32>
    %108 = tpu.matmul %107, %5, %cst_43 {dimension_numbers = #tpu.dot_dimension_numbers<[1], [0], [0], [1], [0, 0, 1, 1], [], []>} : vector<32x512xf32>, vector<512x32xf32>, vector<32x32xf32> -> vector<32x32xf32>
    %109 = vector.extract_strided_slice %70 {offsets = [32, 0], sizes = [1, 32], strides = [1, 1]} : vector<36x32xf32> to vector<1x32xf32>
    %110 = vector.broadcast %109 : vector<1x32xf32> to vector<32x32xf32>
    %111 = arith.addf %108, %110 : vector<32x32xf32>
    %112 = vector.extract_strided_slice %70 {offsets = [0, 0], sizes = [32, 32], strides = [1, 1]} : vector<36x32xf32> to vector<32x32xf32>
    %cst_44 = arith.constant dense<0.000000e+00> : vector<32x32xf32>
    %113 = tpu.matmul %111, %112, %cst_44 {dimension_numbers = #tpu.dot_dimension_numbers<[1], [0], [0], [1], [0, 0, 1, 1], [], []>} : vector<32x32xf32>, vector<32x32xf32>, vector<32x32xf32> -> vector<32x32xf32>
    %114 = vector.extract_strided_slice %70 {offsets = [33, 0], sizes = [1, 32], strides = [1, 1]} : vector<36x32xf32> to vector<1x32xf32>
    %115 = vector.broadcast %114 : vector<1x32xf32> to vector<32x32xf32>
    %116 = arith.addf %113, %115 : vector<32x32xf32>
    %117 = vector.extract_strided_slice %70 {offsets = [34, 0], sizes = [1, 32], strides = [1, 1]} : vector<36x32xf32> to vector<1x32xf32>
    %118 = vector.extract_strided_slice %70 {offsets = [35, 0], sizes = [1, 32], strides = [1, 1]} : vector<36x32xf32> to vector<1x32xf32>
    %cst_45 = arith.constant dense<0.000000e+00> : vector<32xf32>
    %119 = vector.multi_reduction <add>, %116, %cst_45 [1] : vector<32x32xf32> to vector<32xf32>
    %120 = vector.shape_cast %119 : vector<32xf32> to vector<32x1xf32>
    %cst_46 = arith.constant 3.200000e+01 : f32
    %121 = vector.broadcast %cst_46 : f32 to vector<32x1xf32>
    %122 = arith.divf %120, %121 : vector<32x1xf32>
    %123 = arith.mulf %116, %116 : vector<32x32xf32>
    %cst_47 = arith.constant dense<0.000000e+00> : vector<32xf32>
    %124 = vector.multi_reduction <add>, %123, %cst_47 [1] : vector<32x32xf32> to vector<32xf32>
    %125 = vector.shape_cast %124 : vector<32xf32> to vector<32x1xf32>
    %cst_48 = arith.constant 3.200000e+01 : f32
    %126 = vector.broadcast %cst_48 : f32 to vector<32x1xf32>
    %127 = arith.divf %125, %126 : vector<32x1xf32>
    %128 = arith.mulf %122, %122 : vector<32x1xf32>
    %129 = arith.subf %127, %128 : vector<32x1xf32>
    %130 = vector.broadcast %122 : vector<32x1xf32> to vector<32x32xf32>
    %131 = arith.subf %116, %130 : vector<32x32xf32>
    %cst_49 = arith.constant 9.99999974E-6 : f32
    %132 = vector.broadcast %cst_49 : f32 to vector<32x1xf32>
    %133 = arith.addf %129, %132 : vector<32x1xf32>
    %134 = math.rsqrt %133 : vector<32x1xf32>
    %135 = vector.broadcast %134 : vector<32x1xf32> to vector<32x32xf32>
    %136 = arith.mulf %131, %135 : vector<32x32xf32>
    %137 = vector.broadcast %117 : vector<1x32xf32> to vector<32x32xf32>
    %138 = arith.mulf %136, %137 : vector<32x32xf32>
    %139 = vector.broadcast %118 : vector<1x32xf32> to vector<32x32xf32>
    %140 = arith.addf %138, %139 : vector<32x32xf32>
    %cst_50 = arith.constant 0.000000e+00 : f32
    %141 = vector.broadcast %cst_50 : f32 to vector<32x32xf32>
    %142 = arith.maximumf %140, %141 : vector<32x32xf32>
    %143 = arith.addf %142, %66 : vector<32x32xf32>
    %c1 = arith.constant 1 : index
    %c0_51 = arith.constant 0 : index
    %c0_52 = arith.constant 0 : index
    %144 = vector.load %arg2[%c1, %c0_51, %c0_52] : memref<4x33x1024xf32, #tpu.memory_space<vmem>>, vector<1x33x1024xf32>
    %145 = vector.shape_cast %144 : vector<1x33x1024xf32> to vector<33x1024xf32>
    %c1_53 = arith.constant 1 : index
    %c0_54 = arith.constant 0 : index
    %c0_55 = arith.constant 0 : index
    %146 = vector.load %arg7[%c1_53, %c0_54, %c0_55] : memref<4x36x32xf32, #tpu.memory_space<vmem>>, vector<1x36x32xf32>
    %147 = vector.shape_cast %146 : vector<1x36x32xf32> to vector<36x32xf32>
    %148 = vector.extract_strided_slice %145 {offsets = [0, 0], sizes = [32, 1024], strides = [1, 1]} : vector<33x1024xf32> to vector<32x1024xf32>
    %cst_56 = arith.constant dense<0.000000e+00> : vector<32x1024xf32>
    %149 = tpu.matmul %143, %148, %cst_56 {dimension_numbers = #tpu.dot_dimension_numbers<[1], [0], [0], [1], [0, 0, 1, 1], [], []>} : vector<32x32xf32>, vector<32x1024xf32>, vector<32x1024xf32> -> vector<32x1024xf32>
    %150 = vector.extract_strided_slice %145 {offsets = [32, 0], sizes = [1, 1024], strides = [1, 1]} : vector<33x1024xf32> to vector<1x1024xf32>
    %151 = vector.broadcast %150 : vector<1x1024xf32> to vector<32x1024xf32>
    %152 = arith.addf %149, %151 : vector<32x1024xf32>
    %153 = vector.extract_strided_slice %152 {offsets = [0, 0], sizes = [32, 512], strides = [1, 1]} : vector<32x1024xf32> to vector<32x512xf32>
    %154 = vector.extract_strided_slice %152 {offsets = [0, 512], sizes = [32, 512], strides = [1, 1]} : vector<32x1024xf32> to vector<32x512xf32>
    %155 = arith.mulf %154, %6 : vector<32x512xf32>
    %cst_57 = arith.constant dense<0.000000e+00> : vector<32x512xf32>
    %156 = tpu.matmul %4, %155, %cst_57 {dimension_numbers = #tpu.dot_dimension_numbers<[1], [0], [0], [1], [0, 0, 1, 1], [], []>} : vector<32x32xf32>, vector<32x512xf32>, vector<32x512xf32> -> vector<32x512xf32>
    %157 = arith.addf %153, %156 : vector<32x512xf32>
    %c1_58 = arith.constant 1 : index
    %c0_59 = arith.constant 0 : index
    %c0_60 = arith.constant 0 : index
    %158 = vector.load %arg3[%c1_58, %c0_59, %c0_60] : memref<4x32x512xf32, #tpu.memory_space<vmem>>, vector<1x32x512xf32>
    %159 = vector.shape_cast %158 : vector<1x32x512xf32> to vector<32x512xf32>
    %160 = arith.addf %157, %159 : vector<32x512xf32>
    %cst_61 = arith.constant 0.000000e+00 : f32
    %161 = vector.broadcast %cst_61 : f32 to vector<32x512xf32>
    %162 = arith.cmpf ogt, %160, %161 : vector<32x512xf32>
    %cst_62 = arith.constant 2.000000e-01 : f32
    %163 = vector.broadcast %cst_62 : f32 to vector<32x512xf32>
    %164 = arith.mulf %163, %160 : vector<32x512xf32>
    %165 = arith.select %162, %160, %164 : vector<32x512xi1>, vector<32x512xf32>
    %c1_63 = arith.constant 1 : index
    %c0_64 = arith.constant 0 : index
    %c0_65 = arith.constant 0 : index
    %166 = vector.load %arg4[%c1_63, %c0_64, %c0_65] : memref<4x512x128xf32, #tpu.memory_space<vmem>>, vector<1x512x128xf32>
    %167 = vector.shape_cast %166 : vector<1x512x128xf32> to vector<512x128xf32>
    %cst_66 = arith.constant dense<0.000000e+00> : vector<32x128xf32>
    %168 = tpu.matmul %165, %167, %cst_66 {dimension_numbers = #tpu.dot_dimension_numbers<[1], [0], [0], [1], [0, 0, 1, 1], [], []>} : vector<32x512xf32>, vector<512x128xf32>, vector<32x128xf32> -> vector<32x128xf32>
    %169 = vector.shape_cast %168 : vector<32x128xf32> to vector<2x16x128xf32>
    %cst_67 = arith.constant dense<0xFF800000> : vector<2x128xf32>
    %170 = vector.multi_reduction <maximumf>, %169, %cst_67 [1] : vector<2x16x128xf32> to vector<2x128xf32>
    %171 = vector.shape_cast %170 : vector<2x128xf32> to vector<2x1x128xf32>
    %172 = vector.broadcast %171 : vector<2x1x128xf32> to vector<2x16x128xf32>
    %173 = arith.subf %169, %172 : vector<2x16x128xf32>
    %174 = math.exp %173 : vector<2x16x128xf32>
    %cst_68 = arith.constant dense<0.000000e+00> : vector<2x128xf32>
    %175 = vector.multi_reduction <add>, %174, %cst_68 [1] : vector<2x16x128xf32> to vector<2x128xf32>
    %176 = vector.shape_cast %175 : vector<2x128xf32> to vector<2x1x128xf32>
    %177 = tpu.reciprocal %176 {approx = true} : vector<2x1x128xf32> -> vector<2x1x128xf32>
    %178 = vector.broadcast %177 : vector<2x1x128xf32> to vector<2x16x128xf32>
    %179 = arith.mulf %174, %178 : vector<2x16x128xf32>
    %180 = vector.shape_cast %179 : vector<2x16x128xf32> to vector<32x128xf32>
    %cst_69 = arith.constant dense<0.000000e+00> : vector<32x512xf32>
    %181 = tpu.matmul %180, %7, %cst_69 {dimension_numbers = #tpu.dot_dimension_numbers<[1], [0], [0], [1], [0, 0, 1, 1], [], []>} : vector<32x128xf32>, vector<128x512xf32>, vector<32x512xf32> -> vector<32x512xf32>
    %182 = arith.mulf %181, %153 : vector<32x512xf32>
    %cst_70 = arith.constant dense<0.000000e+00> : vector<32x512xf32>
    %183 = tpu.matmul %4, %182, %cst_70 {dimension_numbers = #tpu.dot_dimension_numbers<[1], [0], [0], [1], [0, 0, 1, 1], [], []>} : vector<32x32xf32>, vector<32x512xf32>, vector<32x512xf32> -> vector<32x512xf32>
    %184 = arith.mulf %183, %6 : vector<32x512xf32>
    %cst_71 = arith.constant dense<0.000000e+00> : vector<32x32xf32>
    %185 = tpu.matmul %184, %5, %cst_71 {dimension_numbers = #tpu.dot_dimension_numbers<[1], [0], [0], [1], [0, 0, 1, 1], [], []>} : vector<32x512xf32>, vector<512x32xf32>, vector<32x32xf32> -> vector<32x32xf32>
    %186 = vector.extract_strided_slice %147 {offsets = [32, 0], sizes = [1, 32], strides = [1, 1]} : vector<36x32xf32> to vector<1x32xf32>
    %187 = vector.broadcast %186 : vector<1x32xf32> to vector<32x32xf32>
    %188 = arith.addf %185, %187 : vector<32x32xf32>
    %189 = vector.extract_strided_slice %147 {offsets = [0, 0], sizes = [32, 32], strides = [1, 1]} : vector<36x32xf32> to vector<32x32xf32>
    %cst_72 = arith.constant dense<0.000000e+00> : vector<32x32xf32>
    %190 = tpu.matmul %188, %189, %cst_72 {dimension_numbers = #tpu.dot_dimension_numbers<[1], [0], [0], [1], [0, 0, 1, 1], [], []>} : vector<32x32xf32>, vector<32x32xf32>, vector<32x32xf32> -> vector<32x32xf32>
    %191 = vector.extract_strided_slice %147 {offsets = [33, 0], sizes = [1, 32], strides = [1, 1]} : vector<36x32xf32> to vector<1x32xf32>
    %192 = vector.broadcast %191 : vector<1x32xf32> to vector<32x32xf32>
    %193 = arith.addf %190, %192 : vector<32x32xf32>
    %194 = vector.extract_strided_slice %147 {offsets = [34, 0], sizes = [1, 32], strides = [1, 1]} : vector<36x32xf32> to vector<1x32xf32>
    %195 = vector.extract_strided_slice %147 {offsets = [35, 0], sizes = [1, 32], strides = [1, 1]} : vector<36x32xf32> to vector<1x32xf32>
    %cst_73 = arith.constant dense<0.000000e+00> : vector<32xf32>
    %196 = vector.multi_reduction <add>, %193, %cst_73 [1] : vector<32x32xf32> to vector<32xf32>
    %197 = vector.shape_cast %196 : vector<32xf32> to vector<32x1xf32>
    %cst_74 = arith.constant 3.200000e+01 : f32
    %198 = vector.broadcast %cst_74 : f32 to vector<32x1xf32>
    %199 = arith.divf %197, %198 : vector<32x1xf32>
    %200 = arith.mulf %193, %193 : vector<32x32xf32>
    %cst_75 = arith.constant dense<0.000000e+00> : vector<32xf32>
    %201 = vector.multi_reduction <add>, %200, %cst_75 [1] : vector<32x32xf32> to vector<32xf32>
    %202 = vector.shape_cast %201 : vector<32xf32> to vector<32x1xf32>
    %cst_76 = arith.constant 3.200000e+01 : f32
    %203 = vector.broadcast %cst_76 : f32 to vector<32x1xf32>
    %204 = arith.divf %202, %203 : vector<32x1xf32>
    %205 = arith.mulf %199, %199 : vector<32x1xf32>
    %206 = arith.subf %204, %205 : vector<32x1xf32>
    %207 = vector.broadcast %199 : vector<32x1xf32> to vector<32x32xf32>
    %208 = arith.subf %193, %207 : vector<32x32xf32>
    %cst_77 = arith.constant 9.99999974E-6 : f32
    %209 = vector.broadcast %cst_77 : f32 to vector<32x1xf32>
    %210 = arith.addf %206, %209 : vector<32x1xf32>
    %211 = math.rsqrt %210 : vector<32x1xf32>
    %212 = vector.broadcast %211 : vector<32x1xf32> to vector<32x32xf32>
    %213 = arith.mulf %208, %212 : vector<32x32xf32>
    %214 = vector.broadcast %194 : vector<1x32xf32> to vector<32x32xf32>
    %215 = arith.mulf %213, %214 : vector<32x32xf32>
    %216 = vector.broadcast %195 : vector<1x32xf32> to vector<32x32xf32>
    %217 = arith.addf %215, %216 : vector<32x32xf32>
    %cst_78 = arith.constant 0.000000e+00 : f32
    %218 = vector.broadcast %cst_78 : f32 to vector<32x32xf32>
    %219 = arith.maximumf %217, %218 : vector<32x32xf32>
    %220 = arith.addf %219, %143 : vector<32x32xf32>
    %c2 = arith.constant 2 : index
    %c0_79 = arith.constant 0 : index
    %c0_80 = arith.constant 0 : index
    %221 = vector.load %arg2[%c2, %c0_79, %c0_80] : memref<4x33x1024xf32, #tpu.memory_space<vmem>>, vector<1x33x1024xf32>
    %222 = vector.shape_cast %221 : vector<1x33x1024xf32> to vector<33x1024xf32>
    %c2_81 = arith.constant 2 : index
    %c0_82 = arith.constant 0 : index
    %c0_83 = arith.constant 0 : index
    %223 = vector.load %arg7[%c2_81, %c0_82, %c0_83] : memref<4x36x32xf32, #tpu.memory_space<vmem>>, vector<1x36x32xf32>
    %224 = vector.shape_cast %223 : vector<1x36x32xf32> to vector<36x32xf32>
    %225 = vector.extract_strided_slice %222 {offsets = [0, 0], sizes = [32, 1024], strides = [1, 1]} : vector<33x1024xf32> to vector<32x1024xf32>
    %cst_84 = arith.constant dense<0.000000e+00> : vector<32x1024xf32>
    %226 = tpu.matmul %220, %225, %cst_84 {dimension_numbers = #tpu.dot_dimension_numbers<[1], [0], [0], [1], [0, 0, 1, 1], [], []>} : vector<32x32xf32>, vector<32x1024xf32>, vector<32x1024xf32> -> vector<32x1024xf32>
    %227 = vector.extract_strided_slice %222 {offsets = [32, 0], sizes = [1, 1024], strides = [1, 1]} : vector<33x1024xf32> to vector<1x1024xf32>
    %228 = vector.broadcast %227 : vector<1x1024xf32> to vector<32x1024xf32>
    %229 = arith.addf %226, %228 : vector<32x1024xf32>
    %230 = vector.extract_strided_slice %229 {offsets = [0, 0], sizes = [32, 512], strides = [1, 1]} : vector<32x1024xf32> to vector<32x512xf32>
    %231 = vector.extract_strided_slice %229 {offsets = [0, 512], sizes = [32, 512], strides = [1, 1]} : vector<32x1024xf32> to vector<32x512xf32>
    %232 = arith.mulf %231, %6 : vector<32x512xf32>
    %cst_85 = arith.constant dense<0.000000e+00> : vector<32x512xf32>
    %233 = tpu.matmul %4, %232, %cst_85 {dimension_numbers = #tpu.dot_dimension_numbers<[1], [0], [0], [1], [0, 0, 1, 1], [], []>} : vector<32x32xf32>, vector<32x512xf32>, vector<32x512xf32> -> vector<32x512xf32>
    %234 = arith.addf %230, %233 : vector<32x512xf32>
    %c2_86 = arith.constant 2 : index
    %c0_87 = arith.constant 0 : index
    %c0_88 = arith.constant 0 : index
    %235 = vector.load %arg3[%c2_86, %c0_87, %c0_88] : memref<4x32x512xf32, #tpu.memory_space<vmem>>, vector<1x32x512xf32>
    %236 = vector.shape_cast %235 : vector<1x32x512xf32> to vector<32x512xf32>
    %237 = arith.addf %234, %236 : vector<32x512xf32>
    %cst_89 = arith.constant 0.000000e+00 : f32
    %238 = vector.broadcast %cst_89 : f32 to vector<32x512xf32>
    %239 = arith.cmpf ogt, %237, %238 : vector<32x512xf32>
    %cst_90 = arith.constant 2.000000e-01 : f32
    %240 = vector.broadcast %cst_90 : f32 to vector<32x512xf32>
    %241 = arith.mulf %240, %237 : vector<32x512xf32>
    %242 = arith.select %239, %237, %241 : vector<32x512xi1>, vector<32x512xf32>
    %c2_91 = arith.constant 2 : index
    %c0_92 = arith.constant 0 : index
    %c0_93 = arith.constant 0 : index
    %243 = vector.load %arg4[%c2_91, %c0_92, %c0_93] : memref<4x512x128xf32, #tpu.memory_space<vmem>>, vector<1x512x128xf32>
    %244 = vector.shape_cast %243 : vector<1x512x128xf32> to vector<512x128xf32>
    %cst_94 = arith.constant dense<0.000000e+00> : vector<32x128xf32>
    %245 = tpu.matmul %242, %244, %cst_94 {dimension_numbers = #tpu.dot_dimension_numbers<[1], [0], [0], [1], [0, 0, 1, 1], [], []>} : vector<32x512xf32>, vector<512x128xf32>, vector<32x128xf32> -> vector<32x128xf32>
    %246 = vector.shape_cast %245 : vector<32x128xf32> to vector<2x16x128xf32>
    %cst_95 = arith.constant dense<0xFF800000> : vector<2x128xf32>
    %247 = vector.multi_reduction <maximumf>, %246, %cst_95 [1] : vector<2x16x128xf32> to vector<2x128xf32>
    %248 = vector.shape_cast %247 : vector<2x128xf32> to vector<2x1x128xf32>
    %249 = vector.broadcast %248 : vector<2x1x128xf32> to vector<2x16x128xf32>
    %250 = arith.subf %246, %249 : vector<2x16x128xf32>
    %251 = math.exp %250 : vector<2x16x128xf32>
    %cst_96 = arith.constant dense<0.000000e+00> : vector<2x128xf32>
    %252 = vector.multi_reduction <add>, %251, %cst_96 [1] : vector<2x16x128xf32> to vector<2x128xf32>
    %253 = vector.shape_cast %252 : vector<2x128xf32> to vector<2x1x128xf32>
    %254 = tpu.reciprocal %253 {approx = true} : vector<2x1x128xf32> -> vector<2x1x128xf32>
    %255 = vector.broadcast %254 : vector<2x1x128xf32> to vector<2x16x128xf32>
    %256 = arith.mulf %251, %255 : vector<2x16x128xf32>
    %257 = vector.shape_cast %256 : vector<2x16x128xf32> to vector<32x128xf32>
    %cst_97 = arith.constant dense<0.000000e+00> : vector<32x512xf32>
    %258 = tpu.matmul %257, %7, %cst_97 {dimension_numbers = #tpu.dot_dimension_numbers<[1], [0], [0], [1], [0, 0, 1, 1], [], []>} : vector<32x128xf32>, vector<128x512xf32>, vector<32x512xf32> -> vector<32x512xf32>
    %259 = arith.mulf %258, %230 : vector<32x512xf32>
    %cst_98 = arith.constant dense<0.000000e+00> : vector<32x512xf32>
    %260 = tpu.matmul %4, %259, %cst_98 {dimension_numbers = #tpu.dot_dimension_numbers<[1], [0], [0], [1], [0, 0, 1, 1], [], []>} : vector<32x32xf32>, vector<32x512xf32>, vector<32x512xf32> -> vector<32x512xf32>
    %261 = arith.mulf %260, %6 : vector<32x512xf32>
    %cst_99 = arith.constant dense<0.000000e+00> : vector<32x32xf32>
    %262 = tpu.matmul %261, %5, %cst_99 {dimension_numbers = #tpu.dot_dimension_numbers<[1], [0], [0], [1], [0, 0, 1, 1], [], []>} : vector<32x512xf32>, vector<512x32xf32>, vector<32x32xf32> -> vector<32x32xf32>
    %263 = vector.extract_strided_slice %224 {offsets = [32, 0], sizes = [1, 32], strides = [1, 1]} : vector<36x32xf32> to vector<1x32xf32>
    %264 = vector.broadcast %263 : vector<1x32xf32> to vector<32x32xf32>
    %265 = arith.addf %262, %264 : vector<32x32xf32>
    %266 = vector.extract_strided_slice %224 {offsets = [0, 0], sizes = [32, 32], strides = [1, 1]} : vector<36x32xf32> to vector<32x32xf32>
    %cst_100 = arith.constant dense<0.000000e+00> : vector<32x32xf32>
    %267 = tpu.matmul %265, %266, %cst_100 {dimension_numbers = #tpu.dot_dimension_numbers<[1], [0], [0], [1], [0, 0, 1, 1], [], []>} : vector<32x32xf32>, vector<32x32xf32>, vector<32x32xf32> -> vector<32x32xf32>
    %268 = vector.extract_strided_slice %224 {offsets = [33, 0], sizes = [1, 32], strides = [1, 1]} : vector<36x32xf32> to vector<1x32xf32>
    %269 = vector.broadcast %268 : vector<1x32xf32> to vector<32x32xf32>
    %270 = arith.addf %267, %269 : vector<32x32xf32>
    %271 = vector.extract_strided_slice %224 {offsets = [34, 0], sizes = [1, 32], strides = [1, 1]} : vector<36x32xf32> to vector<1x32xf32>
    %272 = vector.extract_strided_slice %224 {offsets = [35, 0], sizes = [1, 32], strides = [1, 1]} : vector<36x32xf32> to vector<1x32xf32>
    %cst_101 = arith.constant dense<0.000000e+00> : vector<32xf32>
    %273 = vector.multi_reduction <add>, %270, %cst_101 [1] : vector<32x32xf32> to vector<32xf32>
    %274 = vector.shape_cast %273 : vector<32xf32> to vector<32x1xf32>
    %cst_102 = arith.constant 3.200000e+01 : f32
    %275 = vector.broadcast %cst_102 : f32 to vector<32x1xf32>
    %276 = arith.divf %274, %275 : vector<32x1xf32>
    %277 = arith.mulf %270, %270 : vector<32x32xf32>
    %cst_103 = arith.constant dense<0.000000e+00> : vector<32xf32>
    %278 = vector.multi_reduction <add>, %277, %cst_103 [1] : vector<32x32xf32> to vector<32xf32>
    %279 = vector.shape_cast %278 : vector<32xf32> to vector<32x1xf32>
    %cst_104 = arith.constant 3.200000e+01 : f32
    %280 = vector.broadcast %cst_104 : f32 to vector<32x1xf32>
    %281 = arith.divf %279, %280 : vector<32x1xf32>
    %282 = arith.mulf %276, %276 : vector<32x1xf32>
    %283 = arith.subf %281, %282 : vector<32x1xf32>
    %284 = vector.broadcast %276 : vector<32x1xf32> to vector<32x32xf32>
    %285 = arith.subf %270, %284 : vector<32x32xf32>
    %cst_105 = arith.constant 9.99999974E-6 : f32
    %286 = vector.broadcast %cst_105 : f32 to vector<32x1xf32>
    %287 = arith.addf %283, %286 : vector<32x1xf32>
    %288 = math.rsqrt %287 : vector<32x1xf32>
    %289 = vector.broadcast %288 : vector<32x1xf32> to vector<32x32xf32>
    %290 = arith.mulf %285, %289 : vector<32x32xf32>
    %291 = vector.broadcast %271 : vector<1x32xf32> to vector<32x32xf32>
    %292 = arith.mulf %290, %291 : vector<32x32xf32>
    %293 = vector.broadcast %272 : vector<1x32xf32> to vector<32x32xf32>
    %294 = arith.addf %292, %293 : vector<32x32xf32>
    %cst_106 = arith.constant 0.000000e+00 : f32
    %295 = vector.broadcast %cst_106 : f32 to vector<32x32xf32>
    %296 = arith.maximumf %294, %295 : vector<32x32xf32>
    %297 = arith.addf %296, %220 : vector<32x32xf32>
    %c3 = arith.constant 3 : index
    %c0_107 = arith.constant 0 : index
    %c0_108 = arith.constant 0 : index
    %298 = vector.load %arg2[%c3, %c0_107, %c0_108] : memref<4x33x1024xf32, #tpu.memory_space<vmem>>, vector<1x33x1024xf32>
    %299 = vector.shape_cast %298 : vector<1x33x1024xf32> to vector<33x1024xf32>
    %c3_109 = arith.constant 3 : index
    %c0_110 = arith.constant 0 : index
    %c0_111 = arith.constant 0 : index
    %300 = vector.load %arg7[%c3_109, %c0_110, %c0_111] : memref<4x36x32xf32, #tpu.memory_space<vmem>>, vector<1x36x32xf32>
    %301 = vector.shape_cast %300 : vector<1x36x32xf32> to vector<36x32xf32>
    %302 = vector.extract_strided_slice %299 {offsets = [0, 0], sizes = [32, 1024], strides = [1, 1]} : vector<33x1024xf32> to vector<32x1024xf32>
    %cst_112 = arith.constant dense<0.000000e+00> : vector<32x1024xf32>
    %303 = tpu.matmul %297, %302, %cst_112 {dimension_numbers = #tpu.dot_dimension_numbers<[1], [0], [0], [1], [0, 0, 1, 1], [], []>} : vector<32x32xf32>, vector<32x1024xf32>, vector<32x1024xf32> -> vector<32x1024xf32>
    %304 = vector.extract_strided_slice %299 {offsets = [32, 0], sizes = [1, 1024], strides = [1, 1]} : vector<33x1024xf32> to vector<1x1024xf32>
    %305 = vector.broadcast %304 : vector<1x1024xf32> to vector<32x1024xf32>
    %306 = arith.addf %303, %305 : vector<32x1024xf32>
    %307 = vector.extract_strided_slice %306 {offsets = [0, 0], sizes = [32, 512], strides = [1, 1]} : vector<32x1024xf32> to vector<32x512xf32>
    %308 = vector.extract_strided_slice %306 {offsets = [0, 512], sizes = [32, 512], strides = [1, 1]} : vector<32x1024xf32> to vector<32x512xf32>
    %309 = arith.mulf %308, %6 : vector<32x512xf32>
    %cst_113 = arith.constant dense<0.000000e+00> : vector<32x512xf32>
    %310 = tpu.matmul %4, %309, %cst_113 {dimension_numbers = #tpu.dot_dimension_numbers<[1], [0], [0], [1], [0, 0, 1, 1], [], []>} : vector<32x32xf32>, vector<32x512xf32>, vector<32x512xf32> -> vector<32x512xf32>
    %311 = arith.addf %307, %310 : vector<32x512xf32>
    %c3_114 = arith.constant 3 : index
    %c0_115 = arith.constant 0 : index
    %c0_116 = arith.constant 0 : index
    %312 = vector.load %arg3[%c3_114, %c0_115, %c0_116] : memref<4x32x512xf32, #tpu.memory_space<vmem>>, vector<1x32x512xf32>
    %313 = vector.shape_cast %312 : vector<1x32x512xf32> to vector<32x512xf32>
    %314 = arith.addf %311, %313 : vector<32x512xf32>
    %cst_117 = arith.constant 0.000000e+00 : f32
    %315 = vector.broadcast %cst_117 : f32 to vector<32x512xf32>
    %316 = arith.cmpf ogt, %314, %315 : vector<32x512xf32>
    %cst_118 = arith.constant 2.000000e-01 : f32
    %317 = vector.broadcast %cst_118 : f32 to vector<32x512xf32>
    %318 = arith.mulf %317, %314 : vector<32x512xf32>
    %319 = arith.select %316, %314, %318 : vector<32x512xi1>, vector<32x512xf32>
    %c3_119 = arith.constant 3 : index
    %c0_120 = arith.constant 0 : index
    %c0_121 = arith.constant 0 : index
    %320 = vector.load %arg4[%c3_119, %c0_120, %c0_121] : memref<4x512x128xf32, #tpu.memory_space<vmem>>, vector<1x512x128xf32>
    %321 = vector.shape_cast %320 : vector<1x512x128xf32> to vector<512x128xf32>
    %cst_122 = arith.constant dense<0.000000e+00> : vector<32x128xf32>
    %322 = tpu.matmul %319, %321, %cst_122 {dimension_numbers = #tpu.dot_dimension_numbers<[1], [0], [0], [1], [0, 0, 1, 1], [], []>} : vector<32x512xf32>, vector<512x128xf32>, vector<32x128xf32> -> vector<32x128xf32>
    %323 = vector.shape_cast %322 : vector<32x128xf32> to vector<2x16x128xf32>
    %cst_123 = arith.constant dense<0xFF800000> : vector<2x128xf32>
    %324 = vector.multi_reduction <maximumf>, %323, %cst_123 [1] : vector<2x16x128xf32> to vector<2x128xf32>
    %325 = vector.shape_cast %324 : vector<2x128xf32> to vector<2x1x128xf32>
    %326 = vector.broadcast %325 : vector<2x1x128xf32> to vector<2x16x128xf32>
    %327 = arith.subf %323, %326 : vector<2x16x128xf32>
    %328 = math.exp %327 : vector<2x16x128xf32>
    %cst_124 = arith.constant dense<0.000000e+00> : vector<2x128xf32>
    %329 = vector.multi_reduction <add>, %328, %cst_124 [1] : vector<2x16x128xf32> to vector<2x128xf32>
    %330 = vector.shape_cast %329 : vector<2x128xf32> to vector<2x1x128xf32>
    %331 = tpu.reciprocal %330 {approx = true} : vector<2x1x128xf32> -> vector<2x1x128xf32>
    %332 = vector.broadcast %331 : vector<2x1x128xf32> to vector<2x16x128xf32>
    %333 = arith.mulf %328, %332 : vector<2x16x128xf32>
    %334 = vector.shape_cast %333 : vector<2x16x128xf32> to vector<32x128xf32>
    %cst_125 = arith.constant dense<0.000000e+00> : vector<32x512xf32>
    %335 = tpu.matmul %334, %7, %cst_125 {dimension_numbers = #tpu.dot_dimension_numbers<[1], [0], [0], [1], [0, 0, 1, 1], [], []>} : vector<32x128xf32>, vector<128x512xf32>, vector<32x512xf32> -> vector<32x512xf32>
    %336 = arith.mulf %335, %307 : vector<32x512xf32>
    %cst_126 = arith.constant dense<0.000000e+00> : vector<32x512xf32>
    %337 = tpu.matmul %4, %336, %cst_126 {dimension_numbers = #tpu.dot_dimension_numbers<[1], [0], [0], [1], [0, 0, 1, 1], [], []>} : vector<32x32xf32>, vector<32x512xf32>, vector<32x512xf32> -> vector<32x512xf32>
    %338 = arith.mulf %337, %6 : vector<32x512xf32>
    %cst_127 = arith.constant dense<0.000000e+00> : vector<32x32xf32>
    %339 = tpu.matmul %338, %5, %cst_127 {dimension_numbers = #tpu.dot_dimension_numbers<[1], [0], [0], [1], [0, 0, 1, 1], [], []>} : vector<32x512xf32>, vector<512x32xf32>, vector<32x32xf32> -> vector<32x32xf32>
    %340 = vector.extract_strided_slice %301 {offsets = [32, 0], sizes = [1, 32], strides = [1, 1]} : vector<36x32xf32> to vector<1x32xf32>
    %341 = vector.broadcast %340 : vector<1x32xf32> to vector<32x32xf32>
    %342 = arith.addf %339, %341 : vector<32x32xf32>
    %343 = vector.extract_strided_slice %301 {offsets = [0, 0], sizes = [32, 32], strides = [1, 1]} : vector<36x32xf32> to vector<32x32xf32>
    %cst_128 = arith.constant dense<0.000000e+00> : vector<32x32xf32>
    %344 = tpu.matmul %342, %343, %cst_128 {dimension_numbers = #tpu.dot_dimension_numbers<[1], [0], [0], [1], [0, 0, 1, 1], [], []>} : vector<32x32xf32>, vector<32x32xf32>, vector<32x32xf32> -> vector<32x32xf32>
    %345 = vector.extract_strided_slice %301 {offsets = [33, 0], sizes = [1, 32], strides = [1, 1]} : vector<36x32xf32> to vector<1x32xf32>
    %346 = vector.broadcast %345 : vector<1x32xf32> to vector<32x32xf32>
    %347 = arith.addf %344, %346 : vector<32x32xf32>
    %348 = vector.extract_strided_slice %301 {offsets = [34, 0], sizes = [1, 32], strides = [1, 1]} : vector<36x32xf32> to vector<1x32xf32>
    %349 = vector.extract_strided_slice %301 {offsets = [35, 0], sizes = [1, 32], strides = [1, 1]} : vector<36x32xf32> to vector<1x32xf32>
    %cst_129 = arith.constant dense<0.000000e+00> : vector<32xf32>
    %350 = vector.multi_reduction <add>, %347, %cst_129 [1] : vector<32x32xf32> to vector<32xf32>
    %351 = vector.shape_cast %350 : vector<32xf32> to vector<32x1xf32>
    %cst_130 = arith.constant 3.200000e+01 : f32
    %352 = vector.broadcast %cst_130 : f32 to vector<32x1xf32>
    %353 = arith.divf %351, %352 : vector<32x1xf32>
    %354 = arith.mulf %347, %347 : vector<32x32xf32>
    %cst_131 = arith.constant dense<0.000000e+00> : vector<32xf32>
    %355 = vector.multi_reduction <add>, %354, %cst_131 [1] : vector<32x32xf32> to vector<32xf32>
    %356 = vector.shape_cast %355 : vector<32xf32> to vector<32x1xf32>
    %cst_132 = arith.constant 3.200000e+01 : f32
    %357 = vector.broadcast %cst_132 : f32 to vector<32x1xf32>
    %358 = arith.divf %356, %357 : vector<32x1xf32>
    %359 = arith.mulf %353, %353 : vector<32x1xf32>
    %360 = arith.subf %358, %359 : vector<32x1xf32>
    %361 = vector.broadcast %353 : vector<32x1xf32> to vector<32x32xf32>
    %362 = arith.subf %347, %361 : vector<32x32xf32>
    %cst_133 = arith.constant 9.99999974E-6 : f32
    %363 = vector.broadcast %cst_133 : f32 to vector<32x1xf32>
    %364 = arith.addf %360, %363 : vector<32x1xf32>
    %365 = math.rsqrt %364 : vector<32x1xf32>
    %366 = vector.broadcast %365 : vector<32x1xf32> to vector<32x32xf32>
    %367 = arith.mulf %362, %366 : vector<32x32xf32>
    %368 = vector.broadcast %348 : vector<1x32xf32> to vector<32x32xf32>
    %369 = arith.mulf %367, %368 : vector<32x32xf32>
    %370 = vector.broadcast %349 : vector<1x32xf32> to vector<32x32xf32>
    %371 = arith.addf %369, %370 : vector<32x32xf32>
    %cst_134 = arith.constant 0.000000e+00 : f32
    %372 = vector.broadcast %cst_134 : f32 to vector<32x32xf32>
    %373 = arith.maximumf %371, %372 : vector<32x32xf32>
    %374 = arith.addf %373, %297 : vector<32x32xf32>
    %c0_135 = arith.constant 0 : index
    %c0_136 = arith.constant 0 : index
    %375 = vector.load %arg8[%c0_135, %c0_136] : memref<33x128xf32, #tpu.memory_space<vmem>>, vector<33x128xf32>
    %376 = vector.extract_strided_slice %375 {offsets = [0, 0], sizes = [32, 128], strides = [1, 1]} : vector<33x128xf32> to vector<32x128xf32>
    %cst_137 = arith.constant dense<0.000000e+00> : vector<32x128xf32>
    %377 = tpu.matmul %374, %376, %cst_137 {dimension_numbers = #tpu.dot_dimension_numbers<[1], [0], [0], [1], [0, 0, 1, 1], [], []>} : vector<32x32xf32>, vector<32x128xf32>, vector<32x128xf32> -> vector<32x128xf32>
    %378 = vector.extract_strided_slice %375 {offsets = [32, 0], sizes = [1, 128], strides = [1, 1]} : vector<33x128xf32> to vector<1x128xf32>
    %379 = vector.broadcast %378 : vector<1x128xf32> to vector<32x128xf32>
    %380 = arith.addf %377, %379 : vector<32x128xf32>
    %c0_138 = arith.constant 0 : index
    %c0_139 = arith.constant 0 : index
    %381 = vector.load %arg9[%c0_138, %c0_139] : memref<32x128xf32, #tpu.memory_space<vmem>>, vector<32x128xf32>
    tpu.vector_store %arg9[%c0_138, %c0_139], %380 {strides = array<i32>} : memref<32x128xf32, #tpu.memory_space<vmem>>, vector<32x128xf32>,
    return
  }
}

</mosaic_0001>

<bundles_post_ra>
// kernel: gatv2_forward_pallas.1
= control target key start
LH: loop header
LB: loop body
LE: loop exit
PB: predicated region body
PF: predicated region fallthrough
CT: control target
= control target key end

     0   :  { %14 = vsyncpa [#allocation3], 0  ;;  %s13480_s0 = inlined_call_operand.vmem [shape: f32[32,8], index: 0, kind: input, shape index: {}]   ;;  %s13481_s1 = inlined_call_operand.vmem [shape: f32[48,32], index: 1, kind: input, shape index: {}]   ;;  %s13482_s2 = inlined_call_operand.vmem [shape: f32[4,33,1024], index: 2, kind: input, shape index: {}]   ;;  %s13483_s3 = inlined_call_operand.hbm [shape: f32[4,32,512], index: 3, kind: input, shape index: {}]   ;;  %s13484_s4 = inlined_call_operand.vmem [shape: f32[4,512,128], index: 4, kind: input, shape index: {}]   ;;  %s13485_s5 = inlined_call_operand.vmem [shape: f32[544,32], index: 5, kind: input, shape index: {}]   ;;  %s13486_s6 = inlined_call_operand.hbm [shape: f32[160,512], index: 6, kind: input, shape index: {}]   ;;  %s13487_s7 = inlined_call_operand.vmem [shape: f32[4,36,32], index: 7, kind: input, shape index: {}]   ;;  %s13488_s8 = inlined_call_operand.vmem [shape: f32[33,128], index: 8, kind: input, shape index: {}]   ;;  %s13489_s9 = inlined_call_operand.vmem [shape: f32[32,128], index: 9, kind: output, shape index: {}]  }
   0x1   :  { %15 = vsyncpa [#allocation5], 0  ;;  %s9741_s30 = smov [#allocation2]  }
   0x2   :  { %s27_s10 = sshll.u32 %s9741_s30, 4  ;;  %s28_s10 = int_to_ptr.vmem [resolvable:$true] %s27_s10 }
   0x3   :  { %s9705_s11 = scalar_lea.vmem %s28_s10, 8192  ;;  %p9710_p1 = scmp.lt.s32.totalorder %s28_s10, %s28_s10 }
   0x4   :  { %p9706_p0 = scmp.ne.s32.totalorder %s28_s10, %s9705_s11  ;;  %p9711_p2 = scmp.lt.s32.totalorder %s9705_s11, %s9705_s11 }
   0x6   :  { %p9712_p3 = por %p9711_p2, %p9710_p1 }
   0x8   :  { %p9713_p4 = pnand %p9712_p3, %p9706_p0 }
   0xa   :  { %9716 = shalt.err (!%p9713_p4)
}
   0xb   :  { %s9742_s12 = smov 512   ;;  %s9743_s13 = smov 32  }
   0xc   :  { %33 = dma.hbm_to_vmem [thread:$0]  %s13483_s3, 8192, %s28_s10, [#allocation3], %s9742_s12, %s9742_s12, %s9743_s13  }
   0xd   :  { %s9744_s16 = smov [#allocation4]  }
   0xe   :  { %s43_s17 = sshll.u32 %s9744_s16, 4  ;;  %s44_s17 = int_to_ptr.vmem [resolvable:$true] %s43_s17 }
   0xf   :  { %s9725_s18 = scalar_lea.vmem %s44_s17, 10240  ;;  %p9730_p6 = scmp.lt.s32.totalorder %s44_s17, %s44_s17 }
  0x10   :  { %p9726_p5 = scmp.ne.s32.totalorder %s44_s17, %s9725_s18  ;;  %p9731_p7 = scmp.lt.s32.totalorder %s9725_s18, %s9725_s18 }
  0x12   :  { %p9732_p8 = por %p9731_p7, %p9730_p6 }
  0x14   :  { %p9733_p9 = pnand %p9732_p8, %p9726_p5 }
  0x16   :  { %9736 = shalt.err (!%p9733_p9)
}
  0x17   :  { %49 = dma.hbm_to_vmem [thread:$0]  %s13486_s6, 10240, %s44_s17, [#allocation5], %s9742_s12, %s9742_s12, %s9743_s13  }
  0x18   :  { %9737 = dma.done.wait [#allocation3], 8192  }
  0x19   :  { %9738 = vsyncadd [#allocation3], 4294959104 }
  0x1a   :  { %9739 = dma.done.wait [#allocation5], 10240  }
  0x1b   :  { %9740 = vsyncadd [#allocation5], 4294957056  ;;  %vm222_vm0 = vcmask 64512   ;;  %v60_v0 = vld [vmem:[%s13481_s1] sm:$0xff]  ;;  %v215_v2 = vld [vmem:[%s13480_s0 + $0x8] sm:$0xff]  ;;  %v218_v5 = vlaneseq  ;;  %vm320_vm1 = vcmask 261120  }
  0x1c   :  { %v214_v1 = vld [vmem:[%s13480_s0] sm:$0xff]  ;;  %9040 = vmatprep.subr.mxu0 %v60_v0  ;;  %v216_v3 = vld [vmem:[%s13480_s0 + $0x10] sm:$0xff]  ;;  %v217_v4 = vld [vmem:[%s13480_s0 + $0x18] sm:$0xff] }
  0x1d   :  { %9042 = vmatprep.mubr.msk.f32.mxu0 %vm222_vm0, %v214_v1  ;;  %9041 = vmatpush3.msra.mxu0 %v60_v0  ;;  %v9817_v6 = vshrl.u32 %v218_v5, 7  ;;  %v9825_v8 = vld [vmem:[%s13481_s1 + $0x28] sm:$0xff]  ;;  %v64_v30 = vld [vmem:[%s13481_s1 + $0x20] sm:$0xff]  ;;  %v63_v31 = vld [vmem:[%s13481_s1 + $0x18] sm:$0xff] }
  0x1e   :  { %9043 = vmatmul.mubr.msk.f32.vlgmr.msra.gmra.mxu0 %vm222_vm0, %v215_v2  ;;  %9048 = vmatprep.subr.mxu1 %v64_v30  ;;  %v62_v32 = vld [vmem:[%s13481_s1 + $0x10] sm:$0xff]  ;;  %v61_v33 = vld [vmem:[%s13481_s1 + $0x8] sm:$0xff] }
  0x1f   :  { %9045 = vmatprep.mubr.msk.f32.mxu0 %vm222_vm0, %v216_v3  ;;  %v9820_v7 = vsub.s32 0, %v9817_v6  ;;  %9049 = vmatpush3.msra.mxu1 %v64_v30  ;;  %v9870_v61 = vsub.s32 1, %v9817_v6  ;;  %v9873_v63 = vsub.s32 2, %v9817_v6  ;;  %v9888_v30 = vsub.s32 3, %v9817_v6 }
  0x20   :  { %9050 = vmatprep.subr.mxu1 %v63_v31 }
  0x21   :  { %13516 = vst [vmem:[#allocation8_spill] sm:$0xff] %v9820_v7  ;;  %v221_v9 = vrot.slane %v9825_v8, %v9820_v7  ;;  %9051 = vmatpush3.msra.mxu1 %v63_v31  ;;  %13517 = vst [vmem:[#allocation9_spill] sm:$0xff] %v9870_v61  ;;  %v385_v1 = vrot.slane %v9825_v8, %v9870_v61 }
  0x22   :  { %9046 = vmatmul.mubr.msk.f32.gmra.mxu0 %vm222_vm0, %v217_v4  ;;  %9052 = vmatprep.subr.mxu1 %v62_v32  ;;  %13518 = vst [vmem:[#allocation10_spill] sm:$0xff] %v9873_v63  ;;  %v393_v4 = vrot.slane %v9825_v8, %v9873_v63  ;;  %13519 = vst [vmem:[#allocation11_spill] sm:$0xff] %v9888_v30 }
  0x23   :  { %9053 = vmatpush3.msra.mxu1 %v62_v32 }
  0x24   :  { %9054 = vmatprep.subr.mxu1 %v61_v33 }
  0x25   :  { %9055 = vmatpush3.msra.mxu1 %v61_v33 }
  0xde   :  { %v9044_v10 = vpop.f32.mrf.mxu0 }
  0xdf   :  { %v9829_v12 = vadd.f32 %v9044_v10, %v221_v9 }
  0xe0   :  { %v301_v11 = vpop.f32.mrf.mxu0 }
  0xe1   :  { %v9831_v13 = vadd.f32 %v301_v11, %v221_v9  ;;  %v339_v20 = vmul.f32 %v9829_v12, %v9829_v12  ;;  %v324_v21 = vsel %vm320_vm1, %v9829_v12, 0.0 }
  0xe2   :  { %v9047_v14 = vpop.f32.mrf.mxu0 }
  0xe3   :  { %v321_v15 = vsel %vm320_vm1, %v9831_v13, 0.0  ;;  %v338_v16 = vmul.f32 %v9831_v13, %v9831_v13  ;;  %v9844_v22 = vadd.f32 %v9047_v14, %v221_v9  ;;  %v345_v23 = vsel %vm320_vm1, %v339_v20, 0.0 }
  0xe4   :  { %322 = vadd.xlane.f32.xlu0 %v321_v15  ;;  %v311_v17 = vpop.f32.mrf.mxu0 }
  0xe5   :  { %v342_v18 = vsel %vm320_vm1, %v338_v16, 0.0  ;;  %v9838_v19 = vadd.f32 %v311_v17, %v221_v9  ;;  %v330_v26 = vsel %vm320_vm1, %v9844_v22, 0.0  ;;  %v341_v27 = vmul.f32 %v9844_v22, %v9844_v22 }
  0xe6   :  { %343 = vadd.xlane.f32.xlu1 %v342_v18 }
  0xe7   :  { %v327_v24 = vsel %vm320_vm1, %v9838_v19, 0.0  ;;  %v340_v25 = vmul.f32 %v9838_v19, %v9838_v19  ;;  %v351_v29 = vsel %vm320_vm1, %v341_v27, 0.0 }
  0xe8   :  { %325 = vadd.xlane.f32.xlu0 %v324_v21 }
  0xe9   :  { %v348_v28 = vsel %vm320_vm1, %v340_v25, 0.0 }
  0xea   :  { %346 = vadd.xlane.f32.xlu1 %v345_v23 }
  0xec   :  { %328 = vadd.xlane.f32.xlu0 %v327_v24 }
  0xee   :  { %331 = vadd.xlane.f32.xlu1 %v330_v26 }
  0xf0   :  { %349 = vadd.xlane.f32.xlu0 %v348_v28 }
  0xf2   :  { %352 = vadd.xlane.f32.xlu1 %v351_v29 }
 0x16d   :  { %v323_v34 = vpop.xlane.xlu0 %322 }
 0x16e   :  { %v334_v35 = vmul.f32 0.03125, %v323_v34 }
 0x16f   :  { %v344_v36 = vpop.xlane.xlu1 %343 }
 0x170   :  { %v358_v37 = vmul.f32 %v334_v35, %v334_v35  ;;  %v354_v38 = vmul.f32 0.03125, %v344_v36  ;;  %v366_v0 = vsub.f32 %v9831_v13, %v334_v35 }
 0x171   :  { %v326_v39 = vpop.xlane.xlu0 %325 }
 0x172   :  { %v362_v40 = vsub.f32 %v354_v38, %v358_v37  ;;  %v335_v41 = vmul.f32 0.03125, %v326_v39 }
 0x173   :  { %v347_v42 = vpop.xlane.xlu1 %346 }
 0x174   :  { %v370_v43 = vadd.f32 1e-05, %v362_v40  ;;  %v359_v44 = vmul.f32 %v335_v41, %v335_v41  ;;  %v355_v45 = vmul.f32 0.03125, %v347_v42  ;;  %v367_v5 = vsub.f32 %v9829_v12, %v335_v41 }
 0x175   :  { %v329_v46 = vpop.xlane.xlu0 %328 }
 0x176   :  { %9137 = vrsqrt.f32 %v370_v43  ;;  %v363_v47 = vsub.f32 %v355_v45, %v359_v44  ;;  %v336_v48 = vmul.f32 0.03125, %v329_v46 }
 0x177   :  { %v332_v49 = vpop.xlane.xlu1 %331 }
 0x178   :  { %v371_v50 = vadd.f32 1e-05, %v363_v47  ;;  %v337_v51 = vmul.f32 0.03125, %v332_v49  ;;  %v360_v53 = vmul.f32 %v336_v48, %v336_v48  ;;  %v368_v17 = vsub.f32 %v9838_v19, %v336_v48 }
 0x179   :  { %v350_v52 = vpop.xlane.xlu0 %349 }
 0x17a   :  { %9139 = vrsqrt.f32 %v371_v50  ;;  %v356_v54 = vmul.f32 0.03125, %v350_v52  ;;  %v361_v56 = vmul.f32 %v337_v51, %v337_v51  ;;  %v369_v20 = vsub.f32 %v9844_v22, %v337_v51  ;;  %v604_v51 = vld [vmem:[%s13482_s2 + $0xc8] sm:$0xff]  ;;  %v606_v52 = vld [vmem:[%s13482_s2 + $0xd8] sm:$0xff] }
 0x17b   :  { %v353_v55 = vpop.xlane.xlu1 %352  ;;  %v405_v22 = vrot.slane %v9825_v8, %v9888_v30  ;;  %692 = vmatprep.subr.mxu0 %v604_v51  ;;  %781 = vmatprep.subr.mxu1 %v606_v52 }
 0x17c   :  { %v364_v57 = vsub.f32 %v356_v54, %v360_v53  ;;  %v357_v58 = vmul.f32 0.03125, %v353_v55  ;;  %v603_v53 = vld [vmem:[%s13482_s2 + $0xc0] sm:$0xff]  ;;  %v605_v54 = vld [vmem:[%s13482_s2 + $0xd0] sm:$0xff]  ;;  %v596_v55 = vld [vmem:[%s13482_s2 + $0x88] sm:$0xff] }
 0x17d   :  { %693 = vmatpush1.msra.mxu0 %v603_v53 }
 0x17e   :  { %v372_v59 = vadd.f32 1e-05, %v364_v57  ;;  %v365_v60 = vsub.f32 %v357_v58, %v361_v56  ;;  %v598_v56 = vld [vmem:[%s13482_s2 + $0x98] sm:$0xff]  ;;  %694 = vmatprep.subr.mxu0 %v596_v55  ;;  %v595_v57 = vld [vmem:[%s13482_s2 + $0x80] sm:$0xff]  ;;  %v597_v58 = vld [vmem:[%s13482_s2 + $0x90] sm:$0xff] }
 0x17f   :  { %695 = vmatpush1.msra.mxu0 %v595_v57  ;;  %v602_v57 = vld [vmem:[%s13482_s2 + $0xb8] sm:$0xff] }
 0x180   :  { %9141 = vrsqrt.f32 %v372_v59  ;;  %v373_v62 = vadd.f32 1e-05, %v365_v60  ;;  %v588_v59 = vld [vmem:[%s13482_s2 + $0x48] sm:$0xff]  ;;  %v590_v60 = vld [vmem:[%s13482_s2 + $0x58] sm:$0xff] }
 0x181   :  { %696 = vmatprep.subr.mxu0 %v588_v59 }
 0x182   :  { %9143 = vrsqrt.f32 %v373_v62  ;;  %v587_v62 = vld [vmem:[%s13482_s2 + $0x40] sm:$0xff] }
 0x183   :  { %v9138_v2 = vpop.eup %9137  ;;  %697 = vmatpush1.msra.mxu0 %v587_v62  ;;  %v601_v62 = vld [vmem:[%s13482_s2 + $0xb0] sm:$0xff] }
 0x184   :  { %v378_v3 = vmul.f32 %v9138_v2, %v366_v0  ;;  %v589_v0 = vld [vmem:[%s13482_s2 + $0x50] sm:$0xff]  ;;  %v582_v2 = vld [vmem:[%s13482_s2 + $0x18] sm:$0xff] }
 0x186   :  { %v386_v9 = vmul.f32 %v385_v1, %v378_v3  ;;  %v579_v3 = vld [vmem:[%s13482_s2] sm:$0xff] }
 0x187   :  { %v9140_v10 = vpop.eup %9139 }
 0x188   :  { %v394_v11 = vadd.f32 %v393_v4, %v386_v9  ;;  %v379_v14 = vmul.f32 %v9140_v10, %v367_v5  ;;  %v13490_v5 = vmov 0.0   ;;  %v608_v9 = vld [vmem:[%s13482_s2 + $0xe8] sm:$0xff]  ;;  %v610_v10 = vld [vmem:[%s13482_s2 + $0xf8] sm:$0xff] }
 0x189   :  { %732 = vmatprep.mubr.f32.mxu0 %v13490_v5 }
 0x18a   :  { %v398_v15 = vmax.f32 %v394_v11, 0.0  ;;  %v387_v16 = vmul.f32 %v385_v1, %v379_v14 }
 0x18c   :  { %9056 = vmatprep.mubr.msk.f32.mxu1 %vm320_vm1, %v398_v15  ;;  %v395_v13 = vadd.f32 %v393_v4, %v387_v16 }
 0x18d   :  { %v9142_v18 = vpop.eup %9141 }
 0x18e   :  { %v399_v21 = vmax.f32 %v395_v13, 0.0  ;;  %v380_v23 = vmul.f32 %v9142_v18, %v368_v17 }
 0x18f   :  { %v9144_v24 = vpop.eup %9143 }
 0x190   :  { %9057 = vmatmul.mubr.msk.f32.vlgmr.msra.gmra.mxu1 %vm320_vm1, %v399_v21  ;;  %v388_v12 = vmul.f32 %v385_v1, %v380_v23  ;;  %v381_v25 = vmul.f32 %v9144_v24, %v369_v20 }
 0x191   :  { %782 = vmatpush1.msra.mxu1 %v605_v54 }
 0x192   :  { %v396_v26 = vadd.f32 %v393_v4, %v388_v12  ;;  %v389_v27 = vmul.f32 %v385_v1, %v381_v25  ;;  %783 = vmatprep.subr.mxu1 %v598_v56  ;;  %v580_v1 = vld [vmem:[%s13482_s2 + $0x8] sm:$0xff] }
 0x193   :  { %784 = vmatpush1.msra.mxu1 %v597_v58  ;;  %698 = vmatprep.subr.mxu0 %v580_v1 }
 0x194   :  { %v400_v28 = vmax.f32 %v396_v26, 0.0  ;;  %v397_v29 = vadd.f32 %v393_v4, %v389_v27  ;;  %785 = vmatprep.subr.mxu1 %v590_v60  ;;  %v581_v4 = vld [vmem:[%s13482_s2 + $0x10] sm:$0xff]  ;;  %699 = vmatpush1.msra.mxu0 %v579_v3  ;;  %v599_v60 = vld [vmem:[%s13482_s2 + $0xa0] sm:$0xff]  ;;  %v594_v3 = vld [vmem:[%s13482_s2 + $0x78] sm:$0xff] }
 0x195   :  { %786 = vmatpush1.msra.mxu1 %v589_v0  ;;  %870 = vmatprep.subr.mxu0 %v608_v9 }
 0x196   :  { %9059 = vmatprep.mubr.msk.f32.mxu1 %vm320_vm1, %v400_v28  ;;  %v401_v19 = vmax.f32 %v397_v29, 0.0  ;;  %787 = vmatprep.subr.mxu1 %v582_v2  ;;  %v592_v2 = vld [vmem:[%s13482_s2 + $0x68] sm:$0xff] }
 0x197   :  { %788 = vmatpush1.msra.mxu1 %v581_v4 }
 0x198   :  { %9060 = vmatmul.mubr.msk.f32.gmra.mxu1 %vm320_vm1, %v401_v19  ;;  %959 = vmatprep.subr.mxu1 %v610_v10  ;;  %v591_v10 = vld [vmem:[%s13482_s2 + $0x60] sm:$0xff] }
 0x199   :  { %821 = vmatprep.mubr.f32.mxu1 %v13490_v5 }
 0x250   :  { %v9058_v31 = vpop.f32.mrf.mxu1 }
 0x251   :  { %v9892_v33 = vadd.f32 %v9058_v31, %v405_v22 }
 0x252   :  { %v484_v32 = vpop.f32.mrf.mxu1 }
 0x253   :  { %v9894_v34 = vadd.f32 %v484_v32, %v405_v22  ;;  %v520_v38 = vmul.f32 %v9892_v33, %v9892_v33  ;;  %v506_v40 = vsel %vm320_vm1, %v9892_v33, 0.0 }
 0x255   :  { %v503_v35 = vsel %vm320_vm1, %v9894_v34, 0.0  ;;  %v519_v36 = vmul.f32 %v9894_v34, %v9894_v34  ;;  %v526_v44 = vsel %vm320_vm1, %v520_v38, 0.0 }
 0x256   :  { %504 = vadd.xlane.f32.xlu0 %v503_v35 }
 0x257   :  { %v523_v37 = vsel %vm320_vm1, %v519_v36, 0.0 }
 0x258   :  { %524 = vadd.xlane.f32.xlu1 %v523_v37  ;;  %v9061_v39 = vpop.f32.mrf.mxu1 }
 0x259   :  { %v9905_v42 = vadd.f32 %v9061_v39, %v405_v22 }
 0x25a   :  { %507 = vadd.xlane.f32.xlu0 %v506_v40  ;;  %v494_v41 = vpop.f32.mrf.mxu1  ;;  %v565_v40 = vsub.s32 4, %v9817_v6 }
 0x25b   :  { %v9907_v43 = vadd.f32 %v494_v41, %v405_v22  ;;  %v522_v48 = vmul.f32 %v9905_v42, %v9905_v42  ;;  %v512_v49 = vsel %vm320_vm1, %v9905_v42, 0.0 }
 0x25c   :  { %527 = vadd.xlane.f32.xlu1 %v526_v44 }
 0x25d   :  { %v509_v45 = vsel %vm320_vm1, %v9907_v43, 0.0  ;;  %v521_v46 = vmul.f32 %v9907_v43, %v9907_v43  ;;  %v532_v50 = vsel %vm320_vm1, %v522_v48, 0.0 }
 0x25e   :  { %510 = vadd.xlane.f32.xlu0 %v509_v45  ;;  %v573_v45 = vsub.s32 5, %v9817_v6  ;;  %v607_v6 = vld [vmem:[%s13482_s2 + $0xe0] sm:$0xff] }
 0x25f   :  { %v529_v47 = vsel %vm320_vm1, %v521_v46, 0.0  ;;  %v566_v46 = vrot.slane %v9825_v8, %v565_v40 }
 0x260   :  { %530 = vadd.xlane.f32.xlu1 %v529_v47 }
 0x262   :  { %513 = vadd.xlane.f32.xlu0 %v512_v49 }
 0x264   :  { %533 = vadd.xlane.f32.xlu1 %v532_v50  ;;  %v574_v50 = vrot.slane %v9825_v8, %v573_v45 }
 0x2df   :  { %v505_v11 = vpop.xlane.xlu0 %504 }
 0x2e0   :  { %v515_v14 = vmul.f32 0.03125, %v505_v11  ;;  %v593_v11 = vld [vmem:[%s13482_s2 + $0x70] sm:$0xff] }
 0x2e1   :  { %v525_v15 = vpop.xlane.xlu1 %524 }
 0x2e2   :  { %v539_v16 = vmul.f32 %v515_v14, %v515_v14  ;;  %v535_v17 = vmul.f32 0.03125, %v525_v15  ;;  %v547_v47 = vsub.f32 %v9894_v34, %v515_v14  ;;  %v609_v34 = vld [vmem:[%s13482_s2 + $0xf0] sm:$0xff]  ;;  %v584_v15 = vld [vmem:[%s13482_s2 + $0x28] sm:$0xff] }
 0x2e3   :  { %v508_v13 = vpop.xlane.xlu0 %507 }
 0x2e4   :  { %v543_v18 = vsub.f32 %v535_v17, %v539_v16  ;;  %v516_v20 = vmul.f32 0.03125, %v508_v13  ;;  %v586_v16 = vld [vmem:[%s13482_s2 + $0x38] sm:$0xff]  ;;  %v583_v13 = vld [vmem:[%s13482_s2 + $0x20] sm:$0xff] }
 0x2e5   :  { %v528_v21 = vpop.xlane.xlu1 %527 }
 0x2e6   :  { %v551_v23 = vadd.f32 1e-05, %v543_v18  ;;  %v540_v24 = vmul.f32 %v516_v20, %v516_v20  ;;  %v536_v12 = vmul.f32 0.03125, %v528_v21  ;;  %v548_v51 = vsub.f32 %v9892_v33, %v516_v20  ;;  %v600_v33 = vld [vmem:[%s13482_s2 + $0xa8] sm:$0xff]  ;;  %v585_v18 = vld [vmem:[%s13482_s2 + $0x30] sm:$0xff] }
 0x2e7   :  { %v511_v25 = vpop.xlane.xlu0 %510 }
 0x2e8   :  { %9145 = vrsqrt.f32 %v551_v23  ;;  %v544_v26 = vsub.f32 %v536_v12, %v540_v24  ;;  %v517_v27 = vmul.f32 0.03125, %v511_v25 }
 0x2e9   :  { %v531_v28 = vpop.xlane.xlu1 %530 }
 0x2ea   :  { %v552_v29 = vadd.f32 1e-05, %v544_v26  ;;  %v541_v19 = vmul.f32 %v517_v27, %v517_v27  ;;  %v537_v22 = vmul.f32 0.03125, %v531_v28  ;;  %v549_v56 = vsub.f32 %v9907_v43, %v517_v27 }
 0x2eb   :  { %v514_v31 = vpop.xlane.xlu0 %513 }
 0x2ec   :  { %9147 = vrsqrt.f32 %v552_v29  ;;  %v545_v32 = vsub.f32 %v537_v22, %v541_v19  ;;  %v518_v35 = vmul.f32 0.03125, %v514_v31 }
 0x2ed   :  { %v534_v36 = vpop.xlane.xlu1 %533 }
 0x2ee   :  { %v553_v37 = vadd.f32 1e-05, %v545_v32  ;;  %v542_v38 = vmul.f32 %v518_v35, %v518_v35  ;;  %v538_v39 = vmul.f32 0.03125, %v534_v36  ;;  %v550_v0 = vsub.f32 %v9905_v42, %v518_v35 }
 0x2f0   :  { %9149 = vrsqrt.f32 %v553_v37  ;;  %v546_v41 = vsub.f32 %v538_v39, %v542_v38 }
 0x2f2   :  { %v554_v44 = vadd.f32 1e-05, %v546_v41 }
 0x2f4   :  { %9151 = vrsqrt.f32 %v554_v44 }
 0x2f5   :  { %v9146_v48 = vpop.eup %9145 }
 0x2f6   :  { %v559_v49 = vmul.f32 %v9146_v48, %v547_v47 }
 0x2f8   :  { %v567_v52 = vmul.f32 %v566_v46, %v559_v49 }
 0x2f9   :  { %v9148_v53 = vpop.eup %9147 }
 0x2fa   :  { %v9982_v54 = vadd.f32 %v574_v50, %v567_v52  ;;  %v560_v55 = vmul.f32 %v9148_v53, %v548_v51  ;;  %v7779_v53 = vld [vmem:[%s13482_s2 + $0x120] ss:$0 sm:$0xff] }
 0x2fc   :  { %13520 = vst [vmem:[#allocation12_spill] sm:$0xff] %v9982_v54  ;;  %7783 = vmatmul.mubr.msk.f32.vlgmr.msra.gmra.mxu0 %vm320_vm1, %v9982_v54  ;;  %7787 = vmatmul.mubr.msk.f32.vlgmr.msra.gmra.mxu1 %vm320_vm1, %v9982_v54  ;;  %v568_v8 = vmul.f32 %v566_v46, %v560_v55  ;;  %v7781_v55 = vld [vmem:[%s13482_s2 + $0x130] ss:$0 sm:$0xff] }
 0x2fd   :  { %v9150_v58 = vpop.eup %9149  ;;  %738 = vmatprep.mubr.f32.mxu0 %v13490_v5  ;;  %827 = vmatprep.mubr.f32.mxu1 %v13490_v5 }
 0x2fe   :  { %v10003_v43 = vadd.f32 %v574_v50, %v568_v8  ;;  %v561_v59 = vmul.f32 %v9150_v58, %v549_v56  ;;  %871 = vmatpush1.msra.mxu0 %v607_v6  ;;  %960 = vmatpush1.msra.mxu1 %v609_v34  ;;  %v7780_v6 = vld [vmem:[%s13482_s2 + $0x128] ss:$0 sm:$0xff]  ;;  %v7782_v34 = vld [vmem:[%s13482_s2 + $0x138] ss:$0 sm:$0xff] }
 0x2ff   :  { %872 = vmatprep.subr.mxu0 %v600_v33  ;;  %961 = vmatprep.subr.mxu1 %v602_v57  ;;  %v147_v33 = vld [vmem:[#allocation4 + $0x68] sm:$0xff]  ;;  %v149_v58 = vld [vmem:[#allocation4 + $0x78] sm:$0xff] }
 0x300   :  { %13521 = vst [vmem:[#allocation13_spill] sm:$0xff] %v10003_v43  ;;  %7784 = vmatmul.mubr.msk.f32.gmra.mxu0 %vm320_vm1, %v10003_v43  ;;  %7788 = vmatmul.mubr.msk.f32.gmra.mxu1 %vm320_vm1, %v10003_v43  ;;  %v569_v1 = vmul.f32 %v566_v46, %v561_v59 }
 0x301   :  { %v9152_v4 = vpop.eup %9151  ;;  %744 = vmatprep.mubr.f32.mxu0 %v13490_v5  ;;  %833 = vmatprep.mubr.f32.mxu1 %v13490_v5 }
 0x302   :  { %v10024_v42 = vadd.f32 %v574_v50, %v569_v1  ;;  %873 = vmatpush1.msra.mxu0 %v599_v60  ;;  %962 = vmatpush1.msra.mxu1 %v601_v62  ;;  %v562_v9 = vmul.f32 %v9152_v4, %v550_v0  ;;  %v146_v0 = vld [vmem:[#allocation4 + $0x60] sm:$0xff]  ;;  %v148_v1 = vld [vmem:[#allocation4 + $0x70] sm:$0xff] }
 0x303   :  { %874 = vmatprep.subr.mxu0 %v592_v2  ;;  %963 = vmatprep.subr.mxu1 %v594_v3 }
 0x304   :  { %13522 = vst [vmem:[#allocation14_spill] sm:$0xff] %v10024_v42  ;;  %7785 = vmatmul.mubr.msk.f32.gmra.mxu0 %vm320_vm1, %v10024_v42  ;;  %7789 = vmatmul.mubr.msk.f32.gmra.mxu1 %vm320_vm1, %v10024_v42  ;;  %v570_v14 = vmul.f32 %v566_v46, %v562_v9 }
 0x305   :  { %750 = vmatprep.mubr.f32.mxu0 %v13490_v5  ;;  %839 = vmatprep.mubr.f32.mxu1 %v13490_v5 }
 0x306   :  { %v10044_v17 = vadd.f32 %v574_v50, %v570_v14  ;;  %875 = vmatpush1.msra.mxu0 %v591_v10  ;;  %964 = vmatpush1.msra.mxu1 %v593_v11  ;;  %v143_v14 = vld [vmem:[#allocation4 + $0x48] sm:$0xff] }
 0x307   :  { %876 = vmatprep.subr.mxu0 %v584_v15  ;;  %965 = vmatprep.subr.mxu1 %v586_v16  ;;  %v145_v15 = vld [vmem:[#allocation4 + $0x58] sm:$0xff] }
 0x308   :  { %13523 = vst [vmem:[#allocation15_spill] sm:$0xff] %v10044_v17  ;;  %7786 = vmatmul.mubr.msk.f32.gmra.mxu0 %vm320_vm1, %v10044_v17  ;;  %7790 = vmatmul.mubr.msk.f32.gmra.mxu1 %vm320_vm1, %v10044_v17 }
 0x309   :  { %877 = vmatpush1.msra.mxu0 %v583_v13  ;;  %910 = vmatprep.mubr.f32.mxu0 %v13490_v5 }
 0x30a   :  { %966 = vmatpush1.msra.mxu1 %v585_v18  ;;  %999 = vmatprep.mubr.f32.mxu1 %v13490_v5  ;;  %v142_v18 = vld [vmem:[#allocation4 + $0x40] sm:$0xff] }
 0x30c   :  { %7791 = vmatmul.mubr.msk.f32.vlgmr.msra.gmra.mxu0 %vm320_vm1, %v9982_v54  ;;  %7795 = vmatmul.mubr.msk.f32.vlgmr.msra.gmra.mxu1 %vm320_vm1, %v9982_v54 }
 0x30d   :  { %916 = vmatprep.mubr.f32.mxu0 %v13490_v5  ;;  %1005 = vmatprep.mubr.f32.mxu1 %v13490_v5 }
 0x310   :  { %7792 = vmatmul.mubr.msk.f32.gmra.mxu0 %vm320_vm1, %v10003_v43  ;;  %7796 = vmatmul.mubr.msk.f32.gmra.mxu1 %vm320_vm1, %v10003_v43 }
 0x311   :  { %922 = vmatprep.mubr.f32.mxu0 %v13490_v5  ;;  %1011 = vmatprep.mubr.f32.mxu1 %v13490_v5 }
 0x314   :  { %7793 = vmatmul.mubr.msk.f32.gmra.mxu0 %vm320_vm1, %v10024_v42  ;;  %7797 = vmatmul.mubr.msk.f32.gmra.mxu1 %vm320_vm1, %v10024_v42 }
 0x315   :  { %928 = vmatprep.mubr.f32.mxu0 %v13490_v5  ;;  %1017 = vmatprep.mubr.f32.mxu1 %v13490_v5 }
 0x318   :  { %7794 = vmatmul.mubr.msk.f32.gmra.mxu0 %vm320_vm1, %v10044_v17  ;;  %7798 = vmatmul.mubr.msk.f32.gmra.mxu1 %vm320_vm1, %v10044_v17 }
 0x319   :  { %1116 = vmatprep.mubr.f32.mxu0 %v13490_v5  ;;  %1205 = vmatprep.mubr.f32.mxu1 %v13490_v5 }
 0x3bc   :  { %v10082_v20 = vpop.f32.mrf.mxu0  ;;  %v10084_v21 = vpop.f32.mrf.mxu1 }
 0x3be   :  { %v10086_v23 = vpop.f32.mrf.mxu0  ;;  %v10088_v24 = vpop.f32.mrf.mxu1 }
 0x3c0   :  { %v10090_v12 = vpop.f32.mrf.mxu0  ;;  %v10092_v25 = vpop.f32.mrf.mxu1 }
 0x3c2   :  { %v10094_v26 = vpop.f32.mrf.mxu0  ;;  %v10096_v27 = vpop.f32.mrf.mxu1 }
 0x3c4   :  { %v10098_v28 = vpop.f32.mrf.mxu0  ;;  %v10100_v29 = vpop.f32.mrf.mxu1 }
 0x3c6   :  { %v10102_v19 = vpop.f32.mrf.mxu0  ;;  %v10104_v22 = vpop.f32.mrf.mxu1 }
 0x3c8   :  { %v10106_v31 = vpop.f32.mrf.mxu0  ;;  %v10108_v32 = vpop.f32.mrf.mxu1 }
 0x3ca   :  { %v10110_v35 = vpop.f32.mrf.mxu0  ;;  %v10112_v36 = vpop.f32.mrf.mxu1 }
 0x3cc   :  { %v912_v37 = vpop.f32.mrf.mxu0  ;;  %v1001_v38 = vpop.f32.mrf.mxu1 }
 0x3cd   :  { %v913_v4 = vadd.f32 %v7779_v53, %v912_v37  ;;  %v140_v37 = vld [vmem:[#allocation4 + $0x30] sm:$0xff] }
 0x3ce   :  { %v914_v39 = vpop.f32.mrf.mxu0  ;;  %v1003_v40 = vpop.f32.mrf.mxu1 }
 0x3cf   :  { %v915_v9 = vadd.f32 %v7780_v6, %v914_v39 }
 0x3d0   :  { %v918_v41 = vpop.f32.mrf.mxu0  ;;  %v1007_v44 = vpop.f32.mrf.mxu1 }
 0x3d1   :  { %v919_v17 = vadd.f32 %v7779_v53, %v918_v41  ;;  %v1008_v42 = vadd.f32 %v7781_v55, %v1007_v44  ;;  %v134_v41 = vld [vmem:[#allocation4] sm:$0xff]  ;;  %v136_v44 = vld [vmem:[#allocation4 + $0x10] sm:$0xff] }
 0x3d2   :  { %v920_v45 = vpop.f32.mrf.mxu0  ;;  %v1009_v46 = vpop.f32.mrf.mxu1 }
 0x3d3   :  { %v921_v16 = vadd.f32 %v7780_v6, %v920_v45  ;;  %v1010_v13 = vadd.f32 %v7782_v34, %v1009_v46  ;;  %v135_v45 = vld [vmem:[#allocation4 + $0x8] sm:$0xff]  ;;  %v137_v46 = vld [vmem:[#allocation4 + $0x18] sm:$0xff] }
 0x3d4   :  { %v924_v47 = vpop.f32.mrf.mxu0  ;;  %v1013_v48 = vpop.f32.mrf.mxu1 }
 0x3d5   :  { %v925_v10 = vadd.f32 %v7779_v53, %v924_v47  ;;  %v1014_v11 = vadd.f32 %v7781_v55, %v1013_v48  ;;  %v1002_v48 = vadd.f32 %v7781_v55, %v1001_v38 }
 0x3d6   :  { %v926_v49 = vpop.f32.mrf.mxu0  ;;  %v1015_v50 = vpop.f32.mrf.mxu1 }
 0x3d7   :  { %v927_v60 = vadd.f32 %v7780_v6, %v926_v49  ;;  %v1016_v62 = vadd.f32 %v7782_v34, %v1015_v50  ;;  %v139_v49 = vld [vmem:[#allocation4 + $0x28] sm:$0xff]  ;;  %v141_v50 = vld [vmem:[#allocation4 + $0x38] sm:$0xff]  ;;  %v1026_v38 = vmul.f32 %v1002_v48, %v136_v44  ;;  %v1366_v44 = vld [vmem:[%s13484_s4 + $0x140] sm:$0xff] }
 0x3d8   :  { %v930_v51 = vpop.f32.mrf.mxu0  ;;  %v1019_v52 = vpop.f32.mrf.mxu1  ;;  %v1335_v48 = vld [vmem:[%s13484_s4 + $0x48] sm:$0xff] }
 0x3d9   :  { %v931_v56 = vadd.f32 %v7779_v53, %v930_v51  ;;  %v1020_v8 = vadd.f32 %v7781_v55, %v1019_v52  ;;  %v144_v51 = vld [vmem:[#allocation4 + $0x50] sm:$0xff]  ;;  %v1033_v39 = vmul.f32 %v927_v60, %v143_v14  ;;  %v1035_v47 = vmul.f32 %v1016_v62, %v145_v15  ;;  %v1354_v14 = vld [vmem:[%s13484_s4 + $0xe0] sm:$0xff] }
 0x3da   :  { %v932_v57 = vpop.f32.mrf.mxu0  ;;  %v1021_v59 = vpop.f32.mrf.mxu1  ;;  %v1034_v30 = vmul.f32 %v1014_v11, %v144_v51  ;;  %v1029_v53 = vmul.f32 %v921_v16, %v139_v49  ;;  %v13524_v55 = vmov 0.0   ;;  %v1356_v60 = vld [vmem:[%s13484_s4 + $0xf0] sm:$0xff]  ;;  %v69_v11 = vld [vmem:[%s13485_s5 + $0x18] sm:$0xff]  ;;  %v1386_v15 = vld [vmem:[%s13484_s4 + $0x1e0] sm:$0xff] }
 0x3db   :  { %v933_v2 = vadd.f32 %v7780_v6, %v932_v57  ;;  %v1022_v3 = vadd.f32 %v7782_v34, %v1021_v59  ;;  %v1036_v43 = vmul.f32 %v931_v56, %v146_v0  ;;  %v1038_v54 = vmul.f32 %v1020_v8, %v148_v1  ;;  %v138_v59 = vld [vmem:[#allocation4 + $0x20] sm:$0xff]  ;;  %v1388_v62 = vld [vmem:[%s13484_s4 + $0x1f0] sm:$0xff]  ;;  %v1385_v51 = vld [vmem:[%s13484_s4 + $0x1d8] sm:$0xff] }
 0x3dc   :  { %v1004_v57 = vadd.f32 %v7782_v34, %v1003_v40  ;;  %v1032_v6 = vmul.f32 %v925_v10, %v142_v18  ;;  %v1028_v40 = vmul.f32 %v919_v17, %v138_v59  ;;  %v1030_v34 = vmul.f32 %v1008_v42, %v140_v37  ;;  %v1341_v42 = vld [vmem:[%s13484_s4 + $0x78] sm:$0xff]  ;;  %v1340_v0 = vld [vmem:[%s13484_s4 + $0x70] sm:$0xff]  ;;  %v1371_v10 = vld [vmem:[%s13484_s4 + $0x168] sm:$0xff] }
 0x3dd   :  { %v1037_v52 = vmul.f32 %v933_v2, %v147_v33  ;;  %v1039_v5 = vmul.f32 %v1022_v3, %v149_v58  ;;  %v1031_v33 = vmul.f32 %v1010_v13, %v141_v50  ;;  %v1025_v56 = vmul.f32 %v915_v9, %v135_v45  ;;  %v1373_v17 = vld [vmem:[%s13484_s4 + $0x178] sm:$0xff]  ;;  %v67_v58 = vld [vmem:[%s13485_s5 + $0x8] sm:$0xff]  ;;  %v1372_v1 = vld [vmem:[%s13484_s4 + $0x170] sm:$0xff] }
 0x3de   :  { %v1027_v8 = vmul.f32 %v1004_v57, %v137_v46  ;;  %v68_v2 = vld [vmem:[%s13485_s5 + $0x10] sm:$0xff]  ;;  %v1355_v3 = vld [vmem:[%s13484_s4 + $0xe8] sm:$0xff]  ;;  %v1338_v16 = vld [vmem:[%s13484_s4 + $0x60] sm:$0xff] }
 0x3df   :  { %1076 = vmatprep.subr.mxu0 %v1037_v52  ;;  %1165 = vmatprep.subr.mxu1 %v1039_v5  ;;  %v1024_v5 = vmul.f32 %v913_v4, %v134_v41  ;;  %v1387_v4 = vld [vmem:[%s13484_s4 + $0x1e8] sm:$0xff]  ;;  %v1370_v13 = vld [vmem:[%s13484_s4 + $0x160] sm:$0xff]  ;;  %v1353_v18 = vld [vmem:[%s13484_s4 + $0xd8] sm:$0xff] }
 0x3e0   :  { %1077 = vmatpush1.msra.mxu0 %v1036_v43  ;;  %1166 = vmatpush1.msra.mxu1 %v1038_v54  ;;  %v66_v54 = vld [vmem:[%s13485_s5] sm:$0xff]  ;;  %v1389_v43 = vld [vmem:[%s13484_s4 + $0x1f8] sm:$0xff]  ;;  %v1339_v9 = vld [vmem:[%s13484_s4 + $0x68] sm:$0xff] }
 0x3e1   :  { %1078 = vmatprep.subr.mxu0 %v1033_v39  ;;  %1167 = vmatprep.subr.mxu1 %v1035_v47  ;;  %v1337_v52 = vld [vmem:[%s13484_s4 + $0x58] sm:$0xff]  ;;  %v1352_v50 = vld [vmem:[%s13484_s4 + $0xd0] sm:$0xff]  ;;  %v1351_v39 = vld [vmem:[%s13484_s4 + $0xc8] sm:$0xff] }
 0x3e2   :  { %1079 = vmatpush1.msra.mxu0 %v1032_v6  ;;  %1168 = vmatpush1.msra.mxu1 %v1034_v30  ;;  %v1357_v30 = vld [vmem:[%s13484_s4 + $0xf8] sm:$0xff]  ;;  %v1384_v57 = vld [vmem:[%s13484_s4 + $0x1d0] sm:$0xff]  ;;  %v1383_v47 = vld [vmem:[%s13484_s4 + $0x1c8] sm:$0xff] }
 0x3e3   :  { %1080 = vmatprep.subr.mxu0 %v1029_v53  ;;  %1169 = vmatprep.subr.mxu1 %v1031_v33  ;;  %v1369_v49 = vld [vmem:[%s13484_s4 + $0x158] sm:$0xff]  ;;  %v1336_v59 = vld [vmem:[%s13484_s4 + $0x50] sm:$0xff]  ;;  %v1367_v45 = vld [vmem:[%s13484_s4 + $0x148] sm:$0xff] }
 0x3e4   :  { %1081 = vmatpush1.msra.mxu0 %v1028_v40  ;;  %1170 = vmatpush1.msra.mxu1 %v1030_v34  ;;  %v1368_v37 = vld [vmem:[%s13484_s4 + $0x150] sm:$0xff]  ;;  %v1350_v46 = vld [vmem:[%s13484_s4 + $0xc0] sm:$0xff]  ;;  %v1349_v53 = vld [vmem:[%s13484_s4 + $0xb8] sm:$0xff] }
 0x3e5   :  { %1082 = vmatprep.subr.mxu0 %v1025_v56  ;;  %1171 = vmatprep.subr.mxu1 %v1027_v8  ;;  %v1382_v6 = vld [vmem:[%s13484_s4 + $0x1c0] sm:$0xff]  ;;  %v1381_v33 = vld [vmem:[%s13484_s4 + $0x1b8] sm:$0xff]  ;;  %v1348_v56 = vld [vmem:[%s13484_s4 + $0xb0] sm:$0xff] }
 0x3e6   :  { %1083 = vmatpush1.msra.mxu0 %v1024_v5  ;;  %1172 = vmatpush1.msra.mxu1 %v1026_v38  ;;  %v1334_v41 = vld [vmem:[%s13484_s4 + $0x40] sm:$0xff]  ;;  %v1333_v40 = vld [vmem:[%s13484_s4 + $0x38] sm:$0xff]  ;;  %v1380_v8 = vld [vmem:[%s13484_s4 + $0x1b0] sm:$0xff] }
 0x3e7   :  { %7799 = vmatmul.mubr.msk.f32.vlgmr.msra.gmra.mxu0 %vm320_vm1, %v66_v54  ;;  %7803 = vmatmul.mubr.msk.f32.vlgmr.msra.gmra.mxu1 %vm320_vm1, %v66_v54  ;;  %v1365_v34 = vld [vmem:[%s13484_s4 + $0x138] sm:$0xff]  ;;  %v1332_v5 = vld [vmem:[%s13484_s4 + $0x30] sm:$0xff]  ;;  %v1347_v54 = vld [vmem:[%s13484_s4 + $0xa8] sm:$0xff] }
 0x3e8   :  { %1122 = vmatprep.mubr.f32.mxu0 %v13524_v55  ;;  %1211 = vmatprep.mubr.f32.mxu1 %v13524_v55  ;;  %v1364_v38 = vld [vmem:[%s13484_s4 + $0x130] sm:$0xff] }
 0x3e9   :  { %8296 = vmatprep.subr.mxu0 %v1357_v30  ;;  %8340 = vmatprep.subr.mxu1 %v1389_v43  ;;  %v1379_v30 = vld [vmem:[%s13484_s4 + $0x1a8] sm:$0xff] }
 0x3ea   :  { %8297 = vmatpush3.msra.mxu0 %v1341_v42  ;;  %8341 = vmatpush3.msra.mxu1 %v1373_v17  ;;  %v1331_v43 = vld [vmem:[%s13484_s4 + $0x28] sm:$0xff]  ;;  %v1346_v17 = vld [vmem:[%s13484_s4 + $0xa0] sm:$0xff] }
 0x3eb   :  { %7800 = vmatmul.mubr.msk.f32.gmra.mxu0 %vm320_vm1, %v67_v58  ;;  %7804 = vmatmul.mubr.msk.f32.gmra.mxu1 %vm320_vm1, %v67_v58  ;;  %v1363_v42 = vld [vmem:[%s13484_s4 + $0x128] sm:$0xff]  ;;  %v1378_v58 = vld [vmem:[%s13484_s4 + $0x1a0] sm:$0xff] }
 0x3ec   :  { %1128 = vmatprep.mubr.f32.mxu0 %v13524_v55  ;;  %1217 = vmatprep.mubr.f32.mxu1 %v13524_v55 }
 0x3ed   :  { %8298 = vmatprep.subr.mxu0 %v1356_v60  ;;  %8342 = vmatprep.subr.mxu1 %v1388_v62  ;;  %v1330_v60 = vld [vmem:[%s13484_s4 + $0x20] sm:$0xff] }
 0x3ee   :  { %8299 = vmatpush3.msra.mxu0 %v1340_v0  ;;  %8343 = vmatpush3.msra.mxu1 %v1372_v1  ;;  %v1362_v62 = vld [vmem:[%s13484_s4 + $0x120] sm:$0xff]  ;;  %v1345_v0 = vld [vmem:[%s13484_s4 + $0x98] sm:$0xff] }
 0x3ef   :  { %7801 = vmatmul.mubr.msk.f32.gmra.mxu0 %vm320_vm1, %v68_v2  ;;  %7805 = vmatmul.mubr.msk.f32.gmra.mxu1 %vm320_vm1, %v68_v2  ;;  %v1377_v1 = vld [vmem:[%s13484_s4 + $0x198] sm:$0xff] }
 0x3f0   :  { %1134 = vmatprep.mubr.f32.mxu0 %v13524_v55  ;;  %1223 = vmatprep.mubr.f32.mxu1 %v13524_v55  ;;  %v1329_v2 = vld [vmem:[%s13484_s4 + $0x18] sm:$0xff] }
 0x3f1   :  { %8300 = vmatprep.subr.mxu0 %v1355_v3  ;;  %8344 = vmatprep.subr.mxu1 %v1387_v4  ;;  %v1361_v3 = vld [vmem:[%s13484_s4 + $0x118] sm:$0xff]  ;;  %v1344_v4 = vld [vmem:[%s13484_s4 + $0x90] sm:$0xff] }
 0x3f2   :  { %8301 = vmatpush3.msra.mxu0 %v1339_v9  ;;  %8345 = vmatpush3.msra.mxu1 %v1371_v10  ;;  %v1376_v9 = vld [vmem:[%s13484_s4 + $0x190] sm:$0xff] }
 0x3f3   :  { %7802 = vmatmul.mubr.msk.f32.gmra.mxu0 %vm320_vm1, %v69_v11  ;;  %7806 = vmatmul.mubr.msk.f32.gmra.mxu1 %vm320_vm1, %v69_v11  ;;  %v1328_v10 = vld [vmem:[%s13484_s4 + $0x10] sm:$0xff] }
 0x3f4   :  { %8302 = vmatprep.subr.mxu0 %v1354_v14  ;;  %8346 = vmatprep.subr.mxu1 %v1386_v15  ;;  %v1360_v11 = vld [vmem:[%s13484_s4 + $0x110] sm:$0xff]  ;;  %v1343_v14 = vld [vmem:[%s13484_s4 + $0x88] sm:$0xff] }
 0x3f5   :  { %8303 = vmatpush3.msra.mxu0 %v1338_v16  ;;  %8347 = vmatpush3.msra.mxu1 %v1370_v13  ;;  %v1375_v15 = vld [vmem:[%s13484_s4 + $0x188] sm:$0xff] }
 0x3f6   :  { %8304 = vmatprep.subr.mxu0 %v1353_v18  ;;  %8348 = vmatprep.subr.mxu1 %v1385_v51  ;;  %v1327_v16 = vld [vmem:[%s13484_s4 + $0x8] sm:$0xff]  ;;  %v1342_v18 = vld [vmem:[%s13484_s4 + $0x80] sm:$0xff] }
 0x3f7   :  { %8305 = vmatpush3.msra.mxu0 %v1337_v52  ;;  %8349 = vmatpush3.msra.mxu1 %v1369_v49  ;;  %v1359_v13 = vld [vmem:[%s13484_s4 + $0x108] sm:$0xff]  ;;  %v1374_v51 = vld [vmem:[%s13484_s4 + $0x180] sm:$0xff] }
 0x3f8   :  { %8306 = vmatprep.subr.mxu0 %v1352_v50  ;;  %8350 = vmatprep.subr.mxu1 %v1384_v57  ;;  %v1326_v52 = vld [vmem:[%s13484_s4] sm:$0xff]  ;;  %v7777_v57 = vld [vmem:[%s13482_s2 + $0x110] ss:$0 sm:$0xff] }
 0x3f9   :  { %8307 = vmatpush3.msra.mxu0 %v1336_v59  ;;  %8351 = vmatpush3.msra.mxu1 %v1368_v37  ;;  %v1358_v49 = vld [vmem:[%s13484_s4 + $0x100] sm:$0xff]  ;;  %v7776_v59 = vld [vmem:[%s13482_s2 + $0x108] ss:$0 sm:$0xff]  ;;  %v7778_v37 = vld [vmem:[%s13482_s2 + $0x118] ss:$0 sm:$0xff] }
 0x3fa   :  { %8308 = vmatprep.subr.mxu0 %v1351_v39  ;;  %8352 = vmatprep.subr.mxu1 %v1383_v47  ;;  %v7775_v50 = vld [vmem:[%s13482_s2 + $0x100] ss:$0 sm:$0xff]  ;;  %v10360_v47 = vadd.f32 %v7777_v57, %v10084_v21  ;;  %v10378_v21 = vadd.f32 %v7778_v37, %v10096_v27 }
 0x3fb   :  { %8309 = vmatpush3.msra.mxu0 %v1335_v48  ;;  %8353 = vmatpush3.msra.mxu1 %v1367_v45  ;;  %v10357_v39 = vadd.f32 %v7775_v50, %v10082_v20  ;;  %v10363_v48 = vadd.f32 %v7776_v59, %v10086_v23  ;;  %v10366_v45 = vadd.f32 %v7778_v37, %v10088_v24  ;;  %v1248_v20 = vld [vmem:[#allocation2 + $0x10] sm:$0xff] }
 0x3fc   :  { %8310 = vmatprep.subr.mxu0 %v1350_v46  ;;  %8354 = vmatprep.subr.mxu1 %v1382_v6  ;;  %v10369_v46 = vadd.f32 %v7775_v50, %v10090_v12  ;;  %v10372_v6 = vadd.f32 %v7777_v57, %v10092_v25  ;;  %v10383_v12 = vadd.f32 %v7775_v50, %v10098_v28  ;;  %v1249_v28 = vld [vmem:[#allocation2 + $0x18] sm:$0xff] }
 0x3fd   :  { %8311 = vmatpush3.msra.mxu0 %v1334_v41  ;;  %8355 = vmatpush3.msra.mxu1 %v1366_v44  ;;  %v1246_v44 = vld [vmem:[#allocation2] sm:$0xff]  ;;  %v10386_v25 = vadd.f32 %v7777_v57, %v10100_v29  ;;  %v10400_v29 = vadd.f32 %v7777_v57, %v10108_v32 }
 0x3fe   :  { %8312 = vmatprep.subr.mxu0 %v1349_v53  ;;  %8356 = vmatprep.subr.mxu1 %v1381_v33  ;;  %v10375_v33 = vadd.f32 %v7776_v59, %v10094_v26 }
 0x3ff   :  { %8313 = vmatpush3.msra.mxu0 %v1333_v40  ;;  %8357 = vmatpush3.msra.mxu1 %v1365_v34  ;;  %v10389_v40 = vadd.f32 %v7776_v59, %v10102_v19  ;;  %v10392_v34 = vadd.f32 %v7778_v37, %v10104_v22  ;;  %v10403_v19 = vadd.f32 %v7776_v59, %v10110_v35  ;;  %v1251_v35 = vld [vmem:[#allocation2 + $0x28] sm:$0xff] }
 0x400   :  { %8314 = vmatprep.subr.mxu0 %v1348_v56  ;;  %8358 = vmatprep.subr.mxu1 %v1380_v8  ;;  %v10406_v22 = vadd.f32 %v7778_v37, %v10112_v36 }
 0x401   :  { %8315 = vmatpush3.msra.mxu0 %v1332_v5  ;;  %8359 = vmatpush3.msra.mxu1 %v1364_v38  ;;  %v1247_v38 = vld [vmem:[#allocation2 + $0x8] sm:$0xff] }
 0x402   :  { %8316 = vmatprep.subr.mxu0 %v1347_v54  ;;  %8360 = vmatprep.subr.mxu1 %v1379_v30  ;;  %v10397_v30 = vadd.f32 %v7775_v50, %v10106_v31 }
 0x403   :  { %8317 = vmatpush3.msra.mxu0 %v1331_v43  ;;  %8361 = vmatpush3.msra.mxu1 %v1363_v42  ;;  %v1250_v42 = vld [vmem:[#allocation2 + $0x20] sm:$0xff] }
 0x404   :  { %8318 = vmatprep.subr.mxu0 %v1346_v17  ;;  %8362 = vmatprep.subr.mxu1 %v1378_v58  ;;  %v1252_v58 = vld [vmem:[#allocation2 + $0x30] sm:$0xff] }
 0x405   :  { %8319 = vmatpush3.msra.mxu0 %v1330_v60  ;;  %8363 = vmatpush3.msra.mxu1 %v1362_v62 }
 0x406   :  { %8320 = vmatprep.subr.mxu0 %v1345_v0  ;;  %8364 = vmatprep.subr.mxu1 %v1377_v1 }
 0x407   :  { %8321 = vmatpush3.msra.mxu0 %v1329_v2  ;;  %8365 = vmatpush3.msra.mxu1 %v1361_v3 }
 0x408   :  { %8322 = vmatprep.subr.mxu0 %v1344_v4  ;;  %8366 = vmatprep.subr.mxu1 %v1376_v9  ;;  %v1253_v4 = vld [vmem:[#allocation2 + $0x38] sm:$0xff] }
 0x409   :  { %8323 = vmatpush3.msra.mxu0 %v1328_v10  ;;  %8367 = vmatpush3.msra.mxu1 %v1360_v11 }
 0x40a   :  { %8324 = vmatprep.subr.mxu0 %v1343_v14  ;;  %8368 = vmatprep.subr.mxu1 %v1375_v15 }
 0x40b   :  { %8325 = vmatpush3.msra.mxu0 %v1327_v16  ;;  %8369 = vmatpush3.msra.mxu1 %v1359_v13  ;;  %v1254_v13 = vld [vmem:[#allocation2 + $0x40] sm:$0xff] }
 0x40c   :  { %8326 = vmatprep.subr.mxu0 %v1342_v18  ;;  %8370 = vmatprep.subr.mxu1 %v1374_v51  ;;  %v1256_v51 = vld [vmem:[#allocation2 + $0x50] sm:$0xff] }
 0x40d   :  { %8327 = vmatpush3.msra.mxu0 %v1326_v52  ;;  %8371 = vmatpush3.msra.mxu1 %v1358_v49 }
 0x4a7   :  { %v1118_v41 = vpop.f32.mrf.mxu0  ;;  %v1207_v53 = vpop.f32.mrf.mxu1 }
 0x4a8   :  { %v1230_v23 = vadd.f32 %v1118_v41, %v10357_v39  ;;  %v1232_v24 = vadd.f32 %v1207_v53, %v10360_v47  ;;  %v1255_v41 = vld [vmem:[#allocation2 + $0x48] sm:$0xff]  ;;  %v1257_v53 = vld [vmem:[#allocation2 + $0x58] sm:$0xff] }
 0x4a9   :  { %v1120_v26 = vpop.f32.mrf.mxu0  ;;  %v1209_v56 = vpop.f32.mrf.mxu1 }
 0x4aa   :  { %v1262_v27 = vadd.f32 %v1246_v44, %v1230_v23  ;;  %v1264_v8 = vadd.f32 %v1248_v20, %v1232_v24  ;;  %v1231_v5 = vadd.f32 %v1120_v26, %v10363_v48  ;;  %v1233_v54 = vadd.f32 %v1209_v56, %v10366_v45 }
 0x4ab   :  { %v1124_v43 = vpop.f32.mrf.mxu0  ;;  %v1213_v17 = vpop.f32.mrf.mxu1 }
 0x4ac   :  { %vm1278_vm2 = vcmp.gt.f32.partialorder %v1262_v27, 0.0  ;;  %v1294_v60 = vmul.f32 0.2, %v1262_v27  ;;  %vm1280_vm3 = vcmp.gt.f32.partialorder %v1264_v8, 0.0  ;;  %v1296_v62 = vmul.f32 0.2, %v1264_v8 }
 0x4ad   :  { %v1263_v0 = vadd.f32 %v1247_v38, %v1231_v5  ;;  %v1265_v31 = vadd.f32 %v1249_v28, %v1233_v54  ;;  %v1234_v1 = vadd.f32 %v1124_v43, %v10369_v46  ;;  %v1236_v32 = vadd.f32 %v1213_v17, %v10372_v6  ;;  %v1126_v2 = vpop.f32.mrf.mxu0  ;;  %v1215_v3 = vpop.f32.mrf.mxu1  ;;  %v1258_v38 = vld [vmem:[#allocation2 + $0x60] sm:$0xff]  ;;  %v1260_v28 = vld [vmem:[#allocation2 + $0x70] sm:$0xff] }
 0x4ae   :  { %v1235_v36 = vadd.f32 %v1126_v2, %v10375_v33  ;;  %v1237_v9 = vadd.f32 %v1215_v3, %v10378_v21  ;;  %v1310_v10 = vsel %vm1278_vm2, %v1262_v27, %v1294_v60  ;;  %v1312_v11 = vsel %vm1280_vm3, %v1264_v8, %v1296_v62  ;;  %v1259_v62 = vld [vmem:[#allocation2 + $0x68] sm:$0xff] }
 0x4af   :  { %v1266_v14 = vadd.f32 %v1250_v42, %v1234_v1  ;;  %v10412_v15 = vadd.f32 %v1252_v58, %v1236_v32  ;;  %v1130_v16 = vpop.f32.mrf.mxu0  ;;  %v1219_v18 = vpop.f32.mrf.mxu1  ;;  %vm1279_vm4 = vcmp.gt.f32.partialorder %v1263_v0, 0.0  ;;  %v1295_v52 = vmul.f32 0.2, %v1263_v0 }
 0x4b0   :  { %v1267_v49 = vadd.f32 %v1251_v35, %v1235_v36  ;;  %v1269_v50 = vadd.f32 %v1253_v4, %v1237_v9  ;;  %v1238_v57 = vadd.f32 %v1130_v16, %v10383_v12  ;;  %v1240_v59 = vadd.f32 %v1219_v18, %v10386_v25 }
 0x4b1   :  { %v1132_v37 = vpop.f32.mrf.mxu0  ;;  %v1221_v44 = vpop.f32.mrf.mxu1  ;;  %v1311_v20 = vsel %vm1279_vm4, %v1263_v0, %v1295_v52  ;;  %vm1281_vm5 = vcmp.gt.f32.partialorder %v1265_v31, 0.0  ;;  %v1297_v23 = vmul.f32 0.2, %v1265_v31  ;;  %vm1282_vm6 = vcmp.gt.f32.partialorder %v1266_v14, 0.0 }
 0x4b2   :  { %v1270_v24 = vadd.f32 %v1254_v13, %v1238_v57  ;;  %v1272_v26 = vadd.f32 %v1256_v51, %v1240_v59  ;;  %v1239_v56 = vadd.f32 %v1132_v37, %v10389_v40  ;;  %v1241_v27 = vadd.f32 %v1221_v44, %v10392_v34  ;;  %1454 = vmatprep.mubr.f32.mxu0 %v1311_v20 }
 0x4b3   :  { %v1313_v8 = vsel %vm1281_vm5, %v1265_v31, %v1297_v23  ;;  %1455 = vmatmul.mubr.f32.vlgmr.msra.gmra.mxu0 %v1310_v10  ;;  %v1136_v5 = vpop.f32.mrf.mxu0  ;;  %v1225_v54 = vpop.f32.mrf.mxu1  ;;  %vm1283_vm7 = vcmp.gt.f32.partialorder %v1267_v49, 0.0  ;;  %v1299_v43 = vmul.f32 0.2, %v1267_v49  ;;  %vm1285_vm8 = vcmp.gt.f32.partialorder %v1269_v50, 0.0  ;;  %v1261_v31 = vld [vmem:[#allocation2 + $0x78] sm:$0xff] }
 0x4b4   :  { %v1271_v42 = vadd.f32 %v1255_v41, %v1239_v56  ;;  %v1273_v17 = vadd.f32 %v1257_v53, %v1241_v27  ;;  %1539 = vmatprep.mubr.f32.mxu1 %v1313_v8  ;;  %v1242_v58 = vadd.f32 %v1136_v5, %v10397_v30  ;;  %v1244_v60 = vadd.f32 %v1225_v54, %v10400_v29  ;;  %v213_v5 = vld [vmem:[#allocation4 + $0x278] sm:$0xff]  ;;  %v207_v54 = vld [vmem:[#allocation4 + $0x248] sm:$0xff] }
 0x4b5   :  { %1540 = vmatmul.mubr.f32.vlgmr.msra.gmra.mxu1 %v1312_v11  ;;  %v1138_v0 = vpop.f32.mrf.mxu0  ;;  %v1227_v1 = vpop.f32.mrf.mxu1  ;;  %v1315_v32 = vsel %vm1283_vm7, %v1267_v49, %v1299_v43  ;;  %v1301_v2 = vmul.f32 0.2, %v1269_v50  ;;  %v1298_v35 = vmul.f32 0.2, %v1266_v14  ;;  %vm1284_vm9 = vcmp.gt.f32.partialorder %v10412_v15, 0.0  ;;  %1695 = vmatprep.subr.mxu1 %v213_v5  ;;  %v206_v43 = vld [vmem:[#allocation4 + $0x240] sm:$0xff] }
 0x4b6   :  { %v1274_v3 = vadd.f32 %v1258_v38, %v1242_v58  ;;  %v1276_v4 = vadd.f32 %v1260_v28, %v1244_v60  ;;  %v1243_v36 = vadd.f32 %v1138_v0, %v10403_v19  ;;  %v1245_v9 = vadd.f32 %v1227_v1, %v10406_v22  ;;  %1459 = vmatprep.mubr.f32.mxu0 %v1315_v32  ;;  %v212_v38 = vld [vmem:[#allocation4 + $0x270] sm:$0xff]  ;;  %v209_v28 = vld [vmem:[#allocation4 + $0x258] sm:$0xff]  ;;  %v202_v60 = vld [vmem:[#allocation4 + $0x220] sm:$0xff] }
 0x4b7   :  { %v1317_v10 = vsel %vm1285_vm8, %v1269_v50, %v1301_v2  ;;  %v1314_v16 = vsel %vm1282_vm6, %v1266_v14, %v1298_v35  ;;  %v1300_v11 = vmul.f32 0.2, %v10412_v15  ;;  %vm1287_vm10 = vcmp.gt.f32.partialorder %v1271_v42, 0.0  ;;  %1696 = vmatpush1.msra.mxu1 %v212_v38  ;;  %v205_v58 = vld [vmem:[#allocation4 + $0x238] sm:$0xff]  ;;  %v199_v0 = vld [vmem:[#allocation4 + $0x208] sm:$0xff]  ;;  %v200_v32 = vld [vmem:[#allocation4 + $0x210] sm:$0xff] }
 0x4b8   :  { %v1275_v13 = vadd.f32 %v1259_v62, %v1243_v36  ;;  %v1277_v18 = vadd.f32 %v1261_v31, %v1245_v9  ;;  %1544 = vmatprep.mubr.f32.mxu1 %v1317_v10  ;;  %1460 = vmatmul.mubr.f32.gmra.mxu0 %v1314_v16  ;;  %v1303_v51 = vmul.f32 0.2, %v1271_v42  ;;  %vm1289_vm11 = vcmp.gt.f32.partialorder %v1273_v17, 0.0  ;;  %v204_v62 = vld [vmem:[#allocation4 + $0x230] sm:$0xff]  ;;  %v201_v1 = vld [vmem:[#allocation4 + $0x218] sm:$0xff]  ;;  %v198_v31 = vld [vmem:[#allocation4 + $0x200] sm:$0xff] }
 0x4b9   :  { %v1316_v52 = vsel %vm1284_vm9, %v10412_v15, %v1300_v11  ;;  %v1305_v49 = vmul.f32 0.2, %v1273_v17  ;;  %vm1286_vm12 = vcmp.gt.f32.partialorder %v1270_v24, 0.0  ;;  %v1302_v57 = vmul.f32 0.2, %v1270_v24  ;;  %1697 = vmatprep.subr.mxu1 %v209_v28  ;;  %v195_v2 = vld [vmem:[#allocation4 + $0x1e8] sm:$0xff] }
 0x4ba   :  { %1545 = vmatmul.mubr.f32.gmra.mxu1 %v1316_v52  ;;  %v1319_v50 = vsel %vm1287_vm10, %v1271_v42, %v1303_v51  ;;  %vm1288_vm13 = vcmp.gt.f32.partialorder %v1272_v26, 0.0  ;;  %v1304_v14 = vmul.f32 0.2, %v1272_v26  ;;  %vm1291_vm14 = vcmp.gt.f32.partialorder %v1275_v13, 0.0  ;;  %v208_v42 = vld [vmem:[#allocation4 + $0x250] sm:$0xff]  ;;  %v197_v35 = vld [vmem:[#allocation4 + $0x1f8] sm:$0xff] }
 0x4bb   :  { %1464 = vmatprep.mubr.f32.mxu0 %v1319_v50  ;;  %v1321_v59 = vsel %vm1289_vm11, %v1273_v17, %v1305_v49  ;;  %v1318_v37 = vsel %vm1286_vm12, %v1270_v24, %v1302_v57  ;;  %v1307_v41 = vmul.f32 0.2, %v1275_v13  ;;  %vm1293_vm15 = vcmp.gt.f32.partialorder %v1277_v18, 0.0  ;;  %v211_v24 = vld [vmem:[#allocation4 + $0x268] sm:$0xff]  ;;  %1698 = vmatpush1.msra.mxu1 %v208_v42  ;;  %v193_v9 = vld [vmem:[#allocation4 + $0x1d8] sm:$0xff]  ;;  %v190_v10 = vld [vmem:[#allocation4 + $0x1c0] sm:$0xff] }
 0x4bc   :  { %1549 = vmatprep.mubr.f32.mxu1 %v1321_v59  ;;  %1465 = vmatmul.mubr.f32.gmra.mxu0 %v1318_v37  ;;  %v1309_v44 = vmul.f32 0.2, %v1277_v18  ;;  %vm1290_vm0 = vcmp.gt.f32.partialorder %v1274_v3, 0.0  ;;  %v1306_v53 = vmul.f32 0.2, %v1274_v3  ;;  %v1320_v20 = vsel %vm1288_vm13, %v1272_v26, %v1304_v14  ;;  %v210_v26 = vld [vmem:[#allocation4 + $0x260] sm:$0xff] }
 0x4bd   :  { %v1323_v15 = vsel %vm1291_vm14, %v1275_v13, %v1307_v41  ;;  %v1308_v23 = vmul.f32 0.2, %v1276_v4  ;;  %vm1292_vm2 = vcmp.gt.f32.partialorder %v1276_v4, 0.0  ;;  %1606 = vmatprep.subr.mxu0 %v211_v24  ;;  %v203_v17 = vld [vmem:[#allocation4 + $0x228] sm:$0xff]  ;;  %1699 = vmatprep.subr.mxu1 %v205_v58  ;;  %v192_v16 = vld [vmem:[#allocation4 + $0x1d0] sm:$0xff]  ;;  %v189_v13 = vld [vmem:[#allocation4 + $0x1b8] sm:$0xff] }
 0x4be   :  { %1550 = vmatmul.mubr.f32.gmra.mxu1 %v1320_v20  ;;  %1469 = vmatprep.mubr.f32.mxu0 %v1323_v15  ;;  %v1325_v56 = vsel %vm1293_vm15, %v1277_v18, %v1309_v44  ;;  %v1322_v27 = vsel %vm1290_vm0, %v1274_v3, %v1306_v53  ;;  %v194_v3 = vld [vmem:[#allocation4 + $0x1e0] sm:$0xff]  ;;  %v191_v36 = vld [vmem:[#allocation4 + $0x1c8] sm:$0xff]  ;;  %v188_v51 = vld [vmem:[#allocation4 + $0x1b0] sm:$0xff] }
 0x4bf   :  { %1554 = vmatprep.mubr.f32.mxu1 %v1325_v56  ;;  %v1324_v8 = vsel %vm1292_vm2, %v1276_v4, %v1308_v23  ;;  %1607 = vmatpush1.msra.mxu0 %v210_v26  ;;  %v196_v4 = vld [vmem:[#allocation4 + $0x1f0] sm:$0xff]  ;;  %v187_v11 = vld [vmem:[#allocation4 + $0x1a8] sm:$0xff]  ;;  %v186_v18 = vld [vmem:[#allocation4 + $0x1a0] sm:$0xff] }
 0x4c0   :  { %1470 = vmatmul.mubr.f32.gmra.mxu0 %v1322_v27  ;;  %1608 = vmatprep.subr.mxu0 %v207_v54  ;;  %v183_v52 = vld [vmem:[#allocation4 + $0x188] sm:$0xff]  ;;  %v185_v49 = vld [vmem:[#allocation4 + $0x198] sm:$0xff]  ;;  %v182_v57 = vld [vmem:[#allocation4 + $0x180] sm:$0xff] }
 0x4c1   :  { %1670 = vmatprep.mubr.f32.mxu0 %v13524_v55  ;;  %1609 = vmatpush1.msra.mxu0 %v206_v43  ;;  %v184_v50 = vld [vmem:[#allocation4 + $0x190] sm:$0xff]  ;;  %v179_v14 = vld [vmem:[#allocation4 + $0x168] sm:$0xff]  ;;  %v181_v59 = vld [vmem:[#allocation4 + $0x178] sm:$0xff] }
 0x4c2   :  { %1555 = vmatmul.mubr.f32.gmra.mxu1 %v1324_v8  ;;  %1610 = vmatprep.subr.mxu0 %v203_v17  ;;  %v178_v37 = vld [vmem:[#allocation4 + $0x160] sm:$0xff]  ;;  %v180_v41 = vld [vmem:[#allocation4 + $0x170] sm:$0xff]  ;;  %v175_v44 = vld [vmem:[#allocation4 + $0x148] sm:$0xff] }
 0x4c3   :  { %1759 = vmatprep.mubr.f32.mxu1 %v13524_v55  ;;  %1611 = vmatpush1.msra.mxu0 %v202_v60  ;;  %v177_v53 = vld [vmem:[#allocation4 + $0x158] sm:$0xff]  ;;  %v174_v20 = vld [vmem:[#allocation4 + $0x140] sm:$0xff]  ;;  %v176_v15 = vld [vmem:[#allocation4 + $0x150] sm:$0xff] }
 0x4c4   :  { %1700 = vmatpush1.msra.mxu1 %v204_v62  ;;  %1612 = vmatprep.subr.mxu0 %v199_v0  ;;  %v171_v23 = vld [vmem:[#allocation4 + $0x128] sm:$0xff]  ;;  %v173_v56 = vld [vmem:[#allocation4 + $0x138] sm:$0xff]  ;;  %v170_v27 = vld [vmem:[#allocation4 + $0x120] sm:$0xff] }
 0x4c5   :  { %1701 = vmatprep.subr.mxu1 %v201_v1  ;;  %1613 = vmatpush1.msra.mxu0 %v198_v31  ;;  %v172_v8 = vld [vmem:[#allocation4 + $0x130] sm:$0xff]  ;;  %v167_v24 = vld [vmem:[#allocation4 + $0x108] sm:$0xff]  ;;  %v169_v5 = vld [vmem:[#allocation4 + $0x118] sm:$0xff] }
 0x4c6   :  { %1702 = vmatpush1.msra.mxu1 %v200_v32  ;;  %1614 = vmatprep.subr.mxu0 %v195_v2  ;;  %v166_v26 = vld [vmem:[#allocation4 + $0x100] sm:$0xff]  ;;  %v168_v38 = vld [vmem:[#allocation4 + $0x110] sm:$0xff]  ;;  %v163_v54 = vld [vmem:[#allocation4 + $0xe8] sm:$0xff] }
 0x4c7   :  { %1703 = vmatprep.subr.mxu1 %v197_v35  ;;  %1615 = vmatpush1.msra.mxu0 %v194_v3  ;;  %v165_v28 = vld [vmem:[#allocation4 + $0xf8] sm:$0xff]  ;;  %v162_v43 = vld [vmem:[#allocation4 + $0xe0] sm:$0xff]  ;;  %v164_v42 = vld [vmem:[#allocation4 + $0xf0] sm:$0xff] }
 0x4c8   :  { %1704 = vmatpush1.msra.mxu1 %v196_v4  ;;  %1616 = vmatprep.subr.mxu0 %v191_v36  ;;  %v159_v17 = vld [vmem:[#allocation4 + $0xc8] sm:$0xff]  ;;  %v161_v58 = vld [vmem:[#allocation4 + $0xd8] sm:$0xff]  ;;  %v158_v60 = vld [vmem:[#allocation4 + $0xc0] sm:$0xff] }
 0x4c9   :  { %1705 = vmatprep.subr.mxu1 %v193_v9  ;;  %1617 = vmatpush1.msra.mxu0 %v190_v10  ;;  %v160_v62 = vld [vmem:[#allocation4 + $0xd0] sm:$0xff]  ;;  %v155_v0 = vld [vmem:[#allocation4 + $0xa8] sm:$0xff]  ;;  %v157_v1 = vld [vmem:[#allocation4 + $0xb8] sm:$0xff] }
 0x4ca   :  { %1706 = vmatpush1.msra.mxu1 %v192_v16  ;;  %1618 = vmatprep.subr.mxu0 %v187_v11  ;;  %v154_v31 = vld [vmem:[#allocation4 + $0xa0] sm:$0xff]  ;;  %v156_v32 = vld [vmem:[#allocation4 + $0xb0] sm:$0xff]  ;;  %v151_v2 = vld [vmem:[#allocation4 + $0x88] sm:$0xff] }
 0x4cb   :  { %1707 = vmatprep.subr.mxu1 %v189_v13  ;;  %1619 = vmatpush1.msra.mxu0 %v186_v18  ;;  %v153_v35 = vld [vmem:[#allocation4 + $0x98] sm:$0xff]  ;;  %v150_v3 = vld [vmem:[#allocation4 + $0x80] sm:$0xff]  ;;  %v152_v4 = vld [vmem:[#allocation4 + $0x90] sm:$0xff] }
 0x4cc   :  { %1708 = vmatpush1.msra.mxu1 %v188_v51  ;;  %1620 = vmatprep.subr.mxu0 %v183_v52 }
 0x4cd   :  { %1709 = vmatprep.subr.mxu1 %v185_v49  ;;  %1621 = vmatpush1.msra.mxu0 %v182_v57 }
 0x4ce   :  { %1710 = vmatpush1.msra.mxu1 %v184_v50  ;;  %1622 = vmatprep.subr.mxu0 %v179_v14 }
 0x4cf   :  { %1711 = vmatprep.subr.mxu1 %v181_v59  ;;  %1623 = vmatpush1.msra.mxu0 %v178_v37 }
 0x4d0   :  { %1712 = vmatpush1.msra.mxu1 %v180_v41  ;;  %1624 = vmatprep.subr.mxu0 %v175_v44 }
 0x4d1   :  { %1713 = vmatprep.subr.mxu1 %v177_v53  ;;  %1625 = vmatpush1.msra.mxu0 %v174_v20 }
 0x4d2   :  { %1714 = vmatpush1.msra.mxu1 %v176_v15  ;;  %1626 = vmatprep.subr.mxu0 %v171_v23 }
 0x4d3   :  { %1715 = vmatprep.subr.mxu1 %v173_v56  ;;  %1627 = vmatpush1.msra.mxu0 %v170_v27 }
 0x4d4   :  { %1716 = vmatpush1.msra.mxu1 %v172_v8  ;;  %1628 = vmatprep.subr.mxu0 %v167_v24 }
 0x4d5   :  { %1717 = vmatprep.subr.mxu1 %v169_v5  ;;  %1629 = vmatpush1.msra.mxu0 %v166_v26 }
 0x4d6   :  { %1718 = vmatpush1.msra.mxu1 %v168_v38  ;;  %1630 = vmatprep.subr.mxu0 %v163_v54 }
 0x4d7   :  { %1719 = vmatprep.subr.mxu1 %v165_v28  ;;  %1631 = vmatpush1.msra.mxu0 %v162_v43 }
 0x4d8   :  { %1720 = vmatpush1.msra.mxu1 %v164_v42  ;;  %1632 = vmatprep.subr.mxu0 %v159_v17 }
 0x4d9   :  { %1721 = vmatprep.subr.mxu1 %v161_v58  ;;  %1633 = vmatpush1.msra.mxu0 %v158_v60 }
 0x4da   :  { %1722 = vmatpush1.msra.mxu1 %v160_v62  ;;  %1634 = vmatprep.subr.mxu0 %v155_v0 }
 0x4db   :  { %1723 = vmatprep.subr.mxu1 %v157_v1  ;;  %1635 = vmatpush1.msra.mxu0 %v154_v31 }
 0x4dc   :  { %1724 = vmatpush1.msra.mxu1 %v156_v32  ;;  %1636 = vmatprep.subr.mxu0 %v151_v2 }
 0x4dd   :  { %1725 = vmatprep.subr.mxu1 %v153_v35  ;;  %1637 = vmatpush1.msra.mxu0 %v150_v3 }
 0x4de   :  { %1726 = vmatpush1.msra.mxu1 %v152_v4 }
 0x573   :  { %v8328_v36 = vpop.f32.mrf.mxu0 }
 0x575   :  { %v8372_v9 = vpop.f32.mrf.mxu1  ;;  %v8329_v10 = vpop.f32.mrf.mxu0 }
 0x576   :  { %v8330_v51 = vadd.f32 %v8329_v10, %v8328_v36 }
 0x577   :  { %v8373_v16 = vpop.f32.mrf.mxu1 }
 0x578   :  { %v8331_v11 = vpop.f32.mrf.mxu0  ;;  %v8374_v52 = vadd.f32 %v8373_v16, %v8372_v9 }
 0x57a   :  { %v8375_v13 = vpop.f32.mrf.mxu1  ;;  %v8332_v18 = vpop.f32.mrf.mxu0  ;;  %v1542_v41 = vadd.f32 %v8374_v52, %v8330_v51 }
 0x57b   :  { %v8333_v49 = vadd.f32 %v8332_v18, %v8331_v11 }
 0x57c   :  { %v8376_v57 = vpop.f32.mrf.mxu1  ;;  %v8334_v50 = vpop.f32.mrf.mxu0 }
 0x57d   :  { %v8377_v14 = vadd.f32 %v8376_v57, %v8375_v13 }
 0x57e   :  { %v8378_v59 = vpop.f32.mrf.mxu1  ;;  %v8335_v37 = vpop.f32.mrf.mxu0 }
 0x57f   :  { %v1547_v44 = vadd.f32 %v8377_v14, %v8333_v49  ;;  %v8336_v8 = vadd.f32 %v8335_v37, %v8334_v50 }
 0x580   :  { %v8379_v53 = vpop.f32.mrf.mxu1  ;;  %v8337_v20 = vpop.f32.mrf.mxu0 }
 0x581   :  { %v1560_v15 = vmax.f32 %v1542_v41, %v1547_v44  ;;  %v8380_v24 = vadd.f32 %v8379_v53, %v8378_v59 }
 0x582   :  { %v8381_v23 = vpop.f32.mrf.mxu1  ;;  %v8338_v56 = vpop.f32.mrf.mxu0 }
 0x583   :  { %v1561_v27 = vrot.slane %v1560_v15, 4  ;;  %v8339_v5 = vadd.f32 %v8338_v56, %v8337_v20  ;;  %v1552_v43 = vadd.f32 %v8380_v24, %v8336_v8 }
 0x584   :  { %v8382_v26 = vpop.f32.mrf.mxu1 }
 0x585   :  { %v1562_v38 = vmax.f32 %v1560_v15, %v1561_v27  ;;  %v8383_v54 = vadd.f32 %v8382_v26, %v8381_v23 }
 0x587   :  { %v1563_v28 = vrot.slane %v1562_v38, 2  ;;  %v1557_v42 = vadd.f32 %v8383_v54, %v8339_v5 }
 0x589   :  { %v1564_v17 = vmax.f32 %v1562_v38, %v1563_v28  ;;  %v1567_v58 = vmax.f32 %v1552_v43, %v1557_v42 }
 0x58b   :  { %v1565_v60 = vrot.slane %v1564_v17, 1  ;;  %v1568_v62 = vrot.slane %v1567_v58, 4 }
 0x58d   :  { %v1566_v0 = vmax.f32 %v1564_v17, %v1565_v60  ;;  %v1569_v1 = vmax.f32 %v1567_v58, %v1568_v62 }
 0x58f   :  { %v1574_v31 = vsub.f32 %v1542_v41, %v1566_v0  ;;  %v1575_v32 = vsub.f32 %v1547_v44, %v1566_v0  ;;  %v1570_v2 = vrot.slane %v1569_v1, 2 }
 0x591   :  { %v1578_v35 = vmul.f32 1.442695, %v1574_v31  ;;  %v1580_v3 = vmul.f32 1.442695, %v1575_v32  ;;  %v1571_v4 = vmax.f32 %v1569_v1, %v1570_v2 }
 0x593   :  { %9153 = vpow2.f32 %v1578_v35  ;;  %v1572_v36 = vrot.slane %v1571_v4, 1 }
 0x594   :  { %9155 = vpow2.f32 %v1580_v3 }
 0x595   :  { %v1573_v9 = vmax.f32 %v1571_v4, %v1572_v36 }
 0x597   :  { %v1576_v10 = vsub.f32 %v1552_v43, %v1573_v9  ;;  %v1577_v16 = vsub.f32 %v1557_v42, %v1573_v9 }
 0x599   :  { %v1582_v11 = vmul.f32 1.442695, %v1576_v10  ;;  %v1584_v13 = vmul.f32 1.442695, %v1577_v16 }
 0x59b   :  { %9157 = vpow2.f32 %v1582_v11 }
 0x59c   :  { %9159 = vpow2.f32 %v1584_v13 }
 0x5a0   :  { %v9154_v18 = vpop.eup %9153 }
 0x5a1   :  { %v9156_v51 = vpop.eup %9155 }
 0x5a2   :  { %v1586_v52 = vadd.f32 %v9156_v51, %v9154_v18 }
 0x5a4   :  { %v1587_v49 = vrot.slane %v1586_v52, 4 }
 0x5a6   :  { %v1588_v57 = vadd.f32 %v1587_v49, %v1586_v52 }
 0x5a8   :  { %v9158_v50 = vpop.eup %9157  ;;  %v1589_v14 = vrot.slane %v1588_v57, 2 }
 0x5a9   :  { %v9160_v59 = vpop.eup %9159 }
 0x5aa   :  { %v1590_v37 = vadd.f32 %v1589_v14, %v1588_v57  ;;  %v1593_v41 = vadd.f32 %v9160_v59, %v9158_v50  ;;  %v84_v57 = vld [vmem:[%s13485_s5 + $0x90] sm:$0xff]  ;;  %v99_v14 = vld [vmem:[%s13485_s5 + $0x108] sm:$0xff] }
 0x5ac   :  { %v1591_v44 = vrot.slane %v1590_v37, 1  ;;  %v1594_v53 = vrot.slane %v1593_v41, 4 }
 0x5ae   :  { %v1592_v20 = vadd.f32 %v1591_v44, %v1590_v37  ;;  %v1595_v15 = vadd.f32 %v1594_v53, %v1593_v41  ;;  %v9235_v37 = vld [vmem:[%s13485_s5 + $0x10] sm:$0xff]  ;;  %v83_v41 = vld [vmem:[%s13485_s5 + $0x88] sm:$0xff]  ;;  %v98_v53 = vld [vmem:[%s13485_s5 + $0x100] sm:$0xff] }
 0x5af   :  { %v115_v44 = vld [vmem:[%s13485_s5 + $0x188] sm:$0xff] }
 0x5b0   :  { %9161 = vrcp.f32 %v1592_v20  ;;  %v1596_v23 = vrot.slane %v1595_v15, 2  ;;  %v130_v20 = vld [vmem:[%s13485_s5 + $0x200] sm:$0xff] }
 0x5b2   :  { %v1597_v56 = vadd.f32 %v1596_v23, %v1595_v15  ;;  %v82_v15 = vld [vmem:[%s13485_s5 + $0x80] sm:$0xff] }
 0x5b3   :  { %v114_v23 = vld [vmem:[%s13485_s5 + $0x180] sm:$0xff] }
 0x5b4   :  { %v1598_v27 = vrot.slane %v1597_v56, 1 }
 0x5b6   :  { %v1599_v8 = vadd.f32 %v1598_v27, %v1597_v56  ;;  %v9236_v56 = vld [vmem:[%s13485_s5 + $0x18] sm:$0xff] }
 0x5b7   :  { %v97_v27 = vld [vmem:[%s13485_s5 + $0xf8] sm:$0xff] }
 0x5b8   :  { %9163 = vrcp.f32 %v1599_v8  ;;  %v129_v8 = vld [vmem:[%s13485_s5 + $0x1f8] sm:$0xff] }
 0x5bd   :  { %v9162_v24 = vpop.eup %9161 }
 0x5be   :  { %v1602_v5 = vmul.f32 %v9162_v24, %v9154_v18  ;;  %v1603_v26 = vmul.f32 %v9162_v24, %v9156_v51  ;;  %v81_v24 = vld [vmem:[%s13485_s5 + $0x78] sm:$0xff] }
 0x5c0   :  { %1671 = vmatmul.mubr.f32.vlgmr.msra.gmra.mxu0 %v1602_v5  ;;  %1760 = vmatmul.mubr.f32.vlgmr.msra.gmra.mxu1 %v1602_v5  ;;  %v113_v5 = vld [vmem:[%s13485_s5 + $0x178] sm:$0xff] }
 0x5c1   :  { %1676 = vmatprep.mubr.f32.mxu0 %v13524_v55  ;;  %1765 = vmatprep.mubr.f32.mxu1 %v13524_v55 }
 0x5c4   :  { %1677 = vmatmul.mubr.f32.gmra.mxu0 %v1603_v26  ;;  %1766 = vmatmul.mubr.f32.gmra.mxu1 %v1603_v26  ;;  %v96_v26 = vld [vmem:[%s13485_s5 + $0xf0] sm:$0xff] }
 0x5c5   :  { %v9164_v38 = vpop.eup %9163  ;;  %1682 = vmatprep.mubr.f32.mxu0 %v13524_v55  ;;  %1771 = vmatprep.mubr.f32.mxu1 %v13524_v55 }
 0x5c6   :  { %v1604_v54 = vmul.f32 %v9164_v38, %v9158_v50  ;;  %v1605_v28 = vmul.f32 %v9164_v38, %v9160_v59  ;;  %v116_v50 = vld [vmem:[%s13485_s5 + $0x190] sm:$0xff]  ;;  %v131_v59 = vld [vmem:[%s13485_s5 + $0x208] sm:$0xff] }
 0x5c7   :  { %v128_v38 = vld [vmem:[%s13485_s5 + $0x1f0] sm:$0xff] }
 0x5c8   :  { %1683 = vmatmul.mubr.f32.gmra.mxu0 %v1604_v54  ;;  %1772 = vmatmul.mubr.f32.gmra.mxu1 %v1604_v54  ;;  %v80_v54 = vld [vmem:[%s13485_s5 + $0x70] sm:$0xff] }
 0x5c9   :  { %1688 = vmatprep.mubr.f32.mxu0 %v13524_v55  ;;  %1777 = vmatprep.mubr.f32.mxu1 %v13524_v55 }
 0x5cc   :  { %1689 = vmatmul.mubr.f32.gmra.mxu0 %v1605_v28  ;;  %1778 = vmatmul.mubr.f32.gmra.mxu1 %v1605_v28  ;;  %v112_v28 = vld [vmem:[%s13485_s5 + $0x170] sm:$0xff] }
 0x5cd   :  { %1864 = vmatprep.mubr.f32.mxu0 %v13524_v55  ;;  %1953 = vmatprep.mubr.f32.mxu1 %v13524_v55 }
 0x680   :  { %v1672_v43 = vpop.f32.mrf.mxu0  ;;  %v1761_v42 = vpop.f32.mrf.mxu1 }
 0x682   :  { %v1674_v17 = vpop.f32.mrf.mxu0  ;;  %v1763_v58 = vpop.f32.mrf.mxu1 }
 0x684   :  { %v1678_v60 = vpop.f32.mrf.mxu0  ;;  %v1767_v62 = vpop.f32.mrf.mxu1 }
 0x686   :  { %v1680_v0 = vpop.f32.mrf.mxu0  ;;  %v1769_v1 = vpop.f32.mrf.mxu1 }
 0x688   :  { %v1684_v31 = vpop.f32.mrf.mxu0  ;;  %v1773_v32 = vpop.f32.mrf.mxu1 }
 0x689   :  { %v1792_v52 = vmul.f32 %v1684_v31, %v10383_v12  ;;  %v1794_v49 = vmul.f32 %v1773_v32, %v10386_v25  ;;  %v1787_v12 = vmul.f32 %v1763_v58, %v10366_v45  ;;  %v1784_v25 = vmul.f32 %v1672_v43, %v10357_v39  ;;  %v9233_v39 = vld [vmem:[%s13485_s5] sm:$0xff]  ;;  %v117_v45 = vld [vmem:[%s13485_s5 + $0x198] sm:$0xff]  ;;  %v95_v43 = vld [vmem:[%s13485_s5 + $0xe8] sm:$0xff] }
 0x68a   :  { %v1686_v2 = vpop.f32.mrf.mxu0  ;;  %v1775_v35 = vpop.f32.mrf.mxu1  ;;  %v111_v58 = vld [vmem:[%s13485_s5 + $0x168] sm:$0xff]  ;;  %v93_v31 = vld [vmem:[%s13485_s5 + $0xd8] sm:$0xff] }
 0x68b   :  { %v1793_v18 = vmul.f32 %v1686_v2, %v10389_v40  ;;  %v1795_v51 = vmul.f32 %v1775_v35, %v10392_v34  ;;  %v1790_v40 = vmul.f32 %v1767_v62, %v10372_v6  ;;  %v1785_v34 = vmul.f32 %v1674_v17, %v10363_v48  ;;  %v133_v48 = vld [vmem:[%s13485_s5 + $0x218] sm:$0xff]  ;;  %v100_v6 = vld [vmem:[%s13485_s5 + $0x110] sm:$0xff]  ;;  %v79_v17 = vld [vmem:[%s13485_s5 + $0x68] sm:$0xff] }
 0x68c   :  { %v1690_v3 = vpop.f32.mrf.mxu0  ;;  %v1779_v4 = vpop.f32.mrf.mxu1  ;;  %v126_v62 = vld [vmem:[%s13485_s5 + $0x1e0] sm:$0xff]  ;;  %v125_v32 = vld [vmem:[%s13485_s5 + $0x1d8] sm:$0xff] }
 0x68d   :  { %v1796_v11 = vmul.f32 %v1690_v3, %v10397_v30  ;;  %v1798_v13 = vmul.f32 %v1779_v4, %v10400_v29  ;;  %v1788_v30 = vmul.f32 %v1678_v60, %v10369_v46  ;;  %v101_v46 = vld [vmem:[%s13485_s5 + $0x118] sm:$0xff]  ;;  %v9234_v29 = vld [vmem:[%s13485_s5 + $0x8] sm:$0xff]  ;;  %v94_v60 = vld [vmem:[%s13485_s5 + $0xe0] sm:$0xff] }
 0x68e   :  { %v1692_v36 = vpop.f32.mrf.mxu0  ;;  %v1781_v9 = vpop.f32.mrf.mxu1  ;;  %v77_v2 = vld [vmem:[%s13485_s5 + $0x58] sm:$0xff]  ;;  %v92_v3 = vld [vmem:[%s13485_s5 + $0xd0] sm:$0xff] }
 0x68f   :  { %v1797_v10 = vmul.f32 %v1692_v36, %v10403_v19  ;;  %v1799_v16 = vmul.f32 %v1781_v9, %v10406_v22  ;;  %v1789_v19 = vmul.f32 %v1680_v0, %v10375_v33  ;;  %v1791_v22 = vmul.f32 %v1769_v1, %v10378_v21  ;;  %v132_v21 = vld [vmem:[%s13485_s5 + $0x210] sm:$0xff]  ;;  %v78_v0 = vld [vmem:[%s13485_s5 + $0x60] sm:$0xff]  ;;  %v109_v35 = vld [vmem:[%s13485_s5 + $0x158] sm:$0xff] }
 0x690   :  { %v1786_v33 = vmul.f32 %v1761_v42, %v10360_v47  ;;  %v85_v47 = vld [vmem:[%s13485_s5 + $0x98] sm:$0xff]  ;;  %v127_v42 = vld [vmem:[%s13485_s5 + $0x1e8] sm:$0xff]  ;;  %v110_v1 = vld [vmem:[%s13485_s5 + $0x160] sm:$0xff] }
 0x691   :  { %1824 = vmatprep.subr.mxu0 %v1797_v10  ;;  %1913 = vmatprep.subr.mxu1 %v1799_v16  ;;  %v124_v4 = vld [vmem:[%s13485_s5 + $0x1d0] sm:$0xff]  ;;  %v91_v10 = vld [vmem:[%s13485_s5 + $0xc8] sm:$0xff] }
 0x692   :  { %1825 = vmatpush1.msra.mxu0 %v1796_v11  ;;  %1914 = vmatpush1.msra.mxu1 %v1798_v13  ;;  %v76_v36 = vld [vmem:[%s13485_s5 + $0x50] sm:$0xff]  ;;  %v123_v16 = vld [vmem:[%s13485_s5 + $0x1c8] sm:$0xff] }
 0x693   :  { %1826 = vmatprep.subr.mxu0 %v1793_v18  ;;  %1915 = vmatprep.subr.mxu1 %v1795_v51  ;;  %v108_v9 = vld [vmem:[%s13485_s5 + $0x150] sm:$0xff]  ;;  %v75_v11 = vld [vmem:[%s13485_s5 + $0x48] sm:$0xff]  ;;  %v90_v18 = vld [vmem:[%s13485_s5 + $0xc0] sm:$0xff] }
 0x694   :  { %1827 = vmatpush1.msra.mxu0 %v1792_v52  ;;  %1916 = vmatpush1.msra.mxu1 %v1794_v49  ;;  %v107_v13 = vld [vmem:[%s13485_s5 + $0x148] sm:$0xff]  ;;  %v122_v51 = vld [vmem:[%s13485_s5 + $0x1c0] sm:$0xff] }
 0x695   :  { %1828 = vmatprep.subr.mxu0 %v1789_v19  ;;  %1917 = vmatprep.subr.mxu1 %v1791_v22  ;;  %v74_v52 = vld [vmem:[%s13485_s5 + $0x40] sm:$0xff]  ;;  %v89_v19 = vld [vmem:[%s13485_s5 + $0xb8] sm:$0xff] }
 0x696   :  { %1829 = vmatpush1.msra.mxu0 %v1788_v30  ;;  %1918 = vmatpush1.msra.mxu1 %v1790_v40  ;;  %v106_v49 = vld [vmem:[%s13485_s5 + $0x140] sm:$0xff]  ;;  %v121_v22 = vld [vmem:[%s13485_s5 + $0x1b8] sm:$0xff] }
 0x697   :  { %1830 = vmatprep.subr.mxu0 %v1785_v34  ;;  %1919 = vmatprep.subr.mxu1 %v1787_v12  ;;  %v73_v30 = vld [vmem:[%s13485_s5 + $0x38] sm:$0xff]  ;;  %v88_v34 = vld [vmem:[%s13485_s5 + $0xb0] sm:$0xff] }
 0x698   :  { %1831 = vmatpush1.msra.mxu0 %v1784_v25  ;;  %1920 = vmatpush1.msra.mxu1 %v1786_v33  ;;  %v105_v40 = vld [vmem:[%s13485_s5 + $0x138] sm:$0xff]  ;;  %v120_v12 = vld [vmem:[%s13485_s5 + $0x1b0] sm:$0xff] }
 0x699   :  { %7807 = vmatmul.mubr.msk.f32.vlgmr.msra.gmra.mxu0 %vm320_vm1, %v9233_v39  ;;  %7811 = vmatmul.mubr.msk.f32.vlgmr.msra.gmra.mxu1 %vm320_vm1, %v9233_v39  ;;  %v72_v25 = vld [vmem:[%s13485_s5 + $0x30] sm:$0xff]  ;;  %v71_v39 = vld [vmem:[%s13485_s5 + $0x28] sm:$0xff] }
 0x69a   :  { %1870 = vmatprep.mubr.f32.mxu0 %v13524_v55  ;;  %1959 = vmatprep.mubr.f32.mxu1 %v13524_v55  ;;  %v104_v33 = vld [vmem:[%s13485_s5 + $0x130] sm:$0xff] }
 0x69b   :  { %8384 = vmatprep.subr.mxu0 %v101_v46  ;;  %8428 = vmatprep.subr.mxu1 %v133_v48  ;;  %v87_v46 = vld [vmem:[%s13485_s5 + $0xa8] sm:$0xff] }
 0x69c   :  { %8385 = vmatpush3.msra.mxu0 %v85_v47  ;;  %8429 = vmatpush3.msra.mxu1 %v117_v45  ;;  %v119_v48 = vld [vmem:[%s13485_s5 + $0x1a8] sm:$0xff]  ;;  %v86_v45 = vld [vmem:[%s13485_s5 + $0xa0] sm:$0xff] }
 0x69d   :  { %7808 = vmatmul.mubr.msk.f32.gmra.mxu0 %vm320_vm1, %v9234_v29  ;;  %7812 = vmatmul.mubr.msk.f32.gmra.mxu1 %vm320_vm1, %v9234_v29  ;;  %v103_v47 = vld [vmem:[%s13485_s5 + $0x128] sm:$0xff]  ;;  %v102_v29 = vld [vmem:[%s13485_s5 + $0x120] sm:$0xff] }
 0x69e   :  { %1876 = vmatprep.mubr.f32.mxu0 %v13524_v55  ;;  %1965 = vmatprep.mubr.f32.mxu1 %v13524_v55 }
 0x69f   :  { %8386 = vmatprep.subr.mxu0 %v100_v6  ;;  %8430 = vmatprep.subr.mxu1 %v132_v21  ;;  %v118_v6 = vld [vmem:[%s13485_s5 + $0x1a0] sm:$0xff] }
 0x6a0   :  { %8387 = vmatpush3.msra.mxu0 %v84_v57  ;;  %8431 = vmatpush3.msra.mxu1 %v116_v50  ;;  %v70_v21 = vld [vmem:[%s13485_s5 + $0x20] sm:$0xff] }
 0x6a1   :  { %7809 = vmatmul.mubr.msk.f32.gmra.mxu0 %vm320_vm1, %v9235_v37  ;;  %7813 = vmatmul.mubr.msk.f32.gmra.mxu1 %vm320_vm1, %v9235_v37 }
 0x6a2   :  { %1882 = vmatprep.mubr.f32.mxu0 %v13524_v55  ;;  %1971 = vmatprep.mubr.f32.mxu1 %v13524_v55 }
 0x6a3   :  { %8388 = vmatprep.subr.mxu0 %v99_v14  ;;  %8432 = vmatprep.subr.mxu1 %v131_v59  ;;  %v10673_v14 = vld [vmem:[#allocation4 + $0x10] sm:$0xff] }
 0x6a4   :  { %8389 = vmatpush3.msra.mxu0 %v83_v41  ;;  %8433 = vmatpush3.msra.mxu1 %v115_v44  ;;  %v10676_v44 = vld [vmem:[#allocation4 + $0x8] sm:$0xff] }
 0x6a5   :  { %7810 = vmatmul.mubr.msk.f32.gmra.mxu0 %vm320_vm1, %v9236_v56  ;;  %7814 = vmatmul.mubr.msk.f32.gmra.mxu1 %vm320_vm1, %v9236_v56 }
 0x6a6   :  { %8390 = vmatprep.subr.mxu0 %v98_v53  ;;  %8434 = vmatprep.subr.mxu1 %v130_v20  ;;  %v10679_v20 = vld [vmem:[#allocation4 + $0x18] sm:$0xff] }
 0x6a7   :  { %8391 = vmatpush3.msra.mxu0 %v82_v15  ;;  %8435 = vmatpush3.msra.mxu1 %v114_v23  ;;  %v10682_v23 = vld [vmem:[#allocation4] sm:$0xff] }
 0x6a8   :  { %8392 = vmatprep.subr.mxu0 %v97_v27  ;;  %8436 = vmatprep.subr.mxu1 %v129_v8 }
 0x6a9   :  { %8393 = vmatpush3.msra.mxu0 %v81_v24  ;;  %8437 = vmatpush3.msra.mxu1 %v113_v5  ;;  %v10685_v24 = vld [vmem:[#allocation4 + $0x30] sm:$0xff] }
 0x6aa   :  { %8394 = vmatprep.subr.mxu0 %v96_v26  ;;  %8438 = vmatprep.subr.mxu1 %v128_v38 }
 0x6ab   :  { %8395 = vmatpush3.msra.mxu0 %v80_v54  ;;  %8439 = vmatpush3.msra.mxu1 %v112_v28  ;;  %v10688_v54 = vld [vmem:[#allocation4 + $0x28] sm:$0xff] }
 0x6ac   :  { %8396 = vmatprep.subr.mxu0 %v95_v43  ;;  %8440 = vmatprep.subr.mxu1 %v127_v42  ;;  %v10691_v43 = vld [vmem:[#allocation4 + $0x38] sm:$0xff] }
 0x6ad   :  { %8397 = vmatpush3.msra.mxu0 %v79_v17  ;;  %8441 = vmatpush3.msra.mxu1 %v111_v58  ;;  %v10694_v17 = vld [vmem:[#allocation4 + $0x20] sm:$0xff] }
 0x6ae   :  { %8398 = vmatprep.subr.mxu0 %v94_v60  ;;  %8442 = vmatprep.subr.mxu1 %v126_v62 }
 0x6af   :  { %8399 = vmatpush3.msra.mxu0 %v78_v0  ;;  %8443 = vmatpush3.msra.mxu1 %v110_v1  ;;  %v10697_v0 = vld [vmem:[#allocation4 + $0x50] sm:$0xff] }
 0x6b0   :  { %8400 = vmatprep.subr.mxu0 %v93_v31  ;;  %8444 = vmatprep.subr.mxu1 %v125_v32 }
 0x6b1   :  { %8401 = vmatpush3.msra.mxu0 %v77_v2  ;;  %8445 = vmatpush3.msra.mxu1 %v109_v35  ;;  %v10700_v2 = vld [vmem:[#allocation4 + $0x48] sm:$0xff] }
 0x6b2   :  { %8402 = vmatprep.subr.mxu0 %v92_v3  ;;  %8446 = vmatprep.subr.mxu1 %v124_v4  ;;  %v10703_v3 = vld [vmem:[#allocation4 + $0x58] sm:$0xff] }
 0x6b3   :  { %8403 = vmatpush3.msra.mxu0 %v76_v36  ;;  %8447 = vmatpush3.msra.mxu1 %v108_v9  ;;  %v10706_v36 = vld [vmem:[#allocation4 + $0x40] sm:$0xff] }
 0x6b4   :  { %8404 = vmatprep.subr.mxu0 %v91_v10  ;;  %8448 = vmatprep.subr.mxu1 %v123_v16 }
 0x6b5   :  { %8405 = vmatpush3.msra.mxu0 %v75_v11  ;;  %8449 = vmatpush3.msra.mxu1 %v107_v13  ;;  %v10709_v11 = vld [vmem:[#allocation4 + $0x70] sm:$0xff] }
 0x6b6   :  { %8406 = vmatprep.subr.mxu0 %v90_v18  ;;  %8450 = vmatprep.subr.mxu1 %v122_v51 }
 0x6b7   :  { %8407 = vmatpush3.msra.mxu0 %v74_v52  ;;  %8451 = vmatpush3.msra.mxu1 %v106_v49  ;;  %v10712_v52 = vld [vmem:[#allocation4 + $0x68] sm:$0xff] }
 0x6b8   :  { %8408 = vmatprep.subr.mxu0 %v89_v19  ;;  %8452 = vmatprep.subr.mxu1 %v121_v22  ;;  %v10715_v19 = vld [vmem:[#allocation4 + $0x78] sm:$0xff] }
 0x6b9   :  { %8409 = vmatpush3.msra.mxu0 %v73_v30  ;;  %8453 = vmatpush3.msra.mxu1 %v105_v40  ;;  %v10718_v30 = vld [vmem:[#allocation4 + $0x60] sm:$0xff] }
 0x6ba   :  { %8410 = vmatprep.subr.mxu0 %v88_v34  ;;  %8454 = vmatprep.subr.mxu1 %v120_v12  ;;  %v622_v34 = vld [vmem:[%s13487_s7 + $0x18] sm:$0xff]  ;;  %v621_v12 = vld [vmem:[%s13487_s7 + $0x10] sm:$0xff] }
 0x6bb   :  { %8411 = vmatpush3.msra.mxu0 %v72_v25  ;;  %8455 = vmatpush3.msra.mxu1 %v104_v33  ;;  %v620_v25 = vld [vmem:[%s13487_s7 + $0x8] sm:$0xff]  ;;  %v619_v33 = vld [vmem:[%s13487_s7] sm:$0xff] }
 0x6bc   :  { %8412 = vmatprep.subr.mxu0 %v87_v46  ;;  %8456 = vmatprep.subr.mxu1 %v119_v48  ;;  %v10737_v46 = vld [vmem:[%s13487_s7 + $0x20] sm:$0xf] }
 0x6bd   :  { %8413 = vmatpush3.msra.mxu0 %v71_v39  ;;  %8457 = vmatpush3.msra.mxu1 %v103_v47  ;;  %v1997_v47 = vrot.slane %v10737_v46, %v9820_v7 }
 0x6be   :  { %8414 = vmatprep.subr.mxu0 %v86_v45  ;;  %8458 = vmatprep.subr.mxu1 %v118_v6 }
 0x6bf   :  { %8415 = vmatpush3.msra.mxu0 %v70_v21  ;;  %8459 = vmatpush3.msra.mxu1 %v102_v29 }
 0x6c0   :  { %9062 = vmatprep.subr.mxu0 %v622_v34 }
 0x759   :  { %v1866_v57 = vpop.f32.mrf.mxu0  ;;  %v1955_v50 = vpop.f32.mrf.mxu1 }
 0x75a   :  { %v1980_v59 = vmul.f32 %v10673_v14, %v1955_v50  ;;  %v1978_v56 = vmul.f32 %v10682_v23, %v1866_v57 }
 0x75b   :  { %v1868_v37 = vpop.f32.mrf.mxu0  ;;  %v1957_v41 = vpop.f32.mrf.mxu1 }
 0x75c   :  { %v1979_v53 = vmul.f32 %v10676_v44, %v1868_v37  ;;  %v1981_v15 = vmul.f32 %v10679_v20, %v1957_v41 }
 0x75d   :  { %v1872_v27 = vpop.f32.mrf.mxu0  ;;  %v1961_v8 = vpop.f32.mrf.mxu1 }
 0x75e   :  { %2062 = vmatprep.mubr.f32.mxu0 %v1979_v53  ;;  %2147 = vmatprep.mubr.f32.mxu1 %v1981_v15  ;;  %v1984_v5 = vmul.f32 %v10685_v24, %v1961_v8  ;;  %v1982_v58 = vmul.f32 %v10694_v17, %v1872_v27 }
 0x75f   :  { %v1874_v26 = vpop.f32.mrf.mxu0  ;;  %v1963_v38 = vpop.f32.mrf.mxu1  ;;  %2063 = vmatmul.mubr.f32.vlgmr.msra.gmra.mxu0 %v1978_v56  ;;  %2148 = vmatmul.mubr.f32.vlgmr.msra.gmra.mxu1 %v1980_v59 }
 0x760   :  { %v1983_v28 = vmul.f32 %v10688_v54, %v1874_v26  ;;  %v1985_v42 = vmul.f32 %v10691_v43, %v1963_v38  ;;  %9063 = vmatpush3.msra.mxu0 %v622_v34 }
 0x761   :  { %v1878_v60 = vpop.f32.mrf.mxu0  ;;  %v1967_v62 = vpop.f32.mrf.mxu1  ;;  %9064 = vmatprep.subr.mxu0 %v621_v12 }
 0x762   :  { %2067 = vmatprep.mubr.f32.mxu0 %v1983_v28  ;;  %2152 = vmatprep.mubr.f32.mxu1 %v1985_v42  ;;  %v1988_v1 = vmul.f32 %v10697_v0, %v1967_v62  ;;  %v1986_v9 = vmul.f32 %v10706_v36, %v1878_v60 }
 0x763   :  { %v1880_v31 = vpop.f32.mrf.mxu0  ;;  %v1969_v32 = vpop.f32.mrf.mxu1  ;;  %2068 = vmatmul.mubr.f32.gmra.mxu0 %v1982_v58  ;;  %2153 = vmatmul.mubr.f32.gmra.mxu1 %v1984_v5 }
 0x764   :  { %v1987_v35 = vmul.f32 %v10700_v2, %v1880_v31  ;;  %v1989_v4 = vmul.f32 %v10703_v3, %v1969_v32  ;;  %9065 = vmatpush3.msra.mxu0 %v621_v12 }
 0x765   :  { %v1884_v10 = vpop.f32.mrf.mxu0  ;;  %v1973_v16 = vpop.f32.mrf.mxu1  ;;  %9066 = vmatprep.subr.mxu0 %v620_v25 }
 0x766   :  { %2072 = vmatprep.mubr.f32.mxu0 %v1987_v35  ;;  %2157 = vmatprep.mubr.f32.mxu1 %v1989_v4  ;;  %v1992_v13 = vmul.f32 %v10709_v11, %v1973_v16  ;;  %v1990_v40 = vmul.f32 %v10718_v30, %v1884_v10 }
 0x767   :  { %v1886_v18 = vpop.f32.mrf.mxu0  ;;  %v1975_v51 = vpop.f32.mrf.mxu1  ;;  %2073 = vmatmul.mubr.f32.gmra.mxu0 %v1986_v9  ;;  %2158 = vmatmul.mubr.f32.gmra.mxu1 %v1988_v1 }
 0x768   :  { %v1991_v49 = vmul.f32 %v10712_v52, %v1886_v18  ;;  %v1993_v22 = vmul.f32 %v10715_v19, %v1975_v51  ;;  %9067 = vmatpush3.msra.mxu0 %v620_v25 }
 0x769   :  { %9068 = vmatprep.subr.mxu0 %v619_v33 }
 0x76a   :  { %2077 = vmatprep.mubr.f32.mxu0 %v1991_v49  ;;  %2162 = vmatprep.mubr.f32.mxu1 %v1993_v22 }
 0x76b   :  { %2078 = vmatmul.mubr.f32.gmra.mxu0 %v1990_v40  ;;  %2163 = vmatmul.mubr.f32.gmra.mxu1 %v1992_v13  ;;  %v2171_v13 = vrot.slane %v10737_v46, %v9870_v61 }
 0x76c   :  { %2508 = vmatprep.mubr.f32.mxu1 %v13524_v55  ;;  %9069 = vmatpush3.msra.mxu0 %v619_v33 }
 0x81f   :  { %v8416_v48 = vpop.f32.mrf.mxu0  ;;  %v8460_v39 = vpop.f32.mrf.mxu1 }
 0x821   :  { %v8417_v45 = vpop.f32.mrf.mxu0  ;;  %v8461_v6 = vpop.f32.mrf.mxu1 }
 0x822   :  { %v8418_v21 = vadd.f32 %v8417_v45, %v8416_v48  ;;  %v8462_v59 = vadd.f32 %v8461_v6, %v8460_v39 }
 0x823   :  { %v8419_v29 = vpop.f32.mrf.mxu0  ;;  %v8463_v57 = vpop.f32.mrf.mxu1 }
 0x824   :  { %v2065_v50 = vadd.f32 %v8418_v21, %v1997_v47 }
 0x825   :  { %v8420_v37 = vpop.f32.mrf.mxu0  ;;  %v8464_v41 = vpop.f32.mrf.mxu1 }
 0x826   :  { %v2150_v53 = vadd.f32 %v8462_v59, %v2065_v50  ;;  %v8421_v15 = vadd.f32 %v8420_v37, %v8419_v29  ;;  %v8465_v5 = vadd.f32 %v8464_v41, %v8463_v57  ;;  %v7844_v41 = vld [vmem:[%s13482_s2 + $0x208] sm:$0xff] }
 0x827   :  { %v8422_v56 = vpop.f32.mrf.mxu0  ;;  %v8466_v27 = vpop.f32.mrf.mxu1  ;;  %2468 = vmatprep.subr.mxu1 %v7844_v41 }
 0x828   :  { %v2070_v8 = vadd.f32 %v8421_v15, %v1997_v47  ;;  %9070 = vmatprep.mubr.msk.f32.mxu0 %vm320_vm1, %v2150_v53  ;;  %v7846_v53 = vld [vmem:[%s13482_s2 + $0x218] sm:$0xff]  ;;  %v7843_v15 = vld [vmem:[%s13482_s2 + $0x200] sm:$0xff] }
 0x829   :  { %v8423_v26 = vpop.f32.mrf.mxu0  ;;  %v8467_v38 = vpop.f32.mrf.mxu1  ;;  %2557 = vmatprep.subr.mxu0 %v7846_v53  ;;  %2469 = vmatpush1.msra.mxu1 %v7843_v15 }
 0x82a   :  { %v2155_v28 = vadd.f32 %v8465_v5, %v2070_v8  ;;  %v8424_v42 = vadd.f32 %v8423_v26, %v8422_v56  ;;  %v8468_v1 = vadd.f32 %v8467_v38, %v8466_v27  ;;  %v7845_v56 = vld [vmem:[%s13482_s2 + $0x210] sm:$0xff]  ;;  %v7836_v27 = vld [vmem:[%s13482_s2 + $0x1c8] sm:$0xff]  ;;  %v7838_v8 = vld [vmem:[%s13482_s2 + $0x1d8] sm:$0xff] }
 0x82b   :  { %v8425_v58 = vpop.f32.mrf.mxu0  ;;  %v8469_v60 = vpop.f32.mrf.mxu1  ;;  %2470 = vmatprep.subr.mxu1 %v7836_v27  ;;  %v7835_v5 = vld [vmem:[%s13482_s2 + $0x1c0] sm:$0xff]  ;;  %v7837_v26 = vld [vmem:[%s13482_s2 + $0x1d0] sm:$0xff]  ;;  %v7828_v38 = vld [vmem:[%s13482_s2 + $0x188] sm:$0xff] }
 0x82c   :  { %v2075_v62 = vadd.f32 %v8424_v42, %v1997_v47  ;;  %9071 = vmatmul.mubr.msk.f32.vlgmr.msra.gmra.mxu0 %vm320_vm1, %v2155_v28  ;;  %2471 = vmatpush1.msra.mxu1 %v7835_v5  ;;  %v7830_v28 = vld [vmem:[%s13482_s2 + $0x198] sm:$0xff]  ;;  %v7827_v42 = vld [vmem:[%s13482_s2 + $0x180] sm:$0xff] }
 0x82d   :  { %v8426_v31 = vpop.f32.mrf.mxu0  ;;  %v8470_v32 = vpop.f32.mrf.mxu1  ;;  %2558 = vmatpush1.msra.mxu0 %v7845_v56  ;;  %2472 = vmatprep.subr.mxu1 %v7828_v38 }
 0x82e   :  { %v2160_v35 = vadd.f32 %v8468_v1, %v2075_v62  ;;  %v8427_v4 = vadd.f32 %v8426_v31, %v8425_v58  ;;  %v8471_v10 = vadd.f32 %v8470_v32, %v8469_v60  ;;  %2559 = vmatprep.subr.mxu0 %v7838_v8  ;;  %v7829_v58 = vld [vmem:[%s13482_s2 + $0x190] sm:$0xff]  ;;  %2473 = vmatpush1.msra.mxu1 %v7827_v42  ;;  %v7820_v60 = vld [vmem:[%s13482_s2 + $0x148] sm:$0xff]  ;;  %v7822_v62 = vld [vmem:[%s13482_s2 + $0x158] sm:$0xff] }
 0x82f   :  { %2560 = vmatpush1.msra.mxu0 %v7837_v26  ;;  %2474 = vmatprep.subr.mxu1 %v7820_v60  ;;  %v7819_v1 = vld [vmem:[%s13482_s2 + $0x140] sm:$0xff]  ;;  %v7821_v31 = vld [vmem:[%s13482_s2 + $0x150] sm:$0xff]  ;;  %v7848_v32 = vld [vmem:[%s13482_s2 + $0x228] sm:$0xff]  ;;  %v2332_v26 = vrot.slane %v10737_v46, %v9873_v63 }
 0x830   :  { %v2080_v9 = vadd.f32 %v8427_v4, %v1997_v47  ;;  %9073 = vmatprep.mubr.msk.f32.mxu0 %vm320_vm1, %v2160_v35  ;;  %2561 = vmatprep.subr.mxu0 %v7830_v28  ;;  %v7850_v35 = vld [vmem:[%s13482_s2 + $0x238] sm:$0xff] }
 0x831   :  { %2562 = vmatpush1.msra.mxu0 %v7829_v58  ;;  %2475 = vmatpush1.msra.mxu1 %v7819_v1  ;;  %v13525_v42 = vld [vmem:[#allocation11_spill] sm:$0xff] }
 0x832   :  { %v2165_v16 = vadd.f32 %v8471_v10, %v2080_v9  ;;  %2563 = vmatprep.subr.mxu0 %v7822_v62  ;;  %2646 = vmatprep.subr.mxu1 %v7848_v32  ;;  %v2340_v58 = vrot.slane %v10737_v46, %v13525_v42  ;;  %v7847_v46 = vld [vmem:[%s13482_s2 + $0x220] sm:$0xff] }
 0x833   :  { %2564 = vmatpush1.msra.mxu0 %v7821_v31 }
 0x834   :  { %9074 = vmatmul.mubr.msk.f32.gmra.mxu0 %vm320_vm1, %v2165_v16  ;;  %2735 = vmatprep.subr.mxu0 %v7850_v35 }
 0x835   :  { %2597 = vmatprep.mubr.f32.mxu0 %v13524_v55 }
 0x8ec   :  { %v9072_v18 = vpop.f32.mrf.mxu0 }
 0x8ed   :  { %v10748_v49 = vadd.f32 %v9072_v18, %v2171_v13 }
 0x8ee   :  { %v2250_v51 = vpop.f32.mrf.mxu0 }
 0x8ef   :  { %v10750_v22 = vadd.f32 %v2250_v51, %v2171_v13  ;;  %v2286_v25 = vmul.f32 %v10748_v49, %v10748_v49  ;;  %v2272_v48 = vsel %vm320_vm1, %v10748_v49, 0.0 }
 0x8f1   :  { %v2269_v40 = vsel %vm320_vm1, %v10750_v22, 0.0  ;;  %v2285_v34 = vmul.f32 %v10750_v22, %v10750_v22  ;;  %v2292_v6 = vsel %vm320_vm1, %v2286_v25, 0.0 }
 0x8f2   :  { %2270 = vadd.xlane.f32.xlu0 %v2269_v40 }
 0x8f3   :  { %v2289_v12 = vsel %vm320_vm1, %v2285_v34, 0.0 }
 0x8f4   :  { %2290 = vadd.xlane.f32.xlu1 %v2289_v12  ;;  %v9075_v33 = vpop.f32.mrf.mxu0 }
 0x8f5   :  { %v10761_v47 = vadd.f32 %v9075_v33, %v2171_v13 }
 0x8f6   :  { %2273 = vadd.xlane.f32.xlu0 %v2272_v48  ;;  %v2260_v39 = vpop.f32.mrf.mxu0 }
 0x8f7   :  { %v10763_v45 = vadd.f32 %v2260_v39, %v2171_v13  ;;  %v2288_v50 = vmul.f32 %v10761_v47, %v10761_v47  ;;  %v2278_v59 = vsel %vm320_vm1, %v10761_v47, 0.0 }
 0x8f8   :  { %2293 = vadd.xlane.f32.xlu1 %v2292_v6 }
 0x8f9   :  { %v2275_v21 = vsel %vm320_vm1, %v10763_v45, 0.0  ;;  %v2287_v29 = vmul.f32 %v10763_v45, %v10763_v45  ;;  %v2298_v37 = vsel %vm320_vm1, %v2288_v50, 0.0 }
 0x8fa   :  { %2276 = vadd.xlane.f32.xlu0 %v2275_v21 }
 0x8fb   :  { %v2295_v57 = vsel %vm320_vm1, %v2287_v29, 0.0 }
 0x8fc   :  { %2296 = vadd.xlane.f32.xlu1 %v2295_v57 }
 0x8fe   :  { %2279 = vadd.xlane.f32.xlu0 %v2278_v59 }
 0x900   :  { %2299 = vadd.xlane.f32.xlu1 %v2298_v37 }
 0x97b   :  { %v2271_v4 = vpop.xlane.xlu0 %2270 }
 0x97c   :  { %v2281_v9 = vmul.f32 0.03125, %v2271_v4 }
 0x97d   :  { %v2291_v10 = vpop.xlane.xlu1 %2290 }
 0x97e   :  { %v2305_v16 = vmul.f32 %v2281_v9, %v2281_v9  ;;  %v2301_v13 = vmul.f32 0.03125, %v2291_v10  ;;  %v2313_v38 = vsub.f32 %v10750_v22, %v2281_v9 }
 0x97f   :  { %v2274_v18 = vpop.xlane.xlu0 %2273 }
 0x980   :  { %v2309_v51 = vsub.f32 %v2301_v13, %v2305_v16  ;;  %v2282_v40 = vmul.f32 0.03125, %v2274_v18 }
 0x981   :  { %v2294_v34 = vpop.xlane.xlu1 %2293 }
 0x982   :  { %v2317_v12 = vadd.f32 1e-05, %v2309_v51  ;;  %v2306_v25 = vmul.f32 %v2282_v40, %v2282_v40  ;;  %v2302_v33 = vmul.f32 0.03125, %v2294_v34  ;;  %v2314_v1 = vsub.f32 %v10748_v49, %v2282_v40  ;;  %v13526_v51 = vld [vmem:[#allocation12_spill] sm:$0xff]  ;;  %v7849_v49 = vld [vmem:[%s13482_s2 + $0x230] sm:$0xff] }
 0x983   :  { %v2277_v48 = vpop.xlane.xlu0 %2276 }
 0x984   :  { %9165 = vrsqrt.f32 %v2317_v12  ;;  %v2310_v39 = vsub.f32 %v2302_v33, %v2306_v25  ;;  %v2283_v6 = vmul.f32 0.03125, %v2277_v48  ;;  %v7840_v12 = vld [vmem:[%s13482_s2 + $0x1e8] sm:$0xff]  ;;  %v7842_v25 = vld [vmem:[%s13482_s2 + $0x1f8] sm:$0xff] }
 0x985   :  { %v2297_v21 = vpop.xlane.xlu1 %2296  ;;  %v13528_v48 = vld [vmem:[#allocation13_spill] sm:$0xff] }
 0x986   :  { %v2318_v29 = vadd.f32 1e-05, %v2310_v39  ;;  %v2307_v57 = vmul.f32 %v2283_v6, %v2283_v6  ;;  %v2303_v50 = vmul.f32 0.03125, %v2297_v21  ;;  %v2315_v4 = vsub.f32 %v10763_v45, %v2283_v6  ;;  %v7839_v21 = vld [vmem:[%s13482_s2 + $0x1e0] sm:$0xff] }
 0x987   :  { %v2280_v59 = vpop.xlane.xlu0 %2279 }
 0x988   :  { %9167 = vrsqrt.f32 %v2318_v29  ;;  %v2311_v37 = vsub.f32 %v2303_v50, %v2307_v57  ;;  %v2284_v41 = vmul.f32 0.03125, %v2280_v59  ;;  %v7841_v29 = vld [vmem:[%s13482_s2 + $0x1f0] sm:$0xff]  ;;  %v7832_v59 = vld [vmem:[%s13482_s2 + $0x1a8] sm:$0xff] }
 0x989   :  { %v2300_v53 = vpop.xlane.xlu1 %2299 }
 0x98a   :  { %v2319_v15 = vadd.f32 1e-05, %v2311_v37  ;;  %v2308_v56 = vmul.f32 %v2284_v41, %v2284_v41  ;;  %v2304_v27 = vmul.f32 0.03125, %v2300_v53  ;;  %v2316_v40 = vsub.f32 %v10761_v47, %v2284_v41  ;;  %v7834_v37 = vld [vmem:[%s13482_s2 + $0x1b8] sm:$0xff]  ;;  %v13530_v41 = vld [vmem:[#allocation14_spill] sm:$0xff] }
 0x98c   :  { %9169 = vrsqrt.f32 %v2319_v15  ;;  %v2312_v8 = vsub.f32 %v2304_v27, %v2308_v56  ;;  %v7831_v56 = vld [vmem:[%s13482_s2 + $0x1a0] sm:$0xff]  ;;  %v7833_v27 = vld [vmem:[%s13482_s2 + $0x1b0] sm:$0xff] }
 0x98e   :  { %v2320_v5 = vadd.f32 1e-05, %v2312_v8 }
 0x990   :  { %9171 = vrsqrt.f32 %v2320_v5  ;;  %v7824_v5 = vld [vmem:[%s13482_s2 + $0x168] sm:$0xff] }
 0x991   :  { %v9166_v28 = vpop.eup %9165 }
 0x992   :  { %v2325_v60 = vmul.f32 %v9166_v28, %v2313_v38  ;;  %v13532_v38 = vld [vmem:[#allocation15_spill] sm:$0xff] }
 0x994   :  { %v2333_v62 = vmul.f32 %v2332_v26, %v2325_v60  ;;  %v7825_v60 = vld [vmem:[%s13482_s2 + $0x170] sm:$0xff] }
 0x995   :  { %v9168_v31 = vpop.eup %9167 }
 0x996   :  { %v2326_v32 = vmul.f32 %v9168_v31, %v2314_v1  ;;  %v2341_v35 = vadd.f32 %v2340_v58, %v2333_v62 }
 0x998   :  { %v2345_v10 = vmax.f32 %v2341_v35, 0.0  ;;  %v2334_v16 = vmul.f32 %v2332_v26, %v2326_v32 }
 0x999   :  { %v9170_v13 = vpop.eup %9169 }
 0x99a   :  { %v2327_v18 = vmul.f32 %v9170_v13, %v2315_v4  ;;  %v10838_v22 = vadd.f32 %v2345_v10, %v13526_v51  ;;  %v2342_v9 = vadd.f32 %v2340_v58, %v2334_v16 }
 0x99c   :  { %13527 = vst [vmem:[#allocation12_spill] sm:$0xff] %v10838_v22  ;;  %7872 = vmatmul.mubr.msk.f32.vlgmr.msra.gmra.mxu1 %vm320_vm1, %v10838_v22  ;;  %7876 = vmatmul.mubr.msk.f32.vlgmr.msra.gmra.mxu0 %vm320_vm1, %v10838_v22  ;;  %v2346_v45 = vmax.f32 %v2342_v9, 0.0  ;;  %v2335_v34 = vmul.f32 %v2332_v26, %v2327_v18 }
 0x99d   :  { %v9172_v33 = vpop.eup %9171  ;;  %2514 = vmatprep.mubr.f32.mxu1 %v13524_v55  ;;  %2603 = vmatprep.mubr.f32.mxu0 %v13524_v55 }
 0x99e   :  { %v2328_v47 = vmul.f32 %v9172_v33, %v2316_v40  ;;  %v10860_v39 = vadd.f32 %v2346_v45, %v13528_v48  ;;  %v2343_v6 = vadd.f32 %v2340_v58, %v2335_v34  ;;  %2647 = vmatpush1.msra.mxu1 %v7847_v46  ;;  %2736 = vmatpush1.msra.mxu0 %v7849_v49 }
 0x99f   :  { %2648 = vmatprep.subr.mxu1 %v7840_v12  ;;  %2737 = vmatprep.subr.mxu0 %v7842_v25 }
 0x9a0   :  { %13529 = vst [vmem:[#allocation13_spill] sm:$0xff] %v10860_v39  ;;  %7873 = vmatmul.mubr.msk.f32.gmra.mxu1 %vm320_vm1, %v10860_v39  ;;  %7877 = vmatmul.mubr.msk.f32.gmra.mxu0 %vm320_vm1, %v10860_v39  ;;  %v2347_v57 = vmax.f32 %v2343_v6, 0.0  ;;  %v2336_v50 = vmul.f32 %v2332_v26, %v2328_v47  ;;  %v7826_v26 = vld [vmem:[%s13482_s2 + $0x178] sm:$0xff] }
 0x9a1   :  { %2520 = vmatprep.mubr.f32.mxu1 %v13524_v55  ;;  %2609 = vmatprep.mubr.f32.mxu0 %v13524_v55 }
 0x9a2   :  { %v10881_v53 = vadd.f32 %v2347_v57, %v13530_v41  ;;  %2649 = vmatpush1.msra.mxu1 %v7839_v21  ;;  %2738 = vmatpush1.msra.mxu0 %v7841_v29  ;;  %v2344_v15 = vadd.f32 %v2340_v58, %v2336_v50  ;;  %v7823_v58 = vld [vmem:[%s13482_s2 + $0x160] sm:$0xff] }
 0x9a3   :  { %2650 = vmatprep.subr.mxu1 %v7832_v59  ;;  %2739 = vmatprep.subr.mxu0 %v7834_v37 }
 0x9a4   :  { %13531 = vst [vmem:[#allocation14_spill] sm:$0xff] %v10881_v53  ;;  %7874 = vmatmul.mubr.msk.f32.gmra.mxu1 %vm320_vm1, %v10881_v53  ;;  %7878 = vmatmul.mubr.msk.f32.gmra.mxu0 %vm320_vm1, %v10881_v53  ;;  %v2348_v8 = vmax.f32 %v2344_v15, 0.0  ;;  %v7868_v15 = vld [vmem:[%s13482_s2 + $0x260] ss:$0 sm:$0xff] }
 0x9a5   :  { %2526 = vmatprep.mubr.f32.mxu1 %v13524_v55  ;;  %2615 = vmatprep.mubr.f32.mxu0 %v13524_v55 }
 0x9a6   :  { %v10902_v28 = vadd.f32 %v2348_v8, %v13532_v38  ;;  %2651 = vmatpush1.msra.mxu1 %v7831_v56  ;;  %2740 = vmatpush1.msra.mxu0 %v7833_v27  ;;  %v7870_v56 = vld [vmem:[%s13482_s2 + $0x270] ss:$0 sm:$0xff]  ;;  %v7869_v27 = vld [vmem:[%s13482_s2 + $0x268] ss:$0 sm:$0xff]  ;;  %v7871_v8 = vld [vmem:[%s13482_s2 + $0x278] ss:$0 sm:$0xff] }
 0x9a7   :  { %2652 = vmatprep.subr.mxu1 %v7824_v5  ;;  %2741 = vmatprep.subr.mxu0 %v7826_v26 }
 0x9a8   :  { %13533 = vst [vmem:[#allocation15_spill] sm:$0xff] %v10902_v28  ;;  %7875 = vmatmul.mubr.msk.f32.gmra.mxu1 %vm320_vm1, %v10902_v28  ;;  %7879 = vmatmul.mubr.msk.f32.gmra.mxu0 %vm320_vm1, %v10902_v28 }
 0x9a9   :  { %2653 = vmatpush1.msra.mxu1 %v7823_v58  ;;  %2686 = vmatprep.mubr.f32.mxu1 %v13524_v55 }
 0x9aa   :  { %2742 = vmatpush1.msra.mxu0 %v7825_v60  ;;  %2775 = vmatprep.mubr.f32.mxu0 %v13524_v55 }
 0x9ac   :  { %7880 = vmatmul.mubr.msk.f32.vlgmr.msra.gmra.mxu1 %vm320_vm1, %v10838_v22  ;;  %7884 = vmatmul.mubr.msk.f32.vlgmr.msra.gmra.mxu0 %vm320_vm1, %v10838_v22 }
 0x9ad   :  { %2692 = vmatprep.mubr.f32.mxu1 %v13524_v55  ;;  %2781 = vmatprep.mubr.f32.mxu0 %v13524_v55 }
 0x9b0   :  { %7881 = vmatmul.mubr.msk.f32.gmra.mxu1 %vm320_vm1, %v10860_v39  ;;  %7885 = vmatmul.mubr.msk.f32.gmra.mxu0 %vm320_vm1, %v10860_v39 }
 0x9b1   :  { %2698 = vmatprep.mubr.f32.mxu1 %v13524_v55  ;;  %2787 = vmatprep.mubr.f32.mxu0 %v13524_v55 }
 0x9b4   :  { %7882 = vmatmul.mubr.msk.f32.gmra.mxu1 %vm320_vm1, %v10881_v53  ;;  %7886 = vmatmul.mubr.msk.f32.gmra.mxu0 %vm320_vm1, %v10881_v53 }
 0x9b5   :  { %2704 = vmatprep.mubr.f32.mxu1 %v13524_v55  ;;  %2793 = vmatprep.mubr.f32.mxu0 %v13524_v55 }
 0x9b8   :  { %7883 = vmatmul.mubr.msk.f32.gmra.mxu1 %vm320_vm1, %v10902_v28  ;;  %7887 = vmatmul.mubr.msk.f32.gmra.mxu0 %vm320_vm1, %v10902_v28 }
 0x9b9   :  { %2880 = vmatprep.mubr.f32.mxu1 %v13524_v55  ;;  %2969 = vmatprep.mubr.f32.mxu0 %v13524_v55 }
 0xa5c   :  { %v10940_v62 = vpop.f32.mrf.mxu1  ;;  %v10942_v1 = vpop.f32.mrf.mxu0 }
 0xa5e   :  { %v10944_v31 = vpop.f32.mrf.mxu1  ;;  %v10946_v32 = vpop.f32.mrf.mxu0 }
 0xa60   :  { %v10948_v35 = vpop.f32.mrf.mxu1  ;;  %v10950_v4 = vpop.f32.mrf.mxu0 }
 0xa62   :  { %v10952_v10 = vpop.f32.mrf.mxu1  ;;  %v10954_v16 = vpop.f32.mrf.mxu0 }
 0xa64   :  { %v10956_v13 = vpop.f32.mrf.mxu1  ;;  %v10958_v18 = vpop.f32.mrf.mxu0 }
 0xa66   :  { %v10960_v51 = vpop.f32.mrf.mxu1  ;;  %v10962_v9 = vpop.f32.mrf.mxu0 }
 0xa67   :  { %13534 = vst [vmem:[#allocation16_spill] sm:$0xff] %v10962_v9 }
 0xa68   :  { %v10964_v46 = vpop.f32.mrf.mxu1  ;;  %v10966_v49 = vpop.f32.mrf.mxu0 }
 0xa69   :  { %13535 = vst [vmem:[#allocation17_spill] sm:$0xff] %v10964_v46  ;;  %13536 = vst [vmem:[#allocation18_spill] sm:$0xff] %v10966_v49 }
 0xa6a   :  { %v10968_v40 = vpop.f32.mrf.mxu1  ;;  %v10970_v45 = vpop.f32.mrf.mxu0 }
 0xa6b   :  { %13537 = vst [vmem:[#allocation19_spill] sm:$0xff] %v10968_v40  ;;  %13538 = vst [vmem:[#allocation20_spill] sm:$0xff] %v10970_v45 }
 0xa6c   :  { %v2688_v34 = vpop.f32.mrf.mxu1  ;;  %v2777_v12 = vpop.f32.mrf.mxu0 }
 0xa6d   :  { %v2689_v22 = vadd.f32 %v7868_v15, %v2688_v34 }
 0xa6e   :  { %v2690_v25 = vpop.f32.mrf.mxu1  ;;  %v2779_v33 = vpop.f32.mrf.mxu0 }
 0xa6f   :  { %v2691_v42 = vadd.f32 %v7869_v27, %v2690_v25  ;;  %v2778_v25 = vadd.f32 %v7870_v56, %v2777_v12  ;;  %v7923_v12 = vld [vmem:[%s13484_s4 + $0x2d8] sm:$0xff] }
 0xa70   :  { %v2694_v47 = vpop.f32.mrf.mxu1  ;;  %v2783_v48 = vpop.f32.mrf.mxu0 }
 0xa71   :  { %v2695_v46 = vadd.f32 %v7868_v15, %v2694_v47  ;;  %v2784_v9 = vadd.f32 %v7870_v56, %v2783_v48  ;;  %v7907_v47 = vld [vmem:[%s13484_s4 + $0x258] sm:$0xff] }
 0xa72   :  { %v2696_v6 = vpop.f32.mrf.mxu1  ;;  %v2785_v21 = vpop.f32.mrf.mxu0  ;;  %v7939_v48 = vld [vmem:[%s13484_s4 + $0x358] sm:$0xff] }
 0xa73   :  { %v2697_v7 = vadd.f32 %v7869_v27, %v2696_v6  ;;  %v2786_v45 = vadd.f32 %v7871_v8, %v2785_v21  ;;  %v7922_v21 = vld [vmem:[%s13484_s4 + $0x2d0] sm:$0xff] }
 0xa74   :  { %v2700_v29 = vpop.f32.mrf.mxu1  ;;  %v2789_v57 = vpop.f32.mrf.mxu0 }
 0xa75   :  { %v2701_v63 = vadd.f32 %v7868_v15, %v2700_v29  ;;  %v2790_v61 = vadd.f32 %v7870_v56, %v2789_v57  ;;  %v7954_v29 = vld [vmem:[%s13484_s4 + $0x3d0] sm:$0xff] }
 0xa76   :  { %v2702_v50 = vpop.f32.mrf.mxu1  ;;  %v2791_v59 = vpop.f32.mrf.mxu0  ;;  %v7906_v57 = vld [vmem:[%s13484_s4 + $0x250] sm:$0xff] }
 0xa77   :  { %v2703_v60 = vadd.f32 %v7869_v27, %v2702_v50  ;;  %v2792_v28 = vadd.f32 %v7871_v8, %v2791_v59  ;;  %v2780_v50 = vadd.f32 %v7871_v8, %v2779_v33  ;;  %v2808_v6 = vmul.f32 %v10706_v36, %v2701_v63  ;;  %v7942_v36 = vld [vmem:[%s13484_s4 + $0x370] sm:$0xff]  ;;  %v7955_v33 = vld [vmem:[%s13484_s4 + $0x3d8] sm:$0xff] }
 0xa78   :  { %v2706_v37 = vpop.f32.mrf.mxu1  ;;  %v2795_v41 = vpop.f32.mrf.mxu0 }
 0xa79   :  { %v2707_v5 = vadd.f32 %v7868_v15, %v2706_v37  ;;  %v2796_v26 = vadd.f32 %v7870_v56, %v2795_v41  ;;  %v2809_v59 = vmul.f32 %v10700_v2, %v2703_v60  ;;  %v2811_v34 = vmul.f32 %v10703_v3, %v2792_v28  ;;  %v7941_v28 = vld [vmem:[%s13484_s4 + $0x368] sm:$0xff]  ;;  %v7938_v15 = vld [vmem:[%s13484_s4 + $0x350] sm:$0xff]  ;;  %v7936_v60 = vld [vmem:[%s13484_s4 + $0x340] sm:$0xff] }
 0xa7a   :  { %v2708_v38 = vpop.f32.mrf.mxu1  ;;  %v2797_v58 = vpop.f32.mrf.mxu0  ;;  %v2806_v2 = vmul.f32 %v10685_v24, %v2784_v9  ;;  %v2801_v3 = vmul.f32 %v10676_v44, %v2691_v42  ;;  %v2803_v63 = vmul.f32 %v10679_v20, %v2780_v50  ;;  %v7927_v24 = vld [vmem:[%s13484_s4 + $0x2f8] sm:$0xff]  ;;  %v11009_v20 = vld [vmem:[%s13485_s5] sm:$0xff]  ;;  %v7925_v42 = vld [vmem:[%s13484_s4 + $0x2e8] sm:$0xff] }
 0xa7b   :  { %v2709_v53 = vadd.f32 %v7869_v27, %v2708_v38  ;;  %v2798_v39 = vadd.f32 %v7871_v8, %v2797_v58  ;;  %v2812_v37 = vmul.f32 %v10718_v30, %v2707_v5  ;;  %v2814_v41 = vmul.f32 %v10709_v11, %v2796_v26  ;;  %v7959_v44 = vld [vmem:[%s13484_s4 + $0x3f8] sm:$0xff]  ;;  %v7924_v9 = vld [vmem:[%s13484_s4 + $0x2e0] sm:$0xff]  ;;  %v7921_v56 = vld [vmem:[%s13484_s4 + $0x2c8] sm:$0xff] }
 0xa7c   :  { %v2807_v30 = vmul.f32 %v10691_v43, %v2786_v45  ;;  %v2804_v11 = vmul.f32 %v10694_v17, %v2695_v46  ;;  %v7958_v43 = vld [vmem:[%s13484_s4 + $0x3f0] sm:$0xff]  ;;  %v11032_v17 = vld [vmem:[%s13485_s5 + $0x8] sm:$0xff]  ;;  %v7956_v46 = vld [vmem:[%s13484_s4 + $0x3e0] sm:$0xff] }
 0xa7d   :  { %v2813_v40 = vmul.f32 %v10712_v52, %v2709_v53  ;;  %v2815_v49 = vmul.f32 %v10715_v19, %v2798_v39  ;;  %v2810_v52 = vmul.f32 %v10697_v0, %v2790_v61  ;;  %v2805_v19 = vmul.f32 %v10688_v54, %v2697_v7  ;;  %v7926_v54 = vld [vmem:[%s13484_s4 + $0x2f0] sm:$0xff]  ;;  %v7909_v53 = vld [vmem:[%s13484_s4 + $0x268] sm:$0xff]  ;;  %v11084_v45 = vld [vmem:[%s13485_s5 + $0x18] sm:$0xff] }
 0xa7e   :  { %v2800_v61 = vmul.f32 %v10682_v23, %v2689_v22  ;;  %v2802_v7 = vmul.f32 %v10673_v14, %v2778_v25  ;;  %v7911_v14 = vld [vmem:[%s13484_s4 + $0x278] sm:$0xff]  ;;  %v7910_v0 = vld [vmem:[%s13484_s4 + $0x270] sm:$0xff]  ;;  %v7957_v22 = vld [vmem:[%s13484_s4 + $0x3e8] sm:$0xff] }
 0xa7f   :  { %2840 = vmatprep.subr.mxu1 %v2813_v40  ;;  %2929 = vmatprep.subr.mxu0 %v2815_v49  ;;  %v7943_v23 = vld [vmem:[%s13484_s4 + $0x378] sm:$0xff]  ;;  %v11055_v39 = vld [vmem:[%s13485_s5 + $0x10] sm:$0xff]  ;;  %v7908_v49 = vld [vmem:[%s13484_s4 + $0x260] sm:$0xff] }
 0xa80   :  { %2841 = vmatpush1.msra.mxu1 %v2812_v37  ;;  %2930 = vmatpush1.msra.mxu0 %v2814_v41  ;;  %v7940_v40 = vld [vmem:[%s13484_s4 + $0x360] sm:$0xff]  ;;  %v7953_v27 = vld [vmem:[%s13484_s4 + $0x3c8] sm:$0xff]  ;;  %v7919_v37 = vld [vmem:[%s13484_s4 + $0x2b8] sm:$0xff] }
 0xa81   :  { %2842 = vmatprep.subr.mxu1 %v2809_v59  ;;  %2931 = vmatprep.subr.mxu0 %v2811_v34  ;;  %v7905_v8 = vld [vmem:[%s13484_s4 + $0x248] sm:$0xff]  ;;  %v7920_v26 = vld [vmem:[%s13484_s4 + $0x2c0] sm:$0xff]  ;;  %v7951_v41 = vld [vmem:[%s13484_s4 + $0x3b8] sm:$0xff] }
 0xa82   :  { %2843 = vmatpush1.msra.mxu1 %v2808_v6  ;;  %2932 = vmatpush1.msra.mxu0 %v2810_v52  ;;  %v7937_v5 = vld [vmem:[%s13484_s4 + $0x348] sm:$0xff]  ;;  %v7952_v38 = vld [vmem:[%s13484_s4 + $0x3c0] sm:$0xff]  ;;  %v7903_v50 = vld [vmem:[%s13484_s4 + $0x238] sm:$0xff] }
 0xa83   :  { %2844 = vmatprep.subr.mxu1 %v2805_v19  ;;  %2933 = vmatprep.subr.mxu0 %v2807_v30  ;;  %v7904_v58 = vld [vmem:[%s13484_s4 + $0x240] sm:$0xff]  ;;  %v7935_v59 = vld [vmem:[%s13484_s4 + $0x338] sm:$0xff]  ;;  %v7918_v34 = vld [vmem:[%s13484_s4 + $0x2b0] sm:$0xff] }
 0xa84   :  { %2845 = vmatpush1.msra.mxu1 %v2804_v11  ;;  %2934 = vmatpush1.msra.mxu0 %v2806_v2  ;;  %v7950_v25 = vld [vmem:[%s13484_s4 + $0x3b0] sm:$0xff]  ;;  %v7917_v19 = vld [vmem:[%s13484_s4 + $0x2a8] sm:$0xff] }
 0xa85   :  { %2846 = vmatprep.subr.mxu1 %v2801_v3  ;;  %2935 = vmatprep.subr.mxu0 %v2803_v63  ;;  %v7902_v6 = vld [vmem:[%s13484_s4 + $0x230] sm:$0xff]  ;;  %v7949_v30 = vld [vmem:[%s13484_s4 + $0x3a8] sm:$0xff]  ;;  %v7916_v3 = vld [vmem:[%s13484_s4 + $0x2a0] sm:$0xff] }
 0xa86   :  { %2847 = vmatpush1.msra.mxu1 %v2800_v61  ;;  %2936 = vmatpush1.msra.mxu0 %v2802_v7  ;;  %v7934_v52 = vld [vmem:[%s13484_s4 + $0x330] sm:$0xff]  ;;  %v7901_v11 = vld [vmem:[%s13484_s4 + $0x228] sm:$0xff]  ;;  %v7948_v63 = vld [vmem:[%s13484_s4 + $0x3a0] sm:$0xff] }
 0xa87   :  { %7888 = vmatmul.mubr.msk.f32.vlgmr.msra.gmra.mxu1 %vm320_vm1, %v11009_v20  ;;  %7892 = vmatmul.mubr.msk.f32.vlgmr.msra.gmra.mxu0 %vm320_vm1, %v11009_v20  ;;  %v7933_v2 = vld [vmem:[%s13484_s4 + $0x328] sm:$0xff]  ;;  %v7900_v61 = vld [vmem:[%s13484_s4 + $0x220] sm:$0xff] }
 0xa88   :  { %2886 = vmatprep.mubr.f32.mxu1 %v13524_v55  ;;  %2975 = vmatprep.mubr.f32.mxu0 %v13524_v55  ;;  %v7932_v7 = vld [vmem:[%s13484_s4 + $0x320] sm:$0xff] }
 0xa89   :  { %8480 = vmatprep.subr.mxu1 %v7927_v24  ;;  %8524 = vmatprep.subr.mxu0 %v7959_v44  ;;  %v7915_v24 = vld [vmem:[%s13484_s4 + $0x298] sm:$0xff] }
 0xa8a   :  { %8481 = vmatpush3.msra.mxu1 %v7911_v14  ;;  %8525 = vmatpush3.msra.mxu0 %v7943_v23  ;;  %v7947_v44 = vld [vmem:[%s13484_s4 + $0x398] sm:$0xff] }
 0xa8b   :  { %7889 = vmatmul.mubr.msk.f32.gmra.mxu1 %vm320_vm1, %v11032_v17  ;;  %7893 = vmatmul.mubr.msk.f32.gmra.mxu0 %vm320_vm1, %v11032_v17  ;;  %v7899_v14 = vld [vmem:[%s13484_s4 + $0x218] sm:$0xff] }
 0xa8c   :  { %2892 = vmatprep.mubr.f32.mxu1 %v13524_v55  ;;  %2981 = vmatprep.mubr.f32.mxu0 %v13524_v55  ;;  %v7931_v23 = vld [vmem:[%s13484_s4 + $0x318] sm:$0xff] }
 0xa8d   :  { %8482 = vmatprep.subr.mxu1 %v7926_v54  ;;  %8526 = vmatprep.subr.mxu0 %v7958_v43  ;;  %v7914_v54 = vld [vmem:[%s13484_s4 + $0x290] sm:$0xff] }
 0xa8e   :  { %8483 = vmatpush3.msra.mxu1 %v7910_v0  ;;  %8527 = vmatpush3.msra.mxu0 %v7942_v36  ;;  %v7946_v43 = vld [vmem:[%s13484_s4 + $0x390] sm:$0xff] }
 0xa8f   :  { %7890 = vmatmul.mubr.msk.f32.gmra.mxu1 %vm320_vm1, %v11055_v39  ;;  %7894 = vmatmul.mubr.msk.f32.gmra.mxu0 %vm320_vm1, %v11055_v39  ;;  %v7898_v0 = vld [vmem:[%s13484_s4 + $0x210] sm:$0xff] }
 0xa90   :  { %2898 = vmatprep.mubr.f32.mxu1 %v13524_v55  ;;  %2987 = vmatprep.mubr.f32.mxu0 %v13524_v55  ;;  %v7930_v36 = vld [vmem:[%s13484_s4 + $0x310] sm:$0xff] }
 0xa91   :  { %8484 = vmatprep.subr.mxu1 %v7925_v42  ;;  %8528 = vmatprep.subr.mxu0 %v7957_v22  ;;  %v7913_v42 = vld [vmem:[%s13484_s4 + $0x288] sm:$0xff] }
 0xa92   :  { %8485 = vmatpush3.msra.mxu1 %v7909_v53  ;;  %8529 = vmatpush3.msra.mxu0 %v7941_v28  ;;  %v7945_v22 = vld [vmem:[%s13484_s4 + $0x388] sm:$0xff] }
 0xa93   :  { %7891 = vmatmul.mubr.msk.f32.gmra.mxu1 %vm320_vm1, %v11084_v45  ;;  %7895 = vmatmul.mubr.msk.f32.gmra.mxu0 %vm320_vm1, %v11084_v45  ;;  %v7897_v53 = vld [vmem:[%s13484_s4 + $0x208] sm:$0xff] }
 0xa94   :  { %8486 = vmatprep.subr.mxu1 %v7924_v9  ;;  %8530 = vmatprep.subr.mxu0 %v7956_v46  ;;  %v7929_v28 = vld [vmem:[%s13484_s4 + $0x308] sm:$0xff]  ;;  %v7912_v9 = vld [vmem:[%s13484_s4 + $0x280] sm:$0xff] }
 0xa95   :  { %8487 = vmatpush3.msra.mxu1 %v7908_v49  ;;  %8531 = vmatpush3.msra.mxu0 %v7940_v40  ;;  %v7944_v46 = vld [vmem:[%s13484_s4 + $0x380] sm:$0xff] }
 0xa96   :  { %8488 = vmatprep.subr.mxu1 %v7923_v12  ;;  %8532 = vmatprep.subr.mxu0 %v7955_v33  ;;  %v7896_v49 = vld [vmem:[%s13484_s4 + $0x200] sm:$0xff]  ;;  %v9257_v12 = vld [vmem:[#allocation4 + $0x268] sm:$0xff]  ;;  %v9258_v33 = vld [vmem:[#allocation4 + $0x278] sm:$0xff] }
 0xa97   :  { %8489 = vmatpush3.msra.mxu1 %v7907_v47  ;;  %8533 = vmatpush3.msra.mxu0 %v7939_v48  ;;  %v7928_v40 = vld [vmem:[%s13484_s4 + $0x300] sm:$0xff]  ;;  %v7866_v48 = vld [vmem:[%s13482_s2 + $0x250] ss:$0 sm:$0xff] }
 0xa98   :  { %8490 = vmatprep.subr.mxu1 %v7922_v21  ;;  %8534 = vmatprep.subr.mxu0 %v7954_v29  ;;  %v7864_v47 = vld [vmem:[%s13482_s2 + $0x240] ss:$0 sm:$0xff]  ;;  %v7865_v21 = vld [vmem:[%s13482_s2 + $0x248] ss:$0 sm:$0xff]  ;;  %v7867_v29 = vld [vmem:[%s13482_s2 + $0x258] ss:$0 sm:$0xff] }
 0xa99   :  { %8491 = vmatpush3.msra.mxu1 %v7906_v57  ;;  %8535 = vmatpush3.msra.mxu0 %v7938_v15  ;;  %v11247_v57 = vadd.f32 %v7864_v47, %v10940_v62  ;;  %v11250_v15 = vadd.f32 %v7866_v48, %v10942_v1  ;;  %v3013_v62 = vld [vmem:[#allocation2 + $0x90] sm:$0xff]  ;;  %v11268_v1 = vadd.f32 %v7867_v29, %v10954_v16 }
 0xa9a   :  { %8492 = vmatprep.subr.mxu1 %v7921_v56  ;;  %8536 = vmatprep.subr.mxu0 %v7953_v27  ;;  %v11253_v56 = vadd.f32 %v7865_v21, %v10944_v31  ;;  %v11256_v27 = vadd.f32 %v7867_v29, %v10946_v32 }
 0xa9b   :  { %8493 = vmatpush3.msra.mxu1 %v7905_v8  ;;  %8537 = vmatpush3.msra.mxu0 %v7937_v5  ;;  %v11259_v8 = vadd.f32 %v7864_v47, %v10948_v35  ;;  %v11262_v5 = vadd.f32 %v7866_v48, %v10950_v4  ;;  %v11273_v35 = vadd.f32 %v7864_v47, %v10956_v13  ;;  %v3014_v13 = vld [vmem:[#allocation2 + $0x98] sm:$0xff] }
 0xa9c   :  { %8494 = vmatprep.subr.mxu1 %v7920_v26  ;;  %8538 = vmatprep.subr.mxu0 %v7952_v38  ;;  %v3011_v38 = vld [vmem:[#allocation2 + $0x80] sm:$0xff]  ;;  %v11276_v4 = vadd.f32 %v7866_v48, %v10958_v18  ;;  %v13541_v18 = vld [vmem:[#allocation18_spill] sm:$0xff] }
 0xa9d   :  { %8495 = vmatpush3.msra.mxu1 %v7904_v58  ;;  %8539 = vmatpush3.msra.mxu0 %v7936_v60  ;;  %v11265_v60 = vadd.f32 %v7865_v21, %v10952_v10 }
 0xa9e   :  { %8496 = vmatprep.subr.mxu1 %v7919_v37  ;;  %8540 = vmatprep.subr.mxu0 %v7951_v41  ;;  %v11279_v37 = vadd.f32 %v7865_v21, %v10960_v51  ;;  %v13539_v41 = vld [vmem:[#allocation16_spill] sm:$0xff]  ;;  %v13542_v51 = vld [vmem:[#allocation19_spill] sm:$0xff] }
 0xa9f   :  { %8497 = vmatpush3.msra.mxu1 %v7903_v50  ;;  %8541 = vmatpush3.msra.mxu0 %v7935_v59  ;;  %v11282_v50 = vadd.f32 %v7867_v29, %v13539_v41  ;;  %v3020_v41 = vld [vmem:[#allocation2 + $0xc8] sm:$0xff] }
 0xaa0   :  { %8498 = vmatprep.subr.mxu1 %v7918_v34  ;;  %8542 = vmatprep.subr.mxu0 %v7950_v25 }
 0xaa1   :  { %8499 = vmatpush3.msra.mxu1 %v7902_v6  ;;  %8543 = vmatpush3.msra.mxu0 %v7934_v52  ;;  %v3012_v6 = vld [vmem:[#allocation2 + $0x88] sm:$0xff] }
 0xaa2   :  { %8500 = vmatprep.subr.mxu1 %v7917_v19  ;;  %8544 = vmatprep.subr.mxu0 %v7949_v30  ;;  %v13540_v19 = vld [vmem:[#allocation17_spill] sm:$0xff] }
 0xaa3   :  { %8501 = vmatpush3.msra.mxu1 %v7901_v11  ;;  %8545 = vmatpush3.msra.mxu0 %v7933_v2  ;;  %v11287_v30 = vadd.f32 %v7864_v47, %v13540_v19  ;;  %v11290_v11 = vadd.f32 %v7866_v48, %v13541_v18  ;;  %v11293_v2 = vadd.f32 %v7865_v21, %v13542_v51  ;;  %v3019_v48 = vld [vmem:[#allocation2 + $0xc0] sm:$0xff] }
 0xaa4   :  { %8502 = vmatprep.subr.mxu1 %v7916_v3  ;;  %8546 = vmatprep.subr.mxu0 %v7948_v63  ;;  %v13543_v3 = vld [vmem:[#allocation20_spill] sm:$0xff] }
 0xaa5   :  { %8503 = vmatpush3.msra.mxu1 %v7900_v61  ;;  %8547 = vmatpush3.msra.mxu0 %v7932_v7  ;;  %v11296_v63 = vadd.f32 %v7867_v29, %v13543_v3  ;;  %v3015_v7 = vld [vmem:[#allocation2 + $0xa0] sm:$0xff]  ;;  %v3021_v29 = vld [vmem:[#allocation2 + $0xd0] sm:$0xff] }
 0xaa6   :  { %8504 = vmatprep.subr.mxu1 %v7915_v24  ;;  %8548 = vmatprep.subr.mxu0 %v7947_v44  ;;  %v3017_v44 = vld [vmem:[#allocation2 + $0xb0] sm:$0xff]  ;;  %v3023_v51 = vld [vmem:[#allocation2 + $0xe0] sm:$0xff] }
 0xaa7   :  { %8505 = vmatpush3.msra.mxu1 %v7899_v14  ;;  %8549 = vmatpush3.msra.mxu0 %v7931_v23 }
 0xaa8   :  { %8506 = vmatprep.subr.mxu1 %v7914_v54  ;;  %8550 = vmatprep.subr.mxu0 %v7946_v43 }
 0xaa9   :  { %8507 = vmatpush3.msra.mxu1 %v7898_v0  ;;  %8551 = vmatpush3.msra.mxu0 %v7930_v36 }
 0xaaa   :  { %8508 = vmatprep.subr.mxu1 %v7913_v42  ;;  %8552 = vmatprep.subr.mxu0 %v7945_v22  ;;  %v3016_v22 = vld [vmem:[#allocation2 + $0xa8] sm:$0xff] }
 0xaab   :  { %8509 = vmatpush3.msra.mxu1 %v7897_v53  ;;  %8553 = vmatpush3.msra.mxu0 %v7929_v28  ;;  %v3018_v28 = vld [vmem:[#allocation2 + $0xb8] sm:$0xff] }
 0xaac   :  { %8510 = vmatprep.subr.mxu1 %v7912_v9  ;;  %8554 = vmatprep.subr.mxu0 %v7944_v46 }
 0xaad   :  { %8511 = vmatpush3.msra.mxu1 %v7896_v49  ;;  %8555 = vmatpush3.msra.mxu0 %v7928_v40 }
 0xaae   :  { %3372 = vmatprep.subr.mxu1 %v9257_v12  ;;  %3461 = vmatprep.subr.mxu0 %v9258_v33 }
 0xb47   :  { %v2882_v26 = vpop.f32.mrf.mxu1  ;;  %v2971_v58 = vpop.f32.mrf.mxu0 }
 0xb48   :  { %v2994_v31 = vadd.f32 %v2882_v26, %v11247_v57  ;;  %v2996_v32 = vadd.f32 %v2971_v58, %v11250_v15 }
 0xb49   :  { %v2884_v10 = vpop.f32.mrf.mxu1  ;;  %v2973_v59 = vpop.f32.mrf.mxu0 }
 0xb4a   :  { %v3027_v16 = vadd.f32 %v3011_v38, %v2994_v31  ;;  %v3029_v34 = vadd.f32 %v3013_v62, %v2996_v32  ;;  %v2995_v25 = vadd.f32 %v2884_v10, %v11253_v56  ;;  %v2997_v52 = vadd.f32 %v2973_v59, %v11256_v27  ;;  %v3022_v59 = vld [vmem:[#allocation2 + $0xd8] sm:$0xff] }
 0xb4b   :  { %v2888_v61 = vpop.f32.mrf.mxu1  ;;  %v2977_v24 = vpop.f32.mrf.mxu0 }
 0xb4c   :  { %vm3043_vm3 = vcmp.gt.f32.partialorder %v3027_v16, 0.0  ;;  %v3059_v14 = vmul.f32 0.2, %v3027_v16  ;;  %vm3045_vm4 = vcmp.gt.f32.partialorder %v3029_v34, 0.0  ;;  %v3061_v23 = vmul.f32 0.2, %v3029_v34 }
 0xb4d   :  { %v3028_v54 = vadd.f32 %v3012_v6, %v2995_v25  ;;  %v3030_v43 = vadd.f32 %v3014_v13, %v2997_v52  ;;  %v2998_v0 = vadd.f32 %v2888_v61, %v11259_v8  ;;  %v3000_v36 = vadd.f32 %v2977_v24, %v11262_v5  ;;  %v2890_v42 = vpop.f32.mrf.mxu1  ;;  %v2979_v53 = vpop.f32.mrf.mxu0  ;;  %v3025_v61 = vld [vmem:[#allocation2 + $0xf0] sm:$0xff] }
 0xb4e   :  { %v2999_v9 = vadd.f32 %v2890_v42, %v11265_v60  ;;  %v3001_v46 = vadd.f32 %v2979_v53, %v11268_v1  ;;  %v3075_v49 = vsel %vm3043_vm3, %v3027_v16, %v3059_v14  ;;  %v3077_v40 = vsel %vm3045_vm4, %v3029_v34, %v3061_v23 }
 0xb4f   :  { %v3031_v12 = vadd.f32 %v3015_v7, %v2998_v0  ;;  %v11302_v33 = vadd.f32 %v3017_v44, %v3000_v36  ;;  %v2894_v47 = vpop.f32.mrf.mxu1  ;;  %v2983_v21 = vpop.f32.mrf.mxu0  ;;  %vm3044_vm5 = vcmp.gt.f32.partialorder %v3028_v54, 0.0  ;;  %v3060_v26 = vmul.f32 0.2, %v3028_v54 }
 0xb50   :  { %v3032_v38 = vadd.f32 %v3016_v22, %v2999_v9  ;;  %v3034_v58 = vadd.f32 %v3018_v28, %v3001_v46  ;;  %v3002_v62 = vadd.f32 %v2894_v47, %v11273_v35  ;;  %v3004_v31 = vadd.f32 %v2983_v21, %v11276_v4  ;;  %v9259_v28 = vld [vmem:[#allocation4 + $0x260] sm:$0xff] }
 0xb51   :  { %v2896_v32 = vpop.f32.mrf.mxu1  ;;  %v2985_v10 = vpop.f32.mrf.mxu0  ;;  %v3076_v16 = vsel %vm3044_vm5, %v3028_v54, %v3060_v26  ;;  %vm3046_vm6 = vcmp.gt.f32.partialorder %v3030_v43, 0.0  ;;  %v3062_v34 = vmul.f32 0.2, %v3030_v43  ;;  %vm3047_vm7 = vcmp.gt.f32.partialorder %v3031_v12, 0.0  ;;  %v3024_v54 = vld [vmem:[#allocation2 + $0xe8] sm:$0xff] }
 0xb52   :  { %v11306_v25 = vadd.f32 %v3019_v48, %v3002_v62  ;;  %v11308_v6 = vadd.f32 %v3021_v29, %v3004_v31  ;;  %v3003_v52 = vadd.f32 %v2896_v32, %v11279_v37  ;;  %v3005_v13 = vadd.f32 %v2985_v10, %v11282_v50  ;;  %3220 = vmatprep.mubr.f32.mxu1 %v3076_v16  ;;  %v9260_v29 = vld [vmem:[#allocation4 + $0x270] sm:$0xff]  ;;  %v9261_v26 = vld [vmem:[#allocation4 + $0x248] sm:$0xff]  ;;  %v9263_v10 = vld [vmem:[#allocation4 + $0x240] sm:$0xff] }
 0xb53   :  { %v3078_v19 = vsel %vm3046_vm6, %v3030_v43, %v3062_v34  ;;  %3221 = vmatmul.mubr.f32.vlgmr.msra.gmra.mxu1 %v3075_v49  ;;  %v2900_v18 = vpop.f32.mrf.mxu1  ;;  %v2989_v3 = vpop.f32.mrf.mxu0  ;;  %vm3048_vm8 = vcmp.gt.f32.partialorder %v3032_v38, 0.0  ;;  %v3064_v7 = vmul.f32 0.2, %v3032_v38  ;;  %vm3050_vm9 = vcmp.gt.f32.partialorder %v3034_v58, 0.0  ;;  %v3026_v43 = vld [vmem:[#allocation2 + $0xf8] sm:$0xff]  ;;  %v9264_v34 = vld [vmem:[#allocation4 + $0x228] sm:$0xff] }
 0xb54   :  { %v3036_v24 = vadd.f32 %v3020_v41, %v3003_v52  ;;  %v3038_v44 = vadd.f32 %v3022_v59, %v3005_v13  ;;  %3305 = vmatprep.mubr.f32.mxu0 %v3078_v19  ;;  %v3006_v14 = vadd.f32 %v2900_v18, %v11287_v30  ;;  %v3008_v23 = vadd.f32 %v2989_v3, %v11290_v11  ;;  %v9262_v41 = vld [vmem:[#allocation4 + $0x258] sm:$0xff]  ;;  %v9265_v19 = vld [vmem:[#allocation4 + $0x250] sm:$0xff] }
 0xb55   :  { %3306 = vmatmul.mubr.f32.vlgmr.msra.gmra.mxu0 %v3077_v40  ;;  %v2902_v0 = vpop.f32.mrf.mxu1  ;;  %v2991_v36 = vpop.f32.mrf.mxu0  ;;  %v3080_v42 = vsel %vm3048_vm8, %v3032_v38, %v3064_v7  ;;  %v3066_v22 = vmul.f32 0.2, %v3034_v58  ;;  %v3063_v53 = vmul.f32 0.2, %v3031_v12  ;;  %vm3049_vm10 = vcmp.gt.f32.partialorder %v11302_v33, 0.0  ;;  %3373 = vmatpush1.msra.mxu1 %v9259_v28  ;;  %v9276_v28 = vld [vmem:[#allocation4 + $0x1c8] sm:$0xff] }
 0xb56   :  { %v3039_v9 = vadd.f32 %v3023_v51, %v3006_v14  ;;  %v11315_v46 = vadd.f32 %v3025_v61, %v3008_v23  ;;  %v3007_v49 = vadd.f32 %v2902_v0, %v11293_v2  ;;  %v3009_v47 = vadd.f32 %v2991_v36, %v11296_v63  ;;  %3225 = vmatprep.mubr.f32.mxu1 %v3080_v42  ;;  %v9268_v23 = vld [vmem:[#allocation4 + $0x230] sm:$0xff]  ;;  %v9270_v0 = vld [vmem:[#allocation4 + $0x218] sm:$0xff]  ;;  %v9271_v36 = vld [vmem:[#allocation4 + $0x200] sm:$0xff] }
 0xb57   :  { %v3082_v40 = vsel %vm3050_vm9, %v3034_v58, %v3066_v22  ;;  %v3079_v48 = vsel %vm3047_vm7, %v3031_v12, %v3063_v53  ;;  %v3065_v21 = vmul.f32 0.2, %v11302_v33  ;;  %vm3052_vm11 = vcmp.gt.f32.partialorder %v3036_v24, 0.0  ;;  %3462 = vmatpush1.msra.mxu0 %v9260_v29  ;;  %3374 = vmatprep.subr.mxu1 %v9261_v26  ;;  %v9273_v42 = vld [vmem:[#allocation4 + $0x210] sm:$0xff]  ;;  %v9274_v22 = vld [vmem:[#allocation4 + $0x1e0] sm:$0xff]  ;;  %v9275_v53 = vld [vmem:[#allocation4 + $0x1f8] sm:$0xff] }
 0xb58   :  { %v3040_v38 = vadd.f32 %v3024_v54, %v3007_v49  ;;  %v3042_v62 = vadd.f32 %v3026_v43, %v3009_v47  ;;  %3310 = vmatprep.mubr.f32.mxu0 %v3082_v40  ;;  %3226 = vmatmul.mubr.f32.gmra.mxu1 %v3079_v48  ;;  %v3068_v31 = vmul.f32 0.2, %v3036_v24  ;;  %vm3054_vm12 = vcmp.gt.f32.partialorder %v3038_v44, 0.0  ;;  %v9272_v43 = vld [vmem:[#allocation4 + $0x1e8] sm:$0xff]  ;;  %v9278_v49 = vld [vmem:[#allocation4 + $0x1c0] sm:$0xff]  ;;  %v9281_v40 = vld [vmem:[#allocation4 + $0x1d0] sm:$0xff] }
 0xb59   :  { %v3081_v32 = vsel %vm3049_vm10, %v11302_v33, %v3065_v21  ;;  %v3070_v58 = vmul.f32 0.2, %v3038_v44  ;;  %vm3051_vm13 = vcmp.gt.f32.partialorder %v11306_v25, 0.0  ;;  %v3067_v12 = vmul.f32 0.2, %v11306_v25  ;;  %3463 = vmatprep.subr.mxu0 %v9262_v41  ;;  %3375 = vmatpush1.msra.mxu1 %v9263_v10  ;;  %v9280_v47 = vld [vmem:[#allocation4 + $0x1a8] sm:$0xff] }
 0xb5a   :  { %3311 = vmatmul.mubr.f32.gmra.mxu0 %v3081_v32  ;;  %v3084_v59 = vsel %vm3052_vm11, %v3036_v24, %v3068_v31  ;;  %vm3053_vm14 = vcmp.gt.f32.partialorder %v11308_v6, 0.0  ;;  %v3069_v16 = vmul.f32 0.2, %v11308_v6  ;;  %vm3056_vm15 = vcmp.gt.f32.partialorder %v3040_v38, 0.0  ;;  %3376 = vmatprep.subr.mxu1 %v9264_v34  ;;  %v9266_v24 = vld [vmem:[#allocation4 + $0x238] sm:$0xff]  ;;  %v9282_v48 = vld [vmem:[#allocation4 + $0x1a0] sm:$0xff] }
 0xb5b   :  { %3230 = vmatprep.mubr.f32.mxu1 %v3084_v59  ;;  %v3086_v33 = vsel %vm3054_vm12, %v3038_v44, %v3070_v58  ;;  %v3083_v52 = vsel %vm3051_vm13, %v11306_v25, %v3067_v12  ;;  %v3072_v13 = vmul.f32 0.2, %v3040_v38  ;;  %vm3058_vm0 = vcmp.gt.f32.partialorder %v3042_v62, 0.0  ;;  %3464 = vmatpush1.msra.mxu0 %v9265_v19  ;;  %v9267_v25 = vld [vmem:[#allocation4 + $0x220] sm:$0xff]  ;;  %v9283_v21 = vld [vmem:[#allocation4 + $0x1b8] sm:$0xff]  ;;  %v9284_v29 = vld [vmem:[#allocation4 + $0x188] sm:$0xff] }
 0xb5c   :  { %3315 = vmatprep.mubr.f32.mxu0 %v3086_v33  ;;  %3231 = vmatmul.mubr.f32.gmra.mxu1 %v3083_v52  ;;  %v3074_v18 = vmul.f32 0.2, %v3042_v62  ;;  %vm3055_vm2 = vcmp.gt.f32.partialorder %v3039_v9, 0.0  ;;  %v3071_v51 = vmul.f32 0.2, %v3039_v9  ;;  %v3085_v3 = vsel %vm3053_vm14, %v11308_v6, %v3069_v16  ;;  %v9269_v6 = vld [vmem:[#allocation4 + $0x208] sm:$0xff] }
 0xb5d   :  { %v3088_v61 = vsel %vm3056_vm15, %v3040_v38, %v3072_v13  ;;  %v3073_v7 = vmul.f32 0.2, %v11315_v46  ;;  %3465 = vmatprep.subr.mxu0 %v9266_v24  ;;  %3377 = vmatpush1.msra.mxu1 %v9267_v25  ;;  %vm3057_vm3 = vcmp.gt.f32.partialorder %v11315_v46, 0.0  ;;  %v9285_v26 = vld [vmem:[#allocation4 + $0x1b0] sm:$0xff]  ;;  %v9286_v38 = vld [vmem:[#allocation4 + $0x180] sm:$0xff]  ;;  %v9288_v31 = vld [vmem:[#allocation4 + $0x168] sm:$0xff] }
 0xb5e   :  { %3316 = vmatmul.mubr.f32.gmra.mxu0 %v3085_v3  ;;  %3235 = vmatprep.mubr.f32.mxu1 %v3088_v61  ;;  %v3090_v44 = vsel %vm3058_vm0, %v3042_v62, %v3074_v18  ;;  %v3087_v14 = vsel %vm3055_vm2, %v3039_v9, %v3071_v51  ;;  %v9277_v9 = vld [vmem:[#allocation4 + $0x1f0] sm:$0xff]  ;;  %v9287_v62 = vld [vmem:[#allocation4 + $0x198] sm:$0xff]  ;;  %v9290_v58 = vld [vmem:[#allocation4 + $0x160] sm:$0xff] }
 0xb5f   :  { %3320 = vmatprep.mubr.f32.mxu0 %v3090_v44  ;;  %3466 = vmatpush1.msra.mxu0 %v9268_v23  ;;  %v3089_v54 = vsel %vm3057_vm3, %v11315_v46, %v3073_v7  ;;  %v9279_v46 = vld [vmem:[#allocation4 + $0x1d8] sm:$0xff]  ;;  %v9289_v32 = vld [vmem:[#allocation4 + $0x190] sm:$0xff]  ;;  %v9292_v41 = vld [vmem:[#allocation4 + $0x148] sm:$0xff] }
 0xb60   :  { %3236 = vmatmul.mubr.f32.gmra.mxu1 %v3087_v14  ;;  %3378 = vmatprep.subr.mxu1 %v9269_v6  ;;  %v9291_v12 = vld [vmem:[#allocation4 + $0x178] sm:$0xff]  ;;  %v9293_v10 = vld [vmem:[#allocation4 + $0x170] sm:$0xff]  ;;  %v9294_v59 = vld [vmem:[#allocation4 + $0x140] sm:$0xff] }
 0xb61   :  { %3467 = vmatprep.subr.mxu0 %v9270_v0  ;;  %3379 = vmatpush1.msra.mxu1 %v9271_v36  ;;  %v9295_v16 = vld [vmem:[#allocation4 + $0x158] sm:$0xff]  ;;  %v9296_v34 = vld [vmem:[#allocation4 + $0x128] sm:$0xff]  ;;  %v9297_v33 = vld [vmem:[#allocation4 + $0x150] sm:$0xff] }
 0xb62   :  { %3321 = vmatmul.mubr.f32.gmra.mxu0 %v3089_v54  ;;  %3380 = vmatprep.subr.mxu1 %v9272_v43  ;;  %v9298_v52 = vld [vmem:[#allocation4 + $0x120] sm:$0xff]  ;;  %v9299_v13 = vld [vmem:[#allocation4 + $0x138] sm:$0xff]  ;;  %v9300_v19 = vld [vmem:[#allocation4 + $0x108] sm:$0xff] }
 0xb63   :  { %3468 = vmatpush1.msra.mxu0 %v9273_v42  ;;  %3381 = vmatpush1.msra.mxu1 %v9274_v22  ;;  %v9301_v18 = vld [vmem:[#allocation4 + $0x130] sm:$0xff]  ;;  %v9302_v51 = vld [vmem:[#allocation4 + $0x100] sm:$0xff]  ;;  %v9303_v3 = vld [vmem:[#allocation4 + $0x118] sm:$0xff] }
 0xb64   :  { %3469 = vmatprep.subr.mxu0 %v9275_v53  ;;  %3382 = vmatprep.subr.mxu1 %v9276_v28  ;;  %v9304_v61 = vld [vmem:[#allocation4 + $0xe8] sm:$0xff]  ;;  %v9305_v7 = vld [vmem:[#allocation4 + $0x110] sm:$0xff]  ;;  %v9306_v24 = vld [vmem:[#allocation4 + $0xe0] sm:$0xff] }
 0xb65   :  { %3470 = vmatpush1.msra.mxu0 %v9277_v9  ;;  %3383 = vmatpush1.msra.mxu1 %v9278_v49  ;;  %v9307_v25 = vld [vmem:[#allocation4 + $0xf8] sm:$0xff]  ;;  %v9308_v44 = vld [vmem:[#allocation4 + $0xc8] sm:$0xff]  ;;  %v9309_v14 = vld [vmem:[#allocation4 + $0xf0] sm:$0xff] }
 0xb66   :  { %3471 = vmatprep.subr.mxu0 %v9279_v46  ;;  %3384 = vmatprep.subr.mxu1 %v9280_v47  ;;  %v9310_v23 = vld [vmem:[#allocation4 + $0xc0] sm:$0xff]  ;;  %v9311_v6 = vld [vmem:[#allocation4 + $0xd8] sm:$0xff]  ;;  %v9312_v54 = vld [vmem:[#allocation4 + $0xa8] sm:$0xff] }
 0xb67   :  { %3472 = vmatpush1.msra.mxu0 %v9281_v40  ;;  %3385 = vmatpush1.msra.mxu1 %v9282_v48  ;;  %v9313_v0 = vld [vmem:[#allocation4 + $0xd0] sm:$0xff]  ;;  %v9314_v36 = vld [vmem:[#allocation4 + $0xa0] sm:$0xff]  ;;  %v9315_v43 = vld [vmem:[#allocation4 + $0xb8] sm:$0xff] }
 0xb68   :  { %3473 = vmatprep.subr.mxu0 %v9283_v21  ;;  %3386 = vmatprep.subr.mxu1 %v9284_v29  ;;  %v9316_v42 = vld [vmem:[#allocation4 + $0x88] sm:$0xff]  ;;  %v9317_v22 = vld [vmem:[#allocation4 + $0xb0] sm:$0xff]  ;;  %v9318_v53 = vld [vmem:[#allocation4 + $0x80] sm:$0xff] }
 0xb69   :  { %3474 = vmatpush1.msra.mxu0 %v9285_v26  ;;  %3387 = vmatpush1.msra.mxu1 %v9286_v38  ;;  %v9319_v28 = vld [vmem:[#allocation4 + $0x98] sm:$0xff]  ;;  %v9320_v9 = vld [vmem:[#allocation4 + $0x90] sm:$0xff] }
 0xb6a   :  { %3475 = vmatprep.subr.mxu0 %v9287_v62  ;;  %3388 = vmatprep.subr.mxu1 %v9288_v31 }
 0xb6b   :  { %3476 = vmatpush1.msra.mxu0 %v9289_v32  ;;  %3389 = vmatpush1.msra.mxu1 %v9290_v58 }
 0xb6c   :  { %3477 = vmatprep.subr.mxu0 %v9291_v12  ;;  %3390 = vmatprep.subr.mxu1 %v9292_v41 }
 0xb6d   :  { %3478 = vmatpush1.msra.mxu0 %v9293_v10  ;;  %3391 = vmatpush1.msra.mxu1 %v9294_v59 }
 0xb6e   :  { %3479 = vmatprep.subr.mxu0 %v9295_v16  ;;  %3392 = vmatprep.subr.mxu1 %v9296_v34 }
 0xb6f   :  { %3480 = vmatpush1.msra.mxu0 %v9297_v33  ;;  %3393 = vmatpush1.msra.mxu1 %v9298_v52 }
 0xb70   :  { %3481 = vmatprep.subr.mxu0 %v9299_v13  ;;  %3394 = vmatprep.subr.mxu1 %v9300_v19 }
 0xb71   :  { %3482 = vmatpush1.msra.mxu0 %v9301_v18  ;;  %3395 = vmatpush1.msra.mxu1 %v9302_v51 }
 0xb72   :  { %3483 = vmatprep.subr.mxu0 %v9303_v3  ;;  %3396 = vmatprep.subr.mxu1 %v9304_v61 }
 0xb73   :  { %3484 = vmatpush1.msra.mxu0 %v9305_v7  ;;  %3397 = vmatpush1.msra.mxu1 %v9306_v24 }
 0xb74   :  { %3485 = vmatprep.subr.mxu0 %v9307_v25  ;;  %3398 = vmatprep.subr.mxu1 %v9308_v44 }
 0xb75   :  { %3486 = vmatpush1.msra.mxu0 %v9309_v14  ;;  %3399 = vmatpush1.msra.mxu1 %v9310_v23 }
 0xb76   :  { %3487 = vmatprep.subr.mxu0 %v9311_v6  ;;  %3400 = vmatprep.subr.mxu1 %v9312_v54 }
 0xb77   :  { %3488 = vmatpush1.msra.mxu0 %v9313_v0  ;;  %3401 = vmatpush1.msra.mxu1 %v9314_v36 }
 0xb78   :  { %3489 = vmatprep.subr.mxu0 %v9315_v43  ;;  %3402 = vmatprep.subr.mxu1 %v9316_v42 }
 0xb79   :  { %3490 = vmatpush1.msra.mxu0 %v9317_v22  ;;  %3403 = vmatpush1.msra.mxu1 %v9318_v53 }
 0xb7a   :  { %3491 = vmatprep.subr.mxu0 %v9319_v28  ;;  %3436 = vmatprep.mubr.f32.mxu1 %v13524_v55 }
 0xb7b   :  { %3492 = vmatpush1.msra.mxu0 %v9320_v9  ;;  %3525 = vmatprep.mubr.f32.mxu0 %v13524_v55 }
 0xc13   :  { %v8512_v49 = vpop.f32.mrf.mxu1 }
 0xc15   :  { %v8556_v46 = vpop.f32.mrf.mxu0  ;;  %v8513_v47 = vpop.f32.mrf.mxu1 }
 0xc16   :  { %v8514_v26 = vadd.f32 %v8513_v47, %v8512_v49 }
 0xc17   :  { %v8557_v40 = vpop.f32.mrf.mxu0 }
 0xc18   :  { %v8515_v48 = vpop.f32.mrf.mxu1  ;;  %v8558_v38 = vadd.f32 %v8557_v40, %v8556_v46 }
 0xc1a   :  { %v8559_v21 = vpop.f32.mrf.mxu0  ;;  %v8516_v29 = vpop.f32.mrf.mxu1  ;;  %v3308_v10 = vadd.f32 %v8558_v38, %v8514_v26 }
 0xc1b   :  { %v8517_v62 = vadd.f32 %v8516_v29, %v8515_v48 }
 0xc1c   :  { %v8560_v31 = vpop.f32.mrf.mxu0  ;;  %v8518_v32 = vpop.f32.mrf.mxu1 }
 0xc1d   :  { %v8561_v58 = vadd.f32 %v8560_v31, %v8559_v21 }
 0xc1e   :  { %v8562_v12 = vpop.f32.mrf.mxu0  ;;  %v8519_v41 = vpop.f32.mrf.mxu1 }
 0xc1f   :  { %v3313_v59 = vadd.f32 %v8561_v58, %v8517_v62  ;;  %v8520_v18 = vadd.f32 %v8519_v41, %v8518_v32 }
 0xc20   :  { %v8563_v16 = vpop.f32.mrf.mxu0  ;;  %v8521_v34 = vpop.f32.mrf.mxu1 }
 0xc21   :  { %v3326_v33 = vmax.f32 %v3308_v10, %v3313_v59  ;;  %v8564_v51 = vadd.f32 %v8563_v16, %v8562_v12 }
 0xc22   :  { %v8565_v52 = vpop.f32.mrf.mxu0  ;;  %v8522_v13 = vpop.f32.mrf.mxu1 }
 0xc23   :  { %v3327_v19 = vrot.slane %v3326_v33, 4  ;;  %v8523_v3 = vadd.f32 %v8522_v13, %v8521_v34  ;;  %v3318_v44 = vadd.f32 %v8564_v51, %v8520_v18 }
 0xc24   :  { %v8566_v61 = vpop.f32.mrf.mxu0 }
 0xc25   :  { %v3328_v7 = vmax.f32 %v3326_v33, %v3327_v19  ;;  %v8567_v24 = vadd.f32 %v8566_v61, %v8565_v52 }
 0xc27   :  { %v3329_v25 = vrot.slane %v3328_v7, 2  ;;  %v3323_v14 = vadd.f32 %v8567_v24, %v8523_v3 }
 0xc29   :  { %v3330_v23 = vmax.f32 %v3328_v7, %v3329_v25  ;;  %v3333_v6 = vmax.f32 %v3318_v44, %v3323_v14 }
 0xc2b   :  { %v3331_v54 = vrot.slane %v3330_v23, 1  ;;  %v3334_v0 = vrot.slane %v3333_v6, 4 }
 0xc2d   :  { %v3332_v36 = vmax.f32 %v3330_v23, %v3331_v54  ;;  %v3335_v43 = vmax.f32 %v3333_v6, %v3334_v0 }
 0xc2f   :  { %v3340_v42 = vsub.f32 %v3308_v10, %v3332_v36  ;;  %v3341_v22 = vsub.f32 %v3313_v59, %v3332_v36  ;;  %v3336_v53 = vrot.slane %v3335_v43, 2 }
 0xc31   :  { %v3344_v28 = vmul.f32 1.442695, %v3340_v42  ;;  %v3346_v9 = vmul.f32 1.442695, %v3341_v22  ;;  %v3337_v49 = vmax.f32 %v3335_v43, %v3336_v53 }
 0xc33   :  { %9173 = vpow2.f32 %v3344_v28  ;;  %v3338_v46 = vrot.slane %v3337_v49, 1 }
 0xc34   :  { %9175 = vpow2.f32 %v3346_v9 }
 0xc35   :  { %v3339_v47 = vmax.f32 %v3337_v49, %v3338_v46 }
 0xc37   :  { %v3342_v40 = vsub.f32 %v3318_v44, %v3339_v47  ;;  %v3343_v48 = vsub.f32 %v3323_v14, %v3339_v47 }
 0xc39   :  { %v3348_v21 = vmul.f32 1.442695, %v3342_v40  ;;  %v3350_v29 = vmul.f32 1.442695, %v3343_v48 }
 0xc3b   :  { %9177 = vpow2.f32 %v3348_v21 }
 0xc3c   :  { %9179 = vpow2.f32 %v3350_v29 }
 0xc40   :  { %v9174_v26 = vpop.eup %9173 }
 0xc41   :  { %v9176_v38 = vpop.eup %9175 }
 0xc42   :  { %v3352_v62 = vadd.f32 %v9176_v38, %v9174_v26 }
 0xc44   :  { %v3353_v31 = vrot.slane %v3352_v62, 4 }
 0xc46   :  { %v3354_v32 = vadd.f32 %v3353_v31, %v3352_v62 }
 0xc48   :  { %v9178_v58 = vpop.eup %9177  ;;  %v3355_v12 = vrot.slane %v3354_v32, 2 }
 0xc49   :  { %v9180_v41 = vpop.eup %9179 }
 0xc4a   :  { %v3356_v10 = vadd.f32 %v3355_v12, %v3354_v32  ;;  %v3359_v59 = vadd.f32 %v9180_v41, %v9178_v58  ;;  %v9333_v12 = vld [vmem:[%s13485_s5 + $0x100] sm:$0xff] }
 0xc4c   :  { %v3357_v16 = vrot.slane %v3356_v10, 1  ;;  %v3360_v34 = vrot.slane %v3359_v59, 4 }
 0xc4e   :  { %v3358_v33 = vadd.f32 %v3357_v16, %v3356_v10  ;;  %v3361_v52 = vadd.f32 %v3360_v34, %v3359_v59  ;;  %v9335_v10 = vld [vmem:[%s13485_s5 + $0x80] sm:$0xff]  ;;  %v9338_v16 = vld [vmem:[%s13485_s5 + $0x1f8] sm:$0xff] }
 0xc4f   :  { %v9336_v59 = vld [vmem:[%s13485_s5 + $0x180] sm:$0xff]  ;;  %v9339_v34 = vld [vmem:[%s13485_s5 + $0x78] sm:$0xff] }
 0xc50   :  { %9181 = vrcp.f32 %v3358_v33  ;;  %v3362_v13 = vrot.slane %v3361_v52, 2  ;;  %v9340_v33 = vld [vmem:[%s13485_s5 + $0x178] sm:$0xff] }
 0xc52   :  { %v3363_v19 = vadd.f32 %v3362_v13, %v3361_v52  ;;  %v9341_v52 = vld [vmem:[%s13485_s5 + $0xf0] sm:$0xff] }
 0xc53   :  { %v9342_v13 = vld [vmem:[%s13485_s5 + $0x1f0] sm:$0xff] }
 0xc54   :  { %v3364_v18 = vrot.slane %v3363_v19, 1 }
 0xc56   :  { %v3365_v51 = vadd.f32 %v3364_v18, %v3363_v19  ;;  %v9343_v19 = vld [vmem:[%s13485_s5 + $0x70] sm:$0xff] }
 0xc57   :  { %v9344_v18 = vld [vmem:[%s13485_s5 + $0x170] sm:$0xff] }
 0xc58   :  { %9183 = vrcp.f32 %v3365_v51  ;;  %v9345_v51 = vld [vmem:[%s13485_s5 + $0xe8] sm:$0xff] }
 0xc5d   :  { %v9182_v3 = vpop.eup %9181 }
 0xc5e   :  { %v3368_v61 = vmul.f32 %v9182_v3, %v9174_v26  ;;  %v3369_v7 = vmul.f32 %v9182_v3, %v9176_v38  ;;  %v9346_v3 = vld [vmem:[%s13485_s5 + $0x1e8] sm:$0xff] }
 0xc60   :  { %3437 = vmatmul.mubr.f32.vlgmr.msra.gmra.mxu1 %v3368_v61  ;;  %3526 = vmatmul.mubr.f32.vlgmr.msra.gmra.mxu0 %v3368_v61  ;;  %v9347_v61 = vld [vmem:[%s13485_s5 + $0x68] sm:$0xff] }
 0xc61   :  { %3442 = vmatprep.mubr.f32.mxu1 %v13524_v55  ;;  %3531 = vmatprep.mubr.f32.mxu0 %v13524_v55 }
 0xc64   :  { %3443 = vmatmul.mubr.f32.gmra.mxu1 %v3369_v7  ;;  %3532 = vmatmul.mubr.f32.gmra.mxu0 %v3369_v7  ;;  %v9348_v7 = vld [vmem:[%s13485_s5 + $0x168] sm:$0xff] }
 0xc65   :  { %v9184_v24 = vpop.eup %9183  ;;  %3448 = vmatprep.mubr.f32.mxu1 %v13524_v55  ;;  %3537 = vmatprep.mubr.f32.mxu0 %v13524_v55 }
 0xc66   :  { %v3370_v25 = vmul.f32 %v9184_v24, %v9178_v58  ;;  %v3371_v44 = vmul.f32 %v9184_v24, %v9180_v41  ;;  %v9331_v58 = vld [vmem:[%s13485_s5 + $0x88] sm:$0xff]  ;;  %v9334_v41 = vld [vmem:[%s13485_s5 + $0x200] sm:$0xff] }
 0xc67   :  { %v9349_v24 = vld [vmem:[%s13485_s5 + $0xe0] sm:$0xff] }
 0xc68   :  { %3449 = vmatmul.mubr.f32.gmra.mxu1 %v3370_v25  ;;  %3538 = vmatmul.mubr.f32.gmra.mxu0 %v3370_v25  ;;  %v9350_v25 = vld [vmem:[%s13485_s5 + $0x1e0] sm:$0xff] }
 0xc69   :  { %3454 = vmatprep.mubr.f32.mxu1 %v13524_v55  ;;  %3543 = vmatprep.mubr.f32.mxu0 %v13524_v55 }
 0xc6c   :  { %3455 = vmatmul.mubr.f32.gmra.mxu1 %v3371_v44  ;;  %3544 = vmatmul.mubr.f32.gmra.mxu0 %v3371_v44  ;;  %v9351_v44 = vld [vmem:[%s13485_s5 + $0x60] sm:$0xff] }
 0xc6d   :  { %3630 = vmatprep.mubr.f32.mxu1 %v13524_v55  ;;  %3719 = vmatprep.mubr.f32.mxu0 %v13524_v55 }
 0xd20   :  { %v3438_v14 = vpop.f32.mrf.mxu1  ;;  %v3527_v23 = vpop.f32.mrf.mxu0 }
 0xd22   :  { %v3440_v6 = vpop.f32.mrf.mxu1  ;;  %v3529_v54 = vpop.f32.mrf.mxu0 }
 0xd24   :  { %v3444_v0 = vpop.f32.mrf.mxu1  ;;  %v3533_v36 = vpop.f32.mrf.mxu0 }
 0xd26   :  { %v3446_v43 = vpop.f32.mrf.mxu1  ;;  %v3535_v42 = vpop.f32.mrf.mxu0 }
 0xd28   :  { %v3450_v22 = vpop.f32.mrf.mxu1  ;;  %v3539_v53 = vpop.f32.mrf.mxu0 }
 0xd29   :  { %v3558_v31 = vmul.f32 %v3450_v22, %v11273_v35  ;;  %v3560_v32 = vmul.f32 %v3539_v53, %v11276_v4  ;;  %v3553_v35 = vmul.f32 %v3529_v54, %v11256_v27  ;;  %v3550_v4 = vmul.f32 %v3438_v14, %v11247_v57  ;;  %v9321_v57 = vld [vmem:[%s13485_s5 + $0x118] sm:$0xff]  ;;  %v9325_v27 = vld [vmem:[%s13485_s5 + $0x110] sm:$0xff]  ;;  %v9352_v14 = vld [vmem:[%s13485_s5 + $0x160] sm:$0xff] }
 0xd2a   :  { %v3452_v28 = vpop.f32.mrf.mxu1  ;;  %v3541_v9 = vpop.f32.mrf.mxu0  ;;  %v9355_v54 = vld [vmem:[%s13485_s5 + $0x58] sm:$0xff]  ;;  %v9360_v22 = vld [vmem:[%s13485_s5 + $0x150] sm:$0xff]  ;;  %v9361_v53 = vld [vmem:[%s13485_s5 + $0xc8] sm:$0xff] }
 0xd2b   :  { %v3559_v38 = vmul.f32 %v3452_v28, %v11279_v37  ;;  %v3561_v62 = vmul.f32 %v3541_v9, %v11282_v50  ;;  %v3556_v37 = vmul.f32 %v3533_v36, %v11262_v5  ;;  %v3551_v50 = vmul.f32 %v3440_v6, %v11253_v56  ;;  %v9323_v56 = vld [vmem:[%s13485_s5 + $0x98] sm:$0xff]  ;;  %v9327_v5 = vld [vmem:[%s13485_s5 + $0x90] sm:$0xff]  ;;  %v9362_v28 = vld [vmem:[%s13485_s5 + $0x1c8] sm:$0xff] }
 0xd2c   :  { %v3456_v49 = vpop.f32.mrf.mxu1  ;;  %v3545_v46 = vpop.f32.mrf.mxu0  ;;  %v9354_v6 = vld [vmem:[%s13485_s5 + $0x1d8] sm:$0xff]  ;;  %v9357_v36 = vld [vmem:[%s13485_s5 + $0xd0] sm:$0xff]  ;;  %v9363_v9 = vld [vmem:[%s13485_s5 + $0x48] sm:$0xff] }
 0xd2d   :  { %v3562_v29 = vmul.f32 %v3456_v49, %v11287_v30  ;;  %v3564_v26 = vmul.f32 %v3545_v46, %v11290_v11  ;;  %v3554_v30 = vmul.f32 %v3444_v0, %v11259_v8  ;;  %v9326_v8 = vld [vmem:[%s13485_s5 + $0x210] sm:$0xff]  ;;  %v9330_v11 = vld [vmem:[%s13485_s5 + $0x208] sm:$0xff]  ;;  %v9356_v0 = vld [vmem:[%s13485_s5 + $0x158] sm:$0xff] }
 0xd2e   :  { %v3458_v47 = vpop.f32.mrf.mxu1  ;;  %v3547_v40 = vpop.f32.mrf.mxu0  ;;  %v9364_v49 = vld [vmem:[%s13485_s5 + $0x148] sm:$0xff]  ;;  %v9365_v46 = vld [vmem:[%s13485_s5 + $0xc0] sm:$0xff] }
 0xd2f   :  { %v3563_v48 = vmul.f32 %v3458_v47, %v11293_v2  ;;  %v3565_v21 = vmul.f32 %v3547_v40, %v11296_v63  ;;  %v3555_v2 = vmul.f32 %v3446_v43, %v11265_v60  ;;  %v3557_v63 = vmul.f32 %v3535_v42, %v11268_v1  ;;  %v9329_v1 = vld [vmem:[%s13485_s5 + $0x108] sm:$0xff]  ;;  %v9358_v43 = vld [vmem:[%s13485_s5 + $0x1d0] sm:$0xff]  ;;  %v9366_v47 = vld [vmem:[%s13485_s5 + $0x1c0] sm:$0xff] }
 0xd30   :  { %v3552_v60 = vmul.f32 %v3527_v23, %v11250_v15  ;;  %v9322_v15 = vld [vmem:[%s13485_s5 + $0x218] sm:$0xff]  ;;  %v9359_v42 = vld [vmem:[%s13485_s5 + $0x50] sm:$0xff]  ;;  %v9367_v40 = vld [vmem:[%s13485_s5 + $0x40] sm:$0xff] }
 0xd31   :  { %3590 = vmatprep.subr.mxu1 %v3563_v48  ;;  %3679 = vmatprep.subr.mxu0 %v3565_v21  ;;  %v9353_v23 = vld [vmem:[%s13485_s5 + $0xd8] sm:$0xff]  ;;  %v9368_v48 = vld [vmem:[%s13485_s5 + $0x140] sm:$0xff] }
 0xd32   :  { %3591 = vmatpush1.msra.mxu1 %v3562_v29  ;;  %3680 = vmatpush1.msra.mxu0 %v3564_v26  ;;  %v9369_v21 = vld [vmem:[%s13485_s5 + $0xb8] sm:$0xff] }
 0xd33   :  { %3592 = vmatprep.subr.mxu1 %v3559_v38  ;;  %3681 = vmatprep.subr.mxu0 %v3561_v62  ;;  %v9370_v29 = vld [vmem:[%s13485_s5 + $0x1b8] sm:$0xff]  ;;  %v9373_v62 = vld [vmem:[%s13485_s5 + $0xb0] sm:$0xff] }
 0xd34   :  { %3593 = vmatpush1.msra.mxu1 %v3558_v31  ;;  %3682 = vmatpush1.msra.mxu0 %v3560_v32  ;;  %v9371_v26 = vld [vmem:[%s13485_s5 + $0x38] sm:$0xff]  ;;  %v9374_v31 = vld [vmem:[%s13485_s5 + $0x1b0] sm:$0xff] }
 0xd35   :  { %3594 = vmatprep.subr.mxu1 %v3555_v2  ;;  %3683 = vmatprep.subr.mxu0 %v3557_v63  ;;  %v9372_v38 = vld [vmem:[%s13485_s5 + $0x138] sm:$0xff]  ;;  %v9375_v32 = vld [vmem:[%s13485_s5 + $0x30] sm:$0xff]  ;;  %v9377_v63 = vld [vmem:[%s13485_s5 + $0xa8] sm:$0xff] }
 0xd36   :  { %3595 = vmatpush1.msra.mxu1 %v3554_v30  ;;  %3684 = vmatpush1.msra.mxu0 %v3556_v37  ;;  %v9376_v2 = vld [vmem:[%s13485_s5 + $0x130] sm:$0xff]  ;;  %v9378_v30 = vld [vmem:[%s13485_s5 + $0x1a8] sm:$0xff] }
 0xd37   :  { %3596 = vmatprep.subr.mxu1 %v3551_v50  ;;  %3685 = vmatprep.subr.mxu0 %v3553_v35  ;;  %v9379_v37 = vld [vmem:[%s13485_s5 + $0x28] sm:$0xff]  ;;  %v9381_v35 = vld [vmem:[%s13485_s5 + $0xa0] sm:$0xff] }
 0xd38   :  { %3597 = vmatpush1.msra.mxu1 %v3550_v4  ;;  %3686 = vmatpush1.msra.mxu0 %v3552_v60  ;;  %v9380_v50 = vld [vmem:[%s13485_s5 + $0x128] sm:$0xff]  ;;  %v9382_v4 = vld [vmem:[%s13485_s5 + $0x1a0] sm:$0xff] }
 0xd39   :  { %7960 = vmatmul.mubr.msk.f32.vlgmr.msra.gmra.mxu1 %vm320_vm1, %v11009_v20  ;;  %7964 = vmatmul.mubr.msk.f32.vlgmr.msra.gmra.mxu0 %vm320_vm1, %v11009_v20  ;;  %v9324_v20 = vld [vmem:[%s13485_s5 + $0x198] sm:$0xff]  ;;  %v9383_v60 = vld [vmem:[%s13485_s5 + $0x20] sm:$0xff] }
 0xd3a   :  { %3636 = vmatprep.mubr.f32.mxu1 %v13524_v55  ;;  %3725 = vmatprep.mubr.f32.mxu0 %v13524_v55 }
 0xd3b   :  { %8568 = vmatprep.subr.mxu1 %v9321_v57  ;;  %8612 = vmatprep.subr.mxu0 %v9322_v15  ;;  %v9384_v57 = vld [vmem:[%s13485_s5 + $0x120] sm:$0xff] }
 0xd3c   :  { %8569 = vmatpush3.msra.mxu1 %v9323_v56  ;;  %8613 = vmatpush3.msra.mxu0 %v9324_v20  ;;  %v11580_v20 = vld [vmem:[#allocation4 + $0x10] sm:$0xff] }
 0xd3d   :  { %7961 = vmatmul.mubr.msk.f32.gmra.mxu1 %vm320_vm1, %v11032_v17  ;;  %7965 = vmatmul.mubr.msk.f32.gmra.mxu0 %vm320_vm1, %v11032_v17  ;;  %v9328_v17 = vld [vmem:[%s13485_s5 + $0x190] sm:$0xff] }
 0xd3e   :  { %3642 = vmatprep.mubr.f32.mxu1 %v13524_v55  ;;  %3731 = vmatprep.mubr.f32.mxu0 %v13524_v55 }
 0xd3f   :  { %8570 = vmatprep.subr.mxu1 %v9325_v27  ;;  %8614 = vmatprep.subr.mxu0 %v9326_v8 }
 0xd40   :  { %8571 = vmatpush3.msra.mxu1 %v9327_v5  ;;  %8615 = vmatpush3.msra.mxu0 %v9328_v17  ;;  %v11583_v17 = vld [vmem:[#allocation4 + $0x8] sm:$0xff] }
 0xd41   :  { %7962 = vmatmul.mubr.msk.f32.gmra.mxu1 %vm320_vm1, %v11055_v39  ;;  %7966 = vmatmul.mubr.msk.f32.gmra.mxu0 %vm320_vm1, %v11055_v39  ;;  %v9332_v39 = vld [vmem:[%s13485_s5 + $0x188] sm:$0xff] }
 0xd42   :  { %3648 = vmatprep.mubr.f32.mxu1 %v13524_v55  ;;  %3737 = vmatprep.mubr.f32.mxu0 %v13524_v55 }
 0xd43   :  { %8572 = vmatprep.subr.mxu1 %v9329_v1  ;;  %8616 = vmatprep.subr.mxu0 %v9330_v11  ;;  %v11586_v11 = vld [vmem:[#allocation4 + $0x18] sm:$0xff] }
 0xd44   :  { %8573 = vmatpush3.msra.mxu1 %v9331_v58  ;;  %8617 = vmatpush3.msra.mxu0 %v9332_v39  ;;  %v11589_v39 = vld [vmem:[#allocation4] sm:$0xff] }
 0xd45   :  { %7963 = vmatmul.mubr.msk.f32.gmra.mxu1 %vm320_vm1, %v11084_v45  ;;  %7967 = vmatmul.mubr.msk.f32.gmra.mxu0 %vm320_vm1, %v11084_v45  ;;  %v9337_v45 = vld [vmem:[%s13485_s5 + $0xf8] sm:$0xff] }
 0xd46   :  { %8574 = vmatprep.subr.mxu1 %v9333_v12  ;;  %8618 = vmatprep.subr.mxu0 %v9334_v41 }
 0xd47   :  { %8575 = vmatpush3.msra.mxu1 %v9335_v10  ;;  %8619 = vmatpush3.msra.mxu0 %v9336_v59  ;;  %v11592_v59 = vld [vmem:[#allocation4 + $0x30] sm:$0xff] }
 0xd48   :  { %8576 = vmatprep.subr.mxu1 %v9337_v45  ;;  %8620 = vmatprep.subr.mxu0 %v9338_v16 }
 0xd49   :  { %8577 = vmatpush3.msra.mxu1 %v9339_v34  ;;  %8621 = vmatpush3.msra.mxu0 %v9340_v33  ;;  %v11595_v33 = vld [vmem:[#allocation4 + $0x28] sm:$0xff] }
 0xd4a   :  { %8578 = vmatprep.subr.mxu1 %v9341_v52  ;;  %8622 = vmatprep.subr.mxu0 %v9342_v13  ;;  %v11598_v13 = vld [vmem:[#allocation4 + $0x38] sm:$0xff] }
 0xd4b   :  { %8579 = vmatpush3.msra.mxu1 %v9343_v19  ;;  %8623 = vmatpush3.msra.mxu0 %v9344_v18  ;;  %v11601_v18 = vld [vmem:[#allocation4 + $0x20] sm:$0xff] }
 0xd4c   :  { %8580 = vmatprep.subr.mxu1 %v9345_v51  ;;  %8624 = vmatprep.subr.mxu0 %v9346_v3 }
 0xd4d   :  { %8581 = vmatpush3.msra.mxu1 %v9347_v61  ;;  %8625 = vmatpush3.msra.mxu0 %v9348_v7  ;;  %v11604_v7 = vld [vmem:[#allocation4 + $0x50] sm:$0xff] }
 0xd4e   :  { %8582 = vmatprep.subr.mxu1 %v9349_v24  ;;  %8626 = vmatprep.subr.mxu0 %v9350_v25 }
 0xd4f   :  { %8583 = vmatpush3.msra.mxu1 %v9351_v44  ;;  %8627 = vmatpush3.msra.mxu0 %v9352_v14  ;;  %v11607_v14 = vld [vmem:[#allocation4 + $0x48] sm:$0xff] }
 0xd50   :  { %8584 = vmatprep.subr.mxu1 %v9353_v23  ;;  %8628 = vmatprep.subr.mxu0 %v9354_v6  ;;  %v11610_v6 = vld [vmem:[#allocation4 + $0x58] sm:$0xff] }
 0xd51   :  { %8585 = vmatpush3.msra.mxu1 %v9355_v54  ;;  %8629 = vmatpush3.msra.mxu0 %v9356_v0  ;;  %v11613_v0 = vld [vmem:[#allocation4 + $0x40] sm:$0xff] }
 0xd52   :  { %8586 = vmatprep.subr.mxu1 %v9357_v36  ;;  %8630 = vmatprep.subr.mxu0 %v9358_v43 }
 0xd53   :  { %8587 = vmatpush3.msra.mxu1 %v9359_v42  ;;  %8631 = vmatpush3.msra.mxu0 %v9360_v22  ;;  %v11616_v22 = vld [vmem:[#allocation4 + $0x70] sm:$0xff] }
 0xd54   :  { %8588 = vmatprep.subr.mxu1 %v9361_v53  ;;  %8632 = vmatprep.subr.mxu0 %v9362_v28 }
 0xd55   :  { %8589 = vmatpush3.msra.mxu1 %v9363_v9  ;;  %8633 = vmatpush3.msra.mxu0 %v9364_v49  ;;  %v11619_v49 = vld [vmem:[#allocation4 + $0x68] sm:$0xff] }
 0xd56   :  { %8590 = vmatprep.subr.mxu1 %v9365_v46  ;;  %8634 = vmatprep.subr.mxu0 %v9366_v47  ;;  %v11622_v47 = vld [vmem:[#allocation4 + $0x78] sm:$0xff] }
 0xd57   :  { %8591 = vmatpush3.msra.mxu1 %v9367_v40  ;;  %8635 = vmatpush3.msra.mxu0 %v9368_v48  ;;  %v11625_v48 = vld [vmem:[#allocation4 + $0x60] sm:$0xff] }
 0xd58   :  { %8592 = vmatprep.subr.mxu1 %v9369_v21  ;;  %8636 = vmatprep.subr.mxu0 %v9370_v29  ;;  %v7862_v29 = vld [vmem:[%s13487_s7 + $0x40] sm:$0xff] }
 0xd59   :  { %8593 = vmatpush3.msra.mxu1 %v9371_v26  ;;  %8637 = vmatpush3.msra.mxu0 %v9372_v38  ;;  %v7861_v26 = vld [vmem:[%s13487_s7 + $0x38] sm:$0xff]  ;;  %v7860_v38 = vld [vmem:[%s13487_s7 + $0x30] sm:$0xff] }
 0xd5a   :  { %8594 = vmatprep.subr.mxu1 %v9373_v62  ;;  %8638 = vmatprep.subr.mxu0 %v9374_v31  ;;  %v7859_v62 = vld [vmem:[%s13487_s7 + $0x28] sm:$0xff] }
 0xd5b   :  { %8595 = vmatpush3.msra.mxu1 %v9375_v32  ;;  %8639 = vmatpush3.msra.mxu0 %v9376_v2  ;;  %v11644_v31 = vld [vmem:[%s13487_s7 + $0x48] sm:$0xf] }
 0xd5c   :  { %8596 = vmatprep.subr.mxu1 %v9377_v63  ;;  %8640 = vmatprep.subr.mxu0 %v9378_v30  ;;  %v13544_v63 = vld [vmem:[#allocation8_spill] sm:$0xff] }
 0xd5d   :  { %8597 = vmatpush3.msra.mxu1 %v9379_v37  ;;  %8641 = vmatpush3.msra.mxu0 %v9380_v50  ;;  %v3763_v30 = vrot.slane %v11644_v31, %v13544_v63 }
 0xd5e   :  { %8598 = vmatprep.subr.mxu1 %v9381_v35  ;;  %8642 = vmatprep.subr.mxu0 %v9382_v4 }
 0xd5f   :  { %8599 = vmatpush3.msra.mxu1 %v9383_v60  ;;  %8643 = vmatpush3.msra.mxu0 %v9384_v57 }
 0xd60   :  { %9076 = vmatprep.subr.mxu1 %v7862_v29 }
 0xdf9   :  { %v3632_v15 = vpop.f32.mrf.mxu1  ;;  %v3721_v56 = vpop.f32.mrf.mxu0 }
 0xdfa   :  { %v3746_v27 = vmul.f32 %v11580_v20, %v3721_v56  ;;  %v3744_v12 = vmul.f32 %v11589_v39, %v3632_v15 }
 0xdfb   :  { %v3634_v8 = vpop.f32.mrf.mxu1  ;;  %v3723_v5 = vpop.f32.mrf.mxu0 }
 0xdfc   :  { %v3745_v1 = vmul.f32 %v11583_v17, %v3634_v8  ;;  %v3747_v58 = vmul.f32 %v11586_v11, %v3723_v5 }
 0xdfd   :  { %v3638_v41 = vpop.f32.mrf.mxu1  ;;  %v3727_v10 = vpop.f32.mrf.mxu0 }
 0xdfe   :  { %3828 = vmatprep.mubr.f32.mxu1 %v3745_v1  ;;  %3913 = vmatprep.mubr.f32.mxu0 %v3747_v58  ;;  %v3750_v45 = vmul.f32 %v11592_v59, %v3727_v10  ;;  %v3748_v51 = vmul.f32 %v11601_v18, %v3638_v41 }
 0xdff   :  { %v3640_v16 = vpop.f32.mrf.mxu1  ;;  %v3729_v34 = vpop.f32.mrf.mxu0  ;;  %3829 = vmatmul.mubr.f32.vlgmr.msra.gmra.mxu1 %v3744_v12  ;;  %3914 = vmatmul.mubr.f32.vlgmr.msra.gmra.mxu0 %v3746_v27 }
 0xe00   :  { %v3749_v52 = vmul.f32 %v11595_v33, %v3640_v16  ;;  %v3751_v19 = vmul.f32 %v11598_v13, %v3729_v34  ;;  %9077 = vmatpush3.msra.mxu1 %v7862_v29 }
 0xe01   :  { %v3644_v3 = vpop.f32.mrf.mxu1  ;;  %v3733_v61 = vpop.f32.mrf.mxu0  ;;  %9078 = vmatprep.subr.mxu1 %v7861_v26 }
 0xe02   :  { %3833 = vmatprep.mubr.f32.mxu1 %v3749_v52  ;;  %3918 = vmatprep.mubr.f32.mxu0 %v3751_v19  ;;  %v3754_v24 = vmul.f32 %v11604_v7, %v3733_v61  ;;  %v3752_v36 = vmul.f32 %v11613_v0, %v3644_v3 }
 0xe03   :  { %v3646_v25 = vpop.f32.mrf.mxu1  ;;  %v3735_v44 = vpop.f32.mrf.mxu0  ;;  %3834 = vmatmul.mubr.f32.gmra.mxu1 %v3748_v51  ;;  %3919 = vmatmul.mubr.f32.gmra.mxu0 %v3750_v45 }
 0xe04   :  { %v3753_v23 = vmul.f32 %v11607_v14, %v3646_v25  ;;  %v3755_v54 = vmul.f32 %v11610_v6, %v3735_v44  ;;  %9079 = vmatpush3.msra.mxu1 %v7861_v26 }
 0xe05   :  { %v3650_v43 = vpop.f32.mrf.mxu1  ;;  %v3739_v42 = vpop.f32.mrf.mxu0  ;;  %9080 = vmatprep.subr.mxu1 %v7860_v38 }
 0xe06   :  { %3838 = vmatprep.mubr.f32.mxu1 %v3753_v23  ;;  %3923 = vmatprep.mubr.f32.mxu0 %v3755_v54  ;;  %v3758_v53 = vmul.f32 %v11616_v22, %v3739_v42  ;;  %v3756_v21 = vmul.f32 %v11625_v48, %v3650_v43  ;;  %v13545_v43 = vld [vmem:[#allocation9_spill] sm:$0xff] }
 0xe07   :  { %v3652_v28 = vpop.f32.mrf.mxu1  ;;  %v3741_v9 = vpop.f32.mrf.mxu0  ;;  %3839 = vmatmul.mubr.f32.gmra.mxu1 %v3752_v36  ;;  %3924 = vmatmul.mubr.f32.gmra.mxu0 %v3754_v24  ;;  %v3937_v42 = vrot.slane %v11644_v31, %v13545_v43 }
 0xe08   :  { %v3757_v46 = vmul.f32 %v11619_v49, %v3652_v28  ;;  %v3759_v40 = vmul.f32 %v11622_v47, %v3741_v9  ;;  %9081 = vmatpush3.msra.mxu1 %v7860_v38 }
 0xe09   :  { %9082 = vmatprep.subr.mxu1 %v7859_v62 }
 0xe0a   :  { %3843 = vmatprep.mubr.f32.mxu1 %v3757_v46  ;;  %3928 = vmatprep.mubr.f32.mxu0 %v3759_v40 }
 0xe0b   :  { %3844 = vmatmul.mubr.f32.gmra.mxu1 %v3756_v21  ;;  %3929 = vmatmul.mubr.f32.gmra.mxu0 %v3758_v53 }
 0xe0c   :  { %4274 = vmatprep.mubr.f32.mxu0 %v13524_v55  ;;  %9083 = vmatpush3.msra.mxu1 %v7859_v62 }
 0xebf   :  { %v8600_v32 = vpop.f32.mrf.mxu1  ;;  %v8644_v2 = vpop.f32.mrf.mxu0 }
 0xec1   :  { %v8601_v37 = vpop.f32.mrf.mxu1  ;;  %v8645_v50 = vpop.f32.mrf.mxu0 }
 0xec2   :  { %v8602_v35 = vadd.f32 %v8601_v37, %v8600_v32  ;;  %v8646_v15 = vadd.f32 %v8645_v50, %v8644_v2 }
 0xec3   :  { %v8603_v4 = vpop.f32.mrf.mxu1  ;;  %v8647_v60 = vpop.f32.mrf.mxu0 }
 0xec4   :  { %v3831_v57 = vadd.f32 %v8602_v35, %v3763_v30 }
 0xec5   :  { %v8604_v56 = vpop.f32.mrf.mxu1  ;;  %v8648_v27 = vpop.f32.mrf.mxu0 }
 0xec6   :  { %v3916_v8 = vadd.f32 %v8646_v15, %v3831_v57  ;;  %v8605_v5 = vadd.f32 %v8604_v56, %v8603_v4  ;;  %v8649_v41 = vadd.f32 %v8648_v27, %v8647_v60  ;;  %v7997_v56 = vld [vmem:[%s13482_s2 + $0x348] sm:$0xff]  ;;  %v7999_v27 = vld [vmem:[%s13482_s2 + $0x358] sm:$0xff] }
 0xec7   :  { %v8606_v1 = vpop.f32.mrf.mxu1  ;;  %v8650_v58 = vpop.f32.mrf.mxu0  ;;  %4234 = vmatprep.subr.mxu0 %v7997_v56  ;;  %4323 = vmatprep.subr.mxu1 %v7999_v27 }
 0xec8   :  { %v3836_v12 = vadd.f32 %v8605_v5, %v3763_v30  ;;  %9084 = vmatprep.mubr.msk.f32.mxu1 %vm320_vm1, %v3916_v8  ;;  %v7996_v8 = vld [vmem:[%s13482_s2 + $0x340] sm:$0xff]  ;;  %v7998_v5 = vld [vmem:[%s13482_s2 + $0x350] sm:$0xff] }
 0xec9   :  { %v8607_v10 = vpop.f32.mrf.mxu1  ;;  %v8651_v45 = vpop.f32.mrf.mxu0  ;;  %4235 = vmatpush1.msra.mxu0 %v7996_v8 }
 0xeca   :  { %v3921_v16 = vadd.f32 %v8649_v41, %v3836_v12  ;;  %v8608_v34 = vadd.f32 %v8607_v10, %v8606_v1  ;;  %v8652_v3 = vadd.f32 %v8651_v45, %v8650_v58  ;;  %v7989_v1 = vld [vmem:[%s13482_s2 + $0x308] sm:$0xff]  ;;  %v7991_v58 = vld [vmem:[%s13482_s2 + $0x318] sm:$0xff]  ;;  %v7988_v12 = vld [vmem:[%s13482_s2 + $0x300] sm:$0xff] }
 0xecb   :  { %v8609_v52 = vpop.f32.mrf.mxu1  ;;  %v8653_v19 = vpop.f32.mrf.mxu0  ;;  %4236 = vmatprep.subr.mxu0 %v7989_v1  ;;  %v7990_v41 = vld [vmem:[%s13482_s2 + $0x310] sm:$0xff]  ;;  %v7981_v10 = vld [vmem:[%s13482_s2 + $0x2c8] sm:$0xff]  ;;  %v7983_v45 = vld [vmem:[%s13482_s2 + $0x2d8] sm:$0xff] }
 0xecc   :  { %v3841_v51 = vadd.f32 %v8608_v34, %v3763_v30  ;;  %9085 = vmatmul.mubr.msk.f32.vlgmr.msra.gmra.mxu1 %vm320_vm1, %v3921_v16  ;;  %4237 = vmatpush1.msra.mxu0 %v7988_v12  ;;  %v7980_v16 = vld [vmem:[%s13482_s2 + $0x2c0] sm:$0xff]  ;;  %v7982_v34 = vld [vmem:[%s13482_s2 + $0x2d0] sm:$0xff] }
 0xecd   :  { %v8610_v61 = vpop.f32.mrf.mxu1  ;;  %v8654_v24 = vpop.f32.mrf.mxu0  ;;  %4324 = vmatpush1.msra.mxu1 %v7998_v5  ;;  %4238 = vmatprep.subr.mxu0 %v7981_v10  ;;  %v13546_v12 = vld [vmem:[#allocation10_spill] sm:$0xff] }
 0xece   :  { %v3926_v25 = vadd.f32 %v8652_v3, %v3841_v51  ;;  %v8611_v44 = vadd.f32 %v8610_v61, %v8609_v52  ;;  %v8655_v54 = vadd.f32 %v8654_v24, %v8653_v19  ;;  %4325 = vmatprep.subr.mxu1 %v7991_v58  ;;  %4239 = vmatpush1.msra.mxu0 %v7980_v16  ;;  %v7973_v52 = vld [vmem:[%s13482_s2 + $0x288] sm:$0xff]  ;;  %v7975_v19 = vld [vmem:[%s13482_s2 + $0x298] sm:$0xff]  ;;  %v7972_v51 = vld [vmem:[%s13482_s2 + $0x280] sm:$0xff] }
 0xecf   :  { %4326 = vmatpush1.msra.mxu1 %v7990_v41  ;;  %4240 = vmatprep.subr.mxu0 %v7973_v52  ;;  %v7974_v3 = vld [vmem:[%s13482_s2 + $0x290] sm:$0xff]  ;;  %v8001_v61 = vld [vmem:[%s13482_s2 + $0x368] sm:$0xff]  ;;  %v8003_v24 = vld [vmem:[%s13482_s2 + $0x378] sm:$0xff]  ;;  %v4098_v41 = vrot.slane %v11644_v31, %v13546_v12 }
 0xed0   :  { %v3846_v23 = vadd.f32 %v8611_v44, %v3763_v30  ;;  %9087 = vmatprep.mubr.msk.f32.mxu1 %vm320_vm1, %v3926_v25  ;;  %4327 = vmatprep.subr.mxu1 %v7983_v45  ;;  %v13547_v16 = vld [vmem:[#allocation11_spill] sm:$0xff] }
 0xed1   :  { %4328 = vmatpush1.msra.mxu1 %v7982_v34  ;;  %4241 = vmatpush1.msra.mxu0 %v7972_v51  ;;  %v4106_v34 = vrot.slane %v11644_v31, %v13547_v16  ;;  %v8000_v31 = vld [vmem:[%s13482_s2 + $0x360] sm:$0xff] }
 0xed2   :  { %v3931_v36 = vadd.f32 %v8655_v54, %v3846_v23  ;;  %4329 = vmatprep.subr.mxu1 %v7975_v19  ;;  %4412 = vmatprep.subr.mxu0 %v8001_v61 }
 0xed3   :  { %4330 = vmatpush1.msra.mxu1 %v7974_v3 }
 0xed4   :  { %9088 = vmatmul.mubr.msk.f32.gmra.mxu1 %vm320_vm1, %v3931_v36  ;;  %4501 = vmatprep.subr.mxu1 %v8003_v24 }
 0xed5   :  { %4363 = vmatprep.mubr.f32.mxu1 %v13524_v55 }
 0xf8c   :  { %v9086_v53 = vpop.f32.mrf.mxu1 }
 0xf8d   :  { %v11655_v9 = vadd.f32 %v9086_v53, %v3937_v42 }
 0xf8e   :  { %v4016_v28 = vpop.f32.mrf.mxu1 }
 0xf8f   :  { %v11657_v46 = vadd.f32 %v4016_v28, %v3937_v42  ;;  %v4052_v26 = vmul.f32 %v11655_v9, %v11655_v9  ;;  %v4038_v62 = vsel %vm320_vm1, %v11655_v9, 0.0 }
 0xf91   :  { %v4035_v40 = vsel %vm320_vm1, %v11657_v46, 0.0  ;;  %v4051_v21 = vmul.f32 %v11657_v46, %v11657_v46  ;;  %v4058_v37 = vsel %vm320_vm1, %v4052_v26, 0.0 }
 0xf92   :  { %4036 = vadd.xlane.f32.xlu0 %v4035_v40 }
 0xf93   :  { %v4055_v29 = vsel %vm320_vm1, %v4051_v21, 0.0 }
 0xf94   :  { %4056 = vadd.xlane.f32.xlu1 %v4055_v29  ;;  %v9089_v38 = vpop.f32.mrf.mxu1 }
 0xf95   :  { %v11668_v2 = vadd.f32 %v9089_v38, %v3937_v42 }
 0xf96   :  { %4039 = vadd.xlane.f32.xlu0 %v4038_v62  ;;  %v4026_v32 = vpop.f32.mrf.mxu1 }
 0xf97   :  { %v11670_v30 = vadd.f32 %v4026_v32, %v3937_v42  ;;  %v4054_v60 = vmul.f32 %v11668_v2, %v11668_v2  ;;  %v4044_v57 = vsel %vm320_vm1, %v11668_v2, 0.0 }
 0xf98   :  { %4059 = vadd.xlane.f32.xlu1 %v4058_v37 }
 0xf99   :  { %v4041_v50 = vsel %vm320_vm1, %v11670_v30, 0.0  ;;  %v4053_v35 = vmul.f32 %v11670_v30, %v11670_v30  ;;  %v4064_v15 = vsel %vm320_vm1, %v4054_v60, 0.0 }
 0xf9a   :  { %4042 = vadd.xlane.f32.xlu0 %v4041_v50 }
 0xf9b   :  { %v4061_v4 = vsel %vm320_vm1, %v4053_v35, 0.0 }
 0xf9c   :  { %4062 = vadd.xlane.f32.xlu1 %v4061_v4 }
 0xf9e   :  { %4045 = vadd.xlane.f32.xlu0 %v4044_v57 }
 0xfa0   :  { %4065 = vadd.xlane.f32.xlu1 %v4064_v15 }
0x101b   :  { %v4037_v25 = vpop.xlane.xlu0 %4036 }
0x101c   :  { %v4047_v44 = vmul.f32 0.03125, %v4037_v25 }
0x101d   :  { %v4057_v23 = vpop.xlane.xlu1 %4056 }
0x101e   :  { %v4071_v54 = vmul.f32 %v4047_v44, %v4047_v44  ;;  %v4067_v36 = vmul.f32 0.03125, %v4057_v23  ;;  %v4079_v10 = vsub.f32 %v11657_v46, %v4047_v44 }
0x101f   :  { %v4040_v42 = vpop.xlane.xlu0 %4039 }
0x1020   :  { %v4075_v53 = vsub.f32 %v4067_v36, %v4071_v54  ;;  %v4048_v28 = vmul.f32 0.03125, %v4040_v42 }
0x1021   :  { %v4060_v40 = vpop.xlane.xlu1 %4059 }
0x1022   :  { %v4083_v21 = vadd.f32 1e-05, %v4075_v53  ;;  %v4072_v29 = vmul.f32 %v4048_v28, %v4048_v28  ;;  %v4068_v26 = vmul.f32 0.03125, %v4060_v40  ;;  %v4080_v51 = vsub.f32 %v11655_v9, %v4048_v28  ;;  %v13548_v53 = vld [vmem:[#allocation12_spill] sm:$0xff]  ;;  %v8002_v9 = vld [vmem:[%s13482_s2 + $0x370] sm:$0xff] }
0x1023   :  { %v4043_v38 = vpop.xlane.xlu0 %4042 }
0x1024   :  { %9185 = vrsqrt.f32 %v4083_v21  ;;  %v4076_v62 = vsub.f32 %v4068_v26, %v4072_v29  ;;  %v4049_v32 = vmul.f32 0.03125, %v4043_v38  ;;  %v7993_v21 = vld [vmem:[%s13482_s2 + $0x328] sm:$0xff]  ;;  %v7995_v29 = vld [vmem:[%s13482_s2 + $0x338] sm:$0xff] }
0x1025   :  { %v4063_v37 = vpop.xlane.xlu1 %4062  ;;  %v13550_v38 = vld [vmem:[#allocation13_spill] sm:$0xff] }
0x1026   :  { %v4084_v50 = vadd.f32 1e-05, %v4076_v62  ;;  %v4073_v35 = vmul.f32 %v4049_v32, %v4049_v32  ;;  %v4069_v4 = vmul.f32 0.03125, %v4063_v37  ;;  %v4081_v23 = vsub.f32 %v11670_v30, %v4049_v32  ;;  %v7992_v37 = vld [vmem:[%s13482_s2 + $0x320] sm:$0xff] }
0x1027   :  { %v4046_v60 = vpop.xlane.xlu0 %4045 }
0x1028   :  { %9187 = vrsqrt.f32 %v4084_v50  ;;  %v4077_v57 = vsub.f32 %v4069_v4, %v4073_v35  ;;  %v4050_v15 = vmul.f32 0.03125, %v4046_v60  ;;  %v7994_v50 = vld [vmem:[%s13482_s2 + $0x330] sm:$0xff]  ;;  %v7985_v60 = vld [vmem:[%s13482_s2 + $0x2e8] sm:$0xff] }
0x1029   :  { %v4066_v56 = vpop.xlane.xlu1 %4065 }
0x102a   :  { %v4085_v27 = vadd.f32 1e-05, %v4077_v57  ;;  %v4074_v8 = vmul.f32 %v4050_v15, %v4050_v15  ;;  %v4070_v5 = vmul.f32 0.03125, %v4066_v56  ;;  %v4082_v28 = vsub.f32 %v11668_v2, %v4050_v15  ;;  %v7987_v57 = vld [vmem:[%s13482_s2 + $0x2f8] sm:$0xff]  ;;  %v13552_v15 = vld [vmem:[#allocation14_spill] sm:$0xff] }
0x102c   :  { %9189 = vrsqrt.f32 %v4085_v27  ;;  %v4078_v1 = vsub.f32 %v4070_v5, %v4074_v8  ;;  %v7984_v8 = vld [vmem:[%s13482_s2 + $0x2e0] sm:$0xff]  ;;  %v7986_v5 = vld [vmem:[%s13482_s2 + $0x2f0] sm:$0xff] }
0x102e   :  { %v4086_v58 = vadd.f32 1e-05, %v4078_v1 }
0x1030   :  { %9191 = vrsqrt.f32 %v4086_v58  ;;  %v7977_v58 = vld [vmem:[%s13482_s2 + $0x2a8] sm:$0xff] }
0x1031   :  { %v9186_v45 = vpop.eup %9185 }
0x1032   :  { %v4091_v52 = vmul.f32 %v9186_v45, %v4079_v10  ;;  %v13554_v10 = vld [vmem:[#allocation15_spill] sm:$0xff] }
0x1034   :  { %v4099_v19 = vmul.f32 %v4098_v41, %v4091_v52  ;;  %v7978_v52 = vld [vmem:[%s13482_s2 + $0x2b0] sm:$0xff] }
0x1035   :  { %v9188_v3 = vpop.eup %9187 }
0x1036   :  { %v4107_v61 = vadd.f32 %v4106_v34, %v4099_v19  ;;  %v4092_v24 = vmul.f32 %v9188_v3, %v4080_v51 }
0x1038   :  { %v4111_v25 = vmax.f32 %v4107_v61, 0.0  ;;  %v4100_v54 = vmul.f32 %v4098_v41, %v4092_v24 }
0x1039   :  { %v9190_v36 = vpop.eup %9189 }
0x103a   :  { %v4093_v42 = vmul.f32 %v9190_v36, %v4081_v23  ;;  %v11745_v46 = vadd.f32 %v4111_v25, %v13548_v53  ;;  %v4108_v44 = vadd.f32 %v4106_v34, %v4100_v54 }
0x103c   :  { %13549 = vst [vmem:[#allocation16_spill] sm:$0xff] %v11745_v46  ;;  %8025 = vmatmul.mubr.msk.f32.vlgmr.msra.gmra.mxu0 %vm320_vm1, %v11745_v46  ;;  %8029 = vmatmul.mubr.msk.f32.vlgmr.msra.gmra.mxu1 %vm320_vm1, %v11745_v46  ;;  %v4112_v30 = vmax.f32 %v4108_v44, 0.0  ;;  %v4101_v40 = vmul.f32 %v4098_v41, %v4093_v42 }
0x103d   :  { %v9192_v26 = vpop.eup %9191  ;;  %4280 = vmatprep.mubr.f32.mxu0 %v13524_v55  ;;  %4369 = vmatprep.mubr.f32.mxu1 %v13524_v55 }
0x103e   :  { %v4094_v2 = vmul.f32 %v9192_v26, %v4082_v28  ;;  %v11767_v62 = vadd.f32 %v4112_v30, %v13550_v38  ;;  %v4109_v32 = vadd.f32 %v4106_v34, %v4101_v40  ;;  %4413 = vmatpush1.msra.mxu0 %v8000_v31  ;;  %4502 = vmatpush1.msra.mxu1 %v8002_v9 }
0x103f   :  { %4414 = vmatprep.subr.mxu0 %v7993_v21  ;;  %4503 = vmatprep.subr.mxu1 %v7995_v29 }
0x1040   :  { %13551 = vst [vmem:[#allocation17_spill] sm:$0xff] %v11767_v62  ;;  %8026 = vmatmul.mubr.msk.f32.gmra.mxu0 %vm320_vm1, %v11767_v62  ;;  %8030 = vmatmul.mubr.msk.f32.gmra.mxu1 %vm320_vm1, %v11767_v62  ;;  %v4113_v35 = vmax.f32 %v4109_v32, 0.0  ;;  %v4102_v4 = vmul.f32 %v4098_v41, %v4094_v2  ;;  %v7979_v41 = vld [vmem:[%s13482_s2 + $0x2b8] sm:$0xff] }
0x1041   :  { %4286 = vmatprep.mubr.f32.mxu0 %v13524_v55  ;;  %4375 = vmatprep.mubr.f32.mxu1 %v13524_v55 }
0x1042   :  { %v11788_v56 = vadd.f32 %v4113_v35, %v13552_v15  ;;  %4415 = vmatpush1.msra.mxu0 %v7992_v37  ;;  %4504 = vmatpush1.msra.mxu1 %v7994_v50  ;;  %v4110_v27 = vadd.f32 %v4106_v34, %v4102_v4  ;;  %v7976_v34 = vld [vmem:[%s13482_s2 + $0x2a0] sm:$0xff] }
0x1043   :  { %4416 = vmatprep.subr.mxu0 %v7985_v60  ;;  %4505 = vmatprep.subr.mxu1 %v7987_v57 }
0x1044   :  { %13553 = vst [vmem:[#allocation18_spill] sm:$0xff] %v11788_v56  ;;  %8027 = vmatmul.mubr.msk.f32.gmra.mxu0 %vm320_vm1, %v11788_v56  ;;  %8031 = vmatmul.mubr.msk.f32.gmra.mxu1 %vm320_vm1, %v11788_v56  ;;  %v4114_v1 = vmax.f32 %v4110_v27, 0.0  ;;  %v8021_v27 = vld [vmem:[%s13482_s2 + $0x3a0] ss:$0 sm:$0xff] }
0x1045   :  { %4292 = vmatprep.mubr.f32.mxu0 %v13524_v55  ;;  %4381 = vmatprep.mubr.f32.mxu1 %v13524_v55 }
0x1046   :  { %v11809_v45 = vadd.f32 %v4114_v1, %v13554_v10  ;;  %4417 = vmatpush1.msra.mxu0 %v7984_v8  ;;  %4506 = vmatpush1.msra.mxu1 %v7986_v5  ;;  %v8023_v8 = vld [vmem:[%s13482_s2 + $0x3b0] ss:$0 sm:$0xff]  ;;  %v8022_v5 = vld [vmem:[%s13482_s2 + $0x3a8] ss:$0 sm:$0xff]  ;;  %v8024_v1 = vld [vmem:[%s13482_s2 + $0x3b8] ss:$0 sm:$0xff] }
0x1047   :  { %4418 = vmatprep.subr.mxu0 %v7977_v58  ;;  %4507 = vmatprep.subr.mxu1 %v7979_v41 }
0x1048   :  { %13555 = vst [vmem:[#allocation19_spill] sm:$0xff] %v11809_v45  ;;  %8028 = vmatmul.mubr.msk.f32.gmra.mxu0 %vm320_vm1, %v11809_v45  ;;  %8032 = vmatmul.mubr.msk.f32.gmra.mxu1 %vm320_vm1, %v11809_v45 }
0x1049   :  { %4419 = vmatpush1.msra.mxu0 %v7976_v34  ;;  %4452 = vmatprep.mubr.f32.mxu0 %v13524_v55 }
0x104a   :  { %4508 = vmatpush1.msra.mxu1 %v7978_v52  ;;  %4541 = vmatprep.mubr.f32.mxu1 %v13524_v55 }
0x104c   :  { %8033 = vmatmul.mubr.msk.f32.vlgmr.msra.gmra.mxu0 %vm320_vm1, %v11745_v46  ;;  %8037 = vmatmul.mubr.msk.f32.vlgmr.msra.gmra.mxu1 %vm320_vm1, %v11745_v46 }
0x104d   :  { %4458 = vmatprep.mubr.f32.mxu0 %v13524_v55  ;;  %4547 = vmatprep.mubr.f32.mxu1 %v13524_v55 }
0x1050   :  { %8034 = vmatmul.mubr.msk.f32.gmra.mxu0 %vm320_vm1, %v11767_v62  ;;  %8038 = vmatmul.mubr.msk.f32.gmra.mxu1 %vm320_vm1, %v11767_v62 }
0x1051   :  { %4464 = vmatprep.mubr.f32.mxu0 %v13524_v55  ;;  %4553 = vmatprep.mubr.f32.mxu1 %v13524_v55 }
0x1054   :  { %8035 = vmatmul.mubr.msk.f32.gmra.mxu0 %vm320_vm1, %v11788_v56  ;;  %8039 = vmatmul.mubr.msk.f32.gmra.mxu1 %vm320_vm1, %v11788_v56 }
0x1055   :  { %4470 = vmatprep.mubr.f32.mxu0 %v13524_v55  ;;  %4559 = vmatprep.mubr.f32.mxu1 %v13524_v55 }
0x1058   :  { %8036 = vmatmul.mubr.msk.f32.gmra.mxu0 %vm320_vm1, %v11809_v45  ;;  %8040 = vmatmul.mubr.msk.f32.gmra.mxu1 %vm320_vm1, %v11809_v45 }
0x1059   :  { %4646 = vmatprep.mubr.f32.mxu0 %v13524_v55  ;;  %4735 = vmatprep.mubr.f32.mxu1 %v13524_v55 }
0x10fc   :  { %v11847_v19 = vpop.f32.mrf.mxu0  ;;  %v11849_v51 = vpop.f32.mrf.mxu1 }
0x10fe   :  { %v11851_v3 = vpop.f32.mrf.mxu0  ;;  %v11853_v61 = vpop.f32.mrf.mxu1 }
0x1100   :  { %v11855_v24 = vpop.f32.mrf.mxu0  ;;  %v11857_v25 = vpop.f32.mrf.mxu1 }
0x1102   :  { %v11859_v23 = vpop.f32.mrf.mxu0  ;;  %v11861_v54 = vpop.f32.mrf.mxu1 }
0x1104   :  { %v11863_v36 = vpop.f32.mrf.mxu0  ;;  %v11865_v42 = vpop.f32.mrf.mxu1 }
0x1106   :  { %v11867_v53 = vpop.f32.mrf.mxu0  ;;  %v11869_v44 = vpop.f32.mrf.mxu1 }
0x1107   :  { %13556 = vst [vmem:[#allocation20_spill] sm:$0xff] %v11869_v44 }
0x1108   :  { %v11871_v31 = vpop.f32.mrf.mxu0  ;;  %v11873_v9 = vpop.f32.mrf.mxu1 }
0x1109   :  { %13557 = vst [vmem:[#allocation12_spill] sm:$0xff] %v11871_v31  ;;  %13558 = vst [vmem:[#allocation13_spill] sm:$0xff] %v11873_v9 }
0x110a   :  { %v11875_v28 = vpop.f32.mrf.mxu0  ;;  %v11877_v30 = vpop.f32.mrf.mxu1 }
0x110b   :  { %13559 = vst [vmem:[#allocation14_spill] sm:$0xff] %v11875_v28  ;;  %13560 = vst [vmem:[#allocation15_spill] sm:$0xff] %v11877_v30 }
0x110c   :  { %v4454_v40 = vpop.f32.mrf.mxu0  ;;  %v4543_v21 = vpop.f32.mrf.mxu1 }
0x110d   :  { %v4455_v46 = vadd.f32 %v8021_v27, %v4454_v40 }
0x110e   :  { %v4456_v29 = vpop.f32.mrf.mxu0  ;;  %v4545_v26 = vpop.f32.mrf.mxu1 }
0x110f   :  { %v4457_v16 = vadd.f32 %v8022_v5, %v4456_v29  ;;  %v4544_v29 = vadd.f32 %v8023_v8, %v4543_v21  ;;  %v8076_v21 = vld [vmem:[%s13484_s4 + $0x4d8] sm:$0xff] }
0x1110   :  { %v4460_v2 = vpop.f32.mrf.mxu0  ;;  %v4549_v38 = vpop.f32.mrf.mxu1 }
0x1111   :  { %v4461_v31 = vadd.f32 %v8021_v27, %v4460_v2  ;;  %v4550_v44 = vadd.f32 %v8023_v8, %v4549_v38  ;;  %v8060_v2 = vld [vmem:[%s13484_s4 + $0x458] sm:$0xff] }
0x1112   :  { %v4462_v32 = vpop.f32.mrf.mxu0  ;;  %v4551_v37 = vpop.f32.mrf.mxu1  ;;  %v8092_v38 = vld [vmem:[%s13484_s4 + $0x558] sm:$0xff] }
0x1113   :  { %v4463_v63 = vadd.f32 %v8022_v5, %v4462_v32  ;;  %v4552_v30 = vadd.f32 %v8024_v1, %v4551_v37  ;;  %v8075_v37 = vld [vmem:[%s13484_s4 + $0x4d0] sm:$0xff] }
0x1114   :  { %v4466_v50 = vpop.f32.mrf.mxu0  ;;  %v4555_v35 = vpop.f32.mrf.mxu1 }
0x1115   :  { %v4467_v12 = vadd.f32 %v8021_v27, %v4466_v50  ;;  %v4556_v43 = vadd.f32 %v8023_v8, %v4555_v35  ;;  %v8107_v50 = vld [vmem:[%s13484_s4 + $0x5d0] sm:$0xff] }
0x1116   :  { %v4468_v4 = vpop.f32.mrf.mxu0  ;;  %v4557_v60 = vpop.f32.mrf.mxu1  ;;  %v8059_v35 = vld [vmem:[%s13484_s4 + $0x450] sm:$0xff] }
0x1117   :  { %v4469_v52 = vadd.f32 %v8022_v5, %v4468_v4  ;;  %v4558_v45 = vadd.f32 %v8024_v1, %v4557_v60  ;;  %v4546_v4 = vadd.f32 %v8024_v1, %v4545_v26  ;;  %v4574_v32 = vmul.f32 %v11613_v0, %v4467_v12  ;;  %v8095_v12 = vld [vmem:[%s13484_s4 + $0x570] sm:$0xff]  ;;  %v8108_v26 = vld [vmem:[%s13484_s4 + $0x5d8] sm:$0xff] }
0x1118   :  { %v4472_v57 = vpop.f32.mrf.mxu0  ;;  %v4561_v15 = vpop.f32.mrf.mxu1 }
0x1119   :  { %v4473_v58 = vadd.f32 %v8021_v27, %v4472_v57  ;;  %v4562_v41 = vadd.f32 %v8023_v8, %v4561_v15  ;;  %v4575_v60 = vmul.f32 %v11607_v14, %v4469_v52  ;;  %v4577_v40 = vmul.f32 %v11610_v6, %v4558_v45  ;;  %v8094_v45 = vld [vmem:[%s13484_s4 + $0x568] sm:$0xff]  ;;  %v8091_v27 = vld [vmem:[%s13484_s4 + $0x550] sm:$0xff]  ;;  %v8089_v52 = vld [vmem:[%s13484_s4 + $0x540] sm:$0xff] }
0x111a   :  { %v4474_v10 = vpop.f32.mrf.mxu0  ;;  %v4563_v34 = vpop.f32.mrf.mxu1  ;;  %v4572_v14 = vmul.f32 %v11592_v59, %v4550_v44  ;;  %v4567_v6 = vmul.f32 %v11583_v17, %v4457_v16  ;;  %v4569_v0 = vmul.f32 %v11586_v11, %v4546_v4  ;;  %v8080_v59 = vld [vmem:[%s13484_s4 + $0x4f8] sm:$0xff]  ;;  %v11916_v11 = vld [vmem:[%s13485_s5] sm:$0xff]  ;;  %v8078_v16 = vld [vmem:[%s13484_s4 + $0x4e8] sm:$0xff] }
0x111b   :  { %v4475_v56 = vadd.f32 %v8022_v5, %v4474_v10  ;;  %v4564_v62 = vadd.f32 %v8024_v1, %v4563_v34  ;;  %v4578_v57 = vmul.f32 %v11625_v48, %v4473_v58  ;;  %v4580_v15 = vmul.f32 %v11616_v22, %v4562_v41  ;;  %v8112_v17 = vld [vmem:[%s13484_s4 + $0x5f8] sm:$0xff]  ;;  %v8077_v44 = vld [vmem:[%s13484_s4 + $0x4e0] sm:$0xff]  ;;  %v8074_v8 = vld [vmem:[%s13484_s4 + $0x4c8] sm:$0xff] }
0x111c   :  { %v4573_v48 = vmul.f32 %v11598_v13, %v4552_v30  ;;  %v4570_v22 = vmul.f32 %v11601_v18, %v4461_v31  ;;  %v8079_v13 = vld [vmem:[%s13484_s4 + $0x4f0] sm:$0xff]  ;;  %v8109_v31 = vld [vmem:[%s13484_s4 + $0x5e0] sm:$0xff]  ;;  %v11991_v30 = vld [vmem:[%s13485_s5 + $0x18] sm:$0xff] }
0x111d   :  { %v4579_v28 = vmul.f32 %v11619_v49, %v4475_v56  ;;  %v4581_v9 = vmul.f32 %v11622_v47, %v4564_v62  ;;  %v4576_v49 = vmul.f32 %v11604_v7, %v4556_v43  ;;  %v4571_v47 = vmul.f32 %v11595_v33, %v4463_v63  ;;  %v8111_v18 = vld [vmem:[%s13484_s4 + $0x5f0] sm:$0xff]  ;;  %v11939_v63 = vld [vmem:[%s13485_s5 + $0x8] sm:$0xff]  ;;  %v8073_v41 = vld [vmem:[%s13484_s4 + $0x4c0] sm:$0xff] }
0x111e   :  { %v4566_v7 = vmul.f32 %v11589_v39, %v4455_v46  ;;  %v4568_v33 = vmul.f32 %v11580_v20, %v4544_v29  ;;  %v8064_v20 = vld [vmem:[%s13484_s4 + $0x478] sm:$0xff]  ;;  %v8063_v43 = vld [vmem:[%s13484_s4 + $0x470] sm:$0xff]  ;;  %v8110_v46 = vld [vmem:[%s13484_s4 + $0x5e8] sm:$0xff] }
0x111f   :  { %4606 = vmatprep.subr.mxu0 %v4579_v28  ;;  %4695 = vmatprep.subr.mxu1 %v4581_v9  ;;  %v8096_v39 = vld [vmem:[%s13484_s4 + $0x578] sm:$0xff]  ;;  %v11962_v62 = vld [vmem:[%s13485_s5 + $0x10] sm:$0xff]  ;;  %v8062_v56 = vld [vmem:[%s13484_s4 + $0x468] sm:$0xff] }
0x1120   :  { %4607 = vmatpush1.msra.mxu0 %v4578_v57  ;;  %4696 = vmatpush1.msra.mxu1 %v4580_v15  ;;  %v8061_v9 = vld [vmem:[%s13484_s4 + $0x460] sm:$0xff]  ;;  %v8106_v5 = vld [vmem:[%s13484_s4 + $0x5c8] sm:$0xff]  ;;  %v8072_v57 = vld [vmem:[%s13484_s4 + $0x4b8] sm:$0xff] }
0x1121   :  { %4608 = vmatprep.subr.mxu0 %v4575_v60  ;;  %4697 = vmatprep.subr.mxu1 %v4577_v40  ;;  %v8093_v28 = vld [vmem:[%s13484_s4 + $0x560] sm:$0xff]  ;;  %v8058_v1 = vld [vmem:[%s13484_s4 + $0x448] sm:$0xff]  ;;  %v8104_v15 = vld [vmem:[%s13484_s4 + $0x5b8] sm:$0xff] }
0x1122   :  { %4609 = vmatpush1.msra.mxu0 %v4574_v32  ;;  %4698 = vmatpush1.msra.mxu1 %v4576_v49  ;;  %v8090_v58 = vld [vmem:[%s13484_s4 + $0x548] sm:$0xff]  ;;  %v8105_v10 = vld [vmem:[%s13484_s4 + $0x5c0] sm:$0xff]  ;;  %v8056_v4 = vld [vmem:[%s13484_s4 + $0x438] sm:$0xff] }
0x1123   :  { %4610 = vmatprep.subr.mxu0 %v4571_v47  ;;  %4699 = vmatprep.subr.mxu1 %v4573_v48  ;;  %v8057_v34 = vld [vmem:[%s13484_s4 + $0x440] sm:$0xff]  ;;  %v8088_v60 = vld [vmem:[%s13484_s4 + $0x538] sm:$0xff]  ;;  %v8071_v40 = vld [vmem:[%s13484_s4 + $0x4b0] sm:$0xff] }
0x1124   :  { %4611 = vmatpush1.msra.mxu0 %v4570_v22  ;;  %4700 = vmatpush1.msra.mxu1 %v4572_v14  ;;  %v8103_v29 = vld [vmem:[%s13484_s4 + $0x5b0] sm:$0xff]  ;;  %v8070_v47 = vld [vmem:[%s13484_s4 + $0x4a8] sm:$0xff] }
0x1125   :  { %4612 = vmatprep.subr.mxu0 %v4567_v6  ;;  %4701 = vmatprep.subr.mxu1 %v4569_v0  ;;  %v8055_v32 = vld [vmem:[%s13484_s4 + $0x430] sm:$0xff]  ;;  %v8102_v48 = vld [vmem:[%s13484_s4 + $0x5a8] sm:$0xff]  ;;  %v8069_v6 = vld [vmem:[%s13484_s4 + $0x4a0] sm:$0xff] }
0x1126   :  { %4613 = vmatpush1.msra.mxu0 %v4566_v7  ;;  %4702 = vmatpush1.msra.mxu1 %v4568_v33  ;;  %v8087_v49 = vld [vmem:[%s13484_s4 + $0x530] sm:$0xff]  ;;  %v8054_v22 = vld [vmem:[%s13484_s4 + $0x428] sm:$0xff]  ;;  %v8101_v0 = vld [vmem:[%s13484_s4 + $0x5a0] sm:$0xff] }
0x1127   :  { %8041 = vmatmul.mubr.msk.f32.vlgmr.msra.gmra.mxu0 %vm320_vm1, %v11916_v11  ;;  %8045 = vmatmul.mubr.msk.f32.vlgmr.msra.gmra.mxu1 %vm320_vm1, %v11916_v11  ;;  %v8086_v14 = vld [vmem:[%s13484_s4 + $0x528] sm:$0xff]  ;;  %v8053_v7 = vld [vmem:[%s13484_s4 + $0x420] sm:$0xff] }
0x1128   :  { %4652 = vmatprep.mubr.f32.mxu0 %v13524_v55  ;;  %4741 = vmatprep.mubr.f32.mxu1 %v13524_v55  ;;  %v8085_v33 = vld [vmem:[%s13484_s4 + $0x520] sm:$0xff] }
0x1129   :  { %8664 = vmatprep.subr.mxu0 %v8080_v59  ;;  %8708 = vmatprep.subr.mxu1 %v8112_v17  ;;  %v8068_v59 = vld [vmem:[%s13484_s4 + $0x498] sm:$0xff] }
0x112a   :  { %8665 = vmatpush3.msra.mxu0 %v8064_v20  ;;  %8709 = vmatpush3.msra.mxu1 %v8096_v39  ;;  %v8100_v17 = vld [vmem:[%s13484_s4 + $0x598] sm:$0xff] }
0x112b   :  { %8042 = vmatmul.mubr.msk.f32.gmra.mxu0 %vm320_vm1, %v11939_v63  ;;  %8046 = vmatmul.mubr.msk.f32.gmra.mxu1 %vm320_vm1, %v11939_v63  ;;  %v8052_v20 = vld [vmem:[%s13484_s4 + $0x418] sm:$0xff] }
0x112c   :  { %4658 = vmatprep.mubr.f32.mxu0 %v13524_v55  ;;  %4747 = vmatprep.mubr.f32.mxu1 %v13524_v55  ;;  %v8084_v39 = vld [vmem:[%s13484_s4 + $0x518] sm:$0xff] }
0x112d   :  { %8666 = vmatprep.subr.mxu0 %v8079_v13  ;;  %8710 = vmatprep.subr.mxu1 %v8111_v18  ;;  %v8067_v13 = vld [vmem:[%s13484_s4 + $0x490] sm:$0xff] }
0x112e   :  { %8667 = vmatpush3.msra.mxu0 %v8063_v43  ;;  %8711 = vmatpush3.msra.mxu1 %v8095_v12  ;;  %v8099_v18 = vld [vmem:[%s13484_s4 + $0x590] sm:$0xff] }
0x112f   :  { %8043 = vmatmul.mubr.msk.f32.gmra.mxu0 %vm320_vm1, %v11962_v62  ;;  %8047 = vmatmul.mubr.msk.f32.gmra.mxu1 %vm320_vm1, %v11962_v62  ;;  %v8051_v43 = vld [vmem:[%s13484_s4 + $0x410] sm:$0xff] }
0x1130   :  { %4664 = vmatprep.mubr.f32.mxu0 %v13524_v55  ;;  %4753 = vmatprep.mubr.f32.mxu1 %v13524_v55  ;;  %v8083_v12 = vld [vmem:[%s13484_s4 + $0x510] sm:$0xff] }
0x1131   :  { %8668 = vmatprep.subr.mxu0 %v8078_v16  ;;  %8712 = vmatprep.subr.mxu1 %v8110_v46  ;;  %v8066_v16 = vld [vmem:[%s13484_s4 + $0x488] sm:$0xff] }
0x1132   :  { %8669 = vmatpush3.msra.mxu0 %v8062_v56  ;;  %8713 = vmatpush3.msra.mxu1 %v8094_v45  ;;  %v8098_v46 = vld [vmem:[%s13484_s4 + $0x588] sm:$0xff] }
0x1133   :  { %8044 = vmatmul.mubr.msk.f32.gmra.mxu0 %vm320_vm1, %v11991_v30  ;;  %8048 = vmatmul.mubr.msk.f32.gmra.mxu1 %vm320_vm1, %v11991_v30  ;;  %v8050_v56 = vld [vmem:[%s13484_s4 + $0x408] sm:$0xff] }
0x1134   :  { %8670 = vmatprep.subr.mxu0 %v8077_v44  ;;  %8714 = vmatprep.subr.mxu1 %v8109_v31  ;;  %v8082_v45 = vld [vmem:[%s13484_s4 + $0x508] sm:$0xff]  ;;  %v8065_v44 = vld [vmem:[%s13484_s4 + $0x480] sm:$0xff] }
0x1135   :  { %8671 = vmatpush3.msra.mxu0 %v8061_v9  ;;  %8715 = vmatpush3.msra.mxu1 %v8093_v28  ;;  %v8097_v31 = vld [vmem:[%s13484_s4 + $0x580] sm:$0xff] }
0x1136   :  { %8672 = vmatprep.subr.mxu0 %v8076_v21  ;;  %8716 = vmatprep.subr.mxu1 %v8108_v26  ;;  %v8049_v9 = vld [vmem:[%s13484_s4 + $0x400] sm:$0xff]  ;;  %v9405_v21 = vld [vmem:[#allocation4 + $0x268] sm:$0xff]  ;;  %v9406_v26 = vld [vmem:[#allocation4 + $0x278] sm:$0xff] }
0x1137   :  { %8673 = vmatpush3.msra.mxu0 %v8060_v2  ;;  %8717 = vmatpush3.msra.mxu1 %v8092_v38  ;;  %v8081_v28 = vld [vmem:[%s13484_s4 + $0x500] sm:$0xff]  ;;  %v8019_v38 = vld [vmem:[%s13482_s2 + $0x390] ss:$0 sm:$0xff] }
0x1138   :  { %8674 = vmatprep.subr.mxu0 %v8075_v37  ;;  %8718 = vmatprep.subr.mxu1 %v8107_v50  ;;  %v8017_v2 = vld [vmem:[%s13482_s2 + $0x380] ss:$0 sm:$0xff]  ;;  %v8018_v37 = vld [vmem:[%s13482_s2 + $0x388] ss:$0 sm:$0xff]  ;;  %v8020_v50 = vld [vmem:[%s13482_s2 + $0x398] ss:$0 sm:$0xff] }
0x1139   :  { %8675 = vmatpush3.msra.mxu0 %v8059_v35  ;;  %8719 = vmatpush3.msra.mxu1 %v8091_v27  ;;  %v12154_v35 = vadd.f32 %v8017_v2, %v11847_v19  ;;  %v12157_v27 = vadd.f32 %v8019_v38, %v11849_v51 }
0x113a   :  { %8676 = vmatprep.subr.mxu0 %v8074_v8  ;;  %8720 = vmatprep.subr.mxu1 %v8106_v5  ;;  %v12160_v8 = vadd.f32 %v8018_v37, %v11851_v3  ;;  %v12163_v5 = vadd.f32 %v8020_v50, %v11853_v61  ;;  %v12174_v3 = vadd.f32 %v8018_v37, %v11859_v23 }
0x113b   :  { %8677 = vmatpush3.msra.mxu0 %v8058_v1  ;;  %8721 = vmatpush3.msra.mxu1 %v8090_v58  ;;  %v4777_v58 = vld [vmem:[#allocation2 + $0x100] sm:$0xff]  ;;  %v12177_v61 = vadd.f32 %v8020_v50, %v11861_v54  ;;  %v12188_v23 = vadd.f32 %v8018_v37, %v11867_v53 }
0x113c   :  { %8678 = vmatprep.subr.mxu0 %v8073_v41  ;;  %8722 = vmatprep.subr.mxu1 %v8105_v10  ;;  %v4779_v10 = vld [vmem:[#allocation2 + $0x110] sm:$0xff]  ;;  %v13561_v54 = vld [vmem:[#allocation20_spill] sm:$0xff] }
0x113d   :  { %8679 = vmatpush3.msra.mxu0 %v8057_v34  ;;  %8723 = vmatpush3.msra.mxu1 %v8089_v52  ;;  %v12166_v34 = vadd.f32 %v8017_v2, %v11855_v24  ;;  %v12169_v52 = vadd.f32 %v8019_v38, %v11857_v25 }
0x113e   :  { %8680 = vmatprep.subr.mxu0 %v8072_v57  ;;  %8724 = vmatprep.subr.mxu1 %v8104_v15  ;;  %v12180_v57 = vadd.f32 %v8017_v2, %v11863_v36  ;;  %v12183_v15 = vadd.f32 %v8019_v38, %v11865_v42  ;;  %v13562_v36 = vld [vmem:[#allocation12_spill] sm:$0xff]  ;;  %v13563_v42 = vld [vmem:[#allocation13_spill] sm:$0xff] }
0x113f   :  { %8681 = vmatpush3.msra.mxu0 %v8056_v4  ;;  %8725 = vmatpush3.msra.mxu1 %v8088_v60 }
0x1140   :  { %8682 = vmatprep.subr.mxu0 %v8071_v40  ;;  %8726 = vmatprep.subr.mxu1 %v8103_v29  ;;  %v4778_v29 = vld [vmem:[#allocation2 + $0x108] sm:$0xff] }
0x1141   :  { %8683 = vmatpush3.msra.mxu0 %v8055_v32  ;;  %8727 = vmatpush3.msra.mxu1 %v8087_v49  ;;  %v12191_v49 = vadd.f32 %v8020_v50, %v13561_v54 }
0x1142   :  { %8684 = vmatprep.subr.mxu0 %v8070_v47  ;;  %8728 = vmatprep.subr.mxu1 %v8102_v48  ;;  %v12194_v47 = vadd.f32 %v8017_v2, %v13562_v36  ;;  %v12197_v48 = vadd.f32 %v8019_v38, %v13563_v42 }
0x1143   :  { %8685 = vmatpush3.msra.mxu0 %v8054_v22  ;;  %8729 = vmatpush3.msra.mxu1 %v8086_v14  ;;  %v4780_v22 = vld [vmem:[#allocation2 + $0x118] sm:$0xff] }
0x1144   :  { %8686 = vmatprep.subr.mxu0 %v8069_v6  ;;  %8730 = vmatprep.subr.mxu1 %v8101_v0  ;;  %v13564_v0 = vld [vmem:[#allocation14_spill] sm:$0xff] }
0x1145   :  { %8687 = vmatpush3.msra.mxu0 %v8053_v7  ;;  %8731 = vmatpush3.msra.mxu1 %v8085_v33  ;;  %v12200_v7 = vadd.f32 %v8018_v37, %v13564_v0  ;;  %v13565_v33 = vld [vmem:[#allocation15_spill] sm:$0xff] }
0x1146   :  { %8688 = vmatprep.subr.mxu0 %v8068_v59  ;;  %8732 = vmatprep.subr.mxu1 %v8100_v17  ;;  %v12203_v59 = vadd.f32 %v8020_v50, %v13565_v33  ;;  %v4781_v17 = vld [vmem:[#allocation2 + $0x120] sm:$0xff] }
0x1147   :  { %8689 = vmatpush3.msra.mxu0 %v8052_v20  ;;  %8733 = vmatpush3.msra.mxu1 %v8084_v39  ;;  %v4783_v20 = vld [vmem:[#allocation2 + $0x130] sm:$0xff] }
0x1148   :  { %8690 = vmatprep.subr.mxu0 %v8067_v13  ;;  %8734 = vmatprep.subr.mxu1 %v8099_v18 }
0x1149   :  { %8691 = vmatpush3.msra.mxu0 %v8051_v43  ;;  %8735 = vmatpush3.msra.mxu1 %v8083_v12 }
0x114a   :  { %8692 = vmatprep.subr.mxu0 %v8066_v16  ;;  %8736 = vmatprep.subr.mxu1 %v8098_v46  ;;  %v4782_v16 = vld [vmem:[#allocation2 + $0x128] sm:$0xff] }
0x114b   :  { %8693 = vmatpush3.msra.mxu0 %v8050_v56  ;;  %8737 = vmatpush3.msra.mxu1 %v8082_v45  ;;  %v4784_v56 = vld [vmem:[#allocation2 + $0x138] sm:$0xff] }
0x114c   :  { %8694 = vmatprep.subr.mxu0 %v8065_v44  ;;  %8738 = vmatprep.subr.mxu1 %v8097_v31 }
0x114d   :  { %8695 = vmatpush3.msra.mxu0 %v8049_v9  ;;  %8739 = vmatpush3.msra.mxu1 %v8081_v28 }
0x114e   :  { %5138 = vmatprep.subr.mxu0 %v9405_v21  ;;  %5227 = vmatprep.subr.mxu1 %v9406_v26 }
0x11e7   :  { %v4648_v1 = vpop.f32.mrf.mxu0  ;;  %v4737_v41 = vpop.f32.mrf.mxu1 }
0x11e8   :  { %v4760_v19 = vadd.f32 %v4648_v1, %v12154_v35  ;;  %v4762_v51 = vadd.f32 %v4737_v41, %v12157_v27  ;;  %v4785_v1 = vld [vmem:[#allocation2 + $0x140] sm:$0xff] }
0x11e9   :  { %v4650_v24 = vpop.f32.mrf.mxu0  ;;  %v4739_v4 = vpop.f32.mrf.mxu1 }
0x11ea   :  { %v4793_v25 = vadd.f32 %v4777_v58, %v4760_v19  ;;  %v4795_v60 = vadd.f32 %v4779_v10, %v4762_v51  ;;  %v4761_v40 = vadd.f32 %v4650_v24, %v12160_v8  ;;  %v4763_v32 = vadd.f32 %v4739_v4, %v12163_v5  ;;  %v4787_v51 = vld [vmem:[#allocation2 + $0x150] sm:$0xff]  ;;  %v4786_v4 = vld [vmem:[#allocation2 + $0x148] sm:$0xff] }
0x11eb   :  { %v4654_v14 = vpop.f32.mrf.mxu0  ;;  %v4743_v6 = vpop.f32.mrf.mxu1 }
0x11ec   :  { %vm4809_vm4 = vcmp.gt.f32.partialorder %v4793_v25, 0.0  ;;  %v4825_v53 = vmul.f32 0.2, %v4793_v25  ;;  %v4827_v39 = vmul.f32 0.2, %v4795_v60  ;;  %v4794_v13 = vadd.f32 %v4778_v29, %v4761_v40  ;;  %v4788_v29 = vld [vmem:[#allocation2 + $0x158] sm:$0xff] }
0x11ed   :  { %v4764_v18 = vadd.f32 %v4654_v14, %v12166_v34  ;;  %v4766_v43 = vadd.f32 %v4743_v6, %v12169_v52  ;;  %v4656_v12 = vpop.f32.mrf.mxu0  ;;  %v4745_v46 = vpop.f32.mrf.mxu1  ;;  %vm4811_vm5 = vcmp.gt.f32.partialorder %v4795_v60, 0.0  ;;  %v4796_v45 = vadd.f32 %v4780_v22, %v4763_v32 }
0x11ee   :  { %v4765_v44 = vadd.f32 %v4656_v12, %v12174_v3  ;;  %v4767_v31 = vadd.f32 %v4745_v46, %v12177_v61  ;;  %vm4810_vm6 = vcmp.gt.f32.partialorder %v4794_v13, 0.0  ;;  %v4826_v2 = vmul.f32 0.2, %v4794_v13 }
0x11ef   :  { %v4797_v9 = vadd.f32 %v4781_v17, %v4764_v18  ;;  %v12209_v28 = vadd.f32 %v4783_v20, %v4766_v43  ;;  %v4660_v21 = vpop.f32.mrf.mxu0  ;;  %v4749_v26 = vpop.f32.mrf.mxu1  ;;  %v4841_v41 = vsel %vm4809_vm4, %v4793_v25, %v4825_v53  ;;  %v4843_v10 = vsel %vm4811_vm5, %v4795_v60, %v4827_v39  ;;  %v9407_v17 = vld [vmem:[#allocation4 + $0x260] sm:$0xff]  ;;  %v4790_v43 = vld [vmem:[#allocation2 + $0x168] sm:$0xff] }
0x11f0   :  { %v4798_v38 = vadd.f32 %v4782_v16, %v4765_v44  ;;  %v4800_v37 = vadd.f32 %v4784_v56, %v4767_v31  ;;  %v4768_v50 = vadd.f32 %v4660_v21, %v12180_v57  ;;  %v4770_v58 = vadd.f32 %v4749_v26, %v12183_v15  ;;  %v4792_v16 = vld [vmem:[#allocation2 + $0x178] sm:$0xff]  ;;  %v9408_v56 = vld [vmem:[#allocation4 + $0x248] sm:$0xff]  ;;  %v4789_v44 = vld [vmem:[#allocation2 + $0x160] sm:$0xff] }
0x11f1   :  { %v4829_v19 = vmul.f32 0.2, %v4797_v9  ;;  %v4662_v24 = vpop.f32.mrf.mxu0  ;;  %v4751_v40 = vpop.f32.mrf.mxu1  ;;  %v4842_v32 = vsel %vm4810_vm6, %v4794_v13, %v4826_v2  ;;  %v4831_v54 = vmul.f32 0.2, %v12209_v28  ;;  %vm4812_vm7 = vcmp.gt.f32.partialorder %v4796_v45, 0.0  ;;  %v4791_v31 = vld [vmem:[#allocation2 + $0x170] sm:$0xff] }
0x11f2   :  { %v4769_v36 = vadd.f32 %v4662_v24, %v12188_v23  ;;  %v4771_v42 = vadd.f32 %v4751_v40, %v12191_v49  ;;  %4986 = vmatprep.mubr.f32.mxu0 %v4842_v32  ;;  %v12218_v22 = vadd.f32 %v4785_v1, %v4768_v50  ;;  %v4828_v25 = vmul.f32 0.2, %v4796_v45  ;;  %v9409_v1 = vld [vmem:[#allocation4 + $0x240] sm:$0xff]  ;;  %v9410_v40 = vld [vmem:[#allocation4 + $0x270] sm:$0xff]  ;;  %v9412_v32 = vld [vmem:[#allocation4 + $0x228] sm:$0xff] }
0x11f3   :  { %4987 = vmatmul.mubr.f32.vlgmr.msra.gmra.mxu0 %v4841_v41  ;;  %v4666_v60 = vpop.f32.mrf.mxu0  ;;  %v4755_v14 = vpop.f32.mrf.mxu1  ;;  %vm4814_vm8 = vcmp.gt.f32.partialorder %v4798_v38, 0.0  ;;  %v4830_v6 = vmul.f32 0.2, %v4798_v38  ;;  %v12220_v0 = vadd.f32 %v4787_v51, %v4770_v58  ;;  %vm4816_vm9 = vcmp.gt.f32.partialorder %v4800_v37, 0.0 }
0x11f4   :  { %v4802_v33 = vadd.f32 %v4786_v4, %v4769_v36  ;;  %v4804_v53 = vadd.f32 %v4788_v29, %v4771_v42  ;;  %5139 = vmatpush1.msra.mxu0 %v9407_v17  ;;  %v4844_v20 = vsel %vm4812_vm7, %v4796_v45, %v4828_v25  ;;  %v4772_v39 = vadd.f32 %v4666_v60, %v12194_v47  ;;  %v9411_v29 = vld [vmem:[#allocation4 + $0x258] sm:$0xff]  ;;  %v9413_v36 = vld [vmem:[#allocation4 + $0x220] sm:$0xff]  ;;  %v9415_v60 = vld [vmem:[#allocation4 + $0x208] sm:$0xff] }
0x11f5   :  { %v4774_v13 = vadd.f32 %v4755_v14, %v12197_v48  ;;  %v4668_v18 = vpop.f32.mrf.mxu0  ;;  %v4757_v12 = vpop.f32.mrf.mxu1  ;;  %v4846_v46 = vsel %vm4814_vm8, %v4798_v38, %v4830_v6  ;;  %5140 = vmatprep.subr.mxu0 %v9408_v56  ;;  %5071 = vmatprep.mubr.f32.mxu1 %v4844_v20  ;;  %v4832_v45 = vmul.f32 0.2, %v4800_v37  ;;  %vm4813_vm10 = vcmp.gt.f32.partialorder %v4797_v9, 0.0  ;;  %v9423_v56 = vld [vmem:[#allocation4 + $0x1e0] sm:$0xff] }
0x11f6   :  { %v4773_v21 = vadd.f32 %v4668_v18, %v12200_v7  ;;  %v4775_v26 = vadd.f32 %v4757_v12, %v12203_v59  ;;  %4991 = vmatprep.mubr.f32.mxu0 %v4846_v46  ;;  %v4833_v2 = vmul.f32 0.2, %v12218_v22  ;;  %5072 = vmatmul.mubr.f32.vlgmr.msra.gmra.mxu1 %v4843_v10  ;;  %v4845_v50 = vsel %vm4813_vm10, %v4797_v9, %v4829_v19  ;;  %v9422_v46 = vld [vmem:[#allocation4 + $0x1f8] sm:$0xff] }
0x11f7   :  { %vm4815_vm11 = vcmp.gt.f32.partialorder %v12209_v28, 0.0  ;;  %5141 = vmatpush1.msra.mxu0 %v9409_v1  ;;  %v4835_v38 = vmul.f32 0.2, %v12220_v0  ;;  %v4848_v51 = vsel %vm4816_vm9, %v4800_v37, %v4832_v45  ;;  %v4805_v24 = vadd.f32 %v4789_v44, %v4772_v39  ;;  %5228 = vmatpush1.msra.mxu1 %v9410_v40  ;;  %v9416_v39 = vld [vmem:[#allocation4 + $0x238] sm:$0xff]  ;;  %v9424_v44 = vld [vmem:[#allocation4 + $0x1f0] sm:$0xff]  ;;  %v9431_v1 = vld [vmem:[#allocation4 + $0x1a0] sm:$0xff] }
0x11f8   :  { %v4806_v58 = vadd.f32 %v4790_v43, %v4773_v21  ;;  %v4808_v41 = vadd.f32 %v4792_v16, %v4775_v26  ;;  %4992 = vmatmul.mubr.f32.gmra.mxu0 %v4845_v50  ;;  %v4807_v4 = vadd.f32 %v4791_v31, %v4774_v13  ;;  %5076 = vmatprep.mubr.f32.mxu1 %v4848_v51  ;;  %vm4818_vm12 = vcmp.gt.f32.partialorder %v4802_v33, 0.0  ;;  %v9417_v13 = vld [vmem:[#allocation4 + $0x230] sm:$0xff]  ;;  %v9419_v43 = vld [vmem:[#allocation4 + $0x200] sm:$0xff]  ;;  %v9425_v31 = vld [vmem:[#allocation4 + $0x1c8] sm:$0xff] }
0x11f9   :  { %vm4820_vm13 = vcmp.gt.f32.partialorder %v4804_v53, 0.0  ;;  %v4847_v9 = vsel %vm4815_vm11, %v12209_v28, %v4831_v54  ;;  %v4834_v10 = vmul.f32 0.2, %v4802_v33  ;;  %v4836_v19 = vmul.f32 0.2, %v4804_v53  ;;  %5229 = vmatprep.subr.mxu1 %v9411_v29  ;;  %5142 = vmatprep.subr.mxu0 %v9412_v32  ;;  %v9414_v54 = vld [vmem:[#allocation4 + $0x250] sm:$0xff] }
0x11fa   :  { %vm4817_vm14 = vcmp.gt.f32.partialorder %v12218_v22, 0.0  ;;  %5077 = vmatmul.mubr.f32.gmra.mxu1 %v4847_v9  ;;  %vm4819_vm15 = vcmp.gt.f32.partialorder %v12220_v0, 0.0  ;;  %vm4822_vm0 = vcmp.gt.f32.partialorder %v4806_v58, 0.0  ;;  %v4838_v37 = vmul.f32 0.2, %v4806_v58  ;;  %5143 = vmatpush1.msra.mxu0 %v9413_v36  ;;  %v9420_v16 = vld [vmem:[#allocation4 + $0x210] sm:$0xff] }
0x11fb   :  { %v4850_v42 = vsel %vm4818_vm12, %v4802_v33, %v4834_v10  ;;  %v4852_v25 = vsel %vm4820_vm13, %v4804_v53, %v4836_v19  ;;  %vm4824_vm2 = vcmp.gt.f32.partialorder %v4808_v41, 0.0  ;;  %v4840_v28 = vmul.f32 0.2, %v4808_v41  ;;  %5230 = vmatpush1.msra.mxu1 %v9414_v54  ;;  %5144 = vmatprep.subr.mxu0 %v9415_v60  ;;  %v9426_v21 = vld [vmem:[#allocation4 + $0x1d8] sm:$0xff]  ;;  %v9427_v26 = vld [vmem:[#allocation4 + $0x1c0] sm:$0xff]  ;;  %v9428_v45 = vld [vmem:[#allocation4 + $0x1d0] sm:$0xff] }
0x11fc   :  { %v4837_v14 = vmul.f32 0.2, %v4805_v24  ;;  %4996 = vmatprep.mubr.f32.mxu0 %v4850_v42  ;;  %5081 = vmatprep.mubr.f32.mxu1 %v4852_v25  ;;  %v4849_v6 = vsel %vm4817_vm14, %v12218_v22, %v4833_v2  ;;  %v4854_v17 = vsel %vm4822_vm0, %v4806_v58, %v4838_v37  ;;  %v4839_v20 = vmul.f32 0.2, %v4807_v4  ;;  %v9418_v22 = vld [vmem:[#allocation4 + $0x218] sm:$0xff]  ;;  %v9429_v2 = vld [vmem:[#allocation4 + $0x1a8] sm:$0xff] }
0x11fd   :  { %4997 = vmatmul.mubr.f32.gmra.mxu0 %v4849_v6  ;;  %v4851_v33 = vsel %vm4819_vm15, %v12220_v0, %v4835_v38  ;;  %v4856_v53 = vsel %vm4824_vm2, %v4808_v41, %v4840_v28  ;;  %vm4821_vm3 = vcmp.gt.f32.partialorder %v4805_v24, 0.0  ;;  %5231 = vmatprep.subr.mxu1 %v9416_v39  ;;  %vm4823_vm4 = vcmp.gt.f32.partialorder %v4807_v4, 0.0  ;;  %v9421_v0 = vld [vmem:[#allocation4 + $0x1e8] sm:$0xff]  ;;  %v9430_v50 = vld [vmem:[#allocation4 + $0x1b8] sm:$0xff]  ;;  %v9432_v38 = vld [vmem:[#allocation4 + $0x1b0] sm:$0xff] }
0x11fe   :  { %5082 = vmatmul.mubr.f32.gmra.mxu1 %v4851_v33  ;;  %5001 = vmatprep.mubr.f32.mxu0 %v4854_v17  ;;  %v4853_v18 = vsel %vm4821_vm3, %v4805_v24, %v4837_v14  ;;  %v4855_v12 = vsel %vm4823_vm4, %v4807_v4, %v4839_v20  ;;  %v9433_v58 = vld [vmem:[#allocation4 + $0x188] sm:$0xff]  ;;  %v9434_v41 = vld [vmem:[#allocation4 + $0x198] sm:$0xff]  ;;  %v9435_v51 = vld [vmem:[#allocation4 + $0x180] sm:$0xff] }
0x11ff   :  { %5086 = vmatprep.mubr.f32.mxu1 %v4856_v53  ;;  %5232 = vmatpush1.msra.mxu1 %v9417_v13  ;;  %v9436_v24 = vld [vmem:[#allocation4 + $0x190] sm:$0xff]  ;;  %v9437_v4 = vld [vmem:[#allocation4 + $0x168] sm:$0xff]  ;;  %v9438_v40 = vld [vmem:[#allocation4 + $0x178] sm:$0xff] }
0x1200   :  { %5233 = vmatprep.subr.mxu1 %v9418_v22  ;;  %5145 = vmatpush1.msra.mxu0 %v9419_v43  ;;  %v9439_v9 = vld [vmem:[#allocation4 + $0x160] sm:$0xff]  ;;  %v9440_v10 = vld [vmem:[#allocation4 + $0x170] sm:$0xff]  ;;  %v9441_v19 = vld [vmem:[#allocation4 + $0x148] sm:$0xff] }
0x1201   :  { %5002 = vmatmul.mubr.f32.gmra.mxu0 %v4853_v18  ;;  %5234 = vmatpush1.msra.mxu1 %v9420_v16  ;;  %v9442_v29 = vld [vmem:[#allocation4 + $0x158] sm:$0xff]  ;;  %v9443_v32 = vld [vmem:[#allocation4 + $0x140] sm:$0xff]  ;;  %v9444_v37 = vld [vmem:[#allocation4 + $0x150] sm:$0xff] }
0x1202   :  { %5087 = vmatmul.mubr.f32.gmra.mxu1 %v4855_v12  ;;  %5146 = vmatprep.subr.mxu0 %v9421_v0  ;;  %v9445_v36 = vld [vmem:[#allocation4 + $0x128] sm:$0xff]  ;;  %v9446_v42 = vld [vmem:[#allocation4 + $0x138] sm:$0xff]  ;;  %v9447_v25 = vld [vmem:[#allocation4 + $0x120] sm:$0xff] }
0x1203   :  { %5235 = vmatprep.subr.mxu1 %v9422_v46  ;;  %5147 = vmatpush1.msra.mxu0 %v9423_v56  ;;  %v9448_v28 = vld [vmem:[#allocation4 + $0x130] sm:$0xff]  ;;  %v9449_v54 = vld [vmem:[#allocation4 + $0x108] sm:$0xff]  ;;  %v9450_v60 = vld [vmem:[#allocation4 + $0x118] sm:$0xff] }
0x1204   :  { %5236 = vmatpush1.msra.mxu1 %v9424_v44  ;;  %5148 = vmatprep.subr.mxu0 %v9425_v31  ;;  %v9451_v14 = vld [vmem:[#allocation4 + $0x100] sm:$0xff]  ;;  %v9452_v6 = vld [vmem:[#allocation4 + $0x110] sm:$0xff]  ;;  %v9453_v17 = vld [vmem:[#allocation4 + $0xe8] sm:$0xff] }
0x1205   :  { %5237 = vmatprep.subr.mxu1 %v9426_v21  ;;  %5149 = vmatpush1.msra.mxu0 %v9427_v26  ;;  %v9454_v20 = vld [vmem:[#allocation4 + $0xf8] sm:$0xff]  ;;  %v9455_v33 = vld [vmem:[#allocation4 + $0xe0] sm:$0xff]  ;;  %v9456_v53 = vld [vmem:[#allocation4 + $0xf0] sm:$0xff] }
0x1206   :  { %5238 = vmatpush1.msra.mxu1 %v9428_v45  ;;  %5150 = vmatprep.subr.mxu0 %v9429_v2  ;;  %v9457_v39 = vld [vmem:[#allocation4 + $0xc8] sm:$0xff]  ;;  %v9458_v13 = vld [vmem:[#allocation4 + $0xd8] sm:$0xff]  ;;  %v9459_v18 = vld [vmem:[#allocation4 + $0xc0] sm:$0xff] }
0x1207   :  { %5239 = vmatprep.subr.mxu1 %v9430_v50  ;;  %5151 = vmatpush1.msra.mxu0 %v9431_v1  ;;  %v9460_v22 = vld [vmem:[#allocation4 + $0xd0] sm:$0xff]  ;;  %v9461_v43 = vld [vmem:[#allocation4 + $0xa8] sm:$0xff]  ;;  %v9462_v12 = vld [vmem:[#allocation4 + $0xb8] sm:$0xff] }
0x1208   :  { %5240 = vmatpush1.msra.mxu1 %v9432_v38  ;;  %5152 = vmatprep.subr.mxu0 %v9433_v58  ;;  %v9463_v16 = vld [vmem:[#allocation4 + $0xa0] sm:$0xff]  ;;  %v9464_v0 = vld [vmem:[#allocation4 + $0xb0] sm:$0xff]  ;;  %v9465_v46 = vld [vmem:[#allocation4 + $0x88] sm:$0xff] }
0x1209   :  { %5241 = vmatprep.subr.mxu1 %v9434_v41  ;;  %5153 = vmatpush1.msra.mxu0 %v9435_v51  ;;  %v9466_v56 = vld [vmem:[#allocation4 + $0x98] sm:$0xff]  ;;  %v9467_v44 = vld [vmem:[#allocation4 + $0x80] sm:$0xff]  ;;  %v9468_v31 = vld [vmem:[#allocation4 + $0x90] sm:$0xff] }
0x120a   :  { %5242 = vmatpush1.msra.mxu1 %v9436_v24  ;;  %5154 = vmatprep.subr.mxu0 %v9437_v4 }
0x120b   :  { %5243 = vmatprep.subr.mxu1 %v9438_v40  ;;  %5155 = vmatpush1.msra.mxu0 %v9439_v9 }
0x120c   :  { %5244 = vmatpush1.msra.mxu1 %v9440_v10  ;;  %5156 = vmatprep.subr.mxu0 %v9441_v19 }
0x120d   :  { %5245 = vmatprep.subr.mxu1 %v9442_v29  ;;  %5157 = vmatpush1.msra.mxu0 %v9443_v32 }
0x120e   :  { %5246 = vmatpush1.msra.mxu1 %v9444_v37  ;;  %5158 = vmatprep.subr.mxu0 %v9445_v36 }
0x120f   :  { %5247 = vmatprep.subr.mxu1 %v9446_v42  ;;  %5159 = vmatpush1.msra.mxu0 %v9447_v25 }
0x1210   :  { %5248 = vmatpush1.msra.mxu1 %v9448_v28  ;;  %5160 = vmatprep.subr.mxu0 %v9449_v54 }
0x1211   :  { %5249 = vmatprep.subr.mxu1 %v9450_v60  ;;  %5161 = vmatpush1.msra.mxu0 %v9451_v14 }
0x1212   :  { %5250 = vmatpush1.msra.mxu1 %v9452_v6  ;;  %5162 = vmatprep.subr.mxu0 %v9453_v17 }
0x1213   :  { %5251 = vmatprep.subr.mxu1 %v9454_v20  ;;  %5163 = vmatpush1.msra.mxu0 %v9455_v33 }
0x1214   :  { %5252 = vmatpush1.msra.mxu1 %v9456_v53  ;;  %5164 = vmatprep.subr.mxu0 %v9457_v39 }
0x1215   :  { %5253 = vmatprep.subr.mxu1 %v9458_v13  ;;  %5165 = vmatpush1.msra.mxu0 %v9459_v18 }
0x1216   :  { %5254 = vmatpush1.msra.mxu1 %v9460_v22  ;;  %5166 = vmatprep.subr.mxu0 %v9461_v43 }
0x1217   :  { %5255 = vmatprep.subr.mxu1 %v9462_v12  ;;  %5167 = vmatpush1.msra.mxu0 %v9463_v16 }
0x1218   :  { %5256 = vmatpush1.msra.mxu1 %v9464_v0  ;;  %5168 = vmatprep.subr.mxu0 %v9465_v46 }
0x1219   :  { %5257 = vmatprep.subr.mxu1 %v9466_v56  ;;  %5169 = vmatpush1.msra.mxu0 %v9467_v44 }
0x121a   :  { %5202 = vmatprep.mubr.f32.mxu0 %v13524_v55  ;;  %5258 = vmatpush1.msra.mxu1 %v9468_v31 }
0x121b   :  { %5291 = vmatprep.mubr.f32.mxu1 %v13524_v55 }
0x12b3   :  { %v8696_v21 = vpop.f32.mrf.mxu0 }
0x12b5   :  { %v8697_v26 = vpop.f32.mrf.mxu0 }
0x12b6   :  { %v8740_v45 = vpop.f32.mrf.mxu1  ;;  %v8698_v58 = vadd.f32 %v8697_v26, %v8696_v21 }
0x12b8   :  { %v8699_v2 = vpop.f32.mrf.mxu0  ;;  %v8741_v50 = vpop.f32.mrf.mxu1 }
0x12b9   :  { %v8742_v41 = vadd.f32 %v8741_v50, %v8740_v45 }
0x12ba   :  { %v8700_v1 = vpop.f32.mrf.mxu0  ;;  %v8743_v38 = vpop.f32.mrf.mxu1 }
0x12bb   :  { %v8701_v51 = vadd.f32 %v8700_v1, %v8699_v2  ;;  %v5074_v10 = vadd.f32 %v8742_v41, %v8698_v58 }
0x12bc   :  { %v8744_v24 = vpop.f32.mrf.mxu1 }
0x12bd   :  { %v8745_v4 = vadd.f32 %v8744_v24, %v8743_v38  ;;  %v8702_v40 = vpop.f32.mrf.mxu0 }
0x12be   :  { %v8746_v9 = vpop.f32.mrf.mxu1 }
0x12bf   :  { %v5079_v19 = vadd.f32 %v8745_v4, %v8701_v51  ;;  %v8703_v29 = vpop.f32.mrf.mxu0 }
0x12c0   :  { %v8747_v32 = vpop.f32.mrf.mxu1  ;;  %v8704_v28 = vadd.f32 %v8703_v29, %v8702_v40 }
0x12c1   :  { %v5092_v37 = vmax.f32 %v5074_v10, %v5079_v19  ;;  %v8705_v36 = vpop.f32.mrf.mxu0  ;;  %v8748_v54 = vadd.f32 %v8747_v32, %v8746_v9 }
0x12c2   :  { %v8749_v42 = vpop.f32.mrf.mxu1 }
0x12c3   :  { %v5093_v25 = vrot.slane %v5092_v37, 4  ;;  %v8706_v60 = vpop.f32.mrf.mxu0  ;;  %v5084_v53 = vadd.f32 %v8748_v54, %v8704_v28 }
0x12c4   :  { %v8707_v14 = vadd.f32 %v8706_v60, %v8705_v36  ;;  %v8750_v6 = vpop.f32.mrf.mxu1 }
0x12c5   :  { %v5094_v17 = vmax.f32 %v5092_v37, %v5093_v25  ;;  %v8751_v20 = vadd.f32 %v8750_v6, %v8749_v42 }
0x12c7   :  { %v5095_v33 = vrot.slane %v5094_v17, 2  ;;  %v5089_v39 = vadd.f32 %v8751_v20, %v8707_v14 }
0x12c9   :  { %v5096_v13 = vmax.f32 %v5094_v17, %v5095_v33  ;;  %v5099_v18 = vmax.f32 %v5084_v53, %v5089_v39 }
0x12cb   :  { %v5097_v22 = vrot.slane %v5096_v13, 1  ;;  %v5100_v43 = vrot.slane %v5099_v18, 4 }
0x12cd   :  { %v5098_v12 = vmax.f32 %v5096_v13, %v5097_v22  ;;  %v5101_v16 = vmax.f32 %v5099_v18, %v5100_v43 }
0x12cf   :  { %v5106_v0 = vsub.f32 %v5074_v10, %v5098_v12  ;;  %v5107_v46 = vsub.f32 %v5079_v19, %v5098_v12  ;;  %v5102_v56 = vrot.slane %v5101_v16, 2 }
0x12d1   :  { %v5110_v44 = vmul.f32 1.442695, %v5106_v0  ;;  %v5112_v31 = vmul.f32 1.442695, %v5107_v46  ;;  %v5103_v21 = vmax.f32 %v5101_v16, %v5102_v56 }
0x12d3   :  { %9193 = vpow2.f32 %v5110_v44  ;;  %v5104_v26 = vrot.slane %v5103_v21, 1 }
0x12d4   :  { %9195 = vpow2.f32 %v5112_v31 }
0x12d5   :  { %v5105_v45 = vmax.f32 %v5103_v21, %v5104_v26 }
0x12d7   :  { %v5108_v2 = vsub.f32 %v5084_v53, %v5105_v45  ;;  %v5109_v50 = vsub.f32 %v5089_v39, %v5105_v45 }
0x12d9   :  { %v5114_v1 = vmul.f32 1.442695, %v5108_v2  ;;  %v5116_v38 = vmul.f32 1.442695, %v5109_v50 }
0x12db   :  { %9197 = vpow2.f32 %v5114_v1 }
0x12dc   :  { %9199 = vpow2.f32 %v5116_v38 }
0x12e0   :  { %v9194_v58 = vpop.eup %9193 }
0x12e1   :  { %v9196_v41 = vpop.eup %9195 }
0x12e2   :  { %v5118_v51 = vadd.f32 %v9196_v41, %v9194_v58 }
0x12e4   :  { %v5119_v24 = vrot.slane %v5118_v51, 4 }
0x12e6   :  { %v5120_v4 = vadd.f32 %v5119_v24, %v5118_v51 }
0x12e8   :  { %v9198_v40 = vpop.eup %9197  ;;  %v5121_v9 = vrot.slane %v5120_v4, 2 }
0x12e9   :  { %v9200_v10 = vpop.eup %9199 }
0x12ea   :  { %v5122_v19 = vadd.f32 %v5121_v9, %v5120_v4  ;;  %v5125_v29 = vadd.f32 %v9200_v10, %v9198_v40  ;;  %v9481_v9 = vld [vmem:[%s13485_s5 + $0x100] sm:$0xff] }
0x12ec   :  { %v5123_v32 = vrot.slane %v5122_v19, 1  ;;  %v5126_v37 = vrot.slane %v5125_v29, 4 }
0x12ee   :  { %v5124_v36 = vadd.f32 %v5123_v32, %v5122_v19  ;;  %v5127_v42 = vadd.f32 %v5126_v37, %v5125_v29  ;;  %v9483_v19 = vld [vmem:[%s13485_s5 + $0x80] sm:$0xff]  ;;  %v9486_v32 = vld [vmem:[%s13485_s5 + $0x1f8] sm:$0xff] }
0x12ef   :  { %v9484_v29 = vld [vmem:[%s13485_s5 + $0x180] sm:$0xff]  ;;  %v9487_v37 = vld [vmem:[%s13485_s5 + $0x78] sm:$0xff] }
0x12f0   :  { %9201 = vrcp.f32 %v5124_v36  ;;  %v5128_v25 = vrot.slane %v5127_v42, 2  ;;  %v9488_v36 = vld [vmem:[%s13485_s5 + $0x178] sm:$0xff] }
0x12f2   :  { %v5129_v28 = vadd.f32 %v5128_v25, %v5127_v42  ;;  %v9489_v42 = vld [vmem:[%s13485_s5 + $0xf0] sm:$0xff] }
0x12f3   :  { %v9490_v25 = vld [vmem:[%s13485_s5 + $0x1f0] sm:$0xff] }
0x12f4   :  { %v5130_v54 = vrot.slane %v5129_v28, 1 }
0x12f6   :  { %v5131_v60 = vadd.f32 %v5130_v54, %v5129_v28  ;;  %v9491_v28 = vld [vmem:[%s13485_s5 + $0x70] sm:$0xff] }
0x12f7   :  { %v9492_v54 = vld [vmem:[%s13485_s5 + $0x170] sm:$0xff] }
0x12f8   :  { %9203 = vrcp.f32 %v5131_v60  ;;  %v9493_v60 = vld [vmem:[%s13485_s5 + $0xe8] sm:$0xff] }
0x12fd   :  { %v9202_v14 = vpop.eup %9201 }
0x12fe   :  { %v5134_v6 = vmul.f32 %v9202_v14, %v9194_v58  ;;  %v5135_v17 = vmul.f32 %v9202_v14, %v9196_v41  ;;  %v9494_v14 = vld [vmem:[%s13485_s5 + $0x1e8] sm:$0xff] }
0x1300   :  { %5203 = vmatmul.mubr.f32.vlgmr.msra.gmra.mxu0 %v5134_v6  ;;  %5292 = vmatmul.mubr.f32.vlgmr.msra.gmra.mxu1 %v5134_v6  ;;  %v9495_v6 = vld [vmem:[%s13485_s5 + $0x68] sm:$0xff] }
0x1301   :  { %5208 = vmatprep.mubr.f32.mxu0 %v13524_v55  ;;  %5297 = vmatprep.mubr.f32.mxu1 %v13524_v55 }
0x1304   :  { %5209 = vmatmul.mubr.f32.gmra.mxu0 %v5135_v17  ;;  %5298 = vmatmul.mubr.f32.gmra.mxu1 %v5135_v17  ;;  %v9496_v17 = vld [vmem:[%s13485_s5 + $0x168] sm:$0xff] }
0x1305   :  { %v9204_v20 = vpop.eup %9203  ;;  %5214 = vmatprep.mubr.f32.mxu0 %v13524_v55  ;;  %5303 = vmatprep.mubr.f32.mxu1 %v13524_v55 }
0x1306   :  { %v5136_v33 = vmul.f32 %v9204_v20, %v9198_v40  ;;  %v5137_v53 = vmul.f32 %v9204_v20, %v9200_v10  ;;  %v9479_v40 = vld [vmem:[%s13485_s5 + $0x88] sm:$0xff]  ;;  %v9482_v10 = vld [vmem:[%s13485_s5 + $0x200] sm:$0xff] }
0x1307   :  { %v9497_v20 = vld [vmem:[%s13485_s5 + $0xe0] sm:$0xff] }
0x1308   :  { %5215 = vmatmul.mubr.f32.gmra.mxu0 %v5136_v33  ;;  %5304 = vmatmul.mubr.f32.gmra.mxu1 %v5136_v33  ;;  %v9498_v33 = vld [vmem:[%s13485_s5 + $0x1e0] sm:$0xff] }
0x1309   :  { %5220 = vmatprep.mubr.f32.mxu0 %v13524_v55  ;;  %5309 = vmatprep.mubr.f32.mxu1 %v13524_v55 }
0x130c   :  { %5221 = vmatmul.mubr.f32.gmra.mxu0 %v5137_v53  ;;  %5310 = vmatmul.mubr.f32.gmra.mxu1 %v5137_v53  ;;  %v9499_v53 = vld [vmem:[%s13485_s5 + $0x60] sm:$0xff] }
0x130d   :  { %5396 = vmatprep.mubr.f32.mxu0 %v13524_v55  ;;  %5485 = vmatprep.mubr.f32.mxu1 %v13524_v55 }
0x13c0   :  { %v5204_v39 = vpop.f32.mrf.mxu0  ;;  %v5293_v13 = vpop.f32.mrf.mxu1 }
0x13c2   :  { %v5206_v18 = vpop.f32.mrf.mxu0  ;;  %v5295_v22 = vpop.f32.mrf.mxu1 }
0x13c4   :  { %v5210_v43 = vpop.f32.mrf.mxu0  ;;  %v5299_v12 = vpop.f32.mrf.mxu1 }
0x13c6   :  { %v5212_v16 = vpop.f32.mrf.mxu0  ;;  %v5301_v0 = vpop.f32.mrf.mxu1 }
0x13c8   :  { %v5216_v46 = vpop.f32.mrf.mxu0  ;;  %v5305_v56 = vpop.f32.mrf.mxu1 }
0x13c9   :  { %v5324_v24 = vmul.f32 %v5216_v46, %v12180_v57  ;;  %v5326_v4 = vmul.f32 %v5305_v56, %v12183_v15  ;;  %v5319_v57 = vmul.f32 %v5295_v22, %v12163_v5  ;;  %v5316_v15 = vmul.f32 %v5204_v39, %v12154_v35  ;;  %v9469_v35 = vld [vmem:[%s13485_s5 + $0x118] sm:$0xff]  ;;  %v9473_v5 = vld [vmem:[%s13485_s5 + $0x110] sm:$0xff]  ;;  %v9500_v39 = vld [vmem:[%s13485_s5 + $0x160] sm:$0xff] }
0x13ca   :  { %v5218_v44 = vpop.f32.mrf.mxu0  ;;  %v5307_v31 = vpop.f32.mrf.mxu1  ;;  %v9503_v22 = vld [vmem:[%s13485_s5 + $0x58] sm:$0xff]  ;;  %v9508_v46 = vld [vmem:[%s13485_s5 + $0x150] sm:$0xff]  ;;  %v9509_v56 = vld [vmem:[%s13485_s5 + $0xc8] sm:$0xff] }
0x13cb   :  { %v5325_v41 = vmul.f32 %v5218_v44, %v12188_v23  ;;  %v5327_v51 = vmul.f32 %v5307_v31, %v12191_v49  ;;  %v5322_v23 = vmul.f32 %v5299_v12, %v12169_v52  ;;  %v5317_v49 = vmul.f32 %v5206_v18, %v12160_v8  ;;  %v9471_v8 = vld [vmem:[%s13485_s5 + $0x98] sm:$0xff]  ;;  %v9475_v52 = vld [vmem:[%s13485_s5 + $0x90] sm:$0xff]  ;;  %v9510_v44 = vld [vmem:[%s13485_s5 + $0x1c8] sm:$0xff] }
0x13cc   :  { %v5222_v21 = vpop.f32.mrf.mxu0  ;;  %v5311_v26 = vpop.f32.mrf.mxu1  ;;  %v9502_v18 = vld [vmem:[%s13485_s5 + $0x1d8] sm:$0xff]  ;;  %v9505_v12 = vld [vmem:[%s13485_s5 + $0xd0] sm:$0xff]  ;;  %v9511_v31 = vld [vmem:[%s13485_s5 + $0x48] sm:$0xff] }
0x13cd   :  { %v5328_v38 = vmul.f32 %v5222_v21, %v12194_v47  ;;  %v5330_v58 = vmul.f32 %v5311_v26, %v12197_v48  ;;  %v5320_v47 = vmul.f32 %v5210_v43, %v12166_v34  ;;  %v9474_v34 = vld [vmem:[%s13485_s5 + $0x210] sm:$0xff]  ;;  %v9478_v48 = vld [vmem:[%s13485_s5 + $0x208] sm:$0xff]  ;;  %v9504_v43 = vld [vmem:[%s13485_s5 + $0x158] sm:$0xff] }
0x13ce   :  { %v5224_v45 = vpop.f32.mrf.mxu0  ;;  %v5313_v2 = vpop.f32.mrf.mxu1  ;;  %v9512_v21 = vld [vmem:[%s13485_s5 + $0x148] sm:$0xff]  ;;  %v9513_v26 = vld [vmem:[%s13485_s5 + $0xc0] sm:$0xff] }
0x13cf   :  { %v5329_v50 = vmul.f32 %v5224_v45, %v12200_v7  ;;  %v5331_v1 = vmul.f32 %v5313_v2, %v12203_v59  ;;  %v5321_v7 = vmul.f32 %v5212_v16, %v12174_v3  ;;  %v5323_v59 = vmul.f32 %v5301_v0, %v12177_v61  ;;  %v9477_v61 = vld [vmem:[%s13485_s5 + $0x108] sm:$0xff]  ;;  %v9506_v16 = vld [vmem:[%s13485_s5 + $0x1d0] sm:$0xff]  ;;  %v9514_v45 = vld [vmem:[%s13485_s5 + $0x1c0] sm:$0xff] }
0x13d0   :  { %v5318_v3 = vmul.f32 %v5293_v13, %v12157_v27  ;;  %v9470_v27 = vld [vmem:[%s13485_s5 + $0x218] sm:$0xff]  ;;  %v9507_v0 = vld [vmem:[%s13485_s5 + $0x50] sm:$0xff]  ;;  %v9515_v2 = vld [vmem:[%s13485_s5 + $0x40] sm:$0xff] }
0x13d1   :  { %5356 = vmatprep.subr.mxu0 %v5329_v50  ;;  %5445 = vmatprep.subr.mxu1 %v5331_v1  ;;  %v9501_v13 = vld [vmem:[%s13485_s5 + $0xd8] sm:$0xff]  ;;  %v9516_v50 = vld [vmem:[%s13485_s5 + $0x140] sm:$0xff] }
0x13d2   :  { %5357 = vmatpush1.msra.mxu0 %v5328_v38  ;;  %5446 = vmatpush1.msra.mxu1 %v5330_v58  ;;  %v9517_v1 = vld [vmem:[%s13485_s5 + $0xb8] sm:$0xff] }
0x13d3   :  { %5358 = vmatprep.subr.mxu0 %v5325_v41  ;;  %5447 = vmatprep.subr.mxu1 %v5327_v51  ;;  %v9518_v38 = vld [vmem:[%s13485_s5 + $0x1b8] sm:$0xff]  ;;  %v9521_v51 = vld [vmem:[%s13485_s5 + $0xb0] sm:$0xff] }
0x13d4   :  { %5359 = vmatpush1.msra.mxu0 %v5324_v24  ;;  %5448 = vmatpush1.msra.mxu1 %v5326_v4  ;;  %v9519_v58 = vld [vmem:[%s13485_s5 + $0x38] sm:$0xff]  ;;  %v9522_v24 = vld [vmem:[%s13485_s5 + $0x1b0] sm:$0xff] }
0x13d5   :  { %5360 = vmatprep.subr.mxu0 %v5321_v7  ;;  %5449 = vmatprep.subr.mxu1 %v5323_v59  ;;  %v9520_v41 = vld [vmem:[%s13485_s5 + $0x138] sm:$0xff]  ;;  %v9523_v4 = vld [vmem:[%s13485_s5 + $0x30] sm:$0xff]  ;;  %v9525_v59 = vld [vmem:[%s13485_s5 + $0xa8] sm:$0xff] }
0x13d6   :  { %5361 = vmatpush1.msra.mxu0 %v5320_v47  ;;  %5450 = vmatpush1.msra.mxu1 %v5322_v23  ;;  %v9524_v7 = vld [vmem:[%s13485_s5 + $0x130] sm:$0xff]  ;;  %v9526_v47 = vld [vmem:[%s13485_s5 + $0x1a8] sm:$0xff] }
0x13d7   :  { %5362 = vmatprep.subr.mxu0 %v5317_v49  ;;  %5451 = vmatprep.subr.mxu1 %v5319_v57  ;;  %v9527_v23 = vld [vmem:[%s13485_s5 + $0x28] sm:$0xff]  ;;  %v9529_v57 = vld [vmem:[%s13485_s5 + $0xa0] sm:$0xff] }
0x13d8   :  { %5363 = vmatpush1.msra.mxu0 %v5316_v15  ;;  %5452 = vmatpush1.msra.mxu1 %v5318_v3  ;;  %v9528_v49 = vld [vmem:[%s13485_s5 + $0x128] sm:$0xff]  ;;  %v9530_v15 = vld [vmem:[%s13485_s5 + $0x1a0] sm:$0xff] }
0x13d9   :  { %8113 = vmatmul.mubr.msk.f32.vlgmr.msra.gmra.mxu0 %vm320_vm1, %v11916_v11  ;;  %8117 = vmatmul.mubr.msk.f32.vlgmr.msra.gmra.mxu1 %vm320_vm1, %v11916_v11  ;;  %v9472_v11 = vld [vmem:[%s13485_s5 + $0x198] sm:$0xff]  ;;  %v9531_v3 = vld [vmem:[%s13485_s5 + $0x20] sm:$0xff] }
0x13da   :  { %5402 = vmatprep.mubr.f32.mxu0 %v13524_v55  ;;  %5491 = vmatprep.mubr.f32.mxu1 %v13524_v55 }
0x13db   :  { %8752 = vmatprep.subr.mxu0 %v9469_v35  ;;  %8796 = vmatprep.subr.mxu1 %v9470_v27  ;;  %v9532_v35 = vld [vmem:[%s13485_s5 + $0x120] sm:$0xff] }
0x13dc   :  { %8753 = vmatpush3.msra.mxu0 %v9471_v8  ;;  %8797 = vmatpush3.msra.mxu1 %v9472_v11  ;;  %v12482_v11 = vld [vmem:[#allocation4 + $0x10] sm:$0xff] }
0x13dd   :  { %8114 = vmatmul.mubr.msk.f32.gmra.mxu0 %vm320_vm1, %v11939_v63  ;;  %8118 = vmatmul.mubr.msk.f32.gmra.mxu1 %vm320_vm1, %v11939_v63  ;;  %v9476_v63 = vld [vmem:[%s13485_s5 + $0x190] sm:$0xff] }
0x13de   :  { %5408 = vmatprep.mubr.f32.mxu0 %v13524_v55  ;;  %5497 = vmatprep.mubr.f32.mxu1 %v13524_v55 }
0x13df   :  { %8754 = vmatprep.subr.mxu0 %v9473_v5  ;;  %8798 = vmatprep.subr.mxu1 %v9474_v34 }
0x13e0   :  { %8755 = vmatpush3.msra.mxu0 %v9475_v52  ;;  %8799 = vmatpush3.msra.mxu1 %v9476_v63  ;;  %v12485_v63 = vld [vmem:[#allocation4 + $0x8] sm:$0xff] }
0x13e1   :  { %8115 = vmatmul.mubr.msk.f32.gmra.mxu0 %vm320_vm1, %v11962_v62  ;;  %8119 = vmatmul.mubr.msk.f32.gmra.mxu1 %vm320_vm1, %v11962_v62  ;;  %v9480_v62 = vld [vmem:[%s13485_s5 + $0x188] sm:$0xff] }
0x13e2   :  { %5414 = vmatprep.mubr.f32.mxu0 %v13524_v55  ;;  %5503 = vmatprep.mubr.f32.mxu1 %v13524_v55 }
0x13e3   :  { %8756 = vmatprep.subr.mxu0 %v9477_v61  ;;  %8800 = vmatprep.subr.mxu1 %v9478_v48  ;;  %v12488_v48 = vld [vmem:[#allocation4 + $0x18] sm:$0xff] }
0x13e4   :  { %8757 = vmatpush3.msra.mxu0 %v9479_v40  ;;  %8801 = vmatpush3.msra.mxu1 %v9480_v62  ;;  %v12491_v62 = vld [vmem:[#allocation4] sm:$0xff] }
0x13e5   :  { %8116 = vmatmul.mubr.msk.f32.gmra.mxu0 %vm320_vm1, %v11991_v30  ;;  %8120 = vmatmul.mubr.msk.f32.gmra.mxu1 %vm320_vm1, %v11991_v30  ;;  %v9485_v30 = vld [vmem:[%s13485_s5 + $0xf8] sm:$0xff] }
0x13e6   :  { %8758 = vmatprep.subr.mxu0 %v9481_v9  ;;  %8802 = vmatprep.subr.mxu1 %v9482_v10 }
0x13e7   :  { %8759 = vmatpush3.msra.mxu0 %v9483_v19  ;;  %8803 = vmatpush3.msra.mxu1 %v9484_v29  ;;  %v12494_v29 = vld [vmem:[#allocation4 + $0x30] sm:$0xff] }
0x13e8   :  { %8760 = vmatprep.subr.mxu0 %v9485_v30  ;;  %8804 = vmatprep.subr.mxu1 %v9486_v32 }
0x13e9   :  { %8761 = vmatpush3.msra.mxu0 %v9487_v37  ;;  %8805 = vmatpush3.msra.mxu1 %v9488_v36  ;;  %v12497_v36 = vld [vmem:[#allocation4 + $0x28] sm:$0xff] }
0x13ea   :  { %8762 = vmatprep.subr.mxu0 %v9489_v42  ;;  %8806 = vmatprep.subr.mxu1 %v9490_v25  ;;  %v12500_v25 = vld [vmem:[#allocation4 + $0x38] sm:$0xff] }
0x13eb   :  { %8763 = vmatpush3.msra.mxu0 %v9491_v28  ;;  %8807 = vmatpush3.msra.mxu1 %v9492_v54  ;;  %v12503_v54 = vld [vmem:[#allocation4 + $0x20] sm:$0xff] }
0x13ec   :  { %8764 = vmatprep.subr.mxu0 %v9493_v60  ;;  %8808 = vmatprep.subr.mxu1 %v9494_v14 }
0x13ed   :  { %8765 = vmatpush3.msra.mxu0 %v9495_v6  ;;  %8809 = vmatpush3.msra.mxu1 %v9496_v17  ;;  %v12506_v17 = vld [vmem:[#allocation4 + $0x50] sm:$0xff] }
0x13ee   :  { %8766 = vmatprep.subr.mxu0 %v9497_v20  ;;  %8810 = vmatprep.subr.mxu1 %v9498_v33 }
0x13ef   :  { %8767 = vmatpush3.msra.mxu0 %v9499_v53  ;;  %8811 = vmatpush3.msra.mxu1 %v9500_v39  ;;  %v12509_v39 = vld [vmem:[#allocation4 + $0x48] sm:$0xff] }
0x13f0   :  { %8768 = vmatprep.subr.mxu0 %v9501_v13  ;;  %8812 = vmatprep.subr.mxu1 %v9502_v18  ;;  %v12512_v18 = vld [vmem:[#allocation4 + $0x58] sm:$0xff] }
0x13f1   :  { %8769 = vmatpush3.msra.mxu0 %v9503_v22  ;;  %8813 = vmatpush3.msra.mxu1 %v9504_v43  ;;  %v12515_v43 = vld [vmem:[#allocation4 + $0x40] sm:$0xff] }
0x13f2   :  { %8770 = vmatprep.subr.mxu0 %v9505_v12  ;;  %8814 = vmatprep.subr.mxu1 %v9506_v16 }
0x13f3   :  { %8771 = vmatpush3.msra.mxu0 %v9507_v0  ;;  %8815 = vmatpush3.msra.mxu1 %v9508_v46  ;;  %v12518_v46 = vld [vmem:[#allocation4 + $0x70] sm:$0xff] }
0x13f4   :  { %8772 = vmatprep.subr.mxu0 %v9509_v56  ;;  %8816 = vmatprep.subr.mxu1 %v9510_v44 }
0x13f5   :  { %8773 = vmatpush3.msra.mxu0 %v9511_v31  ;;  %8817 = vmatpush3.msra.mxu1 %v9512_v21  ;;  %v12521_v21 = vld [vmem:[#allocation4 + $0x68] sm:$0xff] }
0x13f6   :  { %8774 = vmatprep.subr.mxu0 %v9513_v26  ;;  %8818 = vmatprep.subr.mxu1 %v9514_v45  ;;  %v12524_v45 = vld [vmem:[#allocation4 + $0x78] sm:$0xff] }
0x13f7   :  { %8775 = vmatpush3.msra.mxu0 %v9515_v2  ;;  %8819 = vmatpush3.msra.mxu1 %v9516_v50  ;;  %v12527_v50 = vld [vmem:[#allocation4 + $0x60] sm:$0xff] }
0x13f8   :  { %8776 = vmatprep.subr.mxu0 %v9517_v1  ;;  %8820 = vmatprep.subr.mxu1 %v9518_v38  ;;  %v8015_v38 = vld [vmem:[%s13487_s7 + $0x68] sm:$0xff] }
0x13f9   :  { %8777 = vmatpush3.msra.mxu0 %v9519_v58  ;;  %8821 = vmatpush3.msra.mxu1 %v9520_v41  ;;  %v8014_v58 = vld [vmem:[%s13487_s7 + $0x60] sm:$0xff]  ;;  %v8013_v41 = vld [vmem:[%s13487_s7 + $0x58] sm:$0xff] }
0x13fa   :  { %8778 = vmatprep.subr.mxu0 %v9521_v51  ;;  %8822 = vmatprep.subr.mxu1 %v9522_v24  ;;  %v8012_v51 = vld [vmem:[%s13487_s7 + $0x50] sm:$0xff] }
0x13fb   :  { %8779 = vmatpush3.msra.mxu0 %v9523_v4  ;;  %8823 = vmatpush3.msra.mxu1 %v9524_v7  ;;  %v12546_v24 = vld [vmem:[%s13487_s7 + $0x70] sm:$0xf] }
0x13fc   :  { %8780 = vmatprep.subr.mxu0 %v9525_v59  ;;  %8824 = vmatprep.subr.mxu1 %v9526_v47  ;;  %v13566_v59 = vld [vmem:[#allocation8_spill] sm:$0xff] }
0x13fd   :  { %8781 = vmatpush3.msra.mxu0 %v9527_v23  ;;  %8825 = vmatpush3.msra.mxu1 %v9528_v49  ;;  %v5529_v47 = vrot.slane %v12546_v24, %v13566_v59 }
0x13fe   :  { %8782 = vmatprep.subr.mxu0 %v9529_v57  ;;  %8826 = vmatprep.subr.mxu1 %v9530_v15 }
0x13ff   :  { %8783 = vmatpush3.msra.mxu0 %v9531_v3  ;;  %8827 = vmatpush3.msra.mxu1 %v9532_v35 }
0x1400   :  { %9090 = vmatprep.subr.mxu0 %v8015_v38 }
0x1499   :  { %v5398_v27 = vpop.f32.mrf.mxu0  ;;  %v5487_v8 = vpop.f32.mrf.mxu1 }
0x149a   :  { %v5512_v5 = vmul.f32 %v12482_v11, %v5487_v8  ;;  %v5510_v9 = vmul.f32 %v12491_v62, %v5398_v27 }
0x149b   :  { %v5400_v34 = vpop.f32.mrf.mxu0  ;;  %v5489_v52 = vpop.f32.mrf.mxu1 }
0x149c   :  { %v5511_v61 = vmul.f32 %v12485_v63, %v5400_v34  ;;  %v5513_v40 = vmul.f32 %v12488_v48, %v5489_v52 }
0x149d   :  { %v5404_v10 = vpop.f32.mrf.mxu0  ;;  %v5493_v19 = vpop.f32.mrf.mxu1 }
0x149e   :  { %5594 = vmatprep.mubr.f32.mxu0 %v5511_v61  ;;  %5679 = vmatprep.mubr.f32.mxu1 %v5513_v40  ;;  %v5516_v30 = vmul.f32 %v12494_v29, %v5493_v19  ;;  %v5514_v60 = vmul.f32 %v12503_v54, %v5404_v10 }
0x149f   :  { %v5406_v32 = vpop.f32.mrf.mxu0  ;;  %v5495_v37 = vpop.f32.mrf.mxu1  ;;  %5595 = vmatmul.mubr.f32.vlgmr.msra.gmra.mxu0 %v5510_v9  ;;  %5680 = vmatmul.mubr.f32.vlgmr.msra.gmra.mxu1 %v5512_v5 }
0x14a0   :  { %v5515_v42 = vmul.f32 %v12497_v36, %v5406_v32  ;;  %v5517_v28 = vmul.f32 %v12500_v25, %v5495_v37  ;;  %9091 = vmatpush3.msra.mxu0 %v8015_v38 }
0x14a1   :  { %v5410_v14 = vpop.f32.mrf.mxu0  ;;  %v5499_v6 = vpop.f32.mrf.mxu1  ;;  %9092 = vmatprep.subr.mxu0 %v8014_v58 }
0x14a2   :  { %5599 = vmatprep.mubr.f32.mxu0 %v5515_v42  ;;  %5684 = vmatprep.mubr.f32.mxu1 %v5517_v28  ;;  %v5520_v20 = vmul.f32 %v12506_v17, %v5499_v6  ;;  %v5518_v12 = vmul.f32 %v12515_v43, %v5410_v14 }
0x14a3   :  { %v5412_v33 = vpop.f32.mrf.mxu0  ;;  %v5501_v53 = vpop.f32.mrf.mxu1  ;;  %5600 = vmatmul.mubr.f32.gmra.mxu0 %v5514_v60  ;;  %5685 = vmatmul.mubr.f32.gmra.mxu1 %v5516_v30 }
0x14a4   :  { %v5519_v13 = vmul.f32 %v12509_v39, %v5412_v33  ;;  %v5521_v22 = vmul.f32 %v12512_v18, %v5501_v53  ;;  %9093 = vmatpush3.msra.mxu0 %v8014_v58 }
0x14a5   :  { %v5416_v16 = vpop.f32.mrf.mxu0  ;;  %v5505_v0 = vpop.f32.mrf.mxu1  ;;  %9094 = vmatprep.subr.mxu0 %v8013_v41 }
0x14a6   :  { %5604 = vmatprep.mubr.f32.mxu0 %v5519_v13  ;;  %5689 = vmatprep.mubr.f32.mxu1 %v5521_v22  ;;  %v5524_v56 = vmul.f32 %v12518_v46, %v5505_v0  ;;  %v5522_v1 = vmul.f32 %v12527_v50, %v5416_v16  ;;  %v13567_v16 = vld [vmem:[#allocation9_spill] sm:$0xff] }
0x14a7   :  { %v5418_v44 = vpop.f32.mrf.mxu0  ;;  %v5507_v31 = vpop.f32.mrf.mxu1  ;;  %5605 = vmatmul.mubr.f32.gmra.mxu0 %v5518_v12  ;;  %5690 = vmatmul.mubr.f32.gmra.mxu1 %v5520_v20  ;;  %v5703_v0 = vrot.slane %v12546_v24, %v13567_v16 }
0x14a8   :  { %v5523_v26 = vmul.f32 %v12521_v21, %v5418_v44  ;;  %v5525_v2 = vmul.f32 %v12524_v45, %v5507_v31  ;;  %9095 = vmatpush3.msra.mxu0 %v8013_v41 }
0x14a9   :  { %9096 = vmatprep.subr.mxu0 %v8012_v51 }
0x14aa   :  { %5609 = vmatprep.mubr.f32.mxu0 %v5523_v26  ;;  %5694 = vmatprep.mubr.f32.mxu1 %v5525_v2 }
0x14ab   :  { %5610 = vmatmul.mubr.f32.gmra.mxu0 %v5522_v1  ;;  %5695 = vmatmul.mubr.f32.gmra.mxu1 %v5524_v56 }
0x14ac   :  { %6040 = vmatprep.mubr.f32.mxu1 %v13524_v55  ;;  %9097 = vmatpush3.msra.mxu0 %v8012_v51 }
0x155f   :  { %v8784_v4 = vpop.f32.mrf.mxu0  ;;  %v8828_v7 = vpop.f32.mrf.mxu1 }
0x1561   :  { %v8785_v23 = vpop.f32.mrf.mxu0  ;;  %v8829_v49 = vpop.f32.mrf.mxu1 }
0x1562   :  { %v8786_v57 = vadd.f32 %v8785_v23, %v8784_v4  ;;  %v8830_v27 = vadd.f32 %v8829_v49, %v8828_v7 }
0x1563   :  { %v8787_v15 = vpop.f32.mrf.mxu0  ;;  %v8831_v3 = vpop.f32.mrf.mxu1 }
0x1564   :  { %v5597_v35 = vadd.f32 %v8786_v57, %v5529_v47 }
0x1565   :  { %v8788_v8 = vpop.f32.mrf.mxu0  ;;  %v8832_v5 = vpop.f32.mrf.mxu1 }
0x1566   :  { %v5682_v34 = vadd.f32 %v8830_v27, %v5597_v35  ;;  %v8789_v52 = vadd.f32 %v8788_v8, %v8787_v15  ;;  %v8833_v10 = vadd.f32 %v8832_v5, %v8831_v3  ;;  %v8150_v8 = vld [vmem:[%s13482_s2 + $0x488] sm:$0xff]  ;;  %v8152_v5 = vld [vmem:[%s13482_s2 + $0x498] sm:$0xff] }
0x1567   :  { %v8790_v61 = vpop.f32.mrf.mxu0  ;;  %v8834_v40 = vpop.f32.mrf.mxu1  ;;  %6000 = vmatprep.subr.mxu1 %v8150_v8  ;;  %6089 = vmatprep.subr.mxu0 %v8152_v5 }
0x1568   :  { %v5602_v9 = vadd.f32 %v8789_v52, %v5529_v47  ;;  %9098 = vmatprep.mubr.msk.f32.mxu0 %vm320_vm1, %v5682_v34  ;;  %v8149_v34 = vld [vmem:[%s13482_s2 + $0x480] sm:$0xff]  ;;  %v8151_v52 = vld [vmem:[%s13482_s2 + $0x490] sm:$0xff] }
0x1569   :  { %v8791_v19 = vpop.f32.mrf.mxu0  ;;  %v8835_v30 = vpop.f32.mrf.mxu1  ;;  %6001 = vmatpush1.msra.mxu1 %v8149_v34 }
0x156a   :  { %v5687_v32 = vadd.f32 %v8833_v10, %v5602_v9  ;;  %v8792_v37 = vadd.f32 %v8791_v19, %v8790_v61  ;;  %v8836_v14 = vadd.f32 %v8835_v30, %v8834_v40  ;;  %v8142_v61 = vld [vmem:[%s13482_s2 + $0x448] sm:$0xff]  ;;  %v8144_v40 = vld [vmem:[%s13482_s2 + $0x458] sm:$0xff]  ;;  %v8141_v9 = vld [vmem:[%s13482_s2 + $0x440] sm:$0xff] }
0x156b   :  { %v8793_v42 = vpop.f32.mrf.mxu0  ;;  %v8837_v28 = vpop.f32.mrf.mxu1  ;;  %6002 = vmatprep.subr.mxu1 %v8142_v61  ;;  %v8143_v10 = vld [vmem:[%s13482_s2 + $0x450] sm:$0xff]  ;;  %v8134_v19 = vld [vmem:[%s13482_s2 + $0x408] sm:$0xff]  ;;  %v8136_v30 = vld [vmem:[%s13482_s2 + $0x418] sm:$0xff] }
0x156c   :  { %v5607_v60 = vadd.f32 %v8792_v37, %v5529_v47  ;;  %9099 = vmatmul.mubr.msk.f32.vlgmr.msra.gmra.mxu0 %vm320_vm1, %v5687_v32  ;;  %6003 = vmatpush1.msra.mxu1 %v8141_v9  ;;  %v8133_v32 = vld [vmem:[%s13482_s2 + $0x400] sm:$0xff]  ;;  %v8135_v37 = vld [vmem:[%s13482_s2 + $0x410] sm:$0xff] }
0x156d   :  { %v8794_v6 = vpop.f32.mrf.mxu0  ;;  %v8838_v20 = vpop.f32.mrf.mxu1  ;;  %6090 = vmatpush1.msra.mxu0 %v8151_v52  ;;  %6004 = vmatprep.subr.mxu1 %v8134_v19  ;;  %v13568_v9 = vld [vmem:[#allocation10_spill] sm:$0xff] }
0x156e   :  { %v5692_v33 = vadd.f32 %v8836_v14, %v5607_v60  ;;  %v8795_v53 = vadd.f32 %v8794_v6, %v8793_v42  ;;  %v8839_v22 = vadd.f32 %v8838_v20, %v8837_v28  ;;  %6091 = vmatprep.subr.mxu0 %v8144_v40  ;;  %6005 = vmatpush1.msra.mxu1 %v8133_v32  ;;  %v8126_v42 = vld [vmem:[%s13482_s2 + $0x3c8] sm:$0xff]  ;;  %v8128_v28 = vld [vmem:[%s13482_s2 + $0x3d8] sm:$0xff]  ;;  %v8125_v60 = vld [vmem:[%s13482_s2 + $0x3c0] sm:$0xff] }
0x156f   :  { %6092 = vmatpush1.msra.mxu0 %v8143_v10  ;;  %6006 = vmatprep.subr.mxu1 %v8126_v42  ;;  %v8127_v14 = vld [vmem:[%s13482_s2 + $0x3d0] sm:$0xff]  ;;  %v8154_v6 = vld [vmem:[%s13482_s2 + $0x4a8] sm:$0xff]  ;;  %v8156_v20 = vld [vmem:[%s13482_s2 + $0x4b8] sm:$0xff]  ;;  %v5864_v10 = vrot.slane %v12546_v24, %v13568_v9 }
0x1570   :  { %v5612_v13 = vadd.f32 %v8795_v53, %v5529_v47  ;;  %9101 = vmatprep.mubr.msk.f32.mxu0 %vm320_vm1, %v5692_v33  ;;  %6093 = vmatprep.subr.mxu0 %v8136_v30  ;;  %v13569_v32 = vld [vmem:[#allocation11_spill] sm:$0xff] }
0x1571   :  { %6094 = vmatpush1.msra.mxu0 %v8135_v37  ;;  %6007 = vmatpush1.msra.mxu1 %v8125_v60  ;;  %v5872_v37 = vrot.slane %v12546_v24, %v13569_v32  ;;  %v8153_v24 = vld [vmem:[%s13482_s2 + $0x4a0] sm:$0xff] }
0x1572   :  { %v5697_v12 = vadd.f32 %v8839_v22, %v5612_v13  ;;  %6095 = vmatprep.subr.mxu0 %v8128_v28  ;;  %6178 = vmatprep.subr.mxu1 %v8154_v6 }
0x1573   :  { %6096 = vmatpush1.msra.mxu0 %v8127_v14 }
0x1574   :  { %9102 = vmatmul.mubr.msk.f32.gmra.mxu0 %vm320_vm1, %v5697_v12  ;;  %6267 = vmatprep.subr.mxu0 %v8156_v20 }
0x1575   :  { %6129 = vmatprep.mubr.f32.mxu0 %v13524_v55 }
0x162c   :  { %v9100_v56 = vpop.f32.mrf.mxu0 }
0x162d   :  { %v12557_v31 = vadd.f32 %v9100_v56, %v5703_v0 }
0x162e   :  { %v5782_v44 = vpop.f32.mrf.mxu0 }
0x162f   :  { %v12559_v26 = vadd.f32 %v5782_v44, %v5703_v0  ;;  %v5818_v58 = vmul.f32 %v12557_v31, %v12557_v31  ;;  %v5804_v51 = vsel %vm320_vm1, %v12557_v31, 0.0 }
0x1631   :  { %v5801_v2 = vsel %vm320_vm1, %v12559_v26, 0.0  ;;  %v5817_v1 = vmul.f32 %v12559_v26, %v12559_v26  ;;  %v5824_v23 = vsel %vm320_vm1, %v5818_v58, 0.0 }
0x1632   :  { %5802 = vadd.xlane.f32.xlu0 %v5801_v2 }
0x1633   :  { %v5821_v38 = vsel %vm320_vm1, %v5817_v1, 0.0 }
0x1634   :  { %5822 = vadd.xlane.f32.xlu1 %v5821_v38  ;;  %v9103_v41 = vpop.f32.mrf.mxu0 }
0x1635   :  { %v12570_v7 = vadd.f32 %v9103_v41, %v5703_v0 }
0x1636   :  { %5805 = vadd.xlane.f32.xlu0 %v5804_v51  ;;  %v5792_v4 = vpop.f32.mrf.mxu0 }
0x1637   :  { %v12572_v47 = vadd.f32 %v5792_v4, %v5703_v0  ;;  %v5820_v3 = vmul.f32 %v12570_v7, %v12570_v7  ;;  %v5810_v35 = vsel %vm320_vm1, %v12570_v7, 0.0 }
0x1638   :  { %5825 = vadd.xlane.f32.xlu1 %v5824_v23 }
0x1639   :  { %v5807_v49 = vsel %vm320_vm1, %v12572_v47, 0.0  ;;  %v5819_v57 = vmul.f32 %v12572_v47, %v12572_v47  ;;  %v5830_v27 = vsel %vm320_vm1, %v5820_v3, 0.0 }
0x163a   :  { %5808 = vadd.xlane.f32.xlu0 %v5807_v49 }
0x163b   :  { %v5827_v15 = vsel %vm320_vm1, %v5819_v57, 0.0 }
0x163c   :  { %5828 = vadd.xlane.f32.xlu1 %v5827_v15 }
0x163e   :  { %5811 = vadd.xlane.f32.xlu0 %v5810_v35 }
0x1640   :  { %5831 = vadd.xlane.f32.xlu1 %v5830_v27 }
0x16bb   :  { %v5803_v33 = vpop.xlane.xlu0 %5802 }
0x16bc   :  { %v5813_v53 = vmul.f32 0.03125, %v5803_v33 }
0x16bd   :  { %v5823_v13 = vpop.xlane.xlu1 %5822 }
0x16be   :  { %v5837_v22 = vmul.f32 %v5813_v53, %v5813_v53  ;;  %v5833_v12 = vmul.f32 0.03125, %v5823_v13  ;;  %v5845_v19 = vsub.f32 %v12559_v26, %v5813_v53 }
0x16bf   :  { %v5806_v0 = vpop.xlane.xlu0 %5805 }
0x16c0   :  { %v5841_v56 = vsub.f32 %v5833_v12, %v5837_v22  ;;  %v5814_v44 = vmul.f32 0.03125, %v5806_v0 }
0x16c1   :  { %v5826_v2 = vpop.xlane.xlu1 %5825 }
0x16c2   :  { %v5849_v1 = vadd.f32 1e-05, %v5841_v56  ;;  %v5838_v38 = vmul.f32 %v5814_v44, %v5814_v44  ;;  %v5834_v58 = vmul.f32 0.03125, %v5826_v2  ;;  %v5846_v60 = vsub.f32 %v12557_v31, %v5814_v44  ;;  %v13570_v56 = vld [vmem:[#allocation16_spill] sm:$0xff]  ;;  %v8155_v31 = vld [vmem:[%s13482_s2 + $0x4b0] sm:$0xff] }
0x16c3   :  { %v5809_v41 = vpop.xlane.xlu0 %5808 }
0x16c4   :  { %9205 = vrsqrt.f32 %v5849_v1  ;;  %v5842_v51 = vsub.f32 %v5834_v58, %v5838_v38  ;;  %v5815_v4 = vmul.f32 0.03125, %v5809_v41  ;;  %v8146_v1 = vld [vmem:[%s13482_s2 + $0x468] sm:$0xff]  ;;  %v8148_v38 = vld [vmem:[%s13482_s2 + $0x478] sm:$0xff] }
0x16c5   :  { %v5829_v23 = vpop.xlane.xlu1 %5828  ;;  %v13572_v41 = vld [vmem:[#allocation17_spill] sm:$0xff] }
0x16c6   :  { %v5850_v49 = vadd.f32 1e-05, %v5842_v51  ;;  %v5839_v57 = vmul.f32 %v5815_v4, %v5815_v4  ;;  %v5835_v15 = vmul.f32 0.03125, %v5829_v23  ;;  %v5847_v13 = vsub.f32 %v12572_v47, %v5815_v4  ;;  %v8145_v23 = vld [vmem:[%s13482_s2 + $0x460] sm:$0xff] }
0x16c7   :  { %v5812_v3 = vpop.xlane.xlu0 %5811 }
0x16c8   :  { %9207 = vrsqrt.f32 %v5850_v49  ;;  %v5843_v35 = vsub.f32 %v5835_v15, %v5839_v57  ;;  %v5816_v27 = vmul.f32 0.03125, %v5812_v3  ;;  %v8147_v49 = vld [vmem:[%s13482_s2 + $0x470] sm:$0xff]  ;;  %v8138_v3 = vld [vmem:[%s13482_s2 + $0x428] sm:$0xff] }
0x16c9   :  { %v5832_v8 = vpop.xlane.xlu1 %5831 }
0x16ca   :  { %v5851_v5 = vadd.f32 1e-05, %v5843_v35  ;;  %v5840_v34 = vmul.f32 %v5816_v27, %v5816_v27  ;;  %v5836_v52 = vmul.f32 0.03125, %v5832_v8  ;;  %v5848_v44 = vsub.f32 %v12570_v7, %v5816_v27  ;;  %v8140_v35 = vld [vmem:[%s13482_s2 + $0x438] sm:$0xff]  ;;  %v13574_v27 = vld [vmem:[#allocation18_spill] sm:$0xff] }
0x16cc   :  { %9209 = vrsqrt.f32 %v5851_v5  ;;  %v5844_v61 = vsub.f32 %v5836_v52, %v5840_v34  ;;  %v8137_v34 = vld [vmem:[%s13482_s2 + $0x420] sm:$0xff]  ;;  %v8139_v52 = vld [vmem:[%s13482_s2 + $0x430] sm:$0xff] }
0x16ce   :  { %v5852_v40 = vadd.f32 1e-05, %v5844_v61 }
0x16d0   :  { %9211 = vrsqrt.f32 %v5852_v40  ;;  %v8130_v40 = vld [vmem:[%s13482_s2 + $0x3e8] sm:$0xff] }
0x16d1   :  { %v9206_v30 = vpop.eup %9205 }
0x16d2   :  { %v5857_v42 = vmul.f32 %v9206_v30, %v5845_v19  ;;  %v13576_v19 = vld [vmem:[#allocation19_spill] sm:$0xff] }
0x16d4   :  { %v5865_v28 = vmul.f32 %v5864_v10, %v5857_v42  ;;  %v8131_v42 = vld [vmem:[%s13482_s2 + $0x3f0] sm:$0xff] }
0x16d5   :  { %v9208_v14 = vpop.eup %9207 }
0x16d6   :  { %v5873_v6 = vadd.f32 %v5872_v37, %v5865_v28  ;;  %v5858_v20 = vmul.f32 %v9208_v14, %v5846_v60 }
0x16d8   :  { %v5877_v33 = vmax.f32 %v5873_v6, 0.0  ;;  %v5866_v22 = vmul.f32 %v5864_v10, %v5858_v20 }
0x16d9   :  { %v9210_v12 = vpop.eup %9209 }
0x16da   :  { %v5859_v0 = vmul.f32 %v9210_v12, %v5847_v13  ;;  %v12647_v26 = vadd.f32 %v5877_v33, %v13570_v56  ;;  %v5874_v53 = vadd.f32 %v5872_v37, %v5866_v22 }
0x16dc   :  { %13571 = vst [vmem:[#allocation20_spill] sm:$0xff] %v12647_v26  ;;  %8178 = vmatmul.mubr.msk.f32.vlgmr.msra.gmra.mxu1 %vm320_vm1, %v12647_v26  ;;  %8182 = vmatmul.mubr.msk.f32.vlgmr.msra.gmra.mxu0 %vm320_vm1, %v12647_v26  ;;  %v5878_v47 = vmax.f32 %v5874_v53, 0.0  ;;  %v5867_v2 = vmul.f32 %v5864_v10, %v5859_v0 }
0x16dd   :  { %v9212_v58 = vpop.eup %9211  ;;  %6046 = vmatprep.mubr.f32.mxu1 %v13524_v55  ;;  %6135 = vmatprep.mubr.f32.mxu0 %v13524_v55 }
0x16de   :  { %v5860_v7 = vmul.f32 %v9212_v58, %v5848_v44  ;;  %v12669_v51 = vadd.f32 %v5878_v47, %v13572_v41  ;;  %v5875_v4 = vadd.f32 %v5872_v37, %v5867_v2  ;;  %6179 = vmatpush1.msra.mxu1 %v8153_v24  ;;  %6268 = vmatpush1.msra.mxu0 %v8155_v31 }
0x16df   :  { %6180 = vmatprep.subr.mxu1 %v8146_v1  ;;  %6269 = vmatprep.subr.mxu0 %v8148_v38 }
0x16e0   :  { %13573 = vst [vmem:[#allocation12_spill] sm:$0xff] %v12669_v51  ;;  %8179 = vmatmul.mubr.msk.f32.gmra.mxu1 %vm320_vm1, %v12669_v51  ;;  %8183 = vmatmul.mubr.msk.f32.gmra.mxu0 %vm320_vm1, %v12669_v51  ;;  %v5879_v57 = vmax.f32 %v5875_v4, 0.0  ;;  %v5868_v15 = vmul.f32 %v5864_v10, %v5860_v7  ;;  %v8132_v10 = vld [vmem:[%s13482_s2 + $0x3f8] sm:$0xff] }
0x16e1   :  { %6052 = vmatprep.mubr.f32.mxu1 %v13524_v55  ;;  %6141 = vmatprep.mubr.f32.mxu0 %v13524_v55 }
0x16e2   :  { %v12690_v8 = vadd.f32 %v5879_v57, %v13574_v27  ;;  %6181 = vmatpush1.msra.mxu1 %v8145_v23  ;;  %6270 = vmatpush1.msra.mxu0 %v8147_v49  ;;  %v5876_v5 = vadd.f32 %v5872_v37, %v5868_v15  ;;  %v8129_v37 = vld [vmem:[%s13482_s2 + $0x3e0] sm:$0xff] }
0x16e3   :  { %6182 = vmatprep.subr.mxu1 %v8138_v3  ;;  %6271 = vmatprep.subr.mxu0 %v8140_v35 }
0x16e4   :  { %13575 = vst [vmem:[#allocation13_spill] sm:$0xff] %v12690_v8  ;;  %8180 = vmatmul.mubr.msk.f32.gmra.mxu1 %vm320_vm1, %v12690_v8  ;;  %8184 = vmatmul.mubr.msk.f32.gmra.mxu0 %vm320_vm1, %v12690_v8  ;;  %v5880_v61 = vmax.f32 %v5876_v5, 0.0  ;;  %v8174_v5 = vld [vmem:[%s13482_s2 + $0x4e0] ss:$0 sm:$0xff] }
0x16e5   :  { %6058 = vmatprep.mubr.f32.mxu1 %v13524_v55  ;;  %6147 = vmatprep.mubr.f32.mxu0 %v13524_v55 }
0x16e6   :  { %v12711_v30 = vadd.f32 %v5880_v61, %v13576_v19  ;;  %6183 = vmatpush1.msra.mxu1 %v8137_v34  ;;  %6272 = vmatpush1.msra.mxu0 %v8139_v52  ;;  %v8176_v34 = vld [vmem:[%s13482_s2 + $0x4f0] ss:$0 sm:$0xff]  ;;  %v8175_v52 = vld [vmem:[%s13482_s2 + $0x4e8] ss:$0 sm:$0xff]  ;;  %v8177_v61 = vld [vmem:[%s13482_s2 + $0x4f8] ss:$0 sm:$0xff] }
0x16e7   :  { %6184 = vmatprep.subr.mxu1 %v8130_v40  ;;  %6273 = vmatprep.subr.mxu0 %v8132_v10 }
0x16e8   :  { %13577 = vst [vmem:[#allocation14_spill] sm:$0xff] %v12711_v30  ;;  %8181 = vmatmul.mubr.msk.f32.gmra.mxu1 %vm320_vm1, %v12711_v30  ;;  %8185 = vmatmul.mubr.msk.f32.gmra.mxu0 %vm320_vm1, %v12711_v30 }
0x16e9   :  { %6185 = vmatpush1.msra.mxu1 %v8129_v37  ;;  %6218 = vmatprep.mubr.f32.mxu1 %v13524_v55 }
0x16ea   :  { %6274 = vmatpush1.msra.mxu0 %v8131_v42  ;;  %6307 = vmatprep.mubr.f32.mxu0 %v13524_v55 }
0x16ec   :  { %8186 = vmatmul.mubr.msk.f32.vlgmr.msra.gmra.mxu1 %vm320_vm1, %v12647_v26  ;;  %8190 = vmatmul.mubr.msk.f32.vlgmr.msra.gmra.mxu0 %vm320_vm1, %v12647_v26 }
0x16ed   :  { %6224 = vmatprep.mubr.f32.mxu1 %v13524_v55  ;;  %6313 = vmatprep.mubr.f32.mxu0 %v13524_v55 }
0x16f0   :  { %8187 = vmatmul.mubr.msk.f32.gmra.mxu1 %vm320_vm1, %v12669_v51  ;;  %8191 = vmatmul.mubr.msk.f32.gmra.mxu0 %vm320_vm1, %v12669_v51 }
0x16f1   :  { %6230 = vmatprep.mubr.f32.mxu1 %v13524_v55  ;;  %6319 = vmatprep.mubr.f32.mxu0 %v13524_v55 }
0x16f4   :  { %8188 = vmatmul.mubr.msk.f32.gmra.mxu1 %vm320_vm1, %v12690_v8  ;;  %8192 = vmatmul.mubr.msk.f32.gmra.mxu0 %vm320_vm1, %v12690_v8 }
0x16f5   :  { %6236 = vmatprep.mubr.f32.mxu1 %v13524_v55  ;;  %6325 = vmatprep.mubr.f32.mxu0 %v13524_v55 }
0x16f8   :  { %8189 = vmatmul.mubr.msk.f32.gmra.mxu1 %vm320_vm1, %v12711_v30  ;;  %8193 = vmatmul.mubr.msk.f32.gmra.mxu0 %vm320_vm1, %v12711_v30 }
0x16f9   :  { %6412 = vmatprep.mubr.f32.mxu1 %v13524_v55  ;;  %6501 = vmatprep.mubr.f32.mxu0 %v13524_v55 }
0x179c   :  { %v12749_v28 = vpop.f32.mrf.mxu1  ;;  %v12751_v60 = vpop.f32.mrf.mxu0 }
0x179e   :  { %v12753_v14 = vpop.f32.mrf.mxu1  ;;  %v12755_v6 = vpop.f32.mrf.mxu0 }
0x17a0   :  { %v12757_v20 = vpop.f32.mrf.mxu1  ;;  %v12759_v33 = vpop.f32.mrf.mxu0 }
0x17a2   :  { %v12761_v13 = vpop.f32.mrf.mxu1  ;;  %v12763_v22 = vpop.f32.mrf.mxu0 }
0x17a4   :  { %v12765_v12 = vpop.f32.mrf.mxu1  ;;  %v12767_v0 = vpop.f32.mrf.mxu0 }
0x17a6   :  { %v12769_v56 = vpop.f32.mrf.mxu1  ;;  %v12771_v53 = vpop.f32.mrf.mxu0 }
0x17a7   :  { %13578 = vst [vmem:[#allocation15_spill] sm:$0xff] %v12771_v53 }
0x17a8   :  { %v12773_v24 = vpop.f32.mrf.mxu1  ;;  %v12775_v31 = vpop.f32.mrf.mxu0 }
0x17a9   :  { %13579 = vst [vmem:[#allocation16_spill] sm:$0xff] %v12773_v24  ;;  %13580 = vst [vmem:[#allocation17_spill] sm:$0xff] %v12775_v31 }
0x17aa   :  { %v12777_v44 = vpop.f32.mrf.mxu1  ;;  %v12779_v47 = vpop.f32.mrf.mxu0 }
0x17ab   :  { %13581 = vst [vmem:[#allocation18_spill] sm:$0xff] %v12777_v44  ;;  %13582 = vst [vmem:[#allocation19_spill] sm:$0xff] %v12779_v47 }
0x17ac   :  { %v6220_v2 = vpop.f32.mrf.mxu1  ;;  %v6309_v1 = vpop.f32.mrf.mxu0 }
0x17ad   :  { %v6221_v26 = vadd.f32 %v8174_v5, %v6220_v2 }
0x17ae   :  { %v6222_v38 = vpop.f32.mrf.mxu1  ;;  %v6311_v58 = vpop.f32.mrf.mxu0 }
0x17af   :  { %v6223_v32 = vadd.f32 %v8175_v52, %v6222_v38  ;;  %v6310_v38 = vadd.f32 %v8176_v34, %v6309_v1  ;;  %v8229_v1 = vld [vmem:[%s13484_s4 + $0x6d8] sm:$0xff] }
0x17b0   :  { %v6226_v7 = vpop.f32.mrf.mxu1  ;;  %v6315_v41 = vpop.f32.mrf.mxu0 }
0x17b1   :  { %v6227_v24 = vadd.f32 %v8174_v5, %v6226_v7  ;;  %v6316_v53 = vadd.f32 %v8176_v34, %v6315_v41  ;;  %v8213_v7 = vld [vmem:[%s13484_s4 + $0x658] sm:$0xff] }
0x17b2   :  { %v6228_v4 = vpop.f32.mrf.mxu1  ;;  %v6317_v23 = vpop.f32.mrf.mxu0  ;;  %v8245_v41 = vld [vmem:[%s13484_s4 + $0x758] sm:$0xff] }
0x17b3   :  { %v6229_v59 = vadd.f32 %v8175_v52, %v6228_v4  ;;  %v6318_v47 = vadd.f32 %v8177_v61, %v6317_v23  ;;  %v8228_v23 = vld [vmem:[%s13484_s4 + $0x6d0] sm:$0xff] }
0x17b4   :  { %v6232_v49 = vpop.f32.mrf.mxu1  ;;  %v6321_v57 = vpop.f32.mrf.mxu0 }
0x17b5   :  { %v6233_v9 = vadd.f32 %v8174_v5, %v6232_v49  ;;  %v6322_v16 = vadd.f32 %v8176_v34, %v6321_v57  ;;  %v8260_v49 = vld [vmem:[%s13484_s4 + $0x7d0] sm:$0xff] }
0x17b6   :  { %v6234_v15 = vpop.f32.mrf.mxu1  ;;  %v6323_v3 = vpop.f32.mrf.mxu0  ;;  %v8212_v57 = vld [vmem:[%s13484_s4 + $0x650] sm:$0xff] }
0x17b7   :  { %v6235_v42 = vadd.f32 %v8175_v52, %v6234_v15  ;;  %v6324_v30 = vadd.f32 %v8177_v61, %v6323_v3  ;;  %v6312_v15 = vadd.f32 %v8177_v61, %v6311_v58  ;;  %v6340_v4 = vmul.f32 %v12515_v43, %v6233_v9  ;;  %v8248_v9 = vld [vmem:[%s13484_s4 + $0x770] sm:$0xff]  ;;  %v8261_v58 = vld [vmem:[%s13484_s4 + $0x7d8] sm:$0xff] }
0x17b8   :  { %v6238_v35 = vpop.f32.mrf.mxu1  ;;  %v6327_v27 = vpop.f32.mrf.mxu0 }
0x17b9   :  { %v6239_v40 = vadd.f32 %v8174_v5, %v6238_v35  ;;  %v6328_v10 = vadd.f32 %v8176_v34, %v6327_v27  ;;  %v6341_v3 = vmul.f32 %v12509_v39, %v6235_v42  ;;  %v6343_v2 = vmul.f32 %v12512_v18, %v6324_v30  ;;  %v8247_v30 = vld [vmem:[%s13484_s4 + $0x768] sm:$0xff]  ;;  %v8244_v5 = vld [vmem:[%s13484_s4 + $0x750] sm:$0xff]  ;;  %v8242_v42 = vld [vmem:[%s13484_s4 + $0x740] sm:$0xff] }
0x17ba   :  { %v6240_v19 = vpop.f32.mrf.mxu1  ;;  %v6329_v37 = vpop.f32.mrf.mxu0  ;;  %v6338_v39 = vmul.f32 %v12494_v29, %v6316_v53  ;;  %v6333_v18 = vmul.f32 %v12485_v63, %v6223_v32  ;;  %v6335_v43 = vmul.f32 %v12488_v48, %v6312_v15  ;;  %v8233_v29 = vld [vmem:[%s13484_s4 + $0x6f8] sm:$0xff]  ;;  %v12818_v48 = vld [vmem:[%s13485_s5] sm:$0xff]  ;;  %v8231_v32 = vld [vmem:[%s13484_s4 + $0x6e8] sm:$0xff] }
0x17bb   :  { %v6241_v8 = vadd.f32 %v8175_v52, %v6240_v19  ;;  %v6330_v51 = vadd.f32 %v8177_v61, %v6329_v37  ;;  %v6344_v35 = vmul.f32 %v12527_v50, %v6239_v40  ;;  %v6346_v27 = vmul.f32 %v12518_v46, %v6328_v10  ;;  %v8265_v63 = vld [vmem:[%s13484_s4 + $0x7f8] sm:$0xff]  ;;  %v8230_v53 = vld [vmem:[%s13484_s4 + $0x6e0] sm:$0xff]  ;;  %v8227_v34 = vld [vmem:[%s13484_s4 + $0x6c8] sm:$0xff] }
0x17bc   :  { %v6339_v50 = vmul.f32 %v12500_v25, %v6318_v47  ;;  %v6336_v46 = vmul.f32 %v12503_v54, %v6227_v24  ;;  %v8232_v25 = vld [vmem:[%s13484_s4 + $0x6f0] sm:$0xff]  ;;  %v8262_v24 = vld [vmem:[%s13484_s4 + $0x7e0] sm:$0xff]  ;;  %v12893_v47 = vld [vmem:[%s13485_s5 + $0x18] sm:$0xff] }
0x17bd   :  { %v6345_v44 = vmul.f32 %v12521_v21, %v6241_v8  ;;  %v6347_v31 = vmul.f32 %v12524_v45, %v6330_v51  ;;  %v6342_v21 = vmul.f32 %v12506_v17, %v6322_v16  ;;  %v6337_v45 = vmul.f32 %v12497_v36, %v6229_v59  ;;  %v8264_v54 = vld [vmem:[%s13484_s4 + $0x7f0] sm:$0xff]  ;;  %v12841_v59 = vld [vmem:[%s13485_s5 + $0x8] sm:$0xff]  ;;  %v8226_v10 = vld [vmem:[%s13484_s4 + $0x6c0] sm:$0xff] }
0x17be   :  { %v6332_v17 = vmul.f32 %v12491_v62, %v6221_v26  ;;  %v6334_v36 = vmul.f32 %v12482_v11, %v6310_v38  ;;  %v8217_v11 = vld [vmem:[%s13484_s4 + $0x678] sm:$0xff]  ;;  %v8216_v16 = vld [vmem:[%s13484_s4 + $0x670] sm:$0xff]  ;;  %v8263_v26 = vld [vmem:[%s13484_s4 + $0x7e8] sm:$0xff] }
0x17bf   :  { %6372 = vmatprep.subr.mxu1 %v6345_v44  ;;  %6461 = vmatprep.subr.mxu0 %v6347_v31  ;;  %v8249_v62 = vld [vmem:[%s13484_s4 + $0x778] sm:$0xff]  ;;  %v12864_v51 = vld [vmem:[%s13485_s5 + $0x10] sm:$0xff]  ;;  %v8215_v8 = vld [vmem:[%s13484_s4 + $0x668] sm:$0xff] }
0x17c0   :  { %6373 = vmatpush1.msra.mxu1 %v6344_v35  ;;  %6462 = vmatpush1.msra.mxu0 %v6346_v27  ;;  %v8214_v31 = vld [vmem:[%s13484_s4 + $0x660] sm:$0xff]  ;;  %v8259_v52 = vld [vmem:[%s13484_s4 + $0x7c8] sm:$0xff]  ;;  %v8225_v35 = vld [vmem:[%s13484_s4 + $0x6b8] sm:$0xff] }
0x17c1   :  { %6374 = vmatprep.subr.mxu1 %v6341_v3  ;;  %6463 = vmatprep.subr.mxu0 %v6343_v2  ;;  %v8246_v44 = vld [vmem:[%s13484_s4 + $0x760] sm:$0xff]  ;;  %v8211_v61 = vld [vmem:[%s13484_s4 + $0x648] sm:$0xff]  ;;  %v8257_v27 = vld [vmem:[%s13484_s4 + $0x7b8] sm:$0xff] }
0x17c2   :  { %6375 = vmatpush1.msra.mxu1 %v6340_v4  ;;  %6464 = vmatpush1.msra.mxu0 %v6342_v21  ;;  %v8243_v40 = vld [vmem:[%s13484_s4 + $0x748] sm:$0xff]  ;;  %v8258_v19 = vld [vmem:[%s13484_s4 + $0x7c0] sm:$0xff]  ;;  %v8209_v15 = vld [vmem:[%s13484_s4 + $0x638] sm:$0xff] }
0x17c3   :  { %6376 = vmatprep.subr.mxu1 %v6337_v45  ;;  %6465 = vmatprep.subr.mxu0 %v6339_v50  ;;  %v8210_v37 = vld [vmem:[%s13484_s4 + $0x640] sm:$0xff]  ;;  %v8241_v3 = vld [vmem:[%s13484_s4 + $0x738] sm:$0xff]  ;;  %v8224_v2 = vld [vmem:[%s13484_s4 + $0x6b0] sm:$0xff] }
0x17c4   :  { %6377 = vmatpush1.msra.mxu1 %v6336_v46  ;;  %6466 = vmatpush1.msra.mxu0 %v6338_v39  ;;  %v8256_v38 = vld [vmem:[%s13484_s4 + $0x7b0] sm:$0xff]  ;;  %v8223_v45 = vld [vmem:[%s13484_s4 + $0x6a8] sm:$0xff] }
0x17c5   :  { %6378 = vmatprep.subr.mxu1 %v6333_v18  ;;  %6467 = vmatprep.subr.mxu0 %v6335_v43  ;;  %v8208_v4 = vld [vmem:[%s13484_s4 + $0x630] sm:$0xff]  ;;  %v8255_v50 = vld [vmem:[%s13484_s4 + $0x7a8] sm:$0xff]  ;;  %v8222_v18 = vld [vmem:[%s13484_s4 + $0x6a0] sm:$0xff] }
0x17c6   :  { %6379 = vmatpush1.msra.mxu1 %v6332_v17  ;;  %6468 = vmatpush1.msra.mxu0 %v6334_v36  ;;  %v8240_v21 = vld [vmem:[%s13484_s4 + $0x730] sm:$0xff]  ;;  %v8207_v46 = vld [vmem:[%s13484_s4 + $0x628] sm:$0xff]  ;;  %v8254_v43 = vld [vmem:[%s13484_s4 + $0x7a0] sm:$0xff] }
0x17c7   :  { %8194 = vmatmul.mubr.msk.f32.vlgmr.msra.gmra.mxu1 %vm320_vm1, %v12818_v48  ;;  %8198 = vmatmul.mubr.msk.f32.vlgmr.msra.gmra.mxu0 %vm320_vm1, %v12818_v48  ;;  %v8239_v39 = vld [vmem:[%s13484_s4 + $0x728] sm:$0xff]  ;;  %v8206_v17 = vld [vmem:[%s13484_s4 + $0x620] sm:$0xff] }
0x17c8   :  { %6418 = vmatprep.mubr.f32.mxu1 %v13524_v55  ;;  %6507 = vmatprep.mubr.f32.mxu0 %v13524_v55  ;;  %v8238_v36 = vld [vmem:[%s13484_s4 + $0x720] sm:$0xff] }
0x17c9   :  { %8848 = vmatprep.subr.mxu1 %v8233_v29  ;;  %8892 = vmatprep.subr.mxu0 %v8265_v63  ;;  %v8221_v29 = vld [vmem:[%s13484_s4 + $0x698] sm:$0xff] }
0x17ca   :  { %8849 = vmatpush3.msra.mxu1 %v8217_v11  ;;  %8893 = vmatpush3.msra.mxu0 %v8249_v62  ;;  %v8253_v63 = vld [vmem:[%s13484_s4 + $0x798] sm:$0xff] }
0x17cb   :  { %8195 = vmatmul.mubr.msk.f32.gmra.mxu1 %vm320_vm1, %v12841_v59  ;;  %8199 = vmatmul.mubr.msk.f32.gmra.mxu0 %vm320_vm1, %v12841_v59  ;;  %v8205_v11 = vld [vmem:[%s13484_s4 + $0x618] sm:$0xff] }
0x17cc   :  { %6424 = vmatprep.mubr.f32.mxu1 %v13524_v55  ;;  %6513 = vmatprep.mubr.f32.mxu0 %v13524_v55  ;;  %v8237_v62 = vld [vmem:[%s13484_s4 + $0x718] sm:$0xff] }
0x17cd   :  { %8850 = vmatprep.subr.mxu1 %v8232_v25  ;;  %8894 = vmatprep.subr.mxu0 %v8264_v54  ;;  %v8220_v25 = vld [vmem:[%s13484_s4 + $0x690] sm:$0xff] }
0x17ce   :  { %8851 = vmatpush3.msra.mxu1 %v8216_v16  ;;  %8895 = vmatpush3.msra.mxu0 %v8248_v9  ;;  %v8252_v54 = vld [vmem:[%s13484_s4 + $0x790] sm:$0xff] }
0x17cf   :  { %8196 = vmatmul.mubr.msk.f32.gmra.mxu1 %vm320_vm1, %v12864_v51  ;;  %8200 = vmatmul.mubr.msk.f32.gmra.mxu0 %vm320_vm1, %v12864_v51  ;;  %v8204_v16 = vld [vmem:[%s13484_s4 + $0x610] sm:$0xff] }
0x17d0   :  { %6430 = vmatprep.mubr.f32.mxu1 %v13524_v55  ;;  %6519 = vmatprep.mubr.f32.mxu0 %v13524_v55  ;;  %v8236_v9 = vld [vmem:[%s13484_s4 + $0x710] sm:$0xff] }
0x17d1   :  { %8852 = vmatprep.subr.mxu1 %v8231_v32  ;;  %8896 = vmatprep.subr.mxu0 %v8263_v26  ;;  %v8219_v32 = vld [vmem:[%s13484_s4 + $0x688] sm:$0xff] }
0x17d2   :  { %8853 = vmatpush3.msra.mxu1 %v8215_v8  ;;  %8897 = vmatpush3.msra.mxu0 %v8247_v30  ;;  %v8251_v26 = vld [vmem:[%s13484_s4 + $0x788] sm:$0xff] }
0x17d3   :  { %8197 = vmatmul.mubr.msk.f32.gmra.mxu1 %vm320_vm1, %v12893_v47  ;;  %8201 = vmatmul.mubr.msk.f32.gmra.mxu0 %vm320_vm1, %v12893_v47  ;;  %v8203_v8 = vld [vmem:[%s13484_s4 + $0x608] sm:$0xff] }
0x17d4   :  { %8854 = vmatprep.subr.mxu1 %v8230_v53  ;;  %8898 = vmatprep.subr.mxu0 %v8262_v24  ;;  %v8235_v30 = vld [vmem:[%s13484_s4 + $0x708] sm:$0xff]  ;;  %v8218_v53 = vld [vmem:[%s13484_s4 + $0x680] sm:$0xff] }
0x17d5   :  { %8855 = vmatpush3.msra.mxu1 %v8214_v31  ;;  %8899 = vmatpush3.msra.mxu0 %v8246_v44  ;;  %v8250_v24 = vld [vmem:[%s13484_s4 + $0x780] sm:$0xff] }
0x17d6   :  { %8856 = vmatprep.subr.mxu1 %v8229_v1  ;;  %8900 = vmatprep.subr.mxu0 %v8261_v58  ;;  %v8202_v31 = vld [vmem:[%s13484_s4 + $0x600] sm:$0xff]  ;;  %v9553_v1 = vld [vmem:[#allocation4 + $0x268] sm:$0xff]  ;;  %v9554_v58 = vld [vmem:[#allocation4 + $0x278] sm:$0xff] }
0x17d7   :  { %8857 = vmatpush3.msra.mxu1 %v8213_v7  ;;  %8901 = vmatpush3.msra.mxu0 %v8245_v41  ;;  %v8234_v44 = vld [vmem:[%s13484_s4 + $0x700] sm:$0xff]  ;;  %v8172_v41 = vld [vmem:[%s13482_s2 + $0x4d0] ss:$0 sm:$0xff] }
0x17d8   :  { %8858 = vmatprep.subr.mxu1 %v8228_v23  ;;  %8902 = vmatprep.subr.mxu0 %v8260_v49  ;;  %v8170_v7 = vld [vmem:[%s13482_s2 + $0x4c0] ss:$0 sm:$0xff]  ;;  %v8171_v23 = vld [vmem:[%s13482_s2 + $0x4c8] ss:$0 sm:$0xff]  ;;  %v8173_v49 = vld [vmem:[%s13482_s2 + $0x4d8] ss:$0 sm:$0xff] }
0x17d9   :  { %8859 = vmatpush3.msra.mxu1 %v8212_v57  ;;  %8903 = vmatpush3.msra.mxu0 %v8244_v5  ;;  %v13056_v57 = vadd.f32 %v8170_v7, %v12749_v28  ;;  %v13059_v5 = vadd.f32 %v8172_v41, %v12751_v60 }
0x17da   :  { %8860 = vmatprep.subr.mxu1 %v8227_v34  ;;  %8904 = vmatprep.subr.mxu0 %v8259_v52  ;;  %v13062_v34 = vadd.f32 %v8171_v23, %v12753_v14  ;;  %v13065_v52 = vadd.f32 %v8173_v49, %v12755_v6  ;;  %v13076_v14 = vadd.f32 %v8171_v23, %v12761_v13 }
0x17db   :  { %8861 = vmatpush3.msra.mxu1 %v8211_v61  ;;  %8905 = vmatpush3.msra.mxu0 %v8243_v40  ;;  %v6543_v40 = vld [vmem:[#allocation2 + $0x180] sm:$0xff]  ;;  %v13079_v6 = vadd.f32 %v8173_v49, %v12763_v22  ;;  %v13090_v13 = vadd.f32 %v8171_v23, %v12769_v56  ;;  %v13583_v22 = vld [vmem:[#allocation15_spill] sm:$0xff] }
0x17dc   :  { %8862 = vmatprep.subr.mxu1 %v8226_v10  ;;  %8906 = vmatprep.subr.mxu0 %v8258_v19  ;;  %v6545_v19 = vld [vmem:[#allocation2 + $0x190] sm:$0xff] }
0x17dd   :  { %8863 = vmatpush3.msra.mxu1 %v8210_v37  ;;  %8907 = vmatpush3.msra.mxu0 %v8242_v42  ;;  %v13068_v37 = vadd.f32 %v8170_v7, %v12757_v20  ;;  %v13071_v42 = vadd.f32 %v8172_v41, %v12759_v33 }
0x17de   :  { %8864 = vmatprep.subr.mxu1 %v8225_v35  ;;  %8908 = vmatprep.subr.mxu0 %v8257_v27  ;;  %v13082_v35 = vadd.f32 %v8170_v7, %v12765_v12  ;;  %v13085_v27 = vadd.f32 %v8172_v41, %v12767_v0  ;;  %v13584_v12 = vld [vmem:[#allocation16_spill] sm:$0xff]  ;;  %v13585_v0 = vld [vmem:[#allocation17_spill] sm:$0xff] }
0x17df   :  { %8865 = vmatpush3.msra.mxu1 %v8209_v15  ;;  %8909 = vmatpush3.msra.mxu0 %v8241_v3 }
0x17e0   :  { %8866 = vmatprep.subr.mxu1 %v8224_v2  ;;  %8910 = vmatprep.subr.mxu0 %v8256_v38  ;;  %v6544_v38 = vld [vmem:[#allocation2 + $0x188] sm:$0xff] }
0x17e1   :  { %8867 = vmatpush3.msra.mxu1 %v8208_v4  ;;  %8911 = vmatpush3.msra.mxu0 %v8240_v21  ;;  %v13093_v21 = vadd.f32 %v8173_v49, %v13583_v22 }
0x17e2   :  { %8868 = vmatprep.subr.mxu1 %v8223_v45  ;;  %8912 = vmatprep.subr.mxu0 %v8255_v50  ;;  %v13096_v45 = vadd.f32 %v8170_v7, %v13584_v12  ;;  %v13099_v50 = vadd.f32 %v8172_v41, %v13585_v0 }
0x17e3   :  { %8869 = vmatpush3.msra.mxu1 %v8207_v46  ;;  %8913 = vmatpush3.msra.mxu0 %v8239_v39  ;;  %v6546_v46 = vld [vmem:[#allocation2 + $0x198] sm:$0xff] }
0x17e4   :  { %8870 = vmatprep.subr.mxu1 %v8222_v18  ;;  %8914 = vmatprep.subr.mxu0 %v8254_v43  ;;  %v13586_v43 = vld [vmem:[#allocation18_spill] sm:$0xff] }
0x17e5   :  { %8871 = vmatpush3.msra.mxu1 %v8206_v17  ;;  %8915 = vmatpush3.msra.mxu0 %v8238_v36  ;;  %v13102_v17 = vadd.f32 %v8171_v23, %v13586_v43  ;;  %v13587_v36 = vld [vmem:[#allocation19_spill] sm:$0xff] }
0x17e6   :  { %8872 = vmatprep.subr.mxu1 %v8221_v29  ;;  %8916 = vmatprep.subr.mxu0 %v8253_v63  ;;  %v13105_v29 = vadd.f32 %v8173_v49, %v13587_v36  ;;  %v6547_v63 = vld [vmem:[#allocation2 + $0x1a0] sm:$0xff] }
0x17e7   :  { %8873 = vmatpush3.msra.mxu1 %v8205_v11  ;;  %8917 = vmatpush3.msra.mxu0 %v8237_v62  ;;  %v6549_v11 = vld [vmem:[#allocation2 + $0x1b0] sm:$0xff] }
0x17e8   :  { %8874 = vmatprep.subr.mxu1 %v8220_v25  ;;  %8918 = vmatprep.subr.mxu0 %v8252_v54 }
0x17e9   :  { %8875 = vmatpush3.msra.mxu1 %v8204_v16  ;;  %8919 = vmatpush3.msra.mxu0 %v8236_v9 }
0x17ea   :  { %8876 = vmatprep.subr.mxu1 %v8219_v32  ;;  %8920 = vmatprep.subr.mxu0 %v8251_v26  ;;  %v6548_v32 = vld [vmem:[#allocation2 + $0x1a8] sm:$0xff] }
0x17eb   :  { %8877 = vmatpush3.msra.mxu1 %v8203_v8  ;;  %8921 = vmatpush3.msra.mxu0 %v8235_v30  ;;  %v6550_v8 = vld [vmem:[#allocation2 + $0x1b8] sm:$0xff] }
0x17ec   :  { %8878 = vmatprep.subr.mxu1 %v8218_v53  ;;  %8922 = vmatprep.subr.mxu0 %v8250_v24 }
0x17ed   :  { %8879 = vmatpush3.msra.mxu1 %v8202_v31  ;;  %8923 = vmatpush3.msra.mxu0 %v8234_v44 }
0x17ee   :  { %6904 = vmatprep.subr.mxu1 %v9553_v1  ;;  %6993 = vmatprep.subr.mxu0 %v9554_v58 }
0x1887   :  { %v6414_v61 = vpop.f32.mrf.mxu1  ;;  %v6503_v10 = vpop.f32.mrf.mxu0 }
0x1888   :  { %v6526_v28 = vadd.f32 %v6414_v61, %v13056_v57  ;;  %v6528_v60 = vadd.f32 %v6503_v10, %v13059_v5  ;;  %v6551_v61 = vld [vmem:[#allocation2 + $0x1c0] sm:$0xff] }
0x1889   :  { %v6416_v20 = vpop.f32.mrf.mxu1  ;;  %v6505_v15 = vpop.f32.mrf.mxu0 }
0x188a   :  { %v6559_v33 = vadd.f32 %v6543_v40, %v6526_v28  ;;  %v6561_v3 = vadd.f32 %v6545_v19, %v6528_v60  ;;  %v6527_v2 = vadd.f32 %v6416_v20, %v13062_v34  ;;  %v6529_v4 = vadd.f32 %v6505_v15, %v13065_v52  ;;  %v6553_v60 = vld [vmem:[#allocation2 + $0x1d0] sm:$0xff]  ;;  %v6552_v15 = vld [vmem:[#allocation2 + $0x1c8] sm:$0xff] }
0x188b   :  { %v6420_v39 = vpop.f32.mrf.mxu1  ;;  %v6509_v18 = vpop.f32.mrf.mxu0 }
0x188c   :  { %vm6575_vm5 = vcmp.gt.f32.partialorder %v6559_v33, 0.0  ;;  %v6591_v56 = vmul.f32 0.2, %v6559_v33  ;;  %v6593_v62 = vmul.f32 0.2, %v6561_v3  ;;  %v6560_v25 = vadd.f32 %v6544_v38, %v6527_v2  ;;  %v6554_v38 = vld [vmem:[#allocation2 + $0x1d8] sm:$0xff] }
0x188d   :  { %v6530_v54 = vadd.f32 %v6420_v39, %v13068_v37  ;;  %v6532_v16 = vadd.f32 %v6509_v18, %v13071_v42  ;;  %v6422_v9 = vpop.f32.mrf.mxu1  ;;  %v6511_v26 = vpop.f32.mrf.mxu0  ;;  %vm6577_vm6 = vcmp.gt.f32.partialorder %v6561_v3, 0.0  ;;  %v6562_v30 = vadd.f32 %v6546_v46, %v6529_v4 }
0x188e   :  { %v6531_v53 = vadd.f32 %v6422_v9, %v13076_v14  ;;  %v6533_v24 = vadd.f32 %v6511_v26, %v13079_v6  ;;  %vm6576_vm7 = vcmp.gt.f32.partialorder %v6560_v25, 0.0  ;;  %v6592_v7 = vmul.f32 0.2, %v6560_v25 }
0x188f   :  { %v6563_v31 = vadd.f32 %v6547_v63, %v6530_v54  ;;  %v13111_v44 = vadd.f32 %v6549_v11, %v6532_v16  ;;  %v6426_v1 = vpop.f32.mrf.mxu1  ;;  %v6515_v58 = vpop.f32.mrf.mxu0  ;;  %v6607_v10 = vsel %vm6575_vm5, %v6559_v33, %v6591_v56  ;;  %v6609_v19 = vsel %vm6577_vm6, %v6561_v3, %v6593_v62  ;;  %v9555_v63 = vld [vmem:[#allocation4 + $0x260] sm:$0xff]  ;;  %v6556_v16 = vld [vmem:[#allocation2 + $0x1e8] sm:$0xff] }
0x1890   :  { %v6564_v41 = vadd.f32 %v6548_v32, %v6531_v53  ;;  %v6566_v23 = vadd.f32 %v6550_v8, %v6533_v24  ;;  %v6534_v49 = vadd.f32 %v6426_v1, %v13082_v35  ;;  %v6536_v40 = vadd.f32 %v6515_v58, %v13085_v27  ;;  %v6558_v32 = vld [vmem:[#allocation2 + $0x1f8] sm:$0xff]  ;;  %v9556_v8 = vld [vmem:[#allocation4 + $0x248] sm:$0xff]  ;;  %v6555_v53 = vld [vmem:[#allocation2 + $0x1e0] sm:$0xff] }
0x1891   :  { %v6595_v28 = vmul.f32 0.2, %v6563_v31  ;;  %v6428_v20 = vpop.f32.mrf.mxu1  ;;  %v6517_v2 = vpop.f32.mrf.mxu0  ;;  %v6608_v4 = vsel %vm6576_vm7, %v6560_v25, %v6592_v7  ;;  %v6597_v22 = vmul.f32 0.2, %v13111_v44  ;;  %vm6578_vm8 = vcmp.gt.f32.partialorder %v6562_v30, 0.0  ;;  %v6557_v24 = vld [vmem:[#allocation2 + $0x1f0] sm:$0xff] }
0x1892   :  { %v6535_v12 = vadd.f32 %v6428_v20, %v13090_v13  ;;  %v6537_v0 = vadd.f32 %v6517_v2, %v13093_v21  ;;  %6752 = vmatprep.mubr.f32.mxu1 %v6608_v4  ;;  %v13120_v46 = vadd.f32 %v6551_v61, %v6534_v49  ;;  %v6594_v33 = vmul.f32 0.2, %v6562_v30  ;;  %v9557_v61 = vld [vmem:[#allocation4 + $0x240] sm:$0xff]  ;;  %v9558_v2 = vld [vmem:[#allocation4 + $0x270] sm:$0xff]  ;;  %v9560_v4 = vld [vmem:[#allocation4 + $0x228] sm:$0xff] }
0x1893   :  { %6753 = vmatmul.mubr.f32.vlgmr.msra.gmra.mxu1 %v6607_v10  ;;  %v6432_v3 = vpop.f32.mrf.mxu1  ;;  %v6521_v39 = vpop.f32.mrf.mxu0  ;;  %vm6580_vm9 = vcmp.gt.f32.partialorder %v6564_v41, 0.0  ;;  %v6596_v18 = vmul.f32 0.2, %v6564_v41  ;;  %v13122_v43 = vadd.f32 %v6553_v60, %v6536_v40  ;;  %vm6582_vm10 = vcmp.gt.f32.partialorder %v6566_v23, 0.0 }
0x1894   :  { %v6568_v36 = vadd.f32 %v6552_v15, %v6535_v12  ;;  %v6570_v56 = vadd.f32 %v6554_v38, %v6537_v0  ;;  %6905 = vmatpush1.msra.mxu1 %v9555_v63  ;;  %v6610_v11 = vsel %vm6578_vm8, %v6562_v30, %v6594_v33  ;;  %v6538_v62 = vadd.f32 %v6432_v3, %v13096_v45  ;;  %v9559_v38 = vld [vmem:[#allocation4 + $0x258] sm:$0xff]  ;;  %v9561_v12 = vld [vmem:[#allocation4 + $0x220] sm:$0xff]  ;;  %v9563_v3 = vld [vmem:[#allocation4 + $0x208] sm:$0xff] }
0x1895   :  { %v6540_v25 = vadd.f32 %v6521_v39, %v13099_v50  ;;  %v6434_v54 = vpop.f32.mrf.mxu1  ;;  %v6523_v9 = vpop.f32.mrf.mxu0  ;;  %v6612_v26 = vsel %vm6580_vm9, %v6564_v41, %v6596_v18  ;;  %6906 = vmatprep.subr.mxu1 %v9556_v8  ;;  %6837 = vmatprep.mubr.f32.mxu0 %v6610_v11  ;;  %v6598_v30 = vmul.f32 0.2, %v6566_v23  ;;  %vm6579_vm11 = vcmp.gt.f32.partialorder %v6563_v31, 0.0  ;;  %v9571_v8 = vld [vmem:[#allocation4 + $0x1e0] sm:$0xff] }
0x1896   :  { %v6539_v1 = vadd.f32 %v6434_v54, %v13102_v17  ;;  %v6541_v58 = vadd.f32 %v6523_v9, %v13105_v29  ;;  %6757 = vmatprep.mubr.f32.mxu1 %v6612_v26  ;;  %v6599_v7 = vmul.f32 0.2, %v13120_v46  ;;  %6838 = vmatmul.mubr.f32.vlgmr.msra.gmra.mxu0 %v6609_v19  ;;  %v6611_v49 = vsel %vm6579_vm11, %v6563_v31, %v6595_v28  ;;  %v9570_v26 = vld [vmem:[#allocation4 + $0x1f8] sm:$0xff] }
0x1897   :  { %vm6581_vm12 = vcmp.gt.f32.partialorder %v13111_v44, 0.0  ;;  %6907 = vmatpush1.msra.mxu1 %v9557_v61  ;;  %v6601_v41 = vmul.f32 0.2, %v13122_v43  ;;  %v6614_v60 = vsel %vm6582_vm10, %v6566_v23, %v6598_v30  ;;  %v6571_v20 = vadd.f32 %v6555_v53, %v6538_v62  ;;  %6994 = vmatpush1.msra.mxu0 %v9558_v2  ;;  %v9564_v62 = vld [vmem:[#allocation4 + $0x238] sm:$0xff]  ;;  %v9572_v53 = vld [vmem:[#allocation4 + $0x1f0] sm:$0xff]  ;;  %v9579_v61 = vld [vmem:[#allocation4 + $0x1a0] sm:$0xff] }
0x1898   :  { %v6572_v40 = vadd.f32 %v6556_v16, %v6539_v1  ;;  %v6574_v10 = vadd.f32 %v6558_v32, %v6541_v58  ;;  %6758 = vmatmul.mubr.f32.gmra.mxu1 %v6611_v49  ;;  %v6573_v15 = vadd.f32 %v6557_v24, %v6540_v25  ;;  %6842 = vmatprep.mubr.f32.mxu0 %v6614_v60  ;;  %vm6584_vm13 = vcmp.gt.f32.partialorder %v6568_v36, 0.0  ;;  %v9565_v25 = vld [vmem:[#allocation4 + $0x230] sm:$0xff]  ;;  %v9567_v16 = vld [vmem:[#allocation4 + $0x200] sm:$0xff]  ;;  %v9573_v24 = vld [vmem:[#allocation4 + $0x1c8] sm:$0xff] }
0x1899   :  { %vm6586_vm14 = vcmp.gt.f32.partialorder %v6570_v56, 0.0  ;;  %v6613_v31 = vsel %vm6581_vm12, %v13111_v44, %v6597_v22  ;;  %v6600_v19 = vmul.f32 0.2, %v6568_v36  ;;  %v6602_v28 = vmul.f32 0.2, %v6570_v56  ;;  %6995 = vmatprep.subr.mxu0 %v9559_v38  ;;  %6908 = vmatprep.subr.mxu1 %v9560_v4  ;;  %v9562_v22 = vld [vmem:[#allocation4 + $0x250] sm:$0xff] }
0x189a   :  { %vm6583_vm15 = vcmp.gt.f32.partialorder %v13120_v46, 0.0  ;;  %6843 = vmatmul.mubr.f32.gmra.mxu0 %v6613_v31  ;;  %vm6585_vm0 = vcmp.gt.f32.partialorder %v13122_v43, 0.0  ;;  %vm6588_vm2 = vcmp.gt.f32.partialorder %v6572_v40, 0.0  ;;  %v6604_v23 = vmul.f32 0.2, %v6572_v40  ;;  %6909 = vmatpush1.msra.mxu1 %v9561_v12  ;;  %v9568_v32 = vld [vmem:[#allocation4 + $0x210] sm:$0xff] }
0x189b   :  { %v6616_v0 = vsel %vm6584_vm13, %v6568_v36, %v6600_v19  ;;  %v6618_v33 = vsel %vm6586_vm14, %v6570_v56, %v6602_v28  ;;  %vm6590_vm3 = vcmp.gt.f32.partialorder %v6574_v10, 0.0  ;;  %v6606_v44 = vmul.f32 0.2, %v6574_v10  ;;  %6996 = vmatpush1.msra.mxu0 %v9562_v22  ;;  %6910 = vmatprep.subr.mxu1 %v9563_v3  ;;  %v9574_v1 = vld [vmem:[#allocation4 + $0x1d8] sm:$0xff]  ;;  %v9575_v58 = vld [vmem:[#allocation4 + $0x1c0] sm:$0xff]  ;;  %v9576_v30 = vld [vmem:[#allocation4 + $0x1d0] sm:$0xff] }
0x189c   :  { %v6603_v39 = vmul.f32 0.2, %v6571_v20  ;;  %6762 = vmatprep.mubr.f32.mxu1 %v6616_v0  ;;  %6847 = vmatprep.mubr.f32.mxu0 %v6618_v33  ;;  %v6615_v18 = vsel %vm6583_vm15, %v13120_v46, %v6599_v7  ;;  %v6620_v63 = vsel %vm6588_vm2, %v6572_v40, %v6604_v23  ;;  %v6605_v11 = vmul.f32 0.2, %v6573_v15  ;;  %v9566_v46 = vld [vmem:[#allocation4 + $0x218] sm:$0xff]  ;;  %v9577_v7 = vld [vmem:[#allocation4 + $0x1a8] sm:$0xff] }
0x189d   :  { %6763 = vmatmul.mubr.f32.gmra.mxu1 %v6615_v18  ;;  %v6617_v36 = vsel %vm6585_vm0, %v13122_v43, %v6601_v41  ;;  %v6622_v56 = vsel %vm6590_vm3, %v6574_v10, %v6606_v44  ;;  %vm6587_vm4 = vcmp.gt.f32.partialorder %v6571_v20, 0.0  ;;  %6997 = vmatprep.subr.mxu0 %v9564_v62  ;;  %vm6589_vm5 = vcmp.gt.f32.partialorder %v6573_v15, 0.0  ;;  %v9569_v43 = vld [vmem:[#allocation4 + $0x1e8] sm:$0xff]  ;;  %v9578_v49 = vld [vmem:[#allocation4 + $0x1b8] sm:$0xff]  ;;  %v9580_v41 = vld [vmem:[#allocation4 + $0x1b0] sm:$0xff] }
0x189e   :  { %6848 = vmatmul.mubr.f32.gmra.mxu0 %v6617_v36  ;;  %6767 = vmatprep.mubr.f32.mxu1 %v6620_v63  ;;  %v6619_v54 = vsel %vm6587_vm4, %v6571_v20, %v6603_v39  ;;  %v6621_v9 = vsel %vm6589_vm5, %v6573_v15, %v6605_v11  ;;  %v9581_v40 = vld [vmem:[#allocation4 + $0x188] sm:$0xff]  ;;  %v9582_v10 = vld [vmem:[#allocation4 + $0x198] sm:$0xff]  ;;  %v9583_v60 = vld [vmem:[#allocation4 + $0x180] sm:$0xff] }
0x189f   :  { %6852 = vmatprep.mubr.f32.mxu0 %v6622_v56  ;;  %6998 = vmatpush1.msra.mxu0 %v9565_v25  ;;  %v9584_v20 = vld [vmem:[#allocation4 + $0x190] sm:$0xff]  ;;  %v9585_v15 = vld [vmem:[#allocation4 + $0x168] sm:$0xff]  ;;  %v9586_v2 = vld [vmem:[#allocation4 + $0x178] sm:$0xff] }
0x18a0   :  { %6999 = vmatprep.subr.mxu0 %v9566_v46  ;;  %6911 = vmatpush1.msra.mxu1 %v9567_v16  ;;  %v9587_v31 = vld [vmem:[#allocation4 + $0x160] sm:$0xff]  ;;  %v9588_v19 = vld [vmem:[#allocation4 + $0x170] sm:$0xff]  ;;  %v9589_v28 = vld [vmem:[#allocation4 + $0x148] sm:$0xff] }
0x18a1   :  { %6768 = vmatmul.mubr.f32.gmra.mxu1 %v6619_v54  ;;  %7000 = vmatpush1.msra.mxu0 %v9568_v32  ;;  %v9590_v38 = vld [vmem:[#allocation4 + $0x158] sm:$0xff]  ;;  %v9591_v4 = vld [vmem:[#allocation4 + $0x140] sm:$0xff]  ;;  %v9592_v23 = vld [vmem:[#allocation4 + $0x150] sm:$0xff] }
0x18a2   :  { %6853 = vmatmul.mubr.f32.gmra.mxu0 %v6621_v9  ;;  %6912 = vmatprep.subr.mxu1 %v9569_v43  ;;  %v9593_v12 = vld [vmem:[#allocation4 + $0x128] sm:$0xff]  ;;  %v9594_v0 = vld [vmem:[#allocation4 + $0x138] sm:$0xff]  ;;  %v9595_v33 = vld [vmem:[#allocation4 + $0x120] sm:$0xff] }
0x18a3   :  { %7001 = vmatprep.subr.mxu0 %v9570_v26  ;;  %6913 = vmatpush1.msra.mxu1 %v9571_v8  ;;  %v9596_v44 = vld [vmem:[#allocation4 + $0x130] sm:$0xff]  ;;  %v9597_v22 = vld [vmem:[#allocation4 + $0x108] sm:$0xff]  ;;  %v9598_v3 = vld [vmem:[#allocation4 + $0x118] sm:$0xff] }
0x18a4   :  { %7002 = vmatpush1.msra.mxu0 %v9572_v53  ;;  %6914 = vmatprep.subr.mxu1 %v9573_v24  ;;  %v9599_v39 = vld [vmem:[#allocation4 + $0x100] sm:$0xff]  ;;  %v9600_v18 = vld [vmem:[#allocation4 + $0x110] sm:$0xff]  ;;  %v9601_v63 = vld [vmem:[#allocation4 + $0xe8] sm:$0xff] }
0x18a5   :  { %7003 = vmatprep.subr.mxu0 %v9574_v1  ;;  %6915 = vmatpush1.msra.mxu1 %v9575_v58  ;;  %v9602_v11 = vld [vmem:[#allocation4 + $0xf8] sm:$0xff]  ;;  %v9603_v36 = vld [vmem:[#allocation4 + $0xe0] sm:$0xff]  ;;  %v9604_v56 = vld [vmem:[#allocation4 + $0xf0] sm:$0xff] }
0x18a6   :  { %7004 = vmatpush1.msra.mxu0 %v9576_v30  ;;  %6916 = vmatprep.subr.mxu1 %v9577_v7  ;;  %v9605_v62 = vld [vmem:[#allocation4 + $0xc8] sm:$0xff]  ;;  %v9606_v25 = vld [vmem:[#allocation4 + $0xd8] sm:$0xff]  ;;  %v9607_v54 = vld [vmem:[#allocation4 + $0xc0] sm:$0xff] }
0x18a7   :  { %7005 = vmatprep.subr.mxu0 %v9578_v49  ;;  %6917 = vmatpush1.msra.mxu1 %v9579_v61  ;;  %v9608_v46 = vld [vmem:[#allocation4 + $0xd0] sm:$0xff]  ;;  %v9609_v16 = vld [vmem:[#allocation4 + $0xa8] sm:$0xff]  ;;  %v9610_v9 = vld [vmem:[#allocation4 + $0xb8] sm:$0xff] }
0x18a8   :  { %7006 = vmatpush1.msra.mxu0 %v9580_v41  ;;  %6918 = vmatprep.subr.mxu1 %v9581_v40  ;;  %v9611_v32 = vld [vmem:[#allocation4 + $0xa0] sm:$0xff]  ;;  %v9612_v43 = vld [vmem:[#allocation4 + $0xb0] sm:$0xff]  ;;  %v9613_v26 = vld [vmem:[#allocation4 + $0x88] sm:$0xff] }
0x18a9   :  { %7007 = vmatprep.subr.mxu0 %v9582_v10  ;;  %6919 = vmatpush1.msra.mxu1 %v9583_v60  ;;  %v9614_v8 = vld [vmem:[#allocation4 + $0x98] sm:$0xff]  ;;  %v9615_v53 = vld [vmem:[#allocation4 + $0x80] sm:$0xff]  ;;  %v9616_v24 = vld [vmem:[#allocation4 + $0x90] sm:$0xff] }
0x18aa   :  { %7008 = vmatpush1.msra.mxu0 %v9584_v20  ;;  %6920 = vmatprep.subr.mxu1 %v9585_v15 }
0x18ab   :  { %7009 = vmatprep.subr.mxu0 %v9586_v2  ;;  %6921 = vmatpush1.msra.mxu1 %v9587_v31 }
0x18ac   :  { %7010 = vmatpush1.msra.mxu0 %v9588_v19  ;;  %6922 = vmatprep.subr.mxu1 %v9589_v28 }
0x18ad   :  { %7011 = vmatprep.subr.mxu0 %v9590_v38  ;;  %6923 = vmatpush1.msra.mxu1 %v9591_v4 }
0x18ae   :  { %7012 = vmatpush1.msra.mxu0 %v9592_v23  ;;  %6924 = vmatprep.subr.mxu1 %v9593_v12 }
0x18af   :  { %7013 = vmatprep.subr.mxu0 %v9594_v0  ;;  %6925 = vmatpush1.msra.mxu1 %v9595_v33 }
0x18b0   :  { %7014 = vmatpush1.msra.mxu0 %v9596_v44  ;;  %6926 = vmatprep.subr.mxu1 %v9597_v22 }
0x18b1   :  { %7015 = vmatprep.subr.mxu0 %v9598_v3  ;;  %6927 = vmatpush1.msra.mxu1 %v9599_v39 }
0x18b2   :  { %7016 = vmatpush1.msra.mxu0 %v9600_v18  ;;  %6928 = vmatprep.subr.mxu1 %v9601_v63 }
0x18b3   :  { %7017 = vmatprep.subr.mxu0 %v9602_v11  ;;  %6929 = vmatpush1.msra.mxu1 %v9603_v36 }
0x18b4   :  { %7018 = vmatpush1.msra.mxu0 %v9604_v56  ;;  %6930 = vmatprep.subr.mxu1 %v9605_v62 }
0x18b5   :  { %7019 = vmatprep.subr.mxu0 %v9606_v25  ;;  %6931 = vmatpush1.msra.mxu1 %v9607_v54 }
0x18b6   :  { %7020 = vmatpush1.msra.mxu0 %v9608_v46  ;;  %6932 = vmatprep.subr.mxu1 %v9609_v16 }
0x18b7   :  { %7021 = vmatprep.subr.mxu0 %v9610_v9  ;;  %6933 = vmatpush1.msra.mxu1 %v9611_v32 }
0x18b8   :  { %7022 = vmatpush1.msra.mxu0 %v9612_v43  ;;  %6934 = vmatprep.subr.mxu1 %v9613_v26 }
0x18b9   :  { %7023 = vmatprep.subr.mxu0 %v9614_v8  ;;  %6935 = vmatpush1.msra.mxu1 %v9615_v53 }
0x18ba   :  { %6968 = vmatprep.mubr.f32.mxu1 %v13524_v55  ;;  %7024 = vmatpush1.msra.mxu0 %v9616_v24 }
0x18bb   :  { %7057 = vmatprep.mubr.f32.mxu0 %v13524_v55 }
0x1953   :  { %v8880_v1 = vpop.f32.mrf.mxu1 }
0x1955   :  { %v8881_v58 = vpop.f32.mrf.mxu1 }
0x1956   :  { %v8924_v30 = vpop.f32.mrf.mxu0  ;;  %v8882_v40 = vadd.f32 %v8881_v58, %v8880_v1 }
0x1958   :  { %v8883_v7 = vpop.f32.mrf.mxu1  ;;  %v8925_v49 = vpop.f32.mrf.mxu0 }
0x1959   :  { %v8926_v10 = vadd.f32 %v8925_v49, %v8924_v30 }
0x195a   :  { %v8884_v61 = vpop.f32.mrf.mxu1  ;;  %v8927_v41 = vpop.f32.mrf.mxu0 }
0x195b   :  { %v8885_v60 = vadd.f32 %v8884_v61, %v8883_v7  ;;  %v6840_v19 = vadd.f32 %v8926_v10, %v8882_v40 }
0x195c   :  { %v8928_v20 = vpop.f32.mrf.mxu0 }
0x195d   :  { %v8929_v15 = vadd.f32 %v8928_v20, %v8927_v41  ;;  %v8886_v2 = vpop.f32.mrf.mxu1 }
0x195e   :  { %v8930_v31 = vpop.f32.mrf.mxu0 }
0x195f   :  { %v6845_v28 = vadd.f32 %v8929_v15, %v8885_v60  ;;  %v8887_v38 = vpop.f32.mrf.mxu1 }
0x1960   :  { %v8931_v4 = vpop.f32.mrf.mxu0  ;;  %v8888_v44 = vadd.f32 %v8887_v38, %v8886_v2 }
0x1961   :  { %v6858_v23 = vmax.f32 %v6840_v19, %v6845_v28  ;;  %v8889_v12 = vpop.f32.mrf.mxu1  ;;  %v8932_v22 = vadd.f32 %v8931_v4, %v8930_v31 }
0x1962   :  { %v8933_v0 = vpop.f32.mrf.mxu0 }
0x1963   :  { %v6859_v33 = vrot.slane %v6858_v23, 4  ;;  %v8890_v3 = vpop.f32.mrf.mxu1  ;;  %v6850_v56 = vadd.f32 %v8932_v22, %v8888_v44 }
0x1964   :  { %v8891_v39 = vadd.f32 %v8890_v3, %v8889_v12  ;;  %v8934_v18 = vpop.f32.mrf.mxu0 }
0x1965   :  { %v6860_v63 = vmax.f32 %v6858_v23, %v6859_v33  ;;  %v8935_v11 = vadd.f32 %v8934_v18, %v8933_v0 }
0x1967   :  { %v6861_v36 = vrot.slane %v6860_v63, 2  ;;  %v6855_v62 = vadd.f32 %v8935_v11, %v8891_v39 }
0x1969   :  { %v6862_v25 = vmax.f32 %v6860_v63, %v6861_v36  ;;  %v6865_v54 = vmax.f32 %v6850_v56, %v6855_v62 }
0x196b   :  { %v6863_v46 = vrot.slane %v6862_v25, 1  ;;  %v6866_v16 = vrot.slane %v6865_v54, 4 }
0x196d   :  { %v6864_v9 = vmax.f32 %v6862_v25, %v6863_v46  ;;  %v6867_v32 = vmax.f32 %v6865_v54, %v6866_v16 }
0x196f   :  { %v6872_v43 = vsub.f32 %v6840_v19, %v6864_v9  ;;  %v6873_v26 = vsub.f32 %v6845_v28, %v6864_v9  ;;  %v6868_v8 = vrot.slane %v6867_v32, 2 }
0x1971   :  { %v6876_v53 = vmul.f32 1.442695, %v6872_v43  ;;  %v6878_v24 = vmul.f32 1.442695, %v6873_v26  ;;  %v6869_v1 = vmax.f32 %v6867_v32, %v6868_v8 }
0x1973   :  { %9213 = vpow2.f32 %v6876_v53  ;;  %v6870_v58 = vrot.slane %v6869_v1, 1 }
0x1974   :  { %9215 = vpow2.f32 %v6878_v24 }
0x1975   :  { %v6871_v30 = vmax.f32 %v6869_v1, %v6870_v58 }
0x1977   :  { %v6874_v7 = vsub.f32 %v6850_v56, %v6871_v30  ;;  %v6875_v49 = vsub.f32 %v6855_v62, %v6871_v30 }
0x1979   :  { %v6880_v61 = vmul.f32 1.442695, %v6874_v7  ;;  %v6882_v41 = vmul.f32 1.442695, %v6875_v49 }
0x197b   :  { %9217 = vpow2.f32 %v6880_v61 }
0x197c   :  { %9219 = vpow2.f32 %v6882_v41 }
0x1980   :  { %v9214_v40 = vpop.eup %9213 }
0x1981   :  { %v9216_v10 = vpop.eup %9215 }
0x1982   :  { %v6884_v60 = vadd.f32 %v9216_v10, %v9214_v40 }
0x1984   :  { %v6885_v20 = vrot.slane %v6884_v60, 4 }
0x1986   :  { %v6886_v15 = vadd.f32 %v6885_v20, %v6884_v60 }
0x1988   :  { %v9218_v2 = vpop.eup %9217  ;;  %v6887_v31 = vrot.slane %v6886_v15, 2 }
0x1989   :  { %v9220_v19 = vpop.eup %9219 }
0x198a   :  { %v6888_v28 = vadd.f32 %v6887_v31, %v6886_v15  ;;  %v6891_v38 = vadd.f32 %v9220_v19, %v9218_v2  ;;  %v9630_v31 = vld [vmem:[%s13485_s5 + $0x200] sm:$0xff] }
0x198c   :  { %v6889_v4 = vrot.slane %v6888_v28, 1  ;;  %v6892_v23 = vrot.slane %v6891_v38, 4 }
0x198e   :  { %v6890_v12 = vadd.f32 %v6889_v4, %v6888_v28  ;;  %v6893_v0 = vadd.f32 %v6892_v23, %v6891_v38  ;;  %v9632_v28 = vld [vmem:[%s13485_s5 + $0x180] sm:$0xff]  ;;  %v9634_v38 = vld [vmem:[%s13485_s5 + $0x1f8] sm:$0xff] }
0x198f   :  { %v9635_v4 = vld [vmem:[%s13485_s5 + $0x78] sm:$0xff] }
0x1990   :  { %9221 = vrcp.f32 %v6890_v12  ;;  %v6894_v33 = vrot.slane %v6893_v0, 2  ;;  %v9636_v23 = vld [vmem:[%s13485_s5 + $0x178] sm:$0xff]  ;;  %v9637_v12 = vld [vmem:[%s13485_s5 + $0xf0] sm:$0xff] }
0x1992   :  { %v6895_v44 = vadd.f32 %v6894_v33, %v6893_v0  ;;  %v9638_v0 = vld [vmem:[%s13485_s5 + $0x1f0] sm:$0xff] }
0x1993   :  { %v9639_v33 = vld [vmem:[%s13485_s5 + $0x70] sm:$0xff] }
0x1994   :  { %v6896_v22 = vrot.slane %v6895_v44, 1 }
0x1996   :  { %v6897_v3 = vadd.f32 %v6896_v22, %v6895_v44  ;;  %v9640_v44 = vld [vmem:[%s13485_s5 + $0x170] sm:$0xff]  ;;  %v9641_v22 = vld [vmem:[%s13485_s5 + $0xe8] sm:$0xff] }
0x1998   :  { %9223 = vrcp.f32 %v6897_v3  ;;  %v9642_v3 = vld [vmem:[%s13485_s5 + $0x1e8] sm:$0xff] }
0x199d   :  { %v9222_v39 = vpop.eup %9221 }
0x199e   :  { %v6900_v18 = vmul.f32 %v9222_v39, %v9214_v40  ;;  %v6901_v63 = vmul.f32 %v9222_v39, %v9216_v10  ;;  %v9643_v39 = vld [vmem:[%s13485_s5 + $0x68] sm:$0xff] }
0x19a0   :  { %6969 = vmatmul.mubr.f32.vlgmr.msra.gmra.mxu1 %v6900_v18  ;;  %7058 = vmatmul.mubr.f32.vlgmr.msra.gmra.mxu0 %v6900_v18  ;;  %v9644_v18 = vld [vmem:[%s13485_s5 + $0x168] sm:$0xff] }
0x19a1   :  { %6974 = vmatprep.mubr.f32.mxu1 %v13524_v55  ;;  %7063 = vmatprep.mubr.f32.mxu0 %v13524_v55 }
0x19a4   :  { %6975 = vmatmul.mubr.f32.gmra.mxu1 %v6901_v63  ;;  %7064 = vmatmul.mubr.f32.gmra.mxu0 %v6901_v63  ;;  %v9645_v63 = vld [vmem:[%s13485_s5 + $0xe0] sm:$0xff] }
0x19a5   :  { %v9224_v11 = vpop.eup %9223  ;;  %6980 = vmatprep.mubr.f32.mxu1 %v13524_v55  ;;  %7069 = vmatprep.mubr.f32.mxu0 %v13524_v55 }
0x19a6   :  { %v6902_v36 = vmul.f32 %v9224_v11, %v9218_v2  ;;  %v6903_v56 = vmul.f32 %v9224_v11, %v9220_v19  ;;  %v9627_v2 = vld [vmem:[%s13485_s5 + $0x88] sm:$0xff]  ;;  %v9631_v19 = vld [vmem:[%s13485_s5 + $0x80] sm:$0xff] }
0x19a7   :  { %v9646_v11 = vld [vmem:[%s13485_s5 + $0x1e0] sm:$0xff] }
0x19a8   :  { %6981 = vmatmul.mubr.f32.gmra.mxu1 %v6902_v36  ;;  %7070 = vmatmul.mubr.f32.gmra.mxu0 %v6902_v36  ;;  %v9647_v36 = vld [vmem:[%s13485_s5 + $0x60] sm:$0xff] }
0x19a9   :  { %6986 = vmatprep.mubr.f32.mxu1 %v13524_v55  ;;  %7075 = vmatprep.mubr.f32.mxu0 %v13524_v55 }
0x19ac   :  { %6987 = vmatmul.mubr.f32.gmra.mxu1 %v6903_v56  ;;  %7076 = vmatmul.mubr.f32.gmra.mxu0 %v6903_v56  ;;  %v9648_v56 = vld [vmem:[%s13485_s5 + $0x160] sm:$0xff] }
0x19ad   :  { %7162 = vmatprep.mubr.f32.mxu1 %v13524_v55  ;;  %7251 = vmatprep.mubr.f32.mxu0 %v13524_v55 }
0x1a60   :  { %v6970_v62 = vpop.f32.mrf.mxu1  ;;  %v7059_v25 = vpop.f32.mrf.mxu0 }
0x1a62   :  { %v6972_v54 = vpop.f32.mrf.mxu1  ;;  %v7061_v46 = vpop.f32.mrf.mxu0 }
0x1a64   :  { %v6976_v16 = vpop.f32.mrf.mxu1  ;;  %v7065_v9 = vpop.f32.mrf.mxu0 }
0x1a66   :  { %v6978_v32 = vpop.f32.mrf.mxu1  ;;  %v7067_v43 = vpop.f32.mrf.mxu0 }
0x1a68   :  { %v6982_v26 = vpop.f32.mrf.mxu1  ;;  %v7071_v8 = vpop.f32.mrf.mxu0 }
0x1a69   :  { %v7090_v20 = vmul.f32 %v6982_v26, %v13082_v35  ;;  %v7092_v15 = vmul.f32 %v7071_v8, %v13085_v27  ;;  %v7085_v35 = vmul.f32 %v7061_v46, %v13065_v52  ;;  %v7082_v27 = vmul.f32 %v6970_v62, %v13056_v57  ;;  %v9617_v57 = vld [vmem:[%s13485_s5 + $0x118] sm:$0xff]  ;;  %v9621_v52 = vld [vmem:[%s13485_s5 + $0x110] sm:$0xff]  ;;  %v9657_v26 = vld [vmem:[%s13485_s5 + $0xc8] sm:$0xff] }
0x1a6a   :  { %v6984_v53 = vpop.f32.mrf.mxu1  ;;  %v7073_v24 = vpop.f32.mrf.mxu0  ;;  %v9649_v62 = vld [vmem:[%s13485_s5 + $0xd8] sm:$0xff]  ;;  %v9658_v8 = vld [vmem:[%s13485_s5 + $0x1c8] sm:$0xff] }
0x1a6b   :  { %v7091_v10 = vmul.f32 %v6984_v53, %v13090_v13  ;;  %v7093_v60 = vmul.f32 %v7073_v24, %v13093_v21  ;;  %v7088_v13 = vmul.f32 %v7065_v9, %v13071_v42  ;;  %v7083_v21 = vmul.f32 %v6972_v54, %v13062_v34  ;;  %v9619_v34 = vld [vmem:[%s13485_s5 + $0x98] sm:$0xff]  ;;  %v9623_v42 = vld [vmem:[%s13485_s5 + $0x90] sm:$0xff]  ;;  %v9659_v53 = vld [vmem:[%s13485_s5 + $0x48] sm:$0xff] }
0x1a6c   :  { %v6988_v1 = vpop.f32.mrf.mxu1  ;;  %v7077_v58 = vpop.f32.mrf.mxu0  ;;  %v9651_v54 = vld [vmem:[%s13485_s5 + $0x58] sm:$0xff]  ;;  %v9654_v9 = vld [vmem:[%s13485_s5 + $0x1d0] sm:$0xff]  ;;  %v9660_v24 = vld [vmem:[%s13485_s5 + $0x148] sm:$0xff] }
0x1a6d   :  { %v7094_v41 = vmul.f32 %v6988_v1, %v13096_v45  ;;  %v7096_v40 = vmul.f32 %v7077_v58, %v13099_v50  ;;  %v7086_v45 = vmul.f32 %v6976_v16, %v13068_v37  ;;  %v9622_v37 = vld [vmem:[%s13485_s5 + $0x210] sm:$0xff]  ;;  %v9626_v50 = vld [vmem:[%s13485_s5 + $0x208] sm:$0xff]  ;;  %v9652_v46 = vld [vmem:[%s13485_s5 + $0x158] sm:$0xff] }
0x1a6e   :  { %v6990_v30 = vpop.f32.mrf.mxu1  ;;  %v7079_v7 = vpop.f32.mrf.mxu0  ;;  %v9653_v16 = vld [vmem:[%s13485_s5 + $0xd0] sm:$0xff]  ;;  %v9661_v1 = vld [vmem:[%s13485_s5 + $0xc0] sm:$0xff] }
0x1a6f   :  { %v7095_v49 = vmul.f32 %v6990_v30, %v13102_v17  ;;  %v7097_v61 = vmul.f32 %v7079_v7, %v13105_v29  ;;  %v7087_v17 = vmul.f32 %v6978_v32, %v13076_v14  ;;  %v7089_v29 = vmul.f32 %v7067_v43, %v13079_v6  ;;  %v9625_v6 = vld [vmem:[%s13485_s5 + $0x108] sm:$0xff]  ;;  %v9655_v32 = vld [vmem:[%s13485_s5 + $0x50] sm:$0xff]  ;;  %v9662_v58 = vld [vmem:[%s13485_s5 + $0x1c0] sm:$0xff] }
0x1a70   :  { %v7084_v14 = vmul.f32 %v7059_v25, %v13059_v5  ;;  %v9618_v5 = vld [vmem:[%s13485_s5 + $0x218] sm:$0xff]  ;;  %v9656_v43 = vld [vmem:[%s13485_s5 + $0x150] sm:$0xff]  ;;  %v9663_v30 = vld [vmem:[%s13485_s5 + $0x40] sm:$0xff] }
0x1a71   :  { %7122 = vmatprep.subr.mxu1 %v7095_v49  ;;  %7211 = vmatprep.subr.mxu0 %v7097_v61  ;;  %v9650_v25 = vld [vmem:[%s13485_s5 + $0x1d8] sm:$0xff]  ;;  %v9664_v7 = vld [vmem:[%s13485_s5 + $0x140] sm:$0xff] }
0x1a72   :  { %7123 = vmatpush1.msra.mxu1 %v7094_v41  ;;  %7212 = vmatpush1.msra.mxu0 %v7096_v40  ;;  %v9665_v49 = vld [vmem:[%s13485_s5 + $0xb8] sm:$0xff] }
0x1a73   :  { %7124 = vmatprep.subr.mxu1 %v7091_v10  ;;  %7213 = vmatprep.subr.mxu0 %v7093_v60  ;;  %v9666_v61 = vld [vmem:[%s13485_s5 + $0x1b8] sm:$0xff]  ;;  %v9669_v10 = vld [vmem:[%s13485_s5 + $0xb0] sm:$0xff] }
0x1a74   :  { %7125 = vmatpush1.msra.mxu1 %v7090_v20  ;;  %7214 = vmatpush1.msra.mxu0 %v7092_v15  ;;  %v9667_v41 = vld [vmem:[%s13485_s5 + $0x38] sm:$0xff]  ;;  %v9670_v60 = vld [vmem:[%s13485_s5 + $0x1b0] sm:$0xff] }
0x1a75   :  { %7126 = vmatprep.subr.mxu1 %v7087_v17  ;;  %7215 = vmatprep.subr.mxu0 %v7089_v29  ;;  %v9668_v40 = vld [vmem:[%s13485_s5 + $0x138] sm:$0xff]  ;;  %v9671_v20 = vld [vmem:[%s13485_s5 + $0x30] sm:$0xff]  ;;  %v9673_v17 = vld [vmem:[%s13485_s5 + $0xa8] sm:$0xff] }
0x1a76   :  { %7127 = vmatpush1.msra.mxu1 %v7086_v45  ;;  %7216 = vmatpush1.msra.mxu0 %v7088_v13  ;;  %v9672_v15 = vld [vmem:[%s13485_s5 + $0x130] sm:$0xff]  ;;  %v9674_v29 = vld [vmem:[%s13485_s5 + $0x1a8] sm:$0xff] }
0x1a77   :  { %7128 = vmatprep.subr.mxu1 %v7083_v21  ;;  %7217 = vmatprep.subr.mxu0 %v7085_v35  ;;  %v9675_v45 = vld [vmem:[%s13485_s5 + $0x28] sm:$0xff]  ;;  %v9677_v21 = vld [vmem:[%s13485_s5 + $0xa0] sm:$0xff] }
0x1a78   :  { %7129 = vmatpush1.msra.mxu1 %v7082_v27  ;;  %7218 = vmatpush1.msra.mxu0 %v7084_v14  ;;  %v9676_v13 = vld [vmem:[%s13485_s5 + $0x128] sm:$0xff]  ;;  %v9678_v35 = vld [vmem:[%s13485_s5 + $0x1a0] sm:$0xff] }
0x1a79   :  { %8266 = vmatmul.mubr.msk.f32.vlgmr.msra.gmra.mxu1 %vm320_vm1, %v12818_v48  ;;  %8270 = vmatmul.mubr.msk.f32.vlgmr.msra.gmra.mxu0 %vm320_vm1, %v12818_v48  ;;  %v9620_v48 = vld [vmem:[%s13485_s5 + $0x198] sm:$0xff]  ;;  %v9679_v27 = vld [vmem:[%s13485_s5 + $0x20] sm:$0xff] }
0x1a7a   :  { %7168 = vmatprep.mubr.f32.mxu1 %v13524_v55  ;;  %7257 = vmatprep.mubr.f32.mxu0 %v13524_v55  ;;  %v9680_v14 = vld [vmem:[%s13485_s5 + $0x120] sm:$0xff] }
0x1a7b   :  { %8936 = vmatprep.subr.mxu1 %v9617_v57  ;;  %8980 = vmatprep.subr.mxu0 %v9618_v5 }
0x1a7c   :  { %8937 = vmatpush3.msra.mxu1 %v9619_v34  ;;  %8981 = vmatpush3.msra.mxu0 %v9620_v48  ;;  %v9681_v48 = vld [vmem:[#allocation4 + $0x10] sm:$0xff] }
0x1a7d   :  { %8267 = vmatmul.mubr.msk.f32.gmra.mxu1 %vm320_vm1, %v12841_v59  ;;  %8271 = vmatmul.mubr.msk.f32.gmra.mxu0 %vm320_vm1, %v12841_v59  ;;  %v9624_v59 = vld [vmem:[%s13485_s5 + $0x190] sm:$0xff] }
0x1a7e   :  { %7174 = vmatprep.mubr.f32.mxu1 %v13524_v55  ;;  %7263 = vmatprep.mubr.f32.mxu0 %v13524_v55 }
0x1a7f   :  { %8938 = vmatprep.subr.mxu1 %v9621_v52  ;;  %8982 = vmatprep.subr.mxu0 %v9622_v37 }
0x1a80   :  { %8939 = vmatpush3.msra.mxu1 %v9623_v42  ;;  %8983 = vmatpush3.msra.mxu0 %v9624_v59  ;;  %v9682_v42 = vld [vmem:[#allocation4 + $0x8] sm:$0xff] }
0x1a81   :  { %8268 = vmatmul.mubr.msk.f32.gmra.mxu1 %vm320_vm1, %v12864_v51  ;;  %8272 = vmatmul.mubr.msk.f32.gmra.mxu0 %vm320_vm1, %v12864_v51  ;;  %v9628_v51 = vld [vmem:[%s13485_s5 + $0x188] sm:$0xff] }
0x1a82   :  { %7180 = vmatprep.mubr.f32.mxu1 %v13524_v55  ;;  %7269 = vmatprep.mubr.f32.mxu0 %v13524_v55  ;;  %v9629_v55 = vld [vmem:[%s13485_s5 + $0x100] sm:$0xff] }
0x1a83   :  { %8940 = vmatprep.subr.mxu1 %v9625_v6  ;;  %8984 = vmatprep.subr.mxu0 %v9626_v50  ;;  %v9683_v6 = vld [vmem:[#allocation4 + $0x18] sm:$0xff] }
0x1a84   :  { %8941 = vmatpush3.msra.mxu1 %v9627_v2  ;;  %8985 = vmatpush3.msra.mxu0 %v9628_v51  ;;  %v9684_v2 = vld [vmem:[#allocation4] sm:$0xff] }
0x1a85   :  { %8269 = vmatmul.mubr.msk.f32.gmra.mxu1 %vm320_vm1, %v12893_v47  ;;  %8273 = vmatmul.mubr.msk.f32.gmra.mxu0 %vm320_vm1, %v12893_v47  ;;  %v9633_v47 = vld [vmem:[%s13485_s5 + $0xf8] sm:$0xff] }
0x1a86   :  { %8942 = vmatprep.subr.mxu1 %v9629_v55  ;;  %8986 = vmatprep.subr.mxu0 %v9630_v31 }
0x1a87   :  { %8943 = vmatpush3.msra.mxu1 %v9631_v19  ;;  %8987 = vmatpush3.msra.mxu0 %v9632_v28  ;;  %v9685_v28 = vld [vmem:[#allocation4 + $0x30] sm:$0xff] }
0x1a88   :  { %8944 = vmatprep.subr.mxu1 %v9633_v47  ;;  %8988 = vmatprep.subr.mxu0 %v9634_v38 }
0x1a89   :  { %8945 = vmatpush3.msra.mxu1 %v9635_v4  ;;  %8989 = vmatpush3.msra.mxu0 %v9636_v23  ;;  %v9686_v4 = vld [vmem:[#allocation4 + $0x28] sm:$0xff] }
0x1a8a   :  { %8946 = vmatprep.subr.mxu1 %v9637_v12  ;;  %8990 = vmatprep.subr.mxu0 %v9638_v0  ;;  %v9687_v12 = vld [vmem:[#allocation4 + $0x38] sm:$0xff] }
0x1a8b   :  { %8947 = vmatpush3.msra.mxu1 %v9639_v33  ;;  %8991 = vmatpush3.msra.mxu0 %v9640_v44  ;;  %v9688_v33 = vld [vmem:[#allocation4 + $0x20] sm:$0xff] }
0x1a8c   :  { %8948 = vmatprep.subr.mxu1 %v9641_v22  ;;  %8992 = vmatprep.subr.mxu0 %v9642_v3 }
0x1a8d   :  { %8949 = vmatpush3.msra.mxu1 %v9643_v39  ;;  %8993 = vmatpush3.msra.mxu0 %v9644_v18  ;;  %v9689_v18 = vld [vmem:[#allocation4 + $0x50] sm:$0xff] }
0x1a8e   :  { %8950 = vmatprep.subr.mxu1 %v9645_v63  ;;  %8994 = vmatprep.subr.mxu0 %v9646_v11 }
0x1a8f   :  { %8951 = vmatpush3.msra.mxu1 %v9647_v36  ;;  %8995 = vmatpush3.msra.mxu0 %v9648_v56  ;;  %v9690_v36 = vld [vmem:[#allocation4 + $0x48] sm:$0xff] }
0x1a90   :  { %8952 = vmatprep.subr.mxu1 %v9649_v62  ;;  %8996 = vmatprep.subr.mxu0 %v9650_v25  ;;  %v9691_v62 = vld [vmem:[#allocation4 + $0x58] sm:$0xff] }
0x1a91   :  { %8953 = vmatpush3.msra.mxu1 %v9651_v54  ;;  %8997 = vmatpush3.msra.mxu0 %v9652_v46  ;;  %v9692_v54 = vld [vmem:[#allocation4 + $0x40] sm:$0xff] }
0x1a92   :  { %8954 = vmatprep.subr.mxu1 %v9653_v16  ;;  %8998 = vmatprep.subr.mxu0 %v9654_v9 }
0x1a93   :  { %8955 = vmatpush3.msra.mxu1 %v9655_v32  ;;  %8999 = vmatpush3.msra.mxu0 %v9656_v43  ;;  %v9693_v43 = vld [vmem:[#allocation4 + $0x70] sm:$0xff] }
0x1a94   :  { %8956 = vmatprep.subr.mxu1 %v9657_v26  ;;  %9000 = vmatprep.subr.mxu0 %v9658_v8 }
0x1a95   :  { %8957 = vmatpush3.msra.mxu1 %v9659_v53  ;;  %9001 = vmatpush3.msra.mxu0 %v9660_v24  ;;  %v9694_v53 = vld [vmem:[#allocation4 + $0x68] sm:$0xff] }
0x1a96   :  { %8958 = vmatprep.subr.mxu1 %v9661_v1  ;;  %9002 = vmatprep.subr.mxu0 %v9662_v58  ;;  %v9695_v1 = vld [vmem:[#allocation4 + $0x78] sm:$0xff] }
0x1a97   :  { %8959 = vmatpush3.msra.mxu1 %v9663_v30  ;;  %9003 = vmatpush3.msra.mxu0 %v9664_v7  ;;  %v9696_v30 = vld [vmem:[#allocation4 + $0x60] sm:$0xff] }
0x1a98   :  { %8960 = vmatprep.subr.mxu1 %v9665_v49  ;;  %9004 = vmatprep.subr.mxu0 %v9666_v61  ;;  %v8168_v49 = vld [vmem:[%s13487_s7 + $0x90] sm:$0xff]  ;;  %v8167_v61 = vld [vmem:[%s13487_s7 + $0x88] sm:$0xff] }
0x1a99   :  { %8961 = vmatpush3.msra.mxu1 %v9667_v41  ;;  %9005 = vmatpush3.msra.mxu0 %v9668_v40  ;;  %v8166_v41 = vld [vmem:[%s13487_s7 + $0x80] sm:$0xff]  ;;  %v8165_v40 = vld [vmem:[%s13487_s7 + $0x78] sm:$0xff] }
0x1a9a   :  { %8962 = vmatprep.subr.mxu1 %v9669_v10  ;;  %9006 = vmatprep.subr.mxu0 %v9670_v60  ;;  %v13399_v10 = vld [vmem:[%s13487_s7 + $0x98] sm:$0xf] }
0x1a9b   :  { %8963 = vmatpush3.msra.mxu1 %v9671_v20  ;;  %9007 = vmatpush3.msra.mxu0 %v9672_v15  ;;  %v13588_v15 = vld [vmem:[#allocation8_spill] sm:$0xff] }
0x1a9c   :  { %8964 = vmatprep.subr.mxu1 %v9673_v17  ;;  %9008 = vmatprep.subr.mxu0 %v9674_v29  ;;  %v7295_v17 = vrot.slane %v13399_v10, %v13588_v15 }
0x1a9d   :  { %8965 = vmatpush3.msra.mxu1 %v9675_v45  ;;  %9009 = vmatpush3.msra.mxu0 %v9676_v13 }
0x1a9e   :  { %8966 = vmatprep.subr.mxu1 %v9677_v21  ;;  %9010 = vmatprep.subr.mxu0 %v9678_v35 }
0x1a9f   :  { %8967 = vmatpush3.msra.mxu1 %v9679_v27  ;;  %9011 = vmatpush3.msra.mxu0 %v9680_v14 }
0x1aa0   :  { %9104 = vmatprep.subr.mxu1 %v8168_v49 }
0x1b39   :  { %v7164_v57 = vpop.f32.mrf.mxu1  ;;  %v7253_v5 = vpop.f32.mrf.mxu0 }
0x1b3a   :  { %v7278_v52 = vmul.f32 %v9681_v48, %v7253_v5  ;;  %v7276_v51 = vmul.f32 %v9684_v2, %v7164_v57 }
0x1b3b   :  { %v7166_v34 = vpop.f32.mrf.mxu1  ;;  %v7255_v37 = vpop.f32.mrf.mxu0 }
0x1b3c   :  { %v7277_v59 = vmul.f32 %v9682_v42, %v7166_v34  ;;  %v7279_v50 = vmul.f32 %v9683_v6, %v7255_v37 }
0x1b3d   :  { %v7170_v55 = vpop.f32.mrf.mxu1  ;;  %v7259_v31 = vpop.f32.mrf.mxu0 }
0x1b3e   :  { %7360 = vmatprep.mubr.f32.mxu1 %v7277_v59  ;;  %7445 = vmatprep.mubr.f32.mxu0 %v7279_v50  ;;  %v7282_v47 = vmul.f32 %v9685_v28, %v7259_v31  ;;  %v7280_v44 = vmul.f32 %v9688_v33, %v7170_v55 }
0x1b3f   :  { %v7172_v19 = vpop.f32.mrf.mxu1  ;;  %7361 = vmatmul.mubr.f32.vlgmr.msra.gmra.mxu1 %v7276_v51  ;;  %v7261_v38 = vpop.f32.mrf.mxu0  ;;  %7446 = vmatmul.mubr.f32.vlgmr.msra.gmra.mxu0 %v7278_v52 }
0x1b40   :  { %v7281_v23 = vmul.f32 %v9686_v4, %v7172_v19  ;;  %v7283_v0 = vmul.f32 %v9687_v12, %v7261_v38  ;;  %9105 = vmatpush3.msra.mxu1 %v8168_v49  ;;  %v7651_v49 = vld [vmem:[%s13488_s8] sm:$0xff] }
0x1b41   :  { %v7176_v22 = vpop.f32.mrf.mxu1  ;;  %v7265_v3 = vpop.f32.mrf.mxu0  ;;  %9106 = vmatprep.subr.mxu1 %v8167_v61 }
0x1b42   :  { %7365 = vmatprep.mubr.f32.mxu1 %v7281_v23  ;;  %7450 = vmatprep.mubr.f32.mxu0 %v7283_v0  ;;  %v7286_v63 = vmul.f32 %v9689_v18, %v7265_v3  ;;  %v7284_v46 = vmul.f32 %v9692_v54, %v7176_v22 }
0x1b43   :  { %v7178_v39 = vpop.f32.mrf.mxu1  ;;  %7366 = vmatmul.mubr.f32.gmra.mxu1 %v7280_v44  ;;  %v7267_v11 = vpop.f32.mrf.mxu0  ;;  %7451 = vmatmul.mubr.f32.gmra.mxu0 %v7282_v47  ;;  %v13589_v44 = vld [vmem:[#allocation9_spill] sm:$0xff] }
0x1b44   :  { %v7285_v56 = vmul.f32 %v9690_v36, %v7178_v39  ;;  %v7287_v25 = vmul.f32 %v9691_v62, %v7267_v11  ;;  %9107 = vmatpush3.msra.mxu1 %v8167_v61  ;;  %v7469_v22 = vrot.slane %v13399_v10, %v13589_v44 }
0x1b45   :  { %v7182_v16 = vpop.f32.mrf.mxu1  ;;  %v7271_v9 = vpop.f32.mrf.mxu0  ;;  %9108 = vmatprep.subr.mxu1 %v8166_v41 }
0x1b46   :  { %7370 = vmatprep.mubr.f32.mxu1 %v7285_v56  ;;  %7455 = vmatprep.mubr.f32.mxu0 %v7287_v25  ;;  %v7290_v26 = vmul.f32 %v9693_v43, %v7271_v9  ;;  %v7288_v7 = vmul.f32 %v9696_v30, %v7182_v16  ;;  %v7653_v30 = vld [vmem:[%s13488_s8 + $0x10] sm:$0xff] }
0x1b47   :  { %v7184_v32 = vpop.f32.mrf.mxu1  ;;  %7371 = vmatmul.mubr.f32.gmra.mxu1 %v7284_v46  ;;  %v7273_v8 = vpop.f32.mrf.mxu0  ;;  %7456 = vmatmul.mubr.f32.gmra.mxu0 %v7286_v63 }
0x1b48   :  { %v7289_v24 = vmul.f32 %v9694_v53, %v7184_v32  ;;  %v7291_v58 = vmul.f32 %v9695_v1, %v7273_v8  ;;  %9109 = vmatpush3.msra.mxu1 %v8166_v41 }
0x1b49   :  { %9110 = vmatprep.subr.mxu1 %v8165_v40 }
0x1b4a   :  { %7375 = vmatprep.mubr.f32.mxu1 %v7289_v24  ;;  %7460 = vmatprep.mubr.f32.mxu0 %v7291_v58  ;;  %v7654_v58 = vld [vmem:[%s13488_s8 + $0x18] sm:$0xff] }
0x1b4b   :  { %7376 = vmatmul.mubr.f32.gmra.mxu1 %v7288_v7  ;;  %7461 = vmatmul.mubr.f32.gmra.mxu0 %v7290_v26  ;;  %v7652_v7 = vld [vmem:[%s13488_s8 + $0x8] sm:$0xff] }
0x1b4c   :  { %9111 = vmatpush3.msra.mxu1 %v8165_v40  ;;  %9118 = vmatprep.subr.mxu0 %v7654_v58 }
0x1b4d   :  { %9119 = vmatpush3.msra.mxu0 %v7654_v58 }
0x1b4e   :  { %9120 = vmatprep.subr.mxu0 %v7653_v30 }
0x1b4f   :  { %9121 = vmatpush3.msra.mxu0 %v7653_v30  ;;  %v13594_v30 = vld [vmem:[#allocation13_spill] sm:$0xff] }
0x1b50   :  { %9122 = vmatprep.subr.mxu0 %v7652_v7 }
0x1b51   :  { %9123 = vmatpush3.msra.mxu0 %v7652_v7  ;;  %v13595_v7 = vld [vmem:[#allocation14_spill] sm:$0xff] }
0x1b52   :  { %9124 = vmatprep.subr.mxu0 %v7651_v49 }
0x1b53   :  { %9125 = vmatpush3.msra.mxu0 %v7651_v49 }
0x1bff   :  { %v8968_v60 = vpop.f32.mrf.mxu1  ;;  %v9012_v20 = vpop.f32.mrf.mxu0 }
0x1c01   :  { %v8969_v29 = vpop.f32.mrf.mxu1  ;;  %v9013_v45 = vpop.f32.mrf.mxu0 }
0x1c02   :  { %v8970_v13 = vadd.f32 %v8969_v29, %v8968_v60  ;;  %v9014_v14 = vadd.f32 %v9013_v45, %v9012_v20 }
0x1c03   :  { %v8971_v21 = vpop.f32.mrf.mxu1  ;;  %v9015_v35 = vpop.f32.mrf.mxu0 }
0x1c04   :  { %v7363_v27 = vadd.f32 %v8970_v13, %v7295_v17 }
0x1c05   :  { %v8972_v57 = vpop.f32.mrf.mxu1  ;;  %v9016_v5 = vpop.f32.mrf.mxu0 }
0x1c06   :  { %v7448_v34 = vadd.f32 %v9014_v14, %v7363_v27  ;;  %v8973_v48 = vadd.f32 %v8972_v57, %v8971_v21  ;;  %v9017_v59 = vadd.f32 %v9016_v5, %v9015_v35 }
0x1c07   :  { %v8974_v52 = vpop.f32.mrf.mxu1  ;;  %v9018_v37 = vpop.f32.mrf.mxu0 }
0x1c08   :  { %v7368_v42 = vadd.f32 %v8973_v48, %v7295_v17  ;;  %9112 = vmatprep.mubr.msk.f32.mxu1 %vm320_vm1, %v7448_v34 }
0x1c09   :  { %v8975_v6 = vpop.f32.mrf.mxu1  ;;  %v9019_v50 = vpop.f32.mrf.mxu0 }
0x1c0a   :  { %v7453_v2 = vadd.f32 %v9017_v59, %v7368_v42  ;;  %v8976_v51 = vadd.f32 %v8975_v6, %v8974_v52  ;;  %v9020_v28 = vadd.f32 %v9019_v50, %v9018_v37 }
0x1c0b   :  { %v8977_v55 = vpop.f32.mrf.mxu1  ;;  %v9021_v31 = vpop.f32.mrf.mxu0 }
0x1c0c   :  { %v7373_v19 = vadd.f32 %v8976_v51, %v7295_v17  ;;  %9113 = vmatmul.mubr.msk.f32.vlgmr.msra.gmra.mxu1 %vm320_vm1, %v7453_v2 }
0x1c0d   :  { %v8978_v47 = vpop.f32.mrf.mxu1  ;;  %v9022_v38 = vpop.f32.mrf.mxu0 }
0x1c0e   :  { %v7458_v4 = vadd.f32 %v9020_v28, %v7373_v19  ;;  %v8979_v23 = vadd.f32 %v8978_v47, %v8977_v55  ;;  %v9023_v0 = vadd.f32 %v9022_v38, %v9021_v31  ;;  %v13590_v19 = vld [vmem:[#allocation10_spill] sm:$0xff] }
0x1c0f   :  { %v7630_v28 = vrot.slane %v13399_v10, %v13590_v19 }
0x1c10   :  { %v7378_v12 = vadd.f32 %v8979_v23, %v7295_v17  ;;  %9115 = vmatprep.mubr.msk.f32.mxu1 %vm320_vm1, %v7458_v4 }
0x1c12   :  { %v7463_v33 = vadd.f32 %v9023_v0, %v7378_v12  ;;  %v13591_v12 = vld [vmem:[#allocation11_spill] sm:$0xff] }
0x1c13   :  { %v7638_v0 = vrot.slane %v13399_v10, %v13591_v12  ;;  %v13593_v10 = vld [vmem:[#allocation12_spill] sm:$0xff] }
0x1c14   :  { %9116 = vmatmul.mubr.msk.f32.gmra.mxu1 %vm320_vm1, %v7463_v33 }
0x1ccc   :  { %v9114_v3 = vpop.f32.mrf.mxu1 }
0x1ccd   :  { %v13409_v39 = vadd.f32 %v9114_v3, %v7469_v22 }
0x1cce   :  { %v7548_v18 = vpop.f32.mrf.mxu1 }
0x1ccf   :  { %v13411_v63 = vadd.f32 %v7548_v18, %v7469_v22  ;;  %v7570_v11 = vsel %vm320_vm1, %v13409_v39, 0.0  ;;  %v7584_v36 = vmul.f32 %v13409_v39, %v13409_v39 }
0x1cd0   :  { %7571 = vadd.xlane.f32.xlu1 %v7570_v11 }
0x1cd1   :  { %v7567_v56 = vsel %vm320_vm1, %v13411_v63, 0.0  ;;  %v7583_v62 = vmul.f32 %v13411_v63, %v13411_v63  ;;  %v7590_v25 = vsel %vm320_vm1, %v7584_v36, 0.0 }
0x1cd2   :  { %7568 = vadd.xlane.f32.xlu0 %v7567_v56 }
0x1cd3   :  { %v7587_v16 = vsel %vm320_vm1, %v7583_v62, 0.0 }
0x1cd4   :  { %7591 = vadd.xlane.f32.xlu1 %v7590_v25  ;;  %v9117_v54 = vpop.f32.mrf.mxu1 }
0x1cd5   :  { %v13422_v46 = vadd.f32 %v9117_v54, %v7469_v22 }
0x1cd6   :  { %7588 = vadd.xlane.f32.xlu0 %v7587_v16  ;;  %v7558_v9 = vpop.f32.mrf.mxu1 }
0x1cd7   :  { %v13425_v32 = vadd.f32 %v7558_v9, %v7469_v22  ;;  %v7576_v43 = vsel %vm320_vm1, %v13422_v46, 0.0  ;;  %v7586_v26 = vmul.f32 %v13422_v46, %v13422_v46 }
0x1cd8   :  { %7577 = vadd.xlane.f32.xlu1 %v7576_v43 }
0x1cd9   :  { %v7573_v8 = vsel %vm320_vm1, %v13425_v32, 0.0  ;;  %v7585_v53 = vmul.f32 %v13425_v32, %v13425_v32  ;;  %v7596_v24 = vsel %vm320_vm1, %v7586_v26, 0.0 }
0x1cda   :  { %7574 = vadd.xlane.f32.xlu0 %v7573_v8 }
0x1cdb   :  { %v7593_v1 = vsel %vm320_vm1, %v7585_v53, 0.0 }
0x1cdc   :  { %7597 = vadd.xlane.f32.xlu1 %v7596_v24 }
0x1cde   :  { %7594 = vadd.xlane.f32.xlu0 %v7593_v1 }
0x1d59   :  { %v7572_v61 = vpop.xlane.xlu1 %7571 }
0x1d5a   :  { %v7580_v41 = vmul.f32 0.03125, %v7572_v61  ;;  %v8278_v61 = vld [vmem:[%s13488_s8 + $0x20] ss:$0 sm:$0xff] }
0x1d5b   :  { %v7569_v40 = vpop.xlane.xlu0 %7568 }
0x1d5c   :  { %v7579_v60 = vmul.f32 0.03125, %v7569_v40  ;;  %v7604_v15 = vmul.f32 %v7580_v41, %v7580_v41  ;;  %v7612_v47 = vsub.f32 %v13409_v39, %v7580_v41 }
0x1d5d   :  { %v7592_v20 = vpop.xlane.xlu1 %7591 }
0x1d5e   :  { %v7600_v17 = vmul.f32 0.03125, %v7592_v20  ;;  %v7603_v45 = vmul.f32 %v7579_v60, %v7579_v60  ;;  %v7611_v4 = vsub.f32 %v13411_v63, %v7579_v60  ;;  %v13592_v63 = vld [vmem:[#allocation20_spill] sm:$0xff] }
0x1d5f   :  { %v7589_v29 = vpop.xlane.xlu0 %7588 }
0x1d60   :  { %v7608_v13 = vsub.f32 %v7600_v17, %v7604_v15  ;;  %v7599_v21 = vmul.f32 0.03125, %v7589_v29 }
0x1d61   :  { %v7578_v35 = vpop.xlane.xlu1 %7577 }
0x1d62   :  { %v7616_v27 = vadd.f32 1e-05, %v7608_v13  ;;  %v7607_v14 = vsub.f32 %v7599_v21, %v7603_v45  ;;  %v7582_v57 = vmul.f32 0.03125, %v7578_v35 }
0x1d63   :  { %v7575_v5 = vpop.xlane.xlu0 %7574 }
0x1d64   :  { %9225 = vrsqrt.f32 %v7616_v27  ;;  %v7615_v34 = vadd.f32 1e-05, %v7607_v14  ;;  %v7581_v48 = vmul.f32 0.03125, %v7575_v5  ;;  %v7606_v37 = vmul.f32 %v7582_v57, %v7582_v57 }
0x1d65   :  { %v7598_v52 = vpop.xlane.xlu1 %7597  ;;  %v7614_v11 = vsub.f32 %v13422_v46, %v7582_v57 }
0x1d66   :  { %9227 = vrsqrt.f32 %v7615_v34  ;;  %v7602_v42 = vmul.f32 0.03125, %v7598_v52  ;;  %v7605_v6 = vmul.f32 %v7581_v48, %v7581_v48  ;;  %v7613_v25 = vsub.f32 %v13425_v32, %v7581_v48 }
0x1d67   :  { %v7595_v59 = vpop.xlane.xlu0 %7594 }
0x1d68   :  { %v7610_v50 = vsub.f32 %v7602_v42, %v7606_v37  ;;  %v7601_v2 = vmul.f32 0.03125, %v7595_v59 }
0x1d6a   :  { %v7618_v51 = vadd.f32 1e-05, %v7610_v50  ;;  %v7609_v55 = vsub.f32 %v7601_v2, %v7605_v6 }
0x1d6c   :  { %9229 = vrsqrt.f32 %v7618_v51  ;;  %v7617_v31 = vadd.f32 1e-05, %v7609_v55 }
0x1d6e   :  { %9231 = vrsqrt.f32 %v7617_v31 }
0x1d71   :  { %v9226_v38 = vpop.eup %9225 }
0x1d72   :  { %v7624_v23 = vmul.f32 %v9226_v38, %v7612_v47 }
0x1d73   :  { %v9228_v33 = vpop.eup %9227 }
0x1d74   :  { %v7632_v44 = vmul.f32 %v7630_v28, %v7624_v23  ;;  %v7623_v22 = vmul.f32 %v9228_v33, %v7611_v4 }
0x1d76   :  { %v7631_v3 = vmul.f32 %v7630_v28, %v7623_v22  ;;  %v7640_v18 = vadd.f32 %v7638_v0, %v7632_v44 }
0x1d78   :  { %v7639_v36 = vadd.f32 %v7638_v0, %v7631_v3  ;;  %v7644_v62 = vmax.f32 %v7640_v18, 0.0 }
0x1d79   :  { %v9230_v56 = vpop.eup %9229 }
0x1d7a   :  { %v7626_v39 = vmul.f32 %v9230_v56, %v7614_v11  ;;  %v7643_v54 = vmax.f32 %v7639_v36, 0.0  ;;  %v7648_v8 = vadd.f32 %v7644_v62, %v13593_v10 }
0x1d7b   :  { %v9232_v16 = vpop.eup %9231 }
0x1d7c   :  { %v7647_v9 = vadd.f32 %v7643_v54, %v13592_v63  ;;  %v7625_v43 = vmul.f32 %v9232_v16, %v7613_v25  ;;  %v7634_v26 = vmul.f32 %v7630_v28, %v7626_v39 }
0x1d7e   :  { %9126 = vmatprep.mubr.msk.f32.mxu0 %vm320_vm1, %v7647_v9  ;;  %v7633_v53 = vmul.f32 %v7630_v28, %v7625_v43  ;;  %v7642_v24 = vadd.f32 %v7638_v0, %v7634_v26 }
0x1d7f   :  { %9127 = vmatmul.mubr.msk.f32.vlgmr.msra.gmra.mxu0 %vm320_vm1, %v7648_v8 }
0x1d80   :  { %v7641_v46 = vadd.f32 %v7638_v0, %v7633_v53  ;;  %v7646_v1 = vmax.f32 %v7642_v24, 0.0 }
0x1d82   :  { %v7645_v58 = vmax.f32 %v7641_v46, 0.0  ;;  %v7650_v49 = vadd.f32 %v7646_v1, %v13595_v7 }
0x1d84   :  { %v7649_v32 = vadd.f32 %v7645_v58, %v13594_v30 }
0x1d86   :  { %9129 = vmatprep.mubr.msk.f32.mxu0 %vm320_vm1, %v7649_v32 }
0x1d87   :  { %9130 = vmatmul.mubr.msk.f32.gmra.mxu0 %vm320_vm1, %v7650_v49 }
0x1e3f   :  { %v9128_v41 = vpop.f32.mrf.mxu0 }
0x1e40   :  { %v7744_v40 = vadd.f32 %v9128_v41, %v8278_v61 }
0x1e41   :  { %v7738_v60 = vpop.f32.mrf.mxu0 }
0x1e42   :  { %7758 = vst [vmem:[%s13489_s9 + $0x8] sm:$0xff] %v7744_v40  ;;  %v7739_v20 = vadd.f32 %v8278_v61, %v7738_v60 }
0x1e44   :  { %7757 = vst [vmem:[%s13489_s9] sm:$0xff] %v7739_v20 }
0x1e47   :  { %v9131_v15 = vpop.f32.mrf.mxu0 }
0x1e48   :  { %v7754_v17 = vadd.f32 %v9131_v15, %v8278_v61 }
0x1e49   :  { %v7748_v29 = vpop.f32.mrf.mxu0 }
0x1e4a   :  { %7760 = vst [vmem:[%s13489_s9 + $0x18] sm:$0xff] %v7754_v17  ;;  %v7749_v45 = vadd.f32 %v8278_v61, %v7748_v29 }
0x1e4c   :  { %7759 = vst [vmem:[%s13489_s9 + $0x10] sm:$0xff] %v7749_v45 }
0x1e4d   :  { %7765 = vsyncpa [#allocation3], 1 }
0x1e4e   :  { %7766 = vsyncpa [#allocation5], 1 }

</bundles_post_ra>
